<compile_context>
chip_gen: v5e
topology: v5e:2x2
jax: 0.10.0
libtpu: 0.0.40
codegen_flags: <defaults>
</compile_context>

<pallas_src>
import functools

import jax
import jax.numpy as jnp
from jax.experimental import pallas as pl
from jax.experimental.pallas import tpu as pltpu


# ----------------------------------------------------------------------------
# Fused direct-conv Pallas kernel (flattened shifted-window formulation)
#
#   out[n] = conv_taps( border_mask * leaky_relu( x[n]*scale + shift ) ) + bias
#            (+ residual[n])
#   optional epilogue: per-channel sum / centered sum-of-squares of out[n]
#   (fused BatchNorm statistics).
# ----------------------------------------------------------------------------
def _make_conv_kernel(tap_offsets, *, fuse_lrelu, has_affine, has_residual,
                      compute_stats, valid_count):
    def kernel(*refs):
        xs_ref = refs[-1]                       # VMEM staging scratch (Hp*Wp, Cin) bf16
        refs = refs[:-1]
        it = iter(refs)
        x_ref = next(it)                        # (1, Hp*Wp, Cin)   bf16
        w_ref = next(it)                        # (taps, Cin, Cout) bf16
        b_ref = next(it)                        # (1, Cout)         f32
        if has_affine:
            sc_ref = next(it)                   # (1, Cin) f32   folded BN scale
            sh_ref = next(it)                   # (1, Cin) f32   folded BN shift
            bm_ref = next(it)                   # (1, Hp*Wp, 1)  conv-padding border mask
        if has_residual:
            r_ref = next(it)                    # (1, Mrows, Cout) bf16
        if compute_stats:
            v_ref = next(it)                    # (1, Mrows, 1) f32 valid-row mask
        o_ref = next(it)                        # (1, Mrows, Cout)
        if compute_stats:
            s_ref = next(it)                    # (1, 1, Cout) f32
            q_ref = next(it)                    # (1, 1, Cout) f32

        m_rows = o_ref.shape[1]
        cout = o_ref.shape[2]

        # ---- input prologue (once per image, f32 elementwise: v5e-safe) ----
        x = x_ref[0].astype(jnp.float32)
        if has_affine:
            # Folded BatchNorm affine of the previous decoder level; the mask
            # re-zeros the conv's zero-padding border (the shift would
            # otherwise leak into the padded region).
            x = (x * sc_ref[...] + sh_ref[...]) * bm_ref[0]
        if fuse_lrelu:
            x = jnp.where(x >= 0.0, x, 0.01 * x)
        xs_ref[...] = x.astype(jnp.bfloat16)    # bf16 MXU operand, staged once

        # ---- tap walk: shifted contiguous windows of the flat image -------
        acc = jnp.zeros((m_rows, cout), jnp.float32)
        for t, off in enumerate(tap_offsets):   # static unroll (<= 9 taps)
            win = xs_ref[pl.ds(off, m_rows), :]
            acc = acc + jnp.dot(win, w_ref[t],
                                preferred_element_type=jnp.float32)

        out = acc + b_ref[...]
        if has_residual:
            out = out + r_ref[0].astype(jnp.float32)
        if compute_stats:
            # Per-block sum and CENTERED sum of squares over valid rows only;
            # combined across (image, phase) blocks with Chan's formula in JAX.
            v = v_ref[0]
            s = jnp.sum(out * v, axis=0, keepdims=True)
            mu = s * (1.0 / valid_count)
            d = (out - mu) * v
            s_ref[0] = s
            q_ref[0] = jnp.sum(d * d, axis=0, keepdims=True)
        o_ref[0] = out.astype(o_ref.dtype)

    return kernel


def _flatten_rows(a, wp):
    """(N, Ho, Wo, C) -> (N, (Ho-1)*wp + Wo, C) in the padded-flat row layout."""
    n, ho, wo, c = a.shape
    a = jnp.pad(a, ((0, 0), (0, 0), (0, wp - wo), (0, 0)))
    a = a.reshape(n, ho * wp, c)
    return a[:, :(ho - 1) * wp + wo, :]


def _unflatten_rows(a, ho, wo, wp):
    """Inverse of _flatten_rows (drops the garbage columns)."""
    n, m, c = a.shape
    a = jnp.pad(a, ((0, 0), (0, ho * wp - m), (0, 0)))
    return a.reshape(n, ho, wp, c)[:, :, :wo, :]


def fused_conv(x_pad, spatial, w_taps, bias, *, kh, kw, residual=None,
               scale=None, shift=None, fuse_lrelu=True, compute_stats=False,
               conv_pad=1, out_dtype=jnp.bfloat16):
    """Fused direct conv on a zero-padded NHWC activation.

    x_pad: (N, Hp, Wp, Cin) with Hp = Ho+kh-1, Wp = Wo+kw-1.
    w_taps: (kh*kw, Cin, Cout) per-tap weight matrices.
    Output is returned in the padded-flat row layout (N, (Ho-1)*Wp+Wo, Cout);
    use _unflatten_rows.  When compute_stats, also returns per-image BN
    sum / centered-sumsq blocks of shape (N, 1, Cout).
    """
    n, hp, wp, cin = x_pad.shape
    ho, wo = spatial
    assert hp == ho + kh - 1 and wp == wo + kw - 1
    taps, cin_w, cout = w_taps.shape
    assert taps == kh * kw and cin_w == cin
    m_rows = (ho - 1) * wp + wo
    has_affine = scale is not None
    has_residual = residual is not None
    tap_offsets = tuple(di * wp + dj for di in range(kh) for dj in range(kw))

    x_flat = x_pad.reshape(n, hp * wp, cin).astype(jnp.bfloat16)

    in_specs = [
        pl.BlockSpec((1, hp * wp, cin), lambda i: (i, 0, 0)),
        pl.BlockSpec((taps, cin, cout), lambda i: (0, 0, 0)),
        pl.BlockSpec((1, cout), lambda i: (0, 0)),
    ]
    args = [x_flat, w_taps.astype(jnp.bfloat16),
            bias.reshape(1, cout).astype(jnp.float32)]

    if has_affine:
        border = jnp.zeros((hp, wp), jnp.float32)
        border = border.at[conv_pad:hp - conv_pad, conv_pad:wp - conv_pad].set(1.0)
        border = border.reshape(1, hp * wp, 1)
        in_specs += [pl.BlockSpec((1, cin), lambda i: (0, 0)),
                     pl.BlockSpec((1, cin), lambda i: (0, 0)),
                     pl.BlockSpec((1, hp * wp, 1), lambda i: (0, 0, 0))]
        args += [scale.reshape(1, cin).astype(jnp.float32),
                 shift.reshape(1, cin).astype(jnp.float32), border]
    if has_residual:
        in_specs.append(pl.BlockSpec((1, m_rows, cout), lambda i: (i, 0, 0)))
        args.append(_flatten_rows(residual, wp).astype(jnp.bfloat16))
    if compute_stats:
        valid = (jnp.arange(m_rows) % wp < wo).astype(jnp.float32)
        in_specs.append(pl.BlockSpec((1, m_rows, 1), lambda i: (0, 0, 0)))
        args.append(valid.reshape(1, m_rows, 1))

    out_shape = [jax.ShapeDtypeStruct((n, m_rows, cout), out_dtype)]
    out_specs = [pl.BlockSpec((1, m_rows, cout), lambda i: (i, 0, 0))]
    if compute_stats:
        out_shape += [jax.ShapeDtypeStruct((n, 1, cout), jnp.float32)] * 2
        out_specs += [pl.BlockSpec((1, 1, cout), lambda i: (i, 0, 0))] * 2

    kernel = _make_conv_kernel(
        tap_offsets, fuse_lrelu=fuse_lrelu, has_affine=has_affine,
        has_residual=has_residual, compute_stats=compute_stats,
        valid_count=ho * wo)

    return pl.pallas_call(
        kernel,
        out_shape=tuple(out_shape) if compute_stats else out_shape[0],
        grid=(n,),
        in_specs=in_specs,
        out_specs=tuple(out_specs) if compute_stats else out_specs[0],
        scratch_shapes=[pltpu.VMEM((hp * wp, cin), jnp.bfloat16)],
        compiler_params=pltpu.CompilerParams(
            dimension_semantics=("parallel",)),
    )(*args)


# ----------------------------------------------------------------------------
# Weight / layout builders (trace-time JAX glue, tiny tensors)
# ----------------------------------------------------------------------------
def _conv3x3_weight(w_oihw):
    """Conv2d weight (Cout, Cin, 3, 3) -> per-tap (9, Cin, Cout)."""
    cout, cin = w_oihw.shape[0], w_oihw.shape[1]
    return jnp.transpose(w_oihw, (2, 3, 1, 0)).reshape(9, cin, cout)


def _downconv_weight(w_oihw):
    """Stride-2 3x3 conv -> 2x2-tap conv over the space-to-depth packed input.

    Returns (4, 4*Cin, Cout); tap t = p*2+q, packed input channel
    (a*2+b)*Cin + cin corresponds to original tap (2p+a, 2q+b) (zero if > 2).
    """
    cout, cin = w_oihw.shape[0], w_oihw.shape[1]
    w = jnp.transpose(w_oihw, (2, 3, 1, 0))                 # (3, 3, Cin, Cout)
    wt = jnp.zeros((2, 2, 2, 2, cin, cout), jnp.float32)    # (p, q, a, b, ci, co)
    for p in range(2):
        for a in range(2):
            di = 2 * p + a
            if di > 2:
                continue
            for q in range(2):
                for b in range(2):
                    dj = 2 * q + b
                    if dj > 2:
                        continue
                    wt = wt.at[p, q, a, b].set(w[di, dj])
    return wt.reshape(4, 4 * cin, cout)


def _upconv_weight(w_iohw):
    """ConvTranspose2d(k=4,s=2,p=1) weight (Cin,Cout,4,4) -> phase-packed
    3x3-tap weight (9, Cin, 4*Cout); output column = ph*Cout + cout with
    ph = rh*2 + rw, i.e. output pixel (2i+rh, 2j+rw)."""
    cin, cout = w_iohw.shape[0], w_iohw.shape[1]
    wt = jnp.zeros((3, 3, cin, 4, cout), jnp.float32)
    for rh in range(2):
        for rw in range(2):
            ph = rh * 2 + rw
            for p in range(2):
                for q in range(2):
                    di, dj = p + rh, q + rw
                    kh = (3 - 2 * p) if rh == 0 else (2 - 2 * p)
                    kw = (3 - 2 * q) if rw == 0 else (2 - 2 * q)
                    wt = wt.at[di, dj, :, ph, :].set(w_iohw[:, :, kh, kw])
    return wt.reshape(9, cin, 4 * cout)


def _space_to_depth2(xp):
    """(N, 2h, 2w, C) -> (N, h, w, 4*C); packed channel (a*2+b)*C + c holds
    source pixel (2u+a, 2v+b)."""
    n, h2, w2, c = xp.shape
    t = xp.reshape(n, h2 // 2, 2, w2 // 2, 2, c)
    t = jnp.transpose(t, (0, 1, 3, 2, 4, 5))
    return t.reshape(n, h2 // 2, w2 // 2, 4 * c)


def _bilinear_phases_packed(r):
    """Scale-2 bilinear upsample (align_corners=False) of (N,h,w,C), built
    directly in the phase-packed layout (N, h, w, 4*C), phase = a*2+b."""
    rm1 = jnp.concatenate([r[:, :1], r[:, :-1]], axis=1)
    rp1 = jnp.concatenate([r[:, 1:], r[:, -1:]], axis=1)
    row0 = 0.25 * rm1 + 0.75 * r
    row1 = 0.75 * r + 0.25 * rp1

    def colmix(t):
        tm1 = jnp.concatenate([t[:, :, :1], t[:, :, :-1]], axis=2)
        tp1 = jnp.concatenate([t[:, :, 1:], t[:, :, -1:]], axis=2)
        return 0.25 * tm1 + 0.75 * t, 0.75 * t + 0.25 * tp1

    p00, p01 = colmix(row0)
    p10, p11 = colmix(row1)
    out = jnp.stack([p00, p01, p10, p11], axis=3)           # (N, h, w, 4, C)
    n, h, w, _, c = out.shape
    return out.reshape(n, h, w, 4 * c)


def _combine_bn_stats(s, q, cout, m):
    """Chan parallel-variance combine of per-(image, phase) block sums and
    centered sums of squares -> per-channel mean and biased variance."""
    nb = s.shape[0] * 4
    s = s.reshape(nb, cout)
    q = q.reshape(nb, cout)
    total = nb * m
    mean = jnp.sum(s, axis=0) / total
    mean_b = s / m
    m2 = jnp.sum(q, axis=0) + m * jnp.sum((mean_b - mean) ** 2, axis=0)
    var = jnp.maximum(m2 / total, 0.0)
    return mean, var


# ----------------------------------------------------------------------------
# Small glue ops (plain JAX)
# ----------------------------------------------------------------------------
def avg_pool2_ceil(x_nhwc):
    """F.avg_pool2d(x, 2, ceil_mode=True): off-bound elements excluded."""
    n, h, w, c = x_nhwc.shape
    ho, wo = -(-h // 2), -(-w // 2)
    xp = jnp.pad(x_nhwc, ((0, 0), (0, 2 * ho - h), (0, 2 * wo - w), (0, 0)))
    s = xp.reshape(n, ho, 2, wo, 2, c).sum(axis=(2, 4))
    ones = jnp.pad(jnp.ones((1, h, w, 1), jnp.float32),
                   ((0, 0), (0, 2 * ho - h), (0, 2 * wo - w), (0, 0)))
    cnt = ones.reshape(1, ho, 2, wo, 2, 1).sum(axis=(2, 4))
    return s / cnt


def upsample2_bilinear(x_nhwc):
    """Reference-only: F.interpolate(scale_factor=2, bilinear, align_corners=False)."""
    n, h, w, c = x_nhwc.shape

    def coords(sz):
        out = jnp.arange(2 * sz, dtype=jnp.float32)
        src = jnp.clip((out + 0.5) / 2.0 - 0.5, 0.0, float(sz - 1))
        i0 = jnp.floor(src).astype(jnp.int32)
        i1 = jnp.minimum(i0 + 1, sz - 1)
        return i0, i1, src - i0.astype(jnp.float32)

    h0, h1, wh = coords(h)
    w0, w1, ww = coords(w)
    xh = (x_nhwc[:, h0] * (1.0 - wh)[None, :, None, None]
          + x_nhwc[:, h1] * wh[None, :, None, None])
    return (xh[:, :, w0] * (1.0 - ww)[None, None, :, None]
            + xh[:, :, w1] * ww[None, None, :, None])


def pad_or_crop_c(x_nhwc, c_target):
    """PyTorch pad_or_crop on channels (last axis here): crop, or zero-pad FRONT."""
    c = x_nhwc.shape[-1]
    y = x_nhwc[..., :c_target]
    if c < c_target:
        y = jnp.pad(y, ((0, 0), (0, 0), (0, 0), (c_target - c, 0)))
    return y


# ----------------------------------------------------------------------------
# Layers
# ----------------------------------------------------------------------------
def down_layer(x, w_oihw, bias):
    """y = Conv2d(k3, s2, p1)(leaky_relu(x));  return y + pad_or_crop(avg_pool(x))."""
    n, h, w, cin = x.shape
    cout = w_oihw.shape[0]
    ho, wo = (h + 1) // 2, (w + 1) // 2
    residual = pad_or_crop_c(avg_pool2_ceil(x.astype(jnp.float32)), cout)
    xp = jnp.pad(x, ((0, 0), (1, 2 * ho + 1 - h), (1, 2 * wo + 1 - w), (0, 0)))
    packed = _space_to_depth2(xp)                           # (N, ho+1, wo+1, 4*Cin)
    out = fused_conv(packed, (ho, wo), _downconv_weight(w_oihw), bias,
                     kh=2, kw=2, residual=residual, fuse_lrelu=True)
    return _unflatten_rows(out, ho, wo, wo + 1)


def up_layer(x, scale_pend, shift_pend, w_iohw, bias, gamma, beta, skip,
             eps=1e-5):
    """Transposed conv + bilinear residual + fused BN stats; returns the new
    (raw, pre-affine) bf16 activation concatenated with the skip plus the
    folded per-channel scale/shift for the next conv."""
    n, h, w, cin = x.shape
    cout = w_iohw.shape[1]
    wp = w + 2

    # Residual = bilinear(pad_or_crop(BN-applied x)) built phase-packed.
    c = min(cin, cout)
    r = x[..., :c].astype(jnp.float32)
    if scale_pend is not None:
        r = r * scale_pend[:c] + shift_pend[:c]
    if c < cout:
        r = jnp.pad(r, ((0, 0), (0, 0), (0, 0), (cout - c, 0)))
    res_packed = _bilinear_phases_packed(r)                 # (N, h, w, 4*Cout)

    xp = jnp.pad(x, ((0, 0), (1, 1), (1, 1), (0, 0)))
    y_flat, s, q = fused_conv(
        xp, (h, w), _upconv_weight(w_iohw), jnp.tile(bias, 4),
        kh=3, kw=3, residual=res_packed, scale=scale_pend, shift=shift_pend,
        fuse_lrelu=True, compute_stats=True)

    mean, var = _combine_bn_stats(s, q, cout, h * w)
    bn_scale = gamma * jax.lax.rsqrt(var + eps)
    bn_shift = beta - mean * bn_scale

    # Un-pack phases (N,h,w,4C) -> (N,2h,2w,C), crop to skip, concat channels.
    y = _unflatten_rows(y_flat, h, w, wp)
    y = y.reshape(n, h, w, 2, 2, cout)
    y = jnp.transpose(y, (0, 1, 3, 2, 4, 5)).reshape(n, 2 * h, 2 * w, cout)
    y = y[:, :skip.shape[1], :skip.shape[2], :]
    x_new = jnp.concatenate([y, skip.astype(jnp.bfloat16)], axis=-1)
    c_skip = skip.shape[-1]
    scale_new = jnp.concatenate([bn_scale, jnp.ones((c_skip,), jnp.float32)])
    shift_new = jnp.concatenate([bn_shift, jnp.zeros((c_skip,), jnp.float32)])
    return x_new, scale_new, shift_new


# ----------------------------------------------------------------------------
# Parameters & forward
# ----------------------------------------------------------------------------
def init_params(key, num_layers, down_channels, up_channels_out, dimension):
    up_channels_in = [
        down_channels[d + 1]
        + (up_channels_out[d + 1] if d + 1 < num_layers else 0)
        for d in range(num_layers)
    ]
    params = {}
    keys = jax.random.split(key, 4 * num_layers + 2)
    k = 0
    for d in range(num_layers):
        params[f"down_w_{d}"] = 0.1 * jax.random.normal(
            keys[k], (down_channels[d + 1], down_channels[d], 3, 3), jnp.float32)
        k += 1
        params[f"down_b_{d}"] = 0.01 * jax.random.normal(
            keys[k], (down_channels[d + 1],), jnp.float32)
        k += 1
        params[f"up_w_{d}"] = 0.1 * jax.random.normal(
            keys[k], (up_channels_in[d], up_channels_out[d], 4, 4), jnp.float32)
        k += 1
        params[f"up_b_{d}"] = 0.01 * jax.random.normal(
            keys[k], (up_channels_out[d],), jnp.float32)
        k += 1
        params[f"bn_g_{d}"] = jnp.ones((up_channels_out[d],), jnp.float32)
        params[f"bn_b_{d}"] = jnp.zeros((up_channels_out[d],), jnp.float32)
    params["last_w"] = jnp.zeros(
        (dimension, down_channels[0] + up_channels_out[0], 3, 3), jnp.float32)
    params["last_b"] = jnp.zeros((dimension,), jnp.float32)
    return params


def unet2_forward(params, x_nchw, y_nchw, *, num_layers):
    x = jnp.concatenate([x_nchw, y_nchw], axis=1)            # NCHW
    x = jnp.transpose(x, (0, 2, 3, 1)).astype(jnp.bfloat16)  # NHWC, bf16 in HBM
    skips = []
    for d in range(num_layers):
        skips.append(x)
        x = down_layer(x, params[f"down_w_{d}"], params[f"down_b_{d}"])
    scale_pend = shift_pend = None
    for d in reversed(range(num_layers)):
        x, scale_pend, shift_pend = up_layer(
            x, scale_pend, shift_pend, params[f"up_w_{d}"], params[f"up_b_{d}"],
            params[f"bn_g_{d}"], params[f"bn_b_{d}"], skips[d])
    # lastConv: 3x3 / s1 / p1, NO leaky_relu; the last BN affine is folded
    # into its input prologue; f32 output.
    n, h, w, cin = x.shape
    xp = jnp.pad(x, ((0, 0), (1, 1), (1, 1), (0, 0)))
    out = fused_conv(xp, (h, w), _conv3x3_weight(params["last_w"]),
                     params["last_b"], kh=3, kw=3, fuse_lrelu=False,
                     scale=scale_pend, shift=shift_pend,
                     out_dtype=jnp.float32)
    out = _unflatten_rows(out, h, w, w + 2)
    return jnp.transpose(out, (0, 3, 1, 2)) / 10.0            # back to NCHW


# ----------------------------------------------------------------------------
# Pure-JAX (XLA conv) f32 reference, for the numerical self-check only
# ----------------------------------------------------------------------------
def reference_forward(params, x_nchw, y_nchw, *, num_layers):
    def lrelu(t):
        return jnp.where(t >= 0, t, 0.01 * t)

    def conv(x, w_oihw, b, stride, padding):
        out = jax.lax.conv_general_dilated(
            x, jnp.transpose(w_oihw, (2, 3, 1, 0)),
            window_strides=(stride, stride),
            padding=[(padding, padding)] * 2,
            dimension_numbers=("NHWC", "HWIO", "NHWC"))
        return out + b

    def conv_t(x, w_iohw, b, stride, padding):
        kh = w_iohw.shape[2]
        w = jnp.transpose(jnp.flip(w_iohw, (2, 3)), (2, 3, 0, 1))
        out = jax.lax.conv_general_dilated(
            x, w, window_strides=(1, 1),
            padding=[(kh - 1 - padding, kh - 1 - padding)] * 2,
            lhs_dilation=(stride, stride),
            dimension_numbers=("NHWC", "HWIO", "NHWC"))
        return out + b

    x = jnp.concatenate([x_nchw, y_nchw], axis=1)
    x = jnp.transpose(x, (0, 2, 3, 1)).astype(jnp.float32)
    skips = []
    for d in range(num_layers):
        skips.append(x)
        yd = conv(lrelu(x), params[f"down_w_{d}"], params[f"down_b_{d}"], 2, 1)
        x = yd + pad_or_crop_c(avg_pool2_ceil(x), yd.shape[-1])
    for d in reversed(range(num_layers)):
        yu = conv_t(lrelu(x), params[f"up_w_{d}"], params[f"up_b_{d}"], 2, 1)
        x = yu + upsample2_bilinear(pad_or_crop_c(x, yu.shape[-1]))
        mean = x.mean(axis=(0, 1, 2))
        var = x.var(axis=(0, 1, 2))
        x = (x - mean) * jax.lax.rsqrt(var + 1e-5) * params[f"bn_g_{d}"] \
            + params[f"bn_b_{d}"]
        sh = skips[d].shape
        x = x[:, :sh[1], :sh[2], :]
        x = jnp.concatenate([x, skips[d]], axis=-1)
    x = conv(x, params["last_w"], params["last_b"], 1, 1)
    return jnp.transpose(x, (0, 3, 1, 2)) / 10.0


# ----------------------------------------------------------------------------
if __name__ == "__main__":
    num_layers = 2
    down_channels = [2, 8, 16]          # channels[0]
    up_channels_out = [4, 8]            # channels[1]
    dimension = 2

    key = jax.random.PRNGKey(0)
    kx, ky, kp, kw_, kb_ = jax.random.split(key, 5)
    x = jax.random.normal(kx, (2, 1, 16, 16), dtype=jnp.float32)
    y = jax.random.normal(ky, (2, 1, 16, 16), dtype=jnp.float32)
    params = init_params(kp, num_layers, down_channels, up_channels_out,
                         dimension)

    fwd = jax.jit(functools.partial(unet2_forward, num_layers=num_layers))
    out = fwd(params, x, y)
    jax.block_until_ready(out)
    assert out.shape == (2, dimension, 16, 16)

    # Numerical self-check vs a pure-JAX f32 reference.  The module zero-inits
    # the last conv (output would be exactly 0), so randomize it for the check.
    check_params = dict(params)
    check_params["last_w"] = 0.1 * jax.random.normal(
        kw_, params["last_w"].shape, jnp.float32)
    check_params["last_b"] = 0.01 * jax.random.normal(
        kb_, params["last_b"].shape, jnp.float32)
    out_k = fwd(check_params, x, y)
    out_r = reference_forward(check_params, x, y, num_layers=num_layers)
    jax.block_until_ready((out_k, out_r))
    err = float(jnp.max(jnp.abs(out_k.astype(jnp.float32) - out_r)))
    scale = float(jnp.max(jnp.abs(out_r)))
    # generous tolerance: bf16 activations + bf16 MXU vs an f32 XLA reference
    assert err <= 0.1 * scale + 1e-2, \
        f"kernel/reference mismatch: {err} (scale {scale})"

    print("KERNEL_OK")
</pallas_src>

<mosaic_0001>
module attributes {stable_mosaic.version = 11 : i64} {
  func.func @kernel(%arg0: i32, %arg1: memref<1x81x8xbf16, #tpu.memory_space<vmem>>, %arg2: memref<4x8x8xbf16, #tpu.memory_space<vmem>>, %arg3: memref<1x8xf32, #tpu.memory_space<vmem>>, %arg4: memref<1x71x8xbf16, #tpu.memory_space<vmem>>, %arg5: memref<1x71x8xbf16, #tpu.memory_space<vmem>>, %arg6: memref<81x8xbf16, #tpu.memory_space<vmem>>) attributes {dimension_semantics = [#tpu.dimension_semantics<parallel>], iteration_bounds = array<i64: 2>, scalar_prefetch = 0 : i64, scratch_operands = 1 : i64, tpu.core_type = #tpu.core_type<tc>, window_params = [{transform_indices = @transform_0, window_bounds = array<i64: 1, 81, 8>}, {pipeline_mode = #tpu.pipeline_mode<synchronous>, transform_indices = @transform_1, window_bounds = array<i64: 4, 8, 8>}, {pipeline_mode = #tpu.pipeline_mode<synchronous>, transform_indices = @transform_2, window_bounds = array<i64: 1, 8>}, {transform_indices = @transform_3, window_bounds = array<i64: 1, 71, 8>}, {transform_indices = @transform_4, window_bounds = array<i64: 1, 71, 8>}]} {
    %c0 = arith.constant 0 : index
    %c0_0 = arith.constant 0 : index
    %c0_1 = arith.constant 0 : index
    %0 = vector.load %arg1[%c0, %c0_0, %c0_1] : memref<1x81x8xbf16, #tpu.memory_space<vmem>>, vector<1x81x8xbf16>
    %1 = vector.shape_cast %0 : vector<1x81x8xbf16> to vector<81x8xbf16>
    %2 = arith.extf %1 : vector<81x8xbf16> to vector<81x8xf32>
    %cst = arith.constant 0.000000e+00 : f32
    %3 = vector.broadcast %cst : f32 to vector<81x8xf32>
    %4 = arith.cmpf oge, %2, %3 : vector<81x8xf32>
    %cst_2 = arith.constant 0.00999999977 : f32
    %5 = vector.broadcast %cst_2 : f32 to vector<81x8xf32>
    %6 = arith.mulf %5, %2 : vector<81x8xf32>
    %7 = arith.select %4, %2, %6 : vector<81x8xi1>, vector<81x8xf32>
    %8 = arith.truncf %7 : vector<81x8xf32> to vector<81x8xbf16>
    %c0_3 = arith.constant 0 : index
    %c0_4 = arith.constant 0 : index
    %9 = vector.load %arg6[%c0_3, %c0_4] : memref<81x8xbf16, #tpu.memory_space<vmem>>, vector<81x8xbf16>
    tpu.vector_store %arg6[%c0_3, %c0_4], %8 {strides = array<i32>} : memref<81x8xbf16, #tpu.memory_space<vmem>>, vector<81x8xbf16>,
    %cst_5 = arith.constant 0.000000e+00 : f32
    %10 = vector.broadcast %cst_5 : f32 to vector<71x8xf32>
    %c0_6 = arith.constant 0 : index
    %c0_7 = arith.constant 0 : index
    %11 = vector.load %arg6[%c0_6, %c0_7] : memref<81x8xbf16, #tpu.memory_space<vmem>>, vector<71x8xbf16>
    %c0_8 = arith.constant 0 : index
    %c0_9 = arith.constant 0 : index
    %c0_10 = arith.constant 0 : index
    %12 = vector.load %arg2[%c0_8, %c0_9, %c0_10] : memref<4x8x8xbf16, #tpu.memory_space<vmem>>, vector<1x8x8xbf16>
    %13 = vector.shape_cast %12 : vector<1x8x8xbf16> to vector<8x8xbf16>
    %cst_11 = arith.constant dense<0.000000e+00> : vector<71x8xf32>
    %14 = tpu.matmul %11, %13, %cst_11 {dimension_numbers = #tpu.dot_dimension_numbers<[1], [0], [0], [1], [0, 0, 1, 1], [], []>} : vector<71x8xbf16>, vector<8x8xbf16>, vector<71x8xf32> -> vector<71x8xf32>
    %15 = arith.addf %10, %14 : vector<71x8xf32>
    %c1 = arith.constant 1 : index
    %c0_12 = arith.constant 0 : index
    %16 = vector.load %arg6[%c1, %c0_12] : memref<81x8xbf16, #tpu.memory_space<vmem>>, vector<71x8xbf16>
    %c1_13 = arith.constant 1 : index
    %c0_14 = arith.constant 0 : index
    %c0_15 = arith.constant 0 : index
    %17 = vector.load %arg2[%c1_13, %c0_14, %c0_15] : memref<4x8x8xbf16, #tpu.memory_space<vmem>>, vector<1x8x8xbf16>
    %18 = vector.shape_cast %17 : vector<1x8x8xbf16> to vector<8x8xbf16>
    %cst_16 = arith.constant dense<0.000000e+00> : vector<71x8xf32>
    %19 = tpu.matmul %16, %18, %cst_16 {dimension_numbers = #tpu.dot_dimension_numbers<[1], [0], [0], [1], [0, 0, 1, 1], [], []>} : vector<71x8xbf16>, vector<8x8xbf16>, vector<71x8xf32> -> vector<71x8xf32>
    %20 = arith.addf %15, %19 : vector<71x8xf32>
    %c9 = arith.constant 9 : index
    %c0_17 = arith.constant 0 : index
    %21 = vector.load %arg6[%c9, %c0_17] : memref<81x8xbf16, #tpu.memory_space<vmem>>, vector<71x8xbf16>
    %c2 = arith.constant 2 : index
    %c0_18 = arith.constant 0 : index
    %c0_19 = arith.constant 0 : index
    %22 = vector.load %arg2[%c2, %c0_18, %c0_19] : memref<4x8x8xbf16, #tpu.memory_space<vmem>>, vector<1x8x8xbf16>
    %23 = vector.shape_cast %22 : vector<1x8x8xbf16> to vector<8x8xbf16>
    %cst_20 = arith.constant dense<0.000000e+00> : vector<71x8xf32>
    %24 = tpu.matmul %21, %23, %cst_20 {dimension_numbers = #tpu.dot_dimension_numbers<[1], [0], [0], [1], [0, 0, 1, 1], [], []>} : vector<71x8xbf16>, vector<8x8xbf16>, vector<71x8xf32> -> vector<71x8xf32>
    %25 = arith.addf %20, %24 : vector<71x8xf32>
    %c10 = arith.constant 10 : index
    %c0_21 = arith.constant 0 : index
    %26 = vector.load %arg6[%c10, %c0_21] : memref<81x8xbf16, #tpu.memory_space<vmem>>, vector<71x8xbf16>
    %c3 = arith.constant 3 : index
    %c0_22 = arith.constant 0 : index
    %c0_23 = arith.constant 0 : index
    %27 = vector.load %arg2[%c3, %c0_22, %c0_23] : memref<4x8x8xbf16, #tpu.memory_space<vmem>>, vector<1x8x8xbf16>
    %28 = vector.shape_cast %27 : vector<1x8x8xbf16> to vector<8x8xbf16>
    %cst_24 = arith.constant dense<0.000000e+00> : vector<71x8xf32>
    %29 = tpu.matmul %26, %28, %cst_24 {dimension_numbers = #tpu.dot_dimension_numbers<[1], [0], [0], [1], [0, 0, 1, 1], [], []>} : vector<71x8xbf16>, vector<8x8xbf16>, vector<71x8xf32> -> vector<71x8xf32>
    %30 = arith.addf %25, %29 : vector<71x8xf32>
    %c0_25 = arith.constant 0 : index
    %c0_26 = arith.constant 0 : index
    %31 = vector.load %arg3[%c0_25, %c0_26] : memref<1x8xf32, #tpu.memory_space<vmem>>, vector<1x8xf32>
    %32 = vector.broadcast %31 : vector<1x8xf32> to vector<71x8xf32>
    %33 = arith.addf %30, %32 : vector<71x8xf32>
    %c0_27 = arith.constant 0 : index
    %c0_28 = arith.constant 0 : index
    %c0_29 = arith.constant 0 : index
    %34 = vector.load %arg4[%c0_27, %c0_28, %c0_29] : memref<1x71x8xbf16, #tpu.memory_space<vmem>>, vector<1x71x8xbf16>
    %35 = vector.shape_cast %34 : vector<1x71x8xbf16> to vector<71x8xbf16>
    %36 = arith.extf %35 : vector<71x8xbf16> to vector<71x8xf32>
    %37 = arith.addf %33, %36 : vector<71x8xf32>
    %38 = arith.truncf %37 : vector<71x8xf32> to vector<71x8xbf16>
    %c0_30 = arith.constant 0 : index
    %c0_31 = arith.constant 0 : index
    %c0_32 = arith.constant 0 : index
    %39 = vector.load %arg5[%c0_30, %c0_31, %c0_32] : memref<1x71x8xbf16, #tpu.memory_space<vmem>>, vector<1x71x8xbf16>
    %40 = vector.shape_cast %39 : vector<1x71x8xbf16> to vector<71x8xbf16>
    %41 = vector.shape_cast %38 : vector<71x8xbf16> to vector<1x71x8xbf16>
    tpu.vector_store %arg5[%c0_30, %c0_31, %c0_32], %41 {strides = array<i32>} : memref<1x71x8xbf16, #tpu.memory_space<vmem>>, vector<1x71x8xbf16>,
    return
  }
  func.func @transform_0(%arg0: i32) -> (i32, i32, i32) {
    %c0_i32 = arith.constant 0 : i32
    %c0_i32_0 = arith.constant 0 : i32
    %c0_i32_1 = arith.constant 0 : i32
    return %arg0, %c0_i32, %c0_i32_0 : i32, i32, i32
  }
  func.func @transform_1(%arg0: i32) -> (i32, i32, i32) {
    %c0_i32 = arith.constant 0 : i32
    %c0_i32_0 = arith.constant 0 : i32
    %c0_i32_1 = arith.constant 0 : i32
    %c0_i32_2 = arith.constant 0 : i32
    return %c0_i32, %c0_i32_0, %c0_i32_1 : i32, i32, i32
  }
  func.func @transform_2(%arg0: i32) -> (i32, i32) {
    %c0_i32 = arith.constant 0 : i32
    %c0_i32_0 = arith.constant 0 : i32
    %c0_i32_1 = arith.constant 0 : i32
    return %c0_i32, %c0_i32_0 : i32, i32
  }
  func.func @transform_3(%arg0: i32) -> (i32, i32, i32) {
    %c0_i32 = arith.constant 0 : i32
    %c0_i32_0 = arith.constant 0 : i32
    %c0_i32_1 = arith.constant 0 : i32
    return %arg0, %c0_i32, %c0_i32_0 : i32, i32, i32
  }
  func.func @transform_4(%arg0: i32) -> (i32, i32, i32) {
    %c0_i32 = arith.constant 0 : i32
    %c0_i32_0 = arith.constant 0 : i32
    %c0_i32_1 = arith.constant 0 : i32
    return %arg0, %c0_i32, %c0_i32_0 : i32, i32, i32
  }
}

module attributes {stable_mosaic.version = 11 : i64} {
  func.func @kernel(%arg0: i32, %arg1: memref<1x25x32xbf16, #tpu.memory_space<vmem>>, %arg2: memref<4x32x16xbf16, #tpu.memory_space<vmem>>, %arg3: memref<1x16xf32, #tpu.memory_space<vmem>>, %arg4: memref<1x19x16xbf16, #tpu.memory_space<vmem>>, %arg5: memref<1x19x16xbf16, #tpu.memory_space<vmem>>, %arg6: memref<25x32xbf16, #tpu.memory_space<vmem>>) attributes {dimension_semantics = [#tpu.dimension_semantics<parallel>], iteration_bounds = array<i64: 2>, scalar_prefetch = 0 : i64, scratch_operands = 1 : i64, tpu.core_type = #tpu.core_type<tc>, window_params = [{transform_indices = @transform_0, window_bounds = array<i64: 1, 25, 32>}, {pipeline_mode = #tpu.pipeline_mode<synchronous>, transform_indices = @transform_1, window_bounds = array<i64: 4, 32, 16>}, {pipeline_mode = #tpu.pipeline_mode<synchronous>, transform_indices = @transform_2, window_bounds = array<i64: 1, 16>}, {transform_indices = @transform_3, window_bounds = array<i64: 1, 19, 16>}, {transform_indices = @transform_4, window_bounds = array<i64: 1, 19, 16>}]} {
    %c0 = arith.constant 0 : index
    %c0_0 = arith.constant 0 : index
    %c0_1 = arith.constant 0 : index
    %0 = vector.load %arg1[%c0, %c0_0, %c0_1] : memref<1x25x32xbf16, #tpu.memory_space<vmem>>, vector<1x25x32xbf16>
    %1 = vector.shape_cast %0 : vector<1x25x32xbf16> to vector<25x32xbf16>
    %2 = arith.extf %1 : vector<25x32xbf16> to vector<25x32xf32>
    %cst = arith.constant 0.000000e+00 : f32
    %3 = vector.broadcast %cst : f32 to vector<25x32xf32>
    %4 = arith.cmpf oge, %2, %3 : vector<25x32xf32>
    %cst_2 = arith.constant 0.00999999977 : f32
    %5 = vector.broadcast %cst_2 : f32 to vector<25x32xf32>
    %6 = arith.mulf %5, %2 : vector<25x32xf32>
    %7 = arith.select %4, %2, %6 : vector<25x32xi1>, vector<25x32xf32>
    %8 = arith.truncf %7 : vector<25x32xf32> to vector<25x32xbf16>
    %c0_3 = arith.constant 0 : index
    %c0_4 = arith.constant 0 : index
    %9 = vector.load %arg6[%c0_3, %c0_4] : memref<25x32xbf16, #tpu.memory_space<vmem>>, vector<25x32xbf16>
    tpu.vector_store %arg6[%c0_3, %c0_4], %8 {strides = array<i32>} : memref<25x32xbf16, #tpu.memory_space<vmem>>, vector<25x32xbf16>,
    %cst_5 = arith.constant 0.000000e+00 : f32
    %10 = vector.broadcast %cst_5 : f32 to vector<19x16xf32>
    %c0_6 = arith.constant 0 : index
    %c0_7 = arith.constant 0 : index
    %11 = vector.load %arg6[%c0_6, %c0_7] : memref<25x32xbf16, #tpu.memory_space<vmem>>, vector<19x32xbf16>
    %c0_8 = arith.constant 0 : index
    %c0_9 = arith.constant 0 : index
    %c0_10 = arith.constant 0 : index
    %12 = vector.load %arg2[%c0_8, %c0_9, %c0_10] : memref<4x32x16xbf16, #tpu.memory_space<vmem>>, vector<1x32x16xbf16>
    %13 = vector.shape_cast %12 : vector<1x32x16xbf16> to vector<32x16xbf16>
    %cst_11 = arith.constant dense<0.000000e+00> : vector<19x16xf32>
    %14 = tpu.matmul %11, %13, %cst_11 {dimension_numbers = #tpu.dot_dimension_numbers<[1], [0], [0], [1], [0, 0, 1, 1], [], []>} : vector<19x32xbf16>, vector<32x16xbf16>, vector<19x16xf32> -> vector<19x16xf32>
    %15 = arith.addf %10, %14 : vector<19x16xf32>
    %c1 = arith.constant 1 : index
    %c0_12 = arith.constant 0 : index
    %16 = vector.load %arg6[%c1, %c0_12] : memref<25x32xbf16, #tpu.memory_space<vmem>>, vector<19x32xbf16>
    %c1_13 = arith.constant 1 : index
    %c0_14 = arith.constant 0 : index
    %c0_15 = arith.constant 0 : index
    %17 = vector.load %arg2[%c1_13, %c0_14, %c0_15] : memref<4x32x16xbf16, #tpu.memory_space<vmem>>, vector<1x32x16xbf16>
    %18 = vector.shape_cast %17 : vector<1x32x16xbf16> to vector<32x16xbf16>
    %cst_16 = arith.constant dense<0.000000e+00> : vector<19x16xf32>
    %19 = tpu.matmul %16, %18, %cst_16 {dimension_numbers = #tpu.dot_dimension_numbers<[1], [0], [0], [1], [0, 0, 1, 1], [], []>} : vector<19x32xbf16>, vector<32x16xbf16>, vector<19x16xf32> -> vector<19x16xf32>
    %20 = arith.addf %15, %19 : vector<19x16xf32>
    %c5 = arith.constant 5 : index
    %c0_17 = arith.constant 0 : index
    %21 = vector.load %arg6[%c5, %c0_17] : memref<25x32xbf16, #tpu.memory_space<vmem>>, vector<19x32xbf16>
    %c2 = arith.constant 2 : index
    %c0_18 = arith.constant 0 : index
    %c0_19 = arith.constant 0 : index
    %22 = vector.load %arg2[%c2, %c0_18, %c0_19] : memref<4x32x16xbf16, #tpu.memory_space<vmem>>, vector<1x32x16xbf16>
    %23 = vector.shape_cast %22 : vector<1x32x16xbf16> to vector<32x16xbf16>
    %cst_20 = arith.constant dense<0.000000e+00> : vector<19x16xf32>
    %24 = tpu.matmul %21, %23, %cst_20 {dimension_numbers = #tpu.dot_dimension_numbers<[1], [0], [0], [1], [0, 0, 1, 1], [], []>} : vector<19x32xbf16>, vector<32x16xbf16>, vector<19x16xf32> -> vector<19x16xf32>
    %25 = arith.addf %20, %24 : vector<19x16xf32>
    %c6 = arith.constant 6 : index
    %c0_21 = arith.constant 0 : index
    %26 = vector.load %arg6[%c6, %c0_21] : memref<25x32xbf16, #tpu.memory_space<vmem>>, vector<19x32xbf16>
    %c3 = arith.constant 3 : index
    %c0_22 = arith.constant 0 : index
    %c0_23 = arith.constant 0 : index
    %27 = vector.load %arg2[%c3, %c0_22, %c0_23] : memref<4x32x16xbf16, #tpu.memory_space<vmem>>, vector<1x32x16xbf16>
    %28 = vector.shape_cast %27 : vector<1x32x16xbf16> to vector<32x16xbf16>
    %cst_24 = arith.constant dense<0.000000e+00> : vector<19x16xf32>
    %29 = tpu.matmul %26, %28, %cst_24 {dimension_numbers = #tpu.dot_dimension_numbers<[1], [0], [0], [1], [0, 0, 1, 1], [], []>} : vector<19x32xbf16>, vector<32x16xbf16>, vector<19x16xf32> -> vector<19x16xf32>
    %30 = arith.addf %25, %29 : vector<19x16xf32>
    %c0_25 = arith.constant 0 : index
    %c0_26 = arith.constant 0 : index
    %31 = vector.load %arg3[%c0_25, %c0_26] : memref<1x16xf32, #tpu.memory_space<vmem>>, vector<1x16xf32>
    %32 = vector.broadcast %31 : vector<1x16xf32> to vector<19x16xf32>
    %33 = arith.addf %30, %32 : vector<19x16xf32>
    %c0_27 = arith.constant 0 : index
    %c0_28 = arith.constant 0 : index
    %c0_29 = arith.constant 0 : index
    %34 = vector.load %arg4[%c0_27, %c0_28, %c0_29] : memref<1x19x16xbf16, #tpu.memory_space<vmem>>, vector<1x19x16xbf16>
    %35 = vector.shape_cast %34 : vector<1x19x16xbf16> to vector<19x16xbf16>
    %36 = arith.extf %35 : vector<19x16xbf16> to vector<19x16xf32>
    %37 = arith.addf %33, %36 : vector<19x16xf32>
    %38 = arith.truncf %37 : vector<19x16xf32> to vector<19x16xbf16>
    %c0_30 = arith.constant 0 : index
    %c0_31 = arith.constant 0 : index
    %c0_32 = arith.constant 0 : index
    %39 = vector.load %arg5[%c0_30, %c0_31, %c0_32] : memref<1x19x16xbf16, #tpu.memory_space<vmem>>, vector<1x19x16xbf16>
    %40 = vector.shape_cast %39 : vector<1x19x16xbf16> to vector<19x16xbf16>
    %41 = vector.shape_cast %38 : vector<19x16xbf16> to vector<1x19x16xbf16>
    tpu.vector_store %arg5[%c0_30, %c0_31, %c0_32], %41 {strides = array<i32>} : memref<1x19x16xbf16, #tpu.memory_space<vmem>>, vector<1x19x16xbf16>,
    return
  }
  func.func @transform_0(%arg0: i32) -> (i32, i32, i32) {
    %c0_i32 = arith.constant 0 : i32
    %c0_i32_0 = arith.constant 0 : i32
    %c0_i32_1 = arith.constant 0 : i32
    return %arg0, %c0_i32, %c0_i32_0 : i32, i32, i32
  }
  func.func @transform_1(%arg0: i32) -> (i32, i32, i32) {
    %c0_i32 = arith.constant 0 : i32
    %c0_i32_0 = arith.constant 0 : i32
    %c0_i32_1 = arith.constant 0 : i32
    %c0_i32_2 = arith.constant 0 : i32
    return %c0_i32, %c0_i32_0, %c0_i32_1 : i32, i32, i32
  }
  func.func @transform_2(%arg0: i32) -> (i32, i32) {
    %c0_i32 = arith.constant 0 : i32
    %c0_i32_0 = arith.constant 0 : i32
    %c0_i32_1 = arith.constant 0 : i32
    return %c0_i32, %c0_i32_0 : i32, i32
  }
  func.func @transform_3(%arg0: i32) -> (i32, i32, i32) {
    %c0_i32 = arith.constant 0 : i32
    %c0_i32_0 = arith.constant 0 : i32
    %c0_i32_1 = arith.constant 0 : i32
    return %arg0, %c0_i32, %c0_i32_0 : i32, i32, i32
  }
  func.func @transform_4(%arg0: i32) -> (i32, i32, i32) {
    %c0_i32 = arith.constant 0 : i32
    %c0_i32_0 = arith.constant 0 : i32
    %c0_i32_1 = arith.constant 0 : i32
    return %arg0, %c0_i32, %c0_i32_0 : i32, i32, i32
  }
}

module attributes {stable_mosaic.version = 11 : i64} {
  func.func @kernel(%arg0: i32, %arg1: memref<1x36x16xbf16, #tpu.memory_space<vmem>>, %arg2: memref<9x16x32xbf16, #tpu.memory_space<vmem>>, %arg3: memref<1x32xf32, #tpu.memory_space<vmem>>, %arg4: memref<1x22x32xbf16, #tpu.memory_space<vmem>>, %arg5: memref<1x22x1xf32, #tpu.memory_space<vmem>>, %arg6: memref<1x22x32xbf16, #tpu.memory_space<vmem>>, %arg7: memref<1x1x32xf32, #tpu.memory_space<vmem>>, %arg8: memref<1x1x32xf32, #tpu.memory_space<vmem>>, %arg9: memref<36x16xbf16, #tpu.memory_space<vmem>>) attributes {dimension_semantics = [#tpu.dimension_semantics<parallel>], iteration_bounds = array<i64: 2>, scalar_prefetch = 0 : i64, scratch_operands = 1 : i64, tpu.core_type = #tpu.core_type<tc>, window_params = [{transform_indices = @transform_0, window_bounds = array<i64: 1, 36, 16>}, {pipeline_mode = #tpu.pipeline_mode<synchronous>, transform_indices = @transform_1, window_bounds = array<i64: 9, 16, 32>}, {pipeline_mode = #tpu.pipeline_mode<synchronous>, transform_indices = @transform_2, window_bounds = array<i64: 1, 32>}, {transform_indices = @transform_3, window_bounds = array<i64: 1, 22, 32>}, {pipeline_mode = #tpu.pipeline_mode<synchronous>, transform_indices = @transform_4, window_bounds = array<i64: 1, 22, 1>}, {transform_indices = @transform_5, window_bounds = array<i64: 1, 22, 32>}, {transform_indices = @transform_6, window_bounds = array<i64: 1, 1, 32>}, {transform_indices = @transform_7, window_bounds = array<i64: 1, 1, 32>}]} {
    %c0 = arith.constant 0 : index
    %c0_0 = arith.constant 0 : index
    %c0_1 = arith.constant 0 : index
    %0 = vector.load %arg1[%c0, %c0_0, %c0_1] : memref<1x36x16xbf16, #tpu.memory_space<vmem>>, vector<1x36x16xbf16>
    %1 = vector.shape_cast %0 : vector<1x36x16xbf16> to vector<36x16xbf16>
    %2 = arith.extf %1 : vector<36x16xbf16> to vector<36x16xf32>
    %cst = arith.constant 0.000000e+00 : f32
    %3 = vector.broadcast %cst : f32 to vector<36x16xf32>
    %4 = arith.cmpf oge, %2, %3 : vector<36x16xf32>
    %cst_2 = arith.constant 0.00999999977 : f32
    %5 = vector.broadcast %cst_2 : f32 to vector<36x16xf32>
    %6 = arith.mulf %5, %2 : vector<36x16xf32>
    %7 = arith.select %4, %2, %6 : vector<36x16xi1>, vector<36x16xf32>
    %8 = arith.truncf %7 : vector<36x16xf32> to vector<36x16xbf16>
    %c0_3 = arith.constant 0 : index
    %c0_4 = arith.constant 0 : index
    %9 = vector.load %arg9[%c0_3, %c0_4] : memref<36x16xbf16, #tpu.memory_space<vmem>>, vector<36x16xbf16>
    tpu.vector_store %arg9[%c0_3, %c0_4], %8 {strides = array<i32>} : memref<36x16xbf16, #tpu.memory_space<vmem>>, vector<36x16xbf16>,
    %cst_5 = arith.constant 0.000000e+00 : f32
    %10 = vector.broadcast %cst_5 : f32 to vector<22x32xf32>
    %c0_6 = arith.constant 0 : index
    %c0_7 = arith.constant 0 : index
    %11 = vector.load %arg9[%c0_6, %c0_7] : memref<36x16xbf16, #tpu.memory_space<vmem>>, vector<22x16xbf16>
    %c0_8 = arith.constant 0 : index
    %c0_9 = arith.constant 0 : index
    %c0_10 = arith.constant 0 : index
    %12 = vector.load %arg2[%c0_8, %c0_9, %c0_10] : memref<9x16x32xbf16, #tpu.memory_space<vmem>>, vector<1x16x32xbf16>
    %13 = vector.shape_cast %12 : vector<1x16x32xbf16> to vector<16x32xbf16>
    %cst_11 = arith.constant dense<0.000000e+00> : vector<22x32xf32>
    %14 = tpu.matmul %11, %13, %cst_11 {dimension_numbers = #tpu.dot_dimension_numbers<[1], [0], [0], [1], [0, 0, 1, 1], [], []>} : vector<22x16xbf16>, vector<16x32xbf16>, vector<22x32xf32> -> vector<22x32xf32>
    %15 = arith.addf %10, %14 : vector<22x32xf32>
    %c1 = arith.constant 1 : index
    %c0_12 = arith.constant 0 : index
    %16 = vector.load %arg9[%c1, %c0_12] : memref<36x16xbf16, #tpu.memory_space<vmem>>, vector<22x16xbf16>
    %c1_13 = arith.constant 1 : index
    %c0_14 = arith.constant 0 : index
    %c0_15 = arith.constant 0 : index
    %17 = vector.load %arg2[%c1_13, %c0_14, %c0_15] : memref<9x16x32xbf16, #tpu.memory_space<vmem>>, vector<1x16x32xbf16>
    %18 = vector.shape_cast %17 : vector<1x16x32xbf16> to vector<16x32xbf16>
    %cst_16 = arith.constant dense<0.000000e+00> : vector<22x32xf32>
    %19 = tpu.matmul %16, %18, %cst_16 {dimension_numbers = #tpu.dot_dimension_numbers<[1], [0], [0], [1], [0, 0, 1, 1], [], []>} : vector<22x16xbf16>, vector<16x32xbf16>, vector<22x32xf32> -> vector<22x32xf32>
    %20 = arith.addf %15, %19 : vector<22x32xf32>
    %c2 = arith.constant 2 : index
    %c0_17 = arith.constant 0 : index
    %21 = vector.load %arg9[%c2, %c0_17] : memref<36x16xbf16, #tpu.memory_space<vmem>>, vector<22x16xbf16>
    %c2_18 = arith.constant 2 : index
    %c0_19 = arith.constant 0 : index
    %c0_20 = arith.constant 0 : index
    %22 = vector.load %arg2[%c2_18, %c0_19, %c0_20] : memref<9x16x32xbf16, #tpu.memory_space<vmem>>, vector<1x16x32xbf16>
    %23 = vector.shape_cast %22 : vector<1x16x32xbf16> to vector<16x32xbf16>
    %cst_21 = arith.constant dense<0.000000e+00> : vector<22x32xf32>
    %24 = tpu.matmul %21, %23, %cst_21 {dimension_numbers = #tpu.dot_dimension_numbers<[1], [0], [0], [1], [0, 0, 1, 1], [], []>} : vector<22x16xbf16>, vector<16x32xbf16>, vector<22x32xf32> -> vector<22x32xf32>
    %25 = arith.addf %20, %24 : vector<22x32xf32>
    %c6 = arith.constant 6 : index
    %c0_22 = arith.constant 0 : index
    %26 = vector.load %arg9[%c6, %c0_22] : memref<36x16xbf16, #tpu.memory_space<vmem>>, vector<22x16xbf16>
    %c3 = arith.constant 3 : index
    %c0_23 = arith.constant 0 : index
    %c0_24 = arith.constant 0 : index
    %27 = vector.load %arg2[%c3, %c0_23, %c0_24] : memref<9x16x32xbf16, #tpu.memory_space<vmem>>, vector<1x16x32xbf16>
    %28 = vector.shape_cast %27 : vector<1x16x32xbf16> to vector<16x32xbf16>
    %cst_25 = arith.constant dense<0.000000e+00> : vector<22x32xf32>
    %29 = tpu.matmul %26, %28, %cst_25 {dimension_numbers = #tpu.dot_dimension_numbers<[1], [0], [0], [1], [0, 0, 1, 1], [], []>} : vector<22x16xbf16>, vector<16x32xbf16>, vector<22x32xf32> -> vector<22x32xf32>
    %30 = arith.addf %25, %29 : vector<22x32xf32>
    %c7 = arith.constant 7 : index
    %c0_26 = arith.constant 0 : index
    %31 = vector.load %arg9[%c7, %c0_26] : memref<36x16xbf16, #tpu.memory_space<vmem>>, vector<22x16xbf16>
    %c4 = arith.constant 4 : index
    %c0_27 = arith.constant 0 : index
    %c0_28 = arith.constant 0 : index
    %32 = vector.load %arg2[%c4, %c0_27, %c0_28] : memref<9x16x32xbf16, #tpu.memory_space<vmem>>, vector<1x16x32xbf16>
    %33 = vector.shape_cast %32 : vector<1x16x32xbf16> to vector<16x32xbf16>
    %cst_29 = arith.constant dense<0.000000e+00> : vector<22x32xf32>
    %34 = tpu.matmul %31, %33, %cst_29 {dimension_numbers = #tpu.dot_dimension_numbers<[1], [0], [0], [1], [0, 0, 1, 1], [], []>} : vector<22x16xbf16>, vector<16x32xbf16>, vector<22x32xf32> -> vector<22x32xf32>
    %35 = arith.addf %30, %34 : vector<22x32xf32>
    %c8 = arith.constant 8 : index
    %c0_30 = arith.constant 0 : index
    %36 = vector.load %arg9[%c8, %c0_30] : memref<36x16xbf16, #tpu.memory_space<vmem>>, vector<22x16xbf16>
    %c5 = arith.constant 5 : index
    %c0_31 = arith.constant 0 : index
    %c0_32 = arith.constant 0 : index
    %37 = vector.load %arg2[%c5, %c0_31, %c0_32] : memref<9x16x32xbf16, #tpu.memory_space<vmem>>, vector<1x16x32xbf16>
    %38 = vector.shape_cast %37 : vector<1x16x32xbf16> to vector<16x32xbf16>
    %cst_33 = arith.constant dense<0.000000e+00> : vector<22x32xf32>
    %39 = tpu.matmul %36, %38, %cst_33 {dimension_numbers = #tpu.dot_dimension_numbers<[1], [0], [0], [1], [0, 0, 1, 1], [], []>} : vector<22x16xbf16>, vector<16x32xbf16>, vector<22x32xf32> -> vector<22x32xf32>
    %40 = arith.addf %35, %39 : vector<22x32xf32>
    %c12 = arith.constant 12 : index
    %c0_34 = arith.constant 0 : index
    %41 = vector.load %arg9[%c12, %c0_34] : memref<36x16xbf16, #tpu.memory_space<vmem>>, vector<22x16xbf16>
    %c6_35 = arith.constant 6 : index
    %c0_36 = arith.constant 0 : index
    %c0_37 = arith.constant 0 : index
    %42 = vector.load %arg2[%c6_35, %c0_36, %c0_37] : memref<9x16x32xbf16, #tpu.memory_space<vmem>>, vector<1x16x32xbf16>
    %43 = vector.shape_cast %42 : vector<1x16x32xbf16> to vector<16x32xbf16>
    %cst_38 = arith.constant dense<0.000000e+00> : vector<22x32xf32>
    %44 = tpu.matmul %41, %43, %cst_38 {dimension_numbers = #tpu.dot_dimension_numbers<[1], [0], [0], [1], [0, 0, 1, 1], [], []>} : vector<22x16xbf16>, vector<16x32xbf16>, vector<22x32xf32> -> vector<22x32xf32>
    %45 = arith.addf %40, %44 : vector<22x32xf32>
    %c13 = arith.constant 13 : index
    %c0_39 = arith.constant 0 : index
    %46 = vector.load %arg9[%c13, %c0_39] : memref<36x16xbf16, #tpu.memory_space<vmem>>, vector<22x16xbf16>
    %c7_40 = arith.constant 7 : index
    %c0_41 = arith.constant 0 : index
    %c0_42 = arith.constant 0 : index
    %47 = vector.load %arg2[%c7_40, %c0_41, %c0_42] : memref<9x16x32xbf16, #tpu.memory_space<vmem>>, vector<1x16x32xbf16>
    %48 = vector.shape_cast %47 : vector<1x16x32xbf16> to vector<16x32xbf16>
    %cst_43 = arith.constant dense<0.000000e+00> : vector<22x32xf32>
    %49 = tpu.matmul %46, %48, %cst_43 {dimension_numbers = #tpu.dot_dimension_numbers<[1], [0], [0], [1], [0, 0, 1, 1], [], []>} : vector<22x16xbf16>, vector<16x32xbf16>, vector<22x32xf32> -> vector<22x32xf32>
    %50 = arith.addf %45, %49 : vector<22x32xf32>
    %c14 = arith.constant 14 : index
    %c0_44 = arith.constant 0 : index
    %51 = vector.load %arg9[%c14, %c0_44] : memref<36x16xbf16, #tpu.memory_space<vmem>>, vector<22x16xbf16>
    %c8_45 = arith.constant 8 : index
    %c0_46 = arith.constant 0 : index
    %c0_47 = arith.constant 0 : index
    %52 = vector.load %arg2[%c8_45, %c0_46, %c0_47] : memref<9x16x32xbf16, #tpu.memory_space<vmem>>, vector<1x16x32xbf16>
    %53 = vector.shape_cast %52 : vector<1x16x32xbf16> to vector<16x32xbf16>
    %cst_48 = arith.constant dense<0.000000e+00> : vector<22x32xf32>
    %54 = tpu.matmul %51, %53, %cst_48 {dimension_numbers = #tpu.dot_dimension_numbers<[1], [0], [0], [1], [0, 0, 1, 1], [], []>} : vector<22x16xbf16>, vector<16x32xbf16>, vector<22x32xf32> -> vector<22x32xf32>
    %55 = arith.addf %50, %54 : vector<22x32xf32>
    %c0_49 = arith.constant 0 : index
    %c0_50 = arith.constant 0 : index
    %56 = vector.load %arg3[%c0_49, %c0_50] : memref<1x32xf32, #tpu.memory_space<vmem>>, vector<1x32xf32>
    %57 = vector.broadcast %56 : vector<1x32xf32> to vector<22x32xf32>
    %58 = arith.addf %55, %57 : vector<22x32xf32>
    %c0_51 = arith.constant 0 : index
    %c0_52 = arith.constant 0 : index
    %c0_53 = arith.constant 0 : index
    %59 = vector.load %arg4[%c0_51, %c0_52, %c0_53] : memref<1x22x32xbf16, #tpu.memory_space<vmem>>, vector<1x22x32xbf16>
    %60 = vector.shape_cast %59 : vector<1x22x32xbf16> to vector<22x32xbf16>
    %61 = arith.extf %60 : vector<22x32xbf16> to vector<22x32xf32>
    %62 = arith.addf %58, %61 : vector<22x32xf32>
    %c0_54 = arith.constant 0 : index
    %c0_55 = arith.constant 0 : index
    %c0_56 = arith.constant 0 : index
    %63 = vector.load %arg5[%c0_54, %c0_55, %c0_56] : memref<1x22x1xf32, #tpu.memory_space<vmem>>, vector<1x22x1xf32>
    %64 = vector.shape_cast %63 : vector<1x22x1xf32> to vector<22x1xf32>
    %65 = vector.broadcast %64 : vector<22x1xf32> to vector<22x32xf32>
    %66 = arith.mulf %62, %65 : vector<22x32xf32>
    %cst_57 = arith.constant dense<0.000000e+00> : vector<32xf32>
    %67 = vector.multi_reduction <add>, %66, %cst_57 [0] : vector<22x32xf32> to vector<32xf32>
    %68 = vector.shape_cast %67 : vector<32xf32> to vector<1x32xf32>
    %cst_58 = arith.constant 6.250000e-02 : f32
    %69 = vector.broadcast %cst_58 : f32 to vector<1x32xf32>
    %70 = arith.mulf %68, %69 : vector<1x32xf32>
    %71 = vector.broadcast %70 : vector<1x32xf32> to vector<22x32xf32>
    %72 = arith.subf %62, %71 : vector<22x32xf32>
    %73 = vector.broadcast %64 : vector<22x1xf32> to vector<22x32xf32>
    %74 = arith.mulf %72, %73 : vector<22x32xf32>
    %c0_59 = arith.constant 0 : index
    %c0_60 = arith.constant 0 : index
    %c0_61 = arith.constant 0 : index
    %75 = vector.load %arg7[%c0_59, %c0_60, %c0_61] : memref<1x1x32xf32, #tpu.memory_space<vmem>>, vector<1x1x32xf32>
    %76 = vector.shape_cast %75 : vector<1x1x32xf32> to vector<1x32xf32>
    %77 = vector.shape_cast %68 : vector<1x32xf32> to vector<1x1x32xf32>
    tpu.vector_store %arg7[%c0_59, %c0_60, %c0_61], %77 {strides = array<i32>} : memref<1x1x32xf32, #tpu.memory_space<vmem>>, vector<1x1x32xf32>,
    %78 = arith.mulf %74, %74 : vector<22x32xf32>
    %cst_62 = arith.constant dense<0.000000e+00> : vector<32xf32>
    %79 = vector.multi_reduction <add>, %78, %cst_62 [0] : vector<22x32xf32> to vector<32xf32>
    %80 = vector.shape_cast %79 : vector<32xf32> to vector<1x32xf32>
    %c0_63 = arith.constant 0 : index
    %c0_64 = arith.constant 0 : index
    %c0_65 = arith.constant 0 : index
    %81 = vector.load %arg8[%c0_63, %c0_64, %c0_65] : memref<1x1x32xf32, #tpu.memory_space<vmem>>, vector<1x1x32xf32>
    %82 = vector.shape_cast %81 : vector<1x1x32xf32> to vector<1x32xf32>
    %83 = vector.shape_cast %80 : vector<1x32xf32> to vector<1x1x32xf32>
    tpu.vector_store %arg8[%c0_63, %c0_64, %c0_65], %83 {strides = array<i32>} : memref<1x1x32xf32, #tpu.memory_space<vmem>>, vector<1x1x32xf32>,
    %84 = arith.truncf %62 : vector<22x32xf32> to vector<22x32xbf16>
    %c0_66 = arith.constant 0 : index
    %c0_67 = arith.constant 0 : index
    %c0_68 = arith.constant 0 : index
    %85 = vector.load %arg6[%c0_66, %c0_67, %c0_68] : memref<1x22x32xbf16, #tpu.memory_space<vmem>>, vector<1x22x32xbf16>
    %86 = vector.shape_cast %85 : vector<1x22x32xbf16> to vector<22x32xbf16>
    %87 = vector.shape_cast %84 : vector<22x32xbf16> to vector<1x22x32xbf16>
    tpu.vector_store %arg6[%c0_66, %c0_67, %c0_68], %87 {strides = array<i32>} : memref<1x22x32xbf16, #tpu.memory_space<vmem>>, vector<1x22x32xbf16>,
    return
  }
  func.func @transform_0(%arg0: i32) -> (i32, i32, i32) {
    %c0_i32 = arith.constant 0 : i32
    %c0_i32_0 = arith.constant 0 : i32
    %c0_i32_1 = arith.constant 0 : i32
    return %arg0, %c0_i32, %c0_i32_0 : i32, i32, i32
  }
  func.func @transform_1(%arg0: i32) -> (i32, i32, i32) {
    %c0_i32 = arith.constant 0 : i32
    %c0_i32_0 = arith.constant 0 : i32
    %c0_i32_1 = arith.constant 0 : i32
    %c0_i32_2 = arith.constant 0 : i32
    return %c0_i32, %c0_i32_0, %c0_i32_1 : i32, i32, i32
  }
  func.func @transform_2(%arg0: i32) -> (i32, i32) {
    %c0_i32 = arith.constant 0 : i32
    %c0_i32_0 = arith.constant 0 : i32
    %c0_i32_1 = arith.constant 0 : i32
    return %c0_i32, %c0_i32_0 : i32, i32
  }
  func.func @transform_3(%arg0: i32) -> (i32, i32, i32) {
    %c0_i32 = arith.constant 0 : i32
    %c0_i32_0 = arith.constant 0 : i32
    %c0_i32_1 = arith.constant 0 : i32
    return %arg0, %c0_i32, %c0_i32_0 : i32, i32, i32
  }
  func.func @transform_4(%arg0: i32) -> (i32, i32, i32) {
    %c0_i32 = arith.constant 0 : i32
    %c0_i32_0 = arith.constant 0 : i32
    %c0_i32_1 = arith.constant 0 : i32
    %c0_i32_2 = arith.constant 0 : i32
    return %c0_i32, %c0_i32_0, %c0_i32_1 : i32, i32, i32
  }
  func.func @transform_5(%arg0: i32) -> (i32, i32, i32) {
    %c0_i32 = arith.constant 0 : i32
    %c0_i32_0 = arith.constant 0 : i32
    %c0_i32_1 = arith.constant 0 : i32
    return %arg0, %c0_i32, %c0_i32_0 : i32, i32, i32
  }
  func.func @transform_6(%arg0: i32) -> (i32, i32, i32) {
    %c0_i32 = arith.constant 0 : i32
    %c0_i32_0 = arith.constant 0 : i32
    %c0_i32_1 = arith.constant 0 : i32
    return %arg0, %c0_i32, %c0_i32_0 : i32, i32, i32
  }
  func.func @transform_7(%arg0: i32) -> (i32, i32, i32) {
    %c0_i32 = arith.constant 0 : i32
    %c0_i32_0 = arith.constant 0 : i32
    %c0_i32_1 = arith.constant 0 : i32
    return %arg0, %c0_i32, %c0_i32_0 : i32, i32, i32
  }
}

module attributes {stable_mosaic.version = 11 : i64} {
  func.func @kernel(%arg0: i32, %arg1: memref<1x100x16xbf16, #tpu.memory_space<vmem>>, %arg2: memref<9x16x16xbf16, #tpu.memory_space<vmem>>, %arg3: memref<1x16xf32, #tpu.memory_space<vmem>>, %arg4: memref<1x16xf32, #tpu.memory_space<vmem>>, %arg5: memref<1x16xf32, #tpu.memory_space<vmem>>, %arg6: memref<1x100x1xf32, #tpu.memory_space<vmem>>, %arg7: memref<1x78x16xbf16, #tpu.memory_space<vmem>>, %arg8: memref<1x78x1xf32, #tpu.memory_space<vmem>>, %arg9: memref<1x78x16xbf16, #tpu.memory_space<vmem>>, %arg10: memref<1x1x16xf32, #tpu.memory_space<vmem>>, %arg11: memref<1x1x16xf32, #tpu.memory_space<vmem>>, %arg12: memref<100x16xbf16, #tpu.memory_space<vmem>>) attributes {dimension_semantics = [#tpu.dimension_semantics<parallel>], iteration_bounds = array<i64: 2>, scalar_prefetch = 0 : i64, scratch_operands = 1 : i64, tpu.core_type = #tpu.core_type<tc>, window_params = [{transform_indices = @transform_0, window_bounds = array<i64: 1, 100, 16>}, {pipeline_mode = #tpu.pipeline_mode<synchronous>, transform_indices = @transform_1, window_bounds = array<i64: 9, 16, 16>}, {pipeline_mode = #tpu.pipeline_mode<synchronous>, transform_indices = @transform_2, window_bounds = array<i64: 1, 16>}, {pipeline_mode = #tpu.pipeline_mode<synchronous>, transform_indices = @transform_3, window_bounds = array<i64: 1, 16>}, {pipeline_mode = #tpu.pipeline_mode<synchronous>, transform_indices = @transform_4, window_bounds = array<i64: 1, 16>}, {pipeline_mode = #tpu.pipeline_mode<synchronous>, transform_indices = @transform_5, window_bounds = array<i64: 1, 100, 1>}, {transform_indices = @transform_6, window_bounds = array<i64: 1, 78, 16>}, {pipeline_mode = #tpu.pipeline_mode<synchronous>, transform_indices = @transform_7, window_bounds = array<i64: 1, 78, 1>}, {transform_indices = @transform_8, window_bounds = array<i64: 1, 78, 16>}, {transform_indices = @transform_9, window_bounds = array<i64: 1, 1, 16>}, {transform_indices = @transform_10, window_bounds = array<i64: 1, 1, 16>}]} {
    %c0 = arith.constant 0 : index
    %c0_0 = arith.constant 0 : index
    %c0_1 = arith.constant 0 : index
    %0 = vector.load %arg1[%c0, %c0_0, %c0_1] : memref<1x100x16xbf16, #tpu.memory_space<vmem>>, vector<1x100x16xbf16>
    %1 = vector.shape_cast %0 : vector<1x100x16xbf16> to vector<100x16xbf16>
    %2 = arith.extf %1 : vector<100x16xbf16> to vector<100x16xf32>
    %c0_2 = arith.constant 0 : index
    %c0_3 = arith.constant 0 : index
    %3 = vector.load %arg4[%c0_2, %c0_3] : memref<1x16xf32, #tpu.memory_space<vmem>>, vector<1x16xf32>
    %4 = vector.broadcast %3 : vector<1x16xf32> to vector<100x16xf32>
    %5 = arith.mulf %2, %4 : vector<100x16xf32>
    %c0_4 = arith.constant 0 : index
    %c0_5 = arith.constant 0 : index
    %6 = vector.load %arg5[%c0_4, %c0_5] : memref<1x16xf32, #tpu.memory_space<vmem>>, vector<1x16xf32>
    %7 = vector.broadcast %6 : vector<1x16xf32> to vector<100x16xf32>
    %8 = arith.addf %5, %7 : vector<100x16xf32>
    %c0_6 = arith.constant 0 : index
    %c0_7 = arith.constant 0 : index
    %c0_8 = arith.constant 0 : index
    %9 = vector.load %arg6[%c0_6, %c0_7, %c0_8] : memref<1x100x1xf32, #tpu.memory_space<vmem>>, vector<1x100x1xf32>
    %10 = vector.shape_cast %9 : vector<1x100x1xf32> to vector<100x1xf32>
    %11 = vector.broadcast %10 : vector<100x1xf32> to vector<100x16xf32>
    %12 = arith.mulf %8, %11 : vector<100x16xf32>
    %cst = arith.constant 0.000000e+00 : f32
    %13 = vector.broadcast %cst : f32 to vector<100x16xf32>
    %14 = arith.cmpf oge, %12, %13 : vector<100x16xf32>
    %cst_9 = arith.constant 0.00999999977 : f32
    %15 = vector.broadcast %cst_9 : f32 to vector<100x16xf32>
    %16 = arith.mulf %15, %12 : vector<100x16xf32>
    %17 = arith.select %14, %12, %16 : vector<100x16xi1>, vector<100x16xf32>
    %18 = arith.truncf %17 : vector<100x16xf32> to vector<100x16xbf16>
    %c0_10 = arith.constant 0 : index
    %c0_11 = arith.constant 0 : index
    %19 = vector.load %arg12[%c0_10, %c0_11] : memref<100x16xbf16, #tpu.memory_space<vmem>>, vector<100x16xbf16>
    tpu.vector_store %arg12[%c0_10, %c0_11], %18 {strides = array<i32>} : memref<100x16xbf16, #tpu.memory_space<vmem>>, vector<100x16xbf16>,
    %cst_12 = arith.constant 0.000000e+00 : f32
    %20 = vector.broadcast %cst_12 : f32 to vector<78x16xf32>
    %c0_13 = arith.constant 0 : index
    %c0_14 = arith.constant 0 : index
    %21 = vector.load %arg12[%c0_13, %c0_14] : memref<100x16xbf16, #tpu.memory_space<vmem>>, vector<78x16xbf16>
    %c0_15 = arith.constant 0 : index
    %c0_16 = arith.constant 0 : index
    %c0_17 = arith.constant 0 : index
    %22 = vector.load %arg2[%c0_15, %c0_16, %c0_17] : memref<9x16x16xbf16, #tpu.memory_space<vmem>>, vector<1x16x16xbf16>
    %23 = vector.shape_cast %22 : vector<1x16x16xbf16> to vector<16x16xbf16>
    %cst_18 = arith.constant dense<0.000000e+00> : vector<78x16xf32>
    %24 = tpu.matmul %21, %23, %cst_18 {dimension_numbers = #tpu.dot_dimension_numbers<[1], [0], [0], [1], [0, 0, 1, 1], [], []>} : vector<78x16xbf16>, vector<16x16xbf16>, vector<78x16xf32> -> vector<78x16xf32>
    %25 = arith.addf %20, %24 : vector<78x16xf32>
    %c1 = arith.constant 1 : index
    %c0_19 = arith.constant 0 : index
    %26 = vector.load %arg12[%c1, %c0_19] : memref<100x16xbf16, #tpu.memory_space<vmem>>, vector<78x16xbf16>
    %c1_20 = arith.constant 1 : index
    %c0_21 = arith.constant 0 : index
    %c0_22 = arith.constant 0 : index
    %27 = vector.load %arg2[%c1_20, %c0_21, %c0_22] : memref<9x16x16xbf16, #tpu.memory_space<vmem>>, vector<1x16x16xbf16>
    %28 = vector.shape_cast %27 : vector<1x16x16xbf16> to vector<16x16xbf16>
    %cst_23 = arith.constant dense<0.000000e+00> : vector<78x16xf32>
    %29 = tpu.matmul %26, %28, %cst_23 {dimension_numbers = #tpu.dot_dimension_numbers<[1], [0], [0], [1], [0, 0, 1, 1], [], []>} : vector<78x16xbf16>, vector<16x16xbf16>, vector<78x16xf32> -> vector<78x16xf32>
    %30 = arith.addf %25, %29 : vector<78x16xf32>
    %c2 = arith.constant 2 : index
    %c0_24 = arith.constant 0 : index
    %31 = vector.load %arg12[%c2, %c0_24] : memref<100x16xbf16, #tpu.memory_space<vmem>>, vector<78x16xbf16>
    %c2_25 = arith.constant 2 : index
    %c0_26 = arith.constant 0 : index
    %c0_27 = arith.constant 0 : index
    %32 = vector.load %arg2[%c2_25, %c0_26, %c0_27] : memref<9x16x16xbf16, #tpu.memory_space<vmem>>, vector<1x16x16xbf16>
    %33 = vector.shape_cast %32 : vector<1x16x16xbf16> to vector<16x16xbf16>
    %cst_28 = arith.constant dense<0.000000e+00> : vector<78x16xf32>
    %34 = tpu.matmul %31, %33, %cst_28 {dimension_numbers = #tpu.dot_dimension_numbers<[1], [0], [0], [1], [0, 0, 1, 1], [], []>} : vector<78x16xbf16>, vector<16x16xbf16>, vector<78x16xf32> -> vector<78x16xf32>
    %35 = arith.addf %30, %34 : vector<78x16xf32>
    %c10 = arith.constant 10 : index
    %c0_29 = arith.constant 0 : index
    %36 = vector.load %arg12[%c10, %c0_29] : memref<100x16xbf16, #tpu.memory_space<vmem>>, vector<78x16xbf16>
    %c3 = arith.constant 3 : index
    %c0_30 = arith.constant 0 : index
    %c0_31 = arith.constant 0 : index
    %37 = vector.load %arg2[%c3, %c0_30, %c0_31] : memref<9x16x16xbf16, #tpu.memory_space<vmem>>, vector<1x16x16xbf16>
    %38 = vector.shape_cast %37 : vector<1x16x16xbf16> to vector<16x16xbf16>
    %cst_32 = arith.constant dense<0.000000e+00> : vector<78x16xf32>
    %39 = tpu.matmul %36, %38, %cst_32 {dimension_numbers = #tpu.dot_dimension_numbers<[1], [0], [0], [1], [0, 0, 1, 1], [], []>} : vector<78x16xbf16>, vector<16x16xbf16>, vector<78x16xf32> -> vector<78x16xf32>
    %40 = arith.addf %35, %39 : vector<78x16xf32>
    %c11 = arith.constant 11 : index
    %c0_33 = arith.constant 0 : index
    %41 = vector.load %arg12[%c11, %c0_33] : memref<100x16xbf16, #tpu.memory_space<vmem>>, vector<78x16xbf16>
    %c4 = arith.constant 4 : index
    %c0_34 = arith.constant 0 : index
    %c0_35 = arith.constant 0 : index
    %42 = vector.load %arg2[%c4, %c0_34, %c0_35] : memref<9x16x16xbf16, #tpu.memory_space<vmem>>, vector<1x16x16xbf16>
    %43 = vector.shape_cast %42 : vector<1x16x16xbf16> to vector<16x16xbf16>
    %cst_36 = arith.constant dense<0.000000e+00> : vector<78x16xf32>
    %44 = tpu.matmul %41, %43, %cst_36 {dimension_numbers = #tpu.dot_dimension_numbers<[1], [0], [0], [1], [0, 0, 1, 1], [], []>} : vector<78x16xbf16>, vector<16x16xbf16>, vector<78x16xf32> -> vector<78x16xf32>
    %45 = arith.addf %40, %44 : vector<78x16xf32>
    %c12 = arith.constant 12 : index
    %c0_37 = arith.constant 0 : index
    %46 = vector.load %arg12[%c12, %c0_37] : memref<100x16xbf16, #tpu.memory_space<vmem>>, vector<78x16xbf16>
    %c5 = arith.constant 5 : index
    %c0_38 = arith.constant 0 : index
    %c0_39 = arith.constant 0 : index
    %47 = vector.load %arg2[%c5, %c0_38, %c0_39] : memref<9x16x16xbf16, #tpu.memory_space<vmem>>, vector<1x16x16xbf16>
    %48 = vector.shape_cast %47 : vector<1x16x16xbf16> to vector<16x16xbf16>
    %cst_40 = arith.constant dense<0.000000e+00> : vector<78x16xf32>
    %49 = tpu.matmul %46, %48, %cst_40 {dimension_numbers = #tpu.dot_dimension_numbers<[1], [0], [0], [1], [0, 0, 1, 1], [], []>} : vector<78x16xbf16>, vector<16x16xbf16>, vector<78x16xf32> -> vector<78x16xf32>
    %50 = arith.addf %45, %49 : vector<78x16xf32>
    %c20 = arith.constant 20 : index
    %c0_41 = arith.constant 0 : index
    %51 = vector.load %arg12[%c20, %c0_41] : memref<100x16xbf16, #tpu.memory_space<vmem>>, vector<78x16xbf16>
    %c6 = arith.constant 6 : index
    %c0_42 = arith.constant 0 : index
    %c0_43 = arith.constant 0 : index
    %52 = vector.load %arg2[%c6, %c0_42, %c0_43] : memref<9x16x16xbf16, #tpu.memory_space<vmem>>, vector<1x16x16xbf16>
    %53 = vector.shape_cast %52 : vector<1x16x16xbf16> to vector<16x16xbf16>
    %cst_44 = arith.constant dense<0.000000e+00> : vector<78x16xf32>
    %54 = tpu.matmul %51, %53, %cst_44 {dimension_numbers = #tpu.dot_dimension_numbers<[1], [0], [0], [1], [0, 0, 1, 1], [], []>} : vector<78x16xbf16>, vector<16x16xbf16>, vector<78x16xf32> -> vector<78x16xf32>
    %55 = arith.addf %50, %54 : vector<78x16xf32>
    %c21 = arith.constant 21 : index
    %c0_45 = arith.constant 0 : index
    %56 = vector.load %arg12[%c21, %c0_45] : memref<100x16xbf16, #tpu.memory_space<vmem>>, vector<78x16xbf16>
    %c7 = arith.constant 7 : index
    %c0_46 = arith.constant 0 : index
    %c0_47 = arith.constant 0 : index
    %57 = vector.load %arg2[%c7, %c0_46, %c0_47] : memref<9x16x16xbf16, #tpu.memory_space<vmem>>, vector<1x16x16xbf16>
    %58 = vector.shape_cast %57 : vector<1x16x16xbf16> to vector<16x16xbf16>
    %cst_48 = arith.constant dense<0.000000e+00> : vector<78x16xf32>
    %59 = tpu.matmul %56, %58, %cst_48 {dimension_numbers = #tpu.dot_dimension_numbers<[1], [0], [0], [1], [0, 0, 1, 1], [], []>} : vector<78x16xbf16>, vector<16x16xbf16>, vector<78x16xf32> -> vector<78x16xf32>
    %60 = arith.addf %55, %59 : vector<78x16xf32>
    %c22 = arith.constant 22 : index
    %c0_49 = arith.constant 0 : index
    %61 = vector.load %arg12[%c22, %c0_49] : memref<100x16xbf16, #tpu.memory_space<vmem>>, vector<78x16xbf16>
    %c8 = arith.constant 8 : index
    %c0_50 = arith.constant 0 : index
    %c0_51 = arith.constant 0 : index
    %62 = vector.load %arg2[%c8, %c0_50, %c0_51] : memref<9x16x16xbf16, #tpu.memory_space<vmem>>, vector<1x16x16xbf16>
    %63 = vector.shape_cast %62 : vector<1x16x16xbf16> to vector<16x16xbf16>
    %cst_52 = arith.constant dense<0.000000e+00> : vector<78x16xf32>
    %64 = tpu.matmul %61, %63, %cst_52 {dimension_numbers = #tpu.dot_dimension_numbers<[1], [0], [0], [1], [0, 0, 1, 1], [], []>} : vector<78x16xbf16>, vector<16x16xbf16>, vector<78x16xf32> -> vector<78x16xf32>
    %65 = arith.addf %60, %64 : vector<78x16xf32>
    %c0_53 = arith.constant 0 : index
    %c0_54 = arith.constant 0 : index
    %66 = vector.load %arg3[%c0_53, %c0_54] : memref<1x16xf32, #tpu.memory_space<vmem>>, vector<1x16xf32>
    %67 = vector.broadcast %66 : vector<1x16xf32> to vector<78x16xf32>
    %68 = arith.addf %65, %67 : vector<78x16xf32>
    %c0_55 = arith.constant 0 : index
    %c0_56 = arith.constant 0 : index
    %c0_57 = arith.constant 0 : index
    %69 = vector.load %arg7[%c0_55, %c0_56, %c0_57] : memref<1x78x16xbf16, #tpu.memory_space<vmem>>, vector<1x78x16xbf16>
    %70 = vector.shape_cast %69 : vector<1x78x16xbf16> to vector<78x16xbf16>
    %71 = arith.extf %70 : vector<78x16xbf16> to vector<78x16xf32>
    %72 = arith.addf %68, %71 : vector<78x16xf32>
    %c0_58 = arith.constant 0 : index
    %c0_59 = arith.constant 0 : index
    %c0_60 = arith.constant 0 : index
    %73 = vector.load %arg8[%c0_58, %c0_59, %c0_60] : memref<1x78x1xf32, #tpu.memory_space<vmem>>, vector<1x78x1xf32>
    %74 = vector.shape_cast %73 : vector<1x78x1xf32> to vector<78x1xf32>
    %75 = vector.broadcast %74 : vector<78x1xf32> to vector<78x16xf32>
    %76 = arith.mulf %72, %75 : vector<78x16xf32>
    %cst_61 = arith.constant dense<0.000000e+00> : vector<16xf32>
    %77 = vector.multi_reduction <add>, %76, %cst_61 [0] : vector<78x16xf32> to vector<16xf32>
    %78 = vector.shape_cast %77 : vector<16xf32> to vector<1x16xf32>
    %cst_62 = arith.constant 1.562500e-02 : f32
    %79 = vector.broadcast %cst_62 : f32 to vector<1x16xf32>
    %80 = arith.mulf %78, %79 : vector<1x16xf32>
    %81 = vector.broadcast %80 : vector<1x16xf32> to vector<78x16xf32>
    %82 = arith.subf %72, %81 : vector<78x16xf32>
    %83 = vector.broadcast %74 : vector<78x1xf32> to vector<78x16xf32>
    %84 = arith.mulf %82, %83 : vector<78x16xf32>
    %c0_63 = arith.constant 0 : index
    %c0_64 = arith.constant 0 : index
    %c0_65 = arith.constant 0 : index
    %85 = vector.load %arg10[%c0_63, %c0_64, %c0_65] : memref<1x1x16xf32, #tpu.memory_space<vmem>>, vector<1x1x16xf32>
    %86 = vector.shape_cast %85 : vector<1x1x16xf32> to vector<1x16xf32>
    %87 = vector.shape_cast %78 : vector<1x16xf32> to vector<1x1x16xf32>
    tpu.vector_store %arg10[%c0_63, %c0_64, %c0_65], %87 {strides = array<i32>} : memref<1x1x16xf32, #tpu.memory_space<vmem>>, vector<1x1x16xf32>,
    %88 = arith.mulf %84, %84 : vector<78x16xf32>
    %cst_66 = arith.constant dense<0.000000e+00> : vector<16xf32>
    %89 = vector.multi_reduction <add>, %88, %cst_66 [0] : vector<78x16xf32> to vector<16xf32>
    %90 = vector.shape_cast %89 : vector<16xf32> to vector<1x16xf32>
    %c0_67 = arith.constant 0 : index
    %c0_68 = arith.constant 0 : index
    %c0_69 = arith.constant 0 : index
    %91 = vector.load %arg11[%c0_67, %c0_68, %c0_69] : memref<1x1x16xf32, #tpu.memory_space<vmem>>, vector<1x1x16xf32>
    %92 = vector.shape_cast %91 : vector<1x1x16xf32> to vector<1x16xf32>
    %93 = vector.shape_cast %90 : vector<1x16xf32> to vector<1x1x16xf32>
    tpu.vector_store %arg11[%c0_67, %c0_68, %c0_69], %93 {strides = array<i32>} : memref<1x1x16xf32, #tpu.memory_space<vmem>>, vector<1x1x16xf32>,
    %94 = arith.truncf %72 : vector<78x16xf32> to vector<78x16xbf16>
    %c0_70 = arith.constant 0 : index
    %c0_71 = arith.constant 0 : index
    %c0_72 = arith.constant 0 : index
    %95 = vector.load %arg9[%c0_70, %c0_71, %c0_72] : memref<1x78x16xbf16, #tpu.memory_space<vmem>>, vector<1x78x16xbf16>
    %96 = vector.shape_cast %95 : vector<1x78x16xbf16> to vector<78x16xbf16>
    %97 = vector.shape_cast %94 : vector<78x16xbf16> to vector<1x78x16xbf16>
    tpu.vector_store %arg9[%c0_70, %c0_71, %c0_72], %97 {strides = array<i32>} : memref<1x78x16xbf16, #tpu.memory_space<vmem>>, vector<1x78x16xbf16>,
    return
  }
  func.func @transform_0(%arg0: i32) -> (i32, i32, i32) {
    %c0_i32 = arith.constant 0 : i32
    %c0_i32_0 = arith.constant 0 : i32
    %c0_i32_1 = arith.constant 0 : i32
    return %arg0, %c0_i32, %c0_i32_0 : i32, i32, i32
  }
  func.func @transform_1(%arg0: i32) -> (i32, i32, i32) {
    %c0_i32 = arith.constant 0 : i32
    %c0_i32_0 = arith.constant 0 : i32
    %c0_i32_1 = arith.constant 0 : i32
    %c0_i32_2 = arith.constant 0 : i32
    return %c0_i32, %c0_i32_0, %c0_i32_1 : i32, i32, i32
  }
  func.func @transform_2(%arg0: i32) -> (i32, i32) {
    %c0_i32 = arith.constant 0 : i32
    %c0_i32_0 = arith.constant 0 : i32
    %c0_i32_1 = arith.constant 0 : i32
    return %c0_i32, %c0_i32_0 : i32, i32
  }
  func.func @transform_3(%arg0: i32) -> (i32, i32) {
    %c0_i32 = arith.constant 0 : i32
    %c0_i32_0 = arith.constant 0 : i32
    %c0_i32_1 = arith.constant 0 : i32
    return %c0_i32, %c0_i32_0 : i32, i32
  }
  func.func @transform_4(%arg0: i32) -> (i32, i32) {
    %c0_i32 = arith.constant 0 : i32
    %c0_i32_0 = arith.constant 0 : i32
    %c0_i32_1 = arith.constant 0 : i32
    return %c0_i32, %c0_i32_0 : i32, i32
  }
  func.func @transform_5(%arg0: i32) -> (i32, i32, i32) {
    %c0_i32 = arith.constant 0 : i32
    %c0_i32_0 = arith.constant 0 : i32
    %c0_i32_1 = arith.constant 0 : i32
    %c0_i32_2 = arith.constant 0 : i32
    return %c0_i32, %c0_i32_0, %c0_i32_1 : i32, i32, i32
  }
  func.func @transform_6(%arg0: i32) -> (i32, i32, i32) {
    %c0_i32 = arith.constant 0 : i32
    %c0_i32_0 = arith.constant 0 : i32
    %c0_i32_1 = arith.constant 0 : i32
    return %arg0, %c0_i32, %c0_i32_0 : i32, i32, i32
  }
  func.func @transform_7(%arg0: i32) -> (i32, i32, i32) {
    %c0_i32 = arith.constant 0 : i32
    %c0_i32_0 = arith.constant 0 : i32
    %c0_i32_1 = arith.constant 0 : i32
    %c0_i32_2 = arith.constant 0 : i32
    return %c0_i32, %c0_i32_0, %c0_i32_1 : i32, i32, i32
  }
  func.func @transform_8(%arg0: i32) -> (i32, i32, i32) {
    %c0_i32 = arith.constant 0 : i32
    %c0_i32_0 = arith.constant 0 : i32
    %c0_i32_1 = arith.constant 0 : i32
    return %arg0, %c0_i32, %c0_i32_0 : i32, i32, i32
  }
  func.func @transform_9(%arg0: i32) -> (i32, i32, i32) {
    %c0_i32 = arith.constant 0 : i32
    %c0_i32_0 = arith.constant 0 : i32
    %c0_i32_1 = arith.constant 0 : i32
    return %arg0, %c0_i32, %c0_i32_0 : i32, i32, i32
  }
  func.func @transform_10(%arg0: i32) -> (i32, i32, i32) {
    %c0_i32 = arith.constant 0 : i32
    %c0_i32_0 = arith.constant 0 : i32
    %c0_i32_1 = arith.constant 0 : i32
    return %arg0, %c0_i32, %c0_i32_0 : i32, i32, i32
  }
}

module attributes {stable_mosaic.version = 11 : i64} {
  func.func @kernel(%arg0: i32, %arg1: memref<1x324x6xbf16, #tpu.memory_space<vmem>>, %arg2: memref<9x6x2xbf16, #tpu.memory_space<vmem>>, %arg3: memref<1x2xf32, #tpu.memory_space<vmem>>, %arg4: memref<1x6xf32, #tpu.memory_space<vmem>>, %arg5: memref<1x6xf32, #tpu.memory_space<vmem>>, %arg6: memref<1x324x1xf32, #tpu.memory_space<vmem>>, %arg7: memref<1x286x2xf32, #tpu.memory_space<vmem>>, %arg8: memref<324x6xbf16, #tpu.memory_space<vmem>>) attributes {dimension_semantics = [#tpu.dimension_semantics<parallel>], iteration_bounds = array<i64: 2>, scalar_prefetch = 0 : i64, scratch_operands = 1 : i64, tpu.core_type = #tpu.core_type<tc>, window_params = [{transform_indices = @transform_0, window_bounds = array<i64: 1, 324, 6>}, {pipeline_mode = #tpu.pipeline_mode<synchronous>, transform_indices = @transform_1, window_bounds = array<i64: 9, 6, 2>}, {pipeline_mode = #tpu.pipeline_mode<synchronous>, transform_indices = @transform_2, window_bounds = array<i64: 1, 2>}, {pipeline_mode = #tpu.pipeline_mode<synchronous>, transform_indices = @transform_3, window_bounds = array<i64: 1, 6>}, {pipeline_mode = #tpu.pipeline_mode<synchronous>, transform_indices = @transform_4, window_bounds = array<i64: 1, 6>}, {pipeline_mode = #tpu.pipeline_mode<synchronous>, transform_indices = @transform_5, window_bounds = array<i64: 1, 324, 1>}, {transform_indices = @transform_6, window_bounds = array<i64: 1, 286, 2>}]} {
    %c0 = arith.constant 0 : index
    %c0_0 = arith.constant 0 : index
    %c0_1 = arith.constant 0 : index
    %0 = vector.load %arg1[%c0, %c0_0, %c0_1] : memref<1x324x6xbf16, #tpu.memory_space<vmem>>, vector<1x324x6xbf16>
    %1 = vector.shape_cast %0 : vector<1x324x6xbf16> to vector<324x6xbf16>
    %2 = arith.extf %1 : vector<324x6xbf16> to vector<324x6xf32>
    %c0_2 = arith.constant 0 : index
    %c0_3 = arith.constant 0 : index
    %3 = vector.load %arg4[%c0_2, %c0_3] : memref<1x6xf32, #tpu.memory_space<vmem>>, vector<1x6xf32>
    %4 = vector.broadcast %3 : vector<1x6xf32> to vector<324x6xf32>
    %5 = arith.mulf %2, %4 : vector<324x6xf32>
    %c0_4 = arith.constant 0 : index
    %c0_5 = arith.constant 0 : index
    %6 = vector.load %arg5[%c0_4, %c0_5] : memref<1x6xf32, #tpu.memory_space<vmem>>, vector<1x6xf32>
    %7 = vector.broadcast %6 : vector<1x6xf32> to vector<324x6xf32>
    %8 = arith.addf %5, %7 : vector<324x6xf32>
    %c0_6 = arith.constant 0 : index
    %c0_7 = arith.constant 0 : index
    %c0_8 = arith.constant 0 : index
    %9 = vector.load %arg6[%c0_6, %c0_7, %c0_8] : memref<1x324x1xf32, #tpu.memory_space<vmem>>, vector<1x324x1xf32>
    %10 = vector.shape_cast %9 : vector<1x324x1xf32> to vector<324x1xf32>
    %11 = vector.broadcast %10 : vector<324x1xf32> to vector<324x6xf32>
    %12 = arith.mulf %8, %11 : vector<324x6xf32>
    %13 = arith.truncf %12 : vector<324x6xf32> to vector<324x6xbf16>
    %c0_9 = arith.constant 0 : index
    %c0_10 = arith.constant 0 : index
    %14 = vector.load %arg8[%c0_9, %c0_10] : memref<324x6xbf16, #tpu.memory_space<vmem>>, vector<324x6xbf16>
    tpu.vector_store %arg8[%c0_9, %c0_10], %13 {strides = array<i32>} : memref<324x6xbf16, #tpu.memory_space<vmem>>, vector<324x6xbf16>,
    %cst = arith.constant 0.000000e+00 : f32
    %15 = vector.broadcast %cst : f32 to vector<286x2xf32>
    %c0_11 = arith.constant 0 : index
    %c0_12 = arith.constant 0 : index
    %16 = vector.load %arg8[%c0_11, %c0_12] : memref<324x6xbf16, #tpu.memory_space<vmem>>, vector<286x6xbf16>
    %c0_13 = arith.constant 0 : index
    %c0_14 = arith.constant 0 : index
    %c0_15 = arith.constant 0 : index
    %17 = vector.load %arg2[%c0_13, %c0_14, %c0_15] : memref<9x6x2xbf16, #tpu.memory_space<vmem>>, vector<1x6x2xbf16>
    %18 = vector.shape_cast %17 : vector<1x6x2xbf16> to vector<6x2xbf16>
    %cst_16 = arith.constant dense<0.000000e+00> : vector<286x2xf32>
    %19 = tpu.matmul %16, %18, %cst_16 {dimension_numbers = #tpu.dot_dimension_numbers<[1], [0], [0], [1], [0, 0, 1, 1], [], []>} : vector<286x6xbf16>, vector<6x2xbf16>, vector<286x2xf32> -> vector<286x2xf32>
    %20 = arith.addf %15, %19 : vector<286x2xf32>
    %c1 = arith.constant 1 : index
    %c0_17 = arith.constant 0 : index
    %21 = vector.load %arg8[%c1, %c0_17] : memref<324x6xbf16, #tpu.memory_space<vmem>>, vector<286x6xbf16>
    %c1_18 = arith.constant 1 : index
    %c0_19 = arith.constant 0 : index
    %c0_20 = arith.constant 0 : index
    %22 = vector.load %arg2[%c1_18, %c0_19, %c0_20] : memref<9x6x2xbf16, #tpu.memory_space<vmem>>, vector<1x6x2xbf16>
    %23 = vector.shape_cast %22 : vector<1x6x2xbf16> to vector<6x2xbf16>
    %cst_21 = arith.constant dense<0.000000e+00> : vector<286x2xf32>
    %24 = tpu.matmul %21, %23, %cst_21 {dimension_numbers = #tpu.dot_dimension_numbers<[1], [0], [0], [1], [0, 0, 1, 1], [], []>} : vector<286x6xbf16>, vector<6x2xbf16>, vector<286x2xf32> -> vector<286x2xf32>
    %25 = arith.addf %20, %24 : vector<286x2xf32>
    %c2 = arith.constant 2 : index
    %c0_22 = arith.constant 0 : index
    %26 = vector.load %arg8[%c2, %c0_22] : memref<324x6xbf16, #tpu.memory_space<vmem>>, vector<286x6xbf16>
    %c2_23 = arith.constant 2 : index
    %c0_24 = arith.constant 0 : index
    %c0_25 = arith.constant 0 : index
    %27 = vector.load %arg2[%c2_23, %c0_24, %c0_25] : memref<9x6x2xbf16, #tpu.memory_space<vmem>>, vector<1x6x2xbf16>
    %28 = vector.shape_cast %27 : vector<1x6x2xbf16> to vector<6x2xbf16>
    %cst_26 = arith.constant dense<0.000000e+00> : vector<286x2xf32>
    %29 = tpu.matmul %26, %28, %cst_26 {dimension_numbers = #tpu.dot_dimension_numbers<[1], [0], [0], [1], [0, 0, 1, 1], [], []>} : vector<286x6xbf16>, vector<6x2xbf16>, vector<286x2xf32> -> vector<286x2xf32>
    %30 = arith.addf %25, %29 : vector<286x2xf32>
    %c18 = arith.constant 18 : index
    %c0_27 = arith.constant 0 : index
    %31 = vector.load %arg8[%c18, %c0_27] : memref<324x6xbf16, #tpu.memory_space<vmem>>, vector<286x6xbf16>
    %c3 = arith.constant 3 : index
    %c0_28 = arith.constant 0 : index
    %c0_29 = arith.constant 0 : index
    %32 = vector.load %arg2[%c3, %c0_28, %c0_29] : memref<9x6x2xbf16, #tpu.memory_space<vmem>>, vector<1x6x2xbf16>
    %33 = vector.shape_cast %32 : vector<1x6x2xbf16> to vector<6x2xbf16>
    %cst_30 = arith.constant dense<0.000000e+00> : vector<286x2xf32>
    %34 = tpu.matmul %31, %33, %cst_30 {dimension_numbers = #tpu.dot_dimension_numbers<[1], [0], [0], [1], [0, 0, 1, 1], [], []>} : vector<286x6xbf16>, vector<6x2xbf16>, vector<286x2xf32> -> vector<286x2xf32>
    %35 = arith.addf %30, %34 : vector<286x2xf32>
    %c19 = arith.constant 19 : index
    %c0_31 = arith.constant 0 : index
    %36 = vector.load %arg8[%c19, %c0_31] : memref<324x6xbf16, #tpu.memory_space<vmem>>, vector<286x6xbf16>
    %c4 = arith.constant 4 : index
    %c0_32 = arith.constant 0 : index
    %c0_33 = arith.constant 0 : index
    %37 = vector.load %arg2[%c4, %c0_32, %c0_33] : memref<9x6x2xbf16, #tpu.memory_space<vmem>>, vector<1x6x2xbf16>
    %38 = vector.shape_cast %37 : vector<1x6x2xbf16> to vector<6x2xbf16>
    %cst_34 = arith.constant dense<0.000000e+00> : vector<286x2xf32>
    %39 = tpu.matmul %36, %38, %cst_34 {dimension_numbers = #tpu.dot_dimension_numbers<[1], [0], [0], [1], [0, 0, 1, 1], [], []>} : vector<286x6xbf16>, vector<6x2xbf16>, vector<286x2xf32> -> vector<286x2xf32>
    %40 = arith.addf %35, %39 : vector<286x2xf32>
    %c20 = arith.constant 20 : index
    %c0_35 = arith.constant 0 : index
    %41 = vector.load %arg8[%c20, %c0_35] : memref<324x6xbf16, #tpu.memory_space<vmem>>, vector<286x6xbf16>
    %c5 = arith.constant 5 : index
    %c0_36 = arith.constant 0 : index
    %c0_37 = arith.constant 0 : index
    %42 = vector.load %arg2[%c5, %c0_36, %c0_37] : memref<9x6x2xbf16, #tpu.memory_space<vmem>>, vector<1x6x2xbf16>
    %43 = vector.shape_cast %42 : vector<1x6x2xbf16> to vector<6x2xbf16>
    %cst_38 = arith.constant dense<0.000000e+00> : vector<286x2xf32>
    %44 = tpu.matmul %41, %43, %cst_38 {dimension_numbers = #tpu.dot_dimension_numbers<[1], [0], [0], [1], [0, 0, 1, 1], [], []>} : vector<286x6xbf16>, vector<6x2xbf16>, vector<286x2xf32> -> vector<286x2xf32>
    %45 = arith.addf %40, %44 : vector<286x2xf32>
    %c36 = arith.constant 36 : index
    %c0_39 = arith.constant 0 : index
    %46 = vector.load %arg8[%c36, %c0_39] : memref<324x6xbf16, #tpu.memory_space<vmem>>, vector<286x6xbf16>
    %c6 = arith.constant 6 : index
    %c0_40 = arith.constant 0 : index
    %c0_41 = arith.constant 0 : index
    %47 = vector.load %arg2[%c6, %c0_40, %c0_41] : memref<9x6x2xbf16, #tpu.memory_space<vmem>>, vector<1x6x2xbf16>
    %48 = vector.shape_cast %47 : vector<1x6x2xbf16> to vector<6x2xbf16>
    %cst_42 = arith.constant dense<0.000000e+00> : vector<286x2xf32>
    %49 = tpu.matmul %46, %48, %cst_42 {dimension_numbers = #tpu.dot_dimension_numbers<[1], [0], [0], [1], [0, 0, 1, 1], [], []>} : vector<286x6xbf16>, vector<6x2xbf16>, vector<286x2xf32> -> vector<286x2xf32>
    %50 = arith.addf %45, %49 : vector<286x2xf32>
    %c37 = arith.constant 37 : index
    %c0_43 = arith.constant 0 : index
    %51 = vector.load %arg8[%c37, %c0_43] : memref<324x6xbf16, #tpu.memory_space<vmem>>, vector<286x6xbf16>
    %c7 = arith.constant 7 : index
    %c0_44 = arith.constant 0 : index
    %c0_45 = arith.constant 0 : index
    %52 = vector.load %arg2[%c7, %c0_44, %c0_45] : memref<9x6x2xbf16, #tpu.memory_space<vmem>>, vector<1x6x2xbf16>
    %53 = vector.shape_cast %52 : vector<1x6x2xbf16> to vector<6x2xbf16>
    %cst_46 = arith.constant dense<0.000000e+00> : vector<286x2xf32>
    %54 = tpu.matmul %51, %53, %cst_46 {dimension_numbers = #tpu.dot_dimension_numbers<[1], [0], [0], [1], [0, 0, 1, 1], [], []>} : vector<286x6xbf16>, vector<6x2xbf16>, vector<286x2xf32> -> vector<286x2xf32>
    %55 = arith.addf %50, %54 : vector<286x2xf32>
    %c38 = arith.constant 38 : index
    %c0_47 = arith.constant 0 : index
    %56 = vector.load %arg8[%c38, %c0_47] : memref<324x6xbf16, #tpu.memory_space<vmem>>, vector<286x6xbf16>
    %c8 = arith.constant 8 : index
    %c0_48 = arith.constant 0 : index
    %c0_49 = arith.constant 0 : index
    %57 = vector.load %arg2[%c8, %c0_48, %c0_49] : memref<9x6x2xbf16, #tpu.memory_space<vmem>>, vector<1x6x2xbf16>
    %58 = vector.shape_cast %57 : vector<1x6x2xbf16> to vector<6x2xbf16>
    %cst_50 = arith.constant dense<0.000000e+00> : vector<286x2xf32>
    %59 = tpu.matmul %56, %58, %cst_50 {dimension_numbers = #tpu.dot_dimension_numbers<[1], [0], [0], [1], [0, 0, 1, 1], [], []>} : vector<286x6xbf16>, vector<6x2xbf16>, vector<286x2xf32> -> vector<286x2xf32>
    %60 = arith.addf %55, %59 : vector<286x2xf32>
    %c0_51 = arith.constant 0 : index
    %c0_52 = arith.constant 0 : index
    %61 = vector.load %arg3[%c0_51, %c0_52] : memref<1x2xf32, #tpu.memory_space<vmem>>, vector<1x2xf32>
    %62 = vector.broadcast %61 : vector<1x2xf32> to vector<286x2xf32>
    %63 = arith.addf %60, %62 : vector<286x2xf32>
    %c0_53 = arith.constant 0 : index
    %c0_54 = arith.constant 0 : index
    %c0_55 = arith.constant 0 : index
    %64 = vector.load %arg7[%c0_53, %c0_54, %c0_55] : memref<1x286x2xf32, #tpu.memory_space<vmem>>, vector<1x286x2xf32>
    %65 = vector.shape_cast %64 : vector<1x286x2xf32> to vector<286x2xf32>
    %66 = vector.shape_cast %63 : vector<286x2xf32> to vector<1x286x2xf32>
    tpu.vector_store %arg7[%c0_53, %c0_54, %c0_55], %66 {strides = array<i32>} : memref<1x286x2xf32, #tpu.memory_space<vmem>>, vector<1x286x2xf32>,
    return
  }
  func.func @transform_0(%arg0: i32) -> (i32, i32, i32) {
    %c0_i32 = arith.constant 0 : i32
    %c0_i32_0 = arith.constant 0 : i32
    %c0_i32_1 = arith.constant 0 : i32
    return %arg0, %c0_i32, %c0_i32_0 : i32, i32, i32
  }
  func.func @transform_1(%arg0: i32) -> (i32, i32, i32) {
    %c0_i32 = arith.constant 0 : i32
    %c0_i32_0 = arith.constant 0 : i32
    %c0_i32_1 = arith.constant 0 : i32
    %c0_i32_2 = arith.constant 0 : i32
    return %c0_i32, %c0_i32_0, %c0_i32_1 : i32, i32, i32
  }
  func.func @transform_2(%arg0: i32) -> (i32, i32) {
    %c0_i32 = arith.constant 0 : i32
    %c0_i32_0 = arith.constant 0 : i32
    %c0_i32_1 = arith.constant 0 : i32
    return %c0_i32, %c0_i32_0 : i32, i32
  }
  func.func @transform_3(%arg0: i32) -> (i32, i32) {
    %c0_i32 = arith.constant 0 : i32
    %c0_i32_0 = arith.constant 0 : i32
    %c0_i32_1 = arith.constant 0 : i32
    return %c0_i32, %c0_i32_0 : i32, i32
  }
  func.func @transform_4(%arg0: i32) -> (i32, i32) {
    %c0_i32 = arith.constant 0 : i32
    %c0_i32_0 = arith.constant 0 : i32
    %c0_i32_1 = arith.constant 0 : i32
    return %c0_i32, %c0_i32_0 : i32, i32
  }
  func.func @transform_5(%arg0: i32) -> (i32, i32, i32) {
    %c0_i32 = arith.constant 0 : i32
    %c0_i32_0 = arith.constant 0 : i32
    %c0_i32_1 = arith.constant 0 : i32
    %c0_i32_2 = arith.constant 0 : i32
    return %c0_i32, %c0_i32_0, %c0_i32_1 : i32, i32, i32
  }
  func.func @transform_6(%arg0: i32) -> (i32, i32, i32) {
    %c0_i32 = arith.constant 0 : i32
    %c0_i32_0 = arith.constant 0 : i32
    %c0_i32_1 = arith.constant 0 : i32
    return %arg0, %c0_i32, %c0_i32_0 : i32, i32, i32
  }
}

</mosaic_0001>

<bundles_post_ra>
// kernel: unet2_forward.5
= control target key start
LH: loop header
LB: loop body
LE: loop exit
PB: predicated region body
PF: predicated region fallthrough
CT: control target
= control target key end

     0   :  { %s1031_s15 = smov 0   ;;  %s1159_s0 = inlined_call_operand.vmem [shape: bf16[2,81,8], index: 0, kind: input, shape index: {}]   ;;  %s1160_s1 = inlined_call_operand.vmem [shape: bf16[4,8,8], index: 1, kind: input, shape index: {}]   ;;  %s1161_s2 = inlined_call_operand.vmem [shape: f32[1,8], index: 2, kind: input, shape index: {}]   ;;  %s1162_s3 = inlined_call_operand.vmem [shape: bf16[2,71,8], index: 3, kind: input, shape index: {}]   ;;  %s1163_s4 = inlined_call_operand.vmem [shape: bf16[2,71,8], index: 4, kind: output, shape index: {}]  }
   0x1 LB: > { %s846_s16 = sadd.s32 4294967295, %s1004_s15   ;;  %p850_p0 = scmp.ge.s32.totalorder %s1004_s15, 1  ;;  %s1004_s15 = sphi %s1031_s15, %s14_s15  }
   0x2   : > { %p172_p1 = scmp.lt.s32.totalorder %s1004_s15, 3 }
   0x4   : > { %p173_p2 = pnand %p850_p0, %p172_p1 }
   0x5   : > { %p203_p3 = scmp.lt.s32.totalorder (!%p173_p2), %s846_s16, 1 }
   0x6   : > { %176 = sbr.rel (%p173_p2) target bundleno = 251 (0xfb), region = 36 }
   0xb   : > { %v311_v0 = vld [vmem:[%s1160_s1] sm:$0xf]  ;;  %vm393_vm0 = vcmask 1043456   ;;  %v903_v1 = vld [vmem:[%s1160_s1 + $0xc] sm:$0xf]  ;;  %s1165_s16 = smov (!%p203_p3, %s846_s16), 1 }
   0xc   : > { %v441_v2 = vsel %vm393_vm0, %v311_v0, 0  ;;  %v672_v3 = vsel %vm393_vm0, %v903_v1, 0  ;;  %v854_v4 = vld [vmem:[%s1160_s1 + $0x4] sm:$0xf]  ;;  %v881_v6 = vld [vmem:[%s1160_s1 + $0x8] sm:$0xf] }
   0xd   : > { %450 = vmatpush.bf16.msra.mxu1 %v441_v2  ;;  %681 = vmatpush.bf16.msra.mxu3 %v672_v3  ;;  %v395_v5 = vsel %vm393_vm0, %v854_v4, 0  ;;  %v565_v7 = vsel %vm393_vm0, %v881_v6, 0  ;;  %s987_s25 = smul.u32 44, %s1165_s16  ;;  %vm285_vm1 = vcmask 60416   ;;  %vm377_vm11 = vcmask 64512  }
   0xe   : > { %404 = vmatpush.bf16.msra.mxu0 %v395_v5  ;;  %574 = vmatpush.bf16.msra.mxu2 %v565_v7  ;;  %vm646_vm12 = vcmask 1046528   ;;  %vm337_vm13 = vsmask.f32 7424  ;;  %vm296_vm0 = vcmask 57344   ;;  %s988_s29 = smul.u32 36, %s1165_s16 }
   0xf   : > { %s1057_s28 = scalar_lea.vmem %s1159_s0, %s987_s25 }
  0x10   : > { %v945_v8 = vld [vmem:[%s1057_s28] sm:$0xff]   ;;  %v980_v9 = vld [vmem:[%s1057_s28 + $0x8] sm:$0xff]   ;;  %v981_v10 = vld [vmem:[%s1057_s28 + $0x10] sm:$0xff]   ;;  %s1111_s6 = scalar_lea.vmem %s1162_s3, %s988_s29  ;;  %s1123_s11 = scalar_lea.vmem %s1163_s4, %s988_s29 }
  0x11   : > { %v946_v11 = vunpack.c.l.bf16 %v945_v8  ;;  %v947_v12 = vunpack.c.h.bf16 %v945_v8  ;;  %v950_v13 = vunpack.c.l.bf16 %v980_v9  ;;  %v951_v14 = vunpack.c.h.bf16 %v980_v9  ;;  %v982_v15 = vld [vmem:[%s1057_s28 + $0x18] sm:$0xff]   ;;  %v983_v29 = vld [vmem:[%s1057_s28 + $0x20] sm:$0xff]  }
  0x12   : > { %v954_v16 = vunpack.c.l.bf16 %v981_v10  ;;  %v955_v17 = vunpack.c.h.bf16 %v981_v10  ;;  %v958_v18 = vunpack.c.l.bf16 %v982_v15  ;;  %v959_v37 = vunpack.c.h.bf16 %v982_v15  ;;  %v229_v10 = vld [vmem:[%s1057_s28 + $0x28] sm:$0x1] }
  0x13   : > { %vm241_vm2 = vcmp.ge.f32.partialorder %v946_v11, 0.0  ;;  %vm242_vm3 = vcmp.ge.f32.partialorder %v947_v12, 0.0  ;;  %v252_v19 = vmul.f32 0.01, %v946_v11  ;;  %v253_v20 = vmul.f32 0.01, %v947_v12 }
  0x14   : > { %vm243_vm4 = vcmp.ge.f32.partialorder %v950_v13, 0.0  ;;  %vm244_vm5 = vcmp.ge.f32.partialorder %v951_v14, 0.0  ;;  %vm245_vm6 = vcmp.ge.f32.partialorder %v954_v16, 0.0  ;;  %v254_v21 = vmul.f32 0.01, %v950_v13 }
  0x15   : > { %v263_v22 = vsel %vm241_vm2, %v946_v11, %v252_v19  ;;  %v264_v23 = vsel %vm242_vm3, %v947_v12, %v253_v20  ;;  %v255_v24 = vmul.f32 0.01, %v951_v14  ;;  %v256_v25 = vmul.f32 0.01, %v954_v16 }
  0x16   : > { %v274_v26 = vpack.c.bf16 %v263_v22, %v263_v22  ;;  %v275_v27 = vpack.c.bf16 %v264_v23, %v264_v23  ;;  %v265_v28 = vsel %vm243_vm4, %v950_v13, %v254_v21  ;;  %vm246_vm7 = vcmp.ge.f32.partialorder %v955_v17, 0.0 }
  0x17   : > { %v266_v30 = vsel %vm244_vm5, %v951_v14, %v255_v24  ;;  %v267_v31 = vsel %vm245_vm6, %v954_v16, %v256_v25  ;;  %v276_v32 = vpack.c.bf16 %v265_v28, %v265_v28  ;;  %vm247_vm8 = vcmp.ge.f32.partialorder %v958_v18, 0.0  ;;  %v299_v25 = vld [vmem:[#allocation2 + $0x28] sm:$0x1] }
  0x18   : > { %286 = vst.msk [vmem:[#allocation2] sm:$0xf] %vm285_vm1, %v274_v26  ;;  %v277_v33 = vpack.c.bf16 %v266_v30, %v266_v30  ;;  %v278_v34 = vpack.c.bf16 %v267_v31, %v267_v31  ;;  %v257_v35 = vmul.f32 0.01, %v955_v17  ;;  %v258_v36 = vmul.f32 0.01, %v958_v18 }
  0x19   : > { %287 = vst.msk [vmem:[#allocation2 + $0x4] sm:$0xf] %vm285_vm1, %v275_v27  ;;  %v962_v38 = vunpack.c.l.bf16 %v983_v29  ;;  %vm248_vm9 = vcmp.ge.f32.partialorder %v959_v37, 0.0  ;;  %v259_v43 = vmul.f32 0.01, %v959_v37  ;;  %v963_v8 = vunpack.c.h.bf16 %v983_v29 }
  0x1a   : > { %288 = vst.msk [vmem:[#allocation2 + $0x8] sm:$0xf] %vm285_vm1, %v276_v32  ;;  %v268_v39 = vsel %vm246_vm7, %v955_v17, %v257_v35  ;;  %v269_v40 = vsel %vm247_vm8, %v958_v18, %v258_v36  ;;  %v240_v14 = vunpack.c.l.bf16 %v229_v10  ;;  %vm297_vm2 = vsmask.f32 256 }
  0x1b   : > { %289 = vst.msk [vmem:[#allocation2 + $0xc] sm:$0xf] %vm285_vm1, %v277_v33  ;;  %v279_v41 = vpack.c.bf16 %v268_v39, %v268_v39  ;;  %v280_v42 = vpack.c.bf16 %v269_v40, %v269_v40  ;;  %vm249_vm10 = vcmp.ge.f32.partialorder %v962_v38, 0.0  ;;  %v260_v44 = vmul.f32 0.01, %v962_v38  ;;  %vm298_vm3 = vmand %vm296_vm0, %vm297_vm2 }
  0x1c   : > { %290 = vst.msk [vmem:[#allocation2 + $0x10] sm:$0xf] %vm285_vm1, %v278_v34  ;;  %v270_v45 = vsel %vm248_vm9, %v959_v37, %v259_v43  ;;  %vm250_vm14 = vcmp.ge.f32.partialorder %v963_v8, 0.0  ;;  %v261_v15 = vmul.f32 0.01, %v963_v8  ;;  %vm251_vm15 = vcmp.ge.f32.partialorder %v240_v14, 0.0 }
  0x1d   : > { %291 = vst.msk [vmem:[#allocation2 + $0x14] sm:$0xf] %vm285_vm1, %v279_v41  ;;  %v271_v46 = vsel %vm249_vm10, %v962_v38, %v260_v44  ;;  %v281_v47 = vpack.c.bf16 %v270_v45, %v270_v45  ;;  %v262_v18 = vmul.f32 0.01, %v240_v14  ;;  %vm774_vm4 = vsmask.f32 3328 }
  0x1e   : > { %292 = vst.msk [vmem:[#allocation2 + $0x18] sm:$0xf] %vm285_vm1, %v280_v42  ;;  %v282_v48 = vpack.c.bf16 %v271_v46, %v271_v46  ;;  %v272_v20 = vsel %vm250_vm14, %v963_v8, %v261_v15  ;;  %vm775_vm5 = vmand %vm285_vm1, %vm774_vm4 }
  0x1f   : > { %293 = vst.msk [vmem:[#allocation2 + $0x1c] sm:$0xf] %vm285_vm1, %v281_v47  ;;  %v273_v23 = vsel %vm251_vm15, %v240_v14, %v262_v18  ;;  %v283_v24 = vpack.c.bf16 %v272_v20, %v272_v20 }
  0x20   : > { %v931_v49 = vld [vmem:[#allocation2] sm:$0xff]  ;;  %294 = vst.msk [vmem:[#allocation2 + $0x20] sm:$0xf] %vm285_vm1, %v282_v48  ;;  %v284_v26 = vpack.c.bf16 %v273_v23, %v273_v23 }
  0x21   : > { %v906_v50 = vld [vmem:[#allocation2 + $0x4] sm:$0xe]  ;;  %v939_v51 = vld [vmem:[#allocation2 + $0x4] sm:$0xf0]  ;;  %v341_v53 = vshll.u32 %v931_v49, 16  ;;  %876 = vmatmul.msk.bf16.vlgmr.msra.gmra.mxu1 %vm377_vm11, %v931_v49  ;;  %v339_v56 = vshrl.u32 %v931_v49, 16 }
  0x22   : > { %v935_v52 = vld [vmem:[#allocation2 + $0x4] sm:$0xff]  ;;  %v907_v54 = vor.u32 %v939_v51, %v906_v50  ;;  %295 = vst.msk [vmem:[#allocation2 + $0x24] sm:$0xf] %vm285_vm1, %v283_v24  ;;  %v300_v30 = vsel %vm298_vm3, %v284_v26, %v299_v25 }
  0x23   : > { %v932_v55 = vld [vmem:[#allocation2 + $0x8] sm:$0xff]  ;;  %v511_v59 = vshrl.u32 %v935_v52, 16  ;;  %v513_v60 = vshll.u32 %v935_v52, 16  ;;  %v343_v62 = vrot.slane %v341_v53, 1  ;;  %301 = vst [vmem:[#allocation2 + $0x28] sm:$0x1] %v300_v30 }
  0x24   : > { %v940_v57 = vld [vmem:[#allocation2 + $0xc] sm:$0xff]  ;;  %v647_v61 = vrot.slane %v907_v54, 1  ;;  %v346_v63 = vshll.u32 %v932_v55, 16  ;;  %v350_v17 = vshrl.u32 %v932_v55, 16 }
  0x25   : > { %v936_v58 = vld [vmem:[#allocation2 + $0xc] sm:$0xff]  ;;  %v648_v0 = vrot.slane %v940_v57, 1  ;;  %v515_v1 = vrot.slane %v513_v60, 1  ;;  %v344_v3 = vor.u32 %v343_v62, %v339_v56  ;;  %v937_v13 = vld [vmem:[#allocation2 + $0x14] sm:$0xff] }
  0x26   : > { %v518_v2 = vshll.u32 %v936_v58, 16  ;;  %v348_v4 = vrot.slane %v346_v63, 1  ;;  %v933_v12 = vld [vmem:[#allocation2 + $0x10] sm:$0xff]  ;;  %v522_v21 = vshrl.u32 %v936_v58, 16  ;;  %v526_v22 = vshll.u32 %v937_v13, 16  ;;  %v934_v36 = vld [vmem:[#allocation2 + $0x18] sm:$0xff] }
  0x27   : > { %v649_v5 = vsel %vm646_vm12, %v647_v61, %v648_v0  ;;  %v516_v6 = vor.u32 %v515_v1, %v511_v59  ;;  %v941_v16 = vld [vmem:[#allocation2 + $0x14] sm:$0xff]  ;;  %v354_v19 = vshll.u32 %v933_v12, 16  ;;  %v938_v37 = vld [vmem:[#allocation2 + $0x1c] sm:$0xff]  ;;  %v358_v39 = vshrl.u32 %v933_v12, 16 }
  0x28   : > { %v520_v7 = vrot.slane %v518_v2, 1  ;;  %924 = vmatmul.msk.bf16.vlgmr.msra.gmra.mxu3 %vm377_vm11, %v649_v5  ;;  %v349_v9 = vsel %vm337_vm13, %v344_v3, %v348_v4  ;;  %v650_v27 = vrot.slane %v941_v16, 1  ;;  %v352_v28 = vor.u32 %v350_v17, %v348_v4  ;;  %v942_v38 = vld [vmem:[#allocation2 + $0x1c] sm:$0xff] }
  0x29   : > { %871 = vmatmul.msk.bf16.vlgmr.msra.gmra.mxu0 %vm377_vm11, %v349_v9  ;;  %v356_v29 = vrot.slane %v354_v19, 1  ;;  %v528_v32 = vrot.slane %v526_v22, 1  ;;  %v362_v40 = vshll.u32 %v934_v36, 16  ;;  %v530_v41 = vshrl.u32 %v937_v13, 16  ;;  %v310_v48 = vld [vmem:[#allocation2 + $0x20] sm:$0xff]  }
  0x2a   : > { %v521_v11 = vsel %vm337_vm13, %v516_v6, %v520_v7  ;;  %v524_v31 = vor.u32 %v522_v21, %v520_v7  ;;  %v651_v33 = vsel %vm646_vm12, %v648_v0, %v650_v27  ;;  %v534_v42 = vshll.u32 %v938_v37, 16  ;;  %v922_v54 = vld [vmem:[#allocation2 + $0x24] sm:$0xf]  ;;  %v1117_v19 = vld [vmem:[%s1161_s2] ss:$0 sm:$0xff] }
  0x2b   : > { %898 = vmatmul.msk.bf16.vlgmr.msra.gmra.mxu2 %vm377_vm11, %v521_v11  ;;  %v357_v34 = vsel %vm337_vm13, %v352_v28, %v356_v29  ;;  %v652_v43 = vrot.slane %v942_v38, 1  ;;  %v360_v44 = vor.u32 %v358_v39, %v356_v29  ;;  %v364_v45 = vrot.slane %v362_v40, 1  ;;  %v965_v17 = vld [vmem:[%s1111_s6] sm:$0xff]   ;;  %v984_v40 = vld [vmem:[%s1111_s6 + $0x8] sm:$0xff]  }
  0x2c   : > { %v529_v35 = vsel %vm337_vm13, %v524_v31, %v528_v32  ;;  %v532_v46 = vor.u32 %v530_v41, %v528_v32  ;;  %v536_v47 = vrot.slane %v534_v42, 1  ;;  %v331_v51 = vunpack.c.l.b16 %v310_v48 }
  0x2d   : > { %v653_v49 = vsel %vm646_vm12, %v650_v27, %v652_v43  ;;  %v365_v50 = vsel %vm337_vm13, %v360_v44, %v364_v45  ;;  %v504_v53 = vunpack.c.h.b16 %v310_v48  ;;  %v366_v59 = vshrl.u32 %v934_v36, 16 }
  0x2e   : > { %v537_v52 = vsel %vm337_vm13, %v532_v46, %v536_v47  ;;  %v336_v56 = vpack.c.b16 %v331_v51, %v331_v51  ;;  %v538_v61 = vshrl.u32 %v938_v37, 16  ;;  %v966_v23 = vunpack.c.l.bf16 %v965_v17 }
  0x2f   : > { %v509_v57 = vpack.c.b16 %v504_v53, %v504_v53  ;;  %v368_v0 = vor.u32 %v366_v59, %v364_v45  ;;  %v970_v46 = vunpack.c.l.bf16 %v984_v40 }
  0x30   : > { %v370_v60 = vshll.u32 %v336_v56, 16  ;;  %v540_v2 = vor.u32 %v538_v61, %v536_v47  ;;  %v374_v7 = vshrl.u32 %v336_v56, 16 }
  0x31   : > { %877 = vmatmul.msk.bf16.gmra.mxu1 %vm377_vm11, %v932_v55  ;;  %v943_v55 = vld [vmem:[#allocation2 + $0x24] sm:$0x10]  ;;  %v542_v62 = vshll.u32 %v509_v57, 16  ;;  %v546_v8 = vshrl.u32 %v509_v57, 16  ;;  %v971_v57 = vunpack.c.h.bf16 %v984_v40 }
  0x32   : > { %v923_v58 = vor.u32 %v943_v55, %v922_v54  ;;  %v372_v1 = vrot.slane %v370_v60, 1 }
  0x33   : > { %v544_v3 = vrot.slane %v542_v62, 1 }
  0x34   : > { %v654_v63 = vrot.slane %v923_v58, 1  ;;  %v373_v5 = vsel %vm337_vm13, %v368_v0, %v372_v1  ;;  %v376_v9 = vor.u32 %v374_v7, %v372_v1 }
  0x35   : > { %v545_v6 = vsel %vm337_vm13, %v540_v2, %v544_v3  ;;  %v548_v10 = vor.u32 %v546_v8, %v544_v3 }
  0x36   : > { %v655_v4 = vsel %vm646_vm12, %v652_v43, %v654_v63 }
  0x38   : > { %925 = vmatmul.msk.bf16.gmra.mxu3 %vm377_vm11, %v651_v33 }
  0x39   : > { %872 = vmatmul.msk.bf16.gmra.mxu0 %vm377_vm11, %v357_v34  ;;  %v967_v34 = vunpack.c.h.bf16 %v965_v17 }
  0x3b   : > { %899 = vmatmul.msk.bf16.gmra.mxu2 %vm377_vm11, %v529_v35 }
  0x41   : > { %878 = vmatmul.msk.bf16.gmra.mxu1 %vm377_vm11, %v933_v12 }
  0x48   : > { %926 = vmatmul.msk.bf16.gmra.mxu3 %vm377_vm11, %v653_v49 }
  0x49   : > { %873 = vmatmul.msk.bf16.gmra.mxu0 %vm377_vm11, %v365_v50 }
  0x4b   : > { %900 = vmatmul.msk.bf16.gmra.mxu2 %vm377_vm11, %v537_v52 }
  0x51   : > { %879 = vmatmul.msk.bf16.gmra.mxu1 %vm377_vm11, %v934_v36 }
  0x58   : > { %927 = vmatmul.msk.bf16.gmra.mxu3 %vm377_vm11, %v655_v4 }
  0x59   : > { %874 = vmatmul.msk.bf16.gmra.mxu0 %vm377_vm11, %v373_v5 }
  0x5b   : > { %901 = vmatmul.msk.bf16.gmra.mxu2 %vm377_vm11, %v545_v6 }
  0x61   : > { %880 = vmatmul.msk.bf16.gmra.mxu1 %vm377_vm11, %v336_v56 }
  0x68   : > { %928 = vmatmul.msk.bf16.gmra.mxu3 %vm377_vm11, %v654_v63  ;;  %v985_v63 = vld [vmem:[%s1111_s6 + $0x10] sm:$0xff]  }
  0x69   : > { %875 = vmatmul.msk.bf16.gmra.mxu0 %vm377_vm11, %v376_v9  ;;  %v974_v5 = vunpack.c.l.bf16 %v985_v63 }
  0x6b   : > { %902 = vmatmul.msk.bf16.gmra.mxu2 %vm377_vm11, %v548_v10 }
  0x9e   : > { %v452_v11 = vpop.f32.mrf.mxu1 }
  0xa6   : > { %v406_v12 = vpop.f32.mrf.mxu0  ;;  %v454_v13 = vpop.f32.mrf.mxu1 }
  0xa7   : > { %v453_v14 = vadd.f32 %v452_v11, %v406_v12 }
  0xab   : > { %v683_v15 = vpop.f32.mrf.mxu3 }
  0xae   : > { %v576_v16 = vpop.f32.mrf.mxu2  ;;  %v408_v20 = vpop.f32.mrf.mxu0 }
  0xaf   : > { %v600_v18 = vadd.f32 %v576_v16, %v453_v14  ;;  %v457_v21 = vpop.f32.mrf.mxu1  ;;  %v455_v27 = vadd.f32 %v454_v13, %v408_v20  ;;  %v975_v16 = vunpack.c.h.bf16 %v985_v63 }
  0xb1   : > { %v707_v22 = vadd.f32 %v683_v15, %v600_v18 }
  0xb3   : > { %v720_v24 = vadd.f32 %v1117_v19, %v707_v22  ;;  %v685_v25 = vpop.f32.mrf.mxu3 }
  0xb5   : > { %v747_v26 = vadd.f32 %v966_v23, %v720_v24  ;;  %v986_v23 = vld [vmem:[%s1111_s6 + $0x18] sm:$0xff]  }
  0xb6   : > { %v578_v28 = vpop.f32.mrf.mxu2  ;;  %v411_v31 = vpop.f32.mrf.mxu0  ;;  %v979_v40 = vunpack.c.h.bf16 %v986_v23 }
  0xb7   : > { %v756_v29 = vpack.c.bf16 %v747_v26, %v747_v26  ;;  %v601_v30 = vadd.f32 %v578_v28, %v455_v27  ;;  %v459_v32 = vpop.f32.mrf.mxu1  ;;  %v458_v36 = vadd.f32 %v457_v21, %v411_v31 }
  0xb9   : > { %765 = vst.msk [vmem:[%s1123_s11] sm:$0xf] %vm285_vm1, %v756_v29  ;;  %v708_v33 = vadd.f32 %v685_v25, %v601_v30  ;;  %v978_v29 = vunpack.c.l.bf16 %v986_v23 }
  0xbb   : > { %v721_v35 = vadd.f32 %v1117_v19, %v708_v33  ;;  %v688_v37 = vpop.f32.mrf.mxu3 }
  0xbd   : > { %v748_v38 = vadd.f32 %v967_v34, %v721_v35 }
  0xbe   : > { %v581_v39 = vpop.f32.mrf.mxu2  ;;  %v413_v43 = vpop.f32.mrf.mxu0 }
  0xbf   : > { %v757_v41 = vpack.c.bf16 %v748_v38, %v748_v38  ;;  %v602_v42 = vadd.f32 %v581_v39, %v458_v36  ;;  %v462_v44 = vpop.f32.mrf.mxu1  ;;  %v460_v50 = vadd.f32 %v459_v32, %v413_v43 }
  0xc1   : > { %766 = vst.msk [vmem:[%s1123_s11 + $0x4] sm:$0xf] %vm285_vm1, %v757_v41  ;;  %v709_v45 = vadd.f32 %v688_v37, %v602_v42 }
  0xc3   : > { %v722_v47 = vadd.f32 %v1117_v19, %v709_v45  ;;  %v690_v48 = vpop.f32.mrf.mxu3 }
  0xc5   : > { %v749_v49 = vadd.f32 %v970_v46, %v722_v47  ;;  %v737_v46 = vld [vmem:[%s1111_s6 + $0x20] sm:$0xf] }
  0xc6   : > { %v583_v51 = vpop.f32.mrf.mxu2  ;;  %v416_v54 = vpop.f32.mrf.mxu0 }
  0xc7   : > { %v758_v52 = vpack.c.bf16 %v749_v49, %v749_v49  ;;  %v603_v53 = vadd.f32 %v583_v51, %v460_v50  ;;  %v464_v55 = vpop.f32.mrf.mxu1  ;;  %v463_v59 = vadd.f32 %v462_v44, %v416_v54  ;;  %v746_v51 = vunpack.c.l.bf16 %v737_v46 }
  0xc9   : > { %767 = vst.msk [vmem:[%s1123_s11 + $0x8] sm:$0xf] %vm285_vm1, %v758_v52  ;;  %v710_v56 = vadd.f32 %v690_v48, %v603_v53 }
  0xcb   : > { %v723_v58 = vadd.f32 %v1117_v19, %v710_v56  ;;  %v693_v60 = vpop.f32.mrf.mxu3 }
  0xcd   : > { %v750_v61 = vadd.f32 %v971_v57, %v723_v58 }
  0xce   : > { %v586_v62 = vpop.f32.mrf.mxu2  ;;  %v418_v2 = vpop.f32.mrf.mxu0 }
  0xcf   : > { %v759_v0 = vpack.c.bf16 %v750_v61, %v750_v61  ;;  %v604_v1 = vadd.f32 %v586_v62, %v463_v59  ;;  %v467_v3 = vpop.f32.mrf.mxu1  ;;  %v465_v9 = vadd.f32 %v464_v55, %v418_v2  ;;  %v776_v55 = vld [vmem:[%s1123_s11 + $0x20] sm:$0xf] }
  0xd1   : > { %768 = vst.msk [vmem:[%s1123_s11 + $0xc] sm:$0xf] %vm285_vm1, %v759_v0  ;;  %v711_v4 = vadd.f32 %v693_v60, %v604_v1 }
  0xd3   : > { %v724_v6 = vadd.f32 %v1117_v19, %v711_v4  ;;  %v695_v7 = vpop.f32.mrf.mxu3 }
  0xd5   : > { %v751_v8 = vadd.f32 %v974_v5, %v724_v6 }
  0xd6   : > { %v588_v10 = vpop.f32.mrf.mxu2  ;;  %v421_v13 = vpop.f32.mrf.mxu0 }
  0xd7   : > { %v760_v11 = vpack.c.bf16 %v751_v8, %v751_v8  ;;  %v605_v12 = vadd.f32 %v588_v10, %v465_v9  ;;  %v469_v14 = vpop.f32.mrf.mxu1  ;;  %v468_v18 = vadd.f32 %v467_v3, %v421_v13 }
  0xd9   : > { %769 = vst.msk [vmem:[%s1123_s11 + $0x10] sm:$0xf] %vm285_vm1, %v760_v11  ;;  %v712_v15 = vadd.f32 %v695_v7, %v605_v12 }
  0xdb   : > { %v725_v17 = vadd.f32 %v1117_v19, %v712_v15  ;;  %v698_v20 = vpop.f32.mrf.mxu3 }
  0xdd   : > { %v752_v21 = vadd.f32 %v975_v16, %v725_v17 }
  0xde   : > { %v591_v22 = vpop.f32.mrf.mxu2  ;;  %v423_v26 = vpop.f32.mrf.mxu0 }
  0xdf   : > { %v761_v24 = vpack.c.bf16 %v752_v21, %v752_v21  ;;  %v606_v25 = vadd.f32 %v591_v22, %v468_v18  ;;  %v472_v27 = vpop.f32.mrf.mxu1  ;;  %v470_v33 = vadd.f32 %v469_v14, %v423_v26 }
  0xe1   : > { %770 = vst.msk [vmem:[%s1123_s11 + $0x14] sm:$0xf] %vm285_vm1, %v761_v24  ;;  %v713_v28 = vadd.f32 %v698_v20, %v606_v25 }
  0xe3   : > { %v726_v30 = vadd.f32 %v1117_v19, %v713_v28  ;;  %v700_v31 = vpop.f32.mrf.mxu3 }
  0xe5   : > { %v753_v32 = vadd.f32 %v978_v29, %v726_v30 }
  0xe6   : > { %v593_v34 = vpop.f32.mrf.mxu2  ;;  %v426_v37 = vpop.f32.mrf.mxu0 }
  0xe7   : > { %v762_v35 = vpack.c.bf16 %v753_v32, %v753_v32  ;;  %v607_v36 = vadd.f32 %v593_v34, %v470_v33  ;;  %v474_v38 = vpop.f32.mrf.mxu1  ;;  %v473_v42 = vadd.f32 %v472_v27, %v426_v37 }
  0xe9   : > { %771 = vst.msk [vmem:[%s1123_s11 + $0x18] sm:$0xf] %vm285_vm1, %v762_v35  ;;  %v714_v39 = vadd.f32 %v700_v31, %v607_v36 }
  0xeb   : > { %v727_v41 = vadd.f32 %v1117_v19, %v714_v39  ;;  %v703_v43 = vpop.f32.mrf.mxu3 }
  0xed   : > { %v754_v44 = vadd.f32 %v979_v40, %v727_v41 }
  0xee   : > { %v596_v45 = vpop.f32.mrf.mxu2  ;;  %v428_v49 = vpop.f32.mrf.mxu0 }
  0xef   : > { %v763_v47 = vpack.c.bf16 %v754_v44, %v754_v44  ;;  %v608_v48 = vadd.f32 %v596_v45, %v473_v42 }
  0xf1   : > { %772 = vst.msk [vmem:[%s1123_s11 + $0x1c] sm:$0xf] %vm285_vm1, %v763_v47  ;;  %v715_v50 = vadd.f32 %v703_v43, %v608_v48 }
  0xf3   : > { %v728_v52 = vadd.f32 %v1117_v19, %v715_v50  ;;  %v705_v53 = vpop.f32.mrf.mxu3 }
  0xf5   : > { %v755_v54 = vadd.f32 %v746_v51, %v728_v52 }
  0xf6   : > { %v598_v56 = vpop.f32.mrf.mxu2 }
  0xf7   : > { %v764_v57 = vpack.c.bf16 %v755_v54, %v755_v54 }
  0xf9   : > { %v777_v58 = vsel %vm775_vm5, %v764_v57, %v776_v55 }
  0xfa   : > { %778 = vst [vmem:[%s1123_s11 + $0x20] sm:$0xf] %v777_v58 }
  0xfb PF: > { %s14_s15 = sadd.s32 1, %s1004_s15  }
  0xfc   : > { %p11_p4 = scmp.ge.s32.totalorder %s14_s15, 4  }
  0xfe   :  { %13 = sbr.rel (!%p11_p4) target bundleno = 1 (0x1), region = 72 }

// kernel: unet2_forward.6
= control target key start
LH: loop header
LB: loop body
LE: loop exit
PB: predicated region body
PF: predicated region fallthrough
CT: control target
= control target key end

     0   :  { %s727_s15 = smov 0   ;;  %s790_s0 = inlined_call_operand.vmem [shape: bf16[2,25,32], index: 0, kind: input, shape index: {}]   ;;  %s791_s1 = inlined_call_operand.vmem [shape: bf16[4,32,16], index: 1, kind: input, shape index: {}]   ;;  %s792_s2 = inlined_call_operand.vmem [shape: f32[1,16], index: 2, kind: input, shape index: {}]   ;;  %s793_s3 = inlined_call_operand.vmem [shape: bf16[2,19,16], index: 3, kind: input, shape index: {}]   ;;  %s794_s4 = inlined_call_operand.vmem [shape: bf16[2,19,16], index: 4, kind: output, shape index: {}]  }
   0x1 LB: > { %s587_s16 = sadd.s32 4294967295, %s700_s15   ;;  %p591_p0 = scmp.ge.s32.totalorder %s700_s15, 1  ;;  %s700_s15 = sphi %s727_s15, %s14_s15  }
   0x2   : > { %p172_p1 = scmp.lt.s32.totalorder %s700_s15, 3 }
   0x4   : > { %p173_p2 = pnand %p591_p0, %p172_p1 }
   0x5   : > { %p203_p3 = scmp.lt.s32.totalorder (!%p173_p2), %s587_s16, 1 }
   0x6   : > { %176 = sbr.rel (%p173_p2) target bundleno = 206 (0xce), region = 36 }
   0xb   : > { %v668_v0 = vld [vmem:[%s791_s1 + $0x38] sm:$0xff]  ;;  %v660_v1 = vld [vmem:[%s791_s1 + $0x8] sm:$0xff]  ;;  %v667_v4 = vld [vmem:[%s791_s1 + $0x30] sm:$0xff]  ;;  %s796_s16 = smov (!%p203_p3, %s587_s16), 1  ;;  %vm247_vm0 = vcmask 253952   ;;  %vm243_vm6 = vcmask 257024  }
   0xc   : > { %v662_v2 = vld [vmem:[%s791_s1 + $0x18] sm:$0xff]  ;;  %v664_v3 = vld [vmem:[%s791_s1 + $0x28] sm:$0xff]  ;;  %477 = vmatpush.bf16.msra.mxu3 %v668_v0  ;;  %348 = vmatpush.bf16.msra.mxu1 %v660_v1  ;;  %v659_v5 = vld [vmem:[%s791_s1] sm:$0xff]  ;;  %s658_s7 = sshll.u32 %s796_s16, 4  ;;  %vm248_vm1 = vsmask.f32 256 }
   0xd   : > { %314 = vmatpush.bf16.msra.mxu0 %v662_v2  ;;  %415 = vmatpush.bf16.msra.mxu2 %v664_v3  ;;  %v661_v6 = vld [vmem:[%s791_s1 + $0x10] sm:$0xff]  ;;  %v663_v7 = vld [vmem:[%s791_s1 + $0x20] sm:$0xff]  ;;  %s207_s10 = scalar_lea.vmem %s790_s0, %s658_s7  ;;  %vm249_vm7 = vmand %vm247_vm0, %vm248_vm1  ;;  %vm301_vm8 = vcmask 261120   ;;  %vm449_vm9 = vcmask 1044480   ;;  %vm273_vm10 = vsmask.f32 7424 }
   0xe   : > { %v670_v8 = vld [vmem:[%s207_s10] sm:$0xff]   ;;  %v221_v9 = vld [vmem:[%s207_s10 + $0x8] sm:$0xf]  ;;  %v222_v10 = vld [vmem:[%s207_s10 + $0xc] sm:$0x1]  ;;  %s684_s11 = smul.u32 12, %s796_s16 }
   0xf   : > { %v671_v11 = vunpack.c.l.bf16 %v670_v8  ;;  %v672_v12 = vunpack.c.h.bf16 %v670_v8  ;;  %v225_v13 = vunpack.c.l.bf16 %v221_v9  ;;  %v226_v14 = vunpack.c.l.bf16 %v222_v10  ;;  %v250_v26 = vld [vmem:[#allocation2 + $0xc] sm:$0x1] }
  0x10   : > { %478 = vmatpush.bf16.msra.mxu3 %v667_v4  ;;  %349 = vmatpush.bf16.msra.mxu1 %v659_v5  ;;  %vm373_vm11 = vsmask.f32 5376  ;;  %s212_s14 = scalar_lea.vmem %s793_s3, %s684_s11  ;;  %s217_s20 = scalar_lea.vmem %s794_s4, %s684_s11  ;;  %vm511_vm12 = vcmask 125952   ;;  %vm514_vm13 = vcmask 123904   ;;  %vm515_vm14 = vsmask.f32 1280 }
  0x11   : > { %315 = vmatpush.bf16.msra.mxu0 %v661_v6  ;;  %416 = vmatpush.bf16.msra.mxu2 %v663_v7  ;;  %vm227_vm2 = vcmp.ge.f32.partialorder %v671_v11, 0.0  ;;  %vm228_vm3 = vcmp.ge.f32.partialorder %v672_v12, 0.0  ;;  %vm229_vm4 = vcmp.ge.f32.partialorder %v225_v13, 0.0  ;;  %vm230_vm5 = vcmp.ge.f32.partialorder %v226_v14, 0.0  ;;  %vm516_vm15 = vmand %vm514_vm13, %vm515_vm14 }
  0x12   : > { %v231_v15 = vmul.f32 0.01, %v671_v11  ;;  %v232_v16 = vmul.f32 0.01, %v672_v12  ;;  %v233_v17 = vmul.f32 0.01, %v225_v13 }
  0x13   : > { %v234_v18 = vmul.f32 0.01, %v226_v14 }
  0x14   : > { %v235_v19 = vsel %vm227_vm2, %v671_v11, %v231_v15  ;;  %v236_v20 = vsel %vm228_vm3, %v672_v12, %v232_v16  ;;  %v237_v21 = vsel %vm229_vm4, %v225_v13, %v233_v17  ;;  %v678_v12 = vld [vmem:[%s212_s14] sm:$0xff]  }
  0x15   : > { %v238_v22 = vsel %vm230_vm5, %v226_v14, %v234_v18  ;;  %v239_v23 = vpack.c.bf16 %v235_v19, %v235_v19  ;;  %v240_v24 = vpack.c.bf16 %v236_v20, %v236_v20  ;;  %v241_v25 = vpack.c.bf16 %v237_v21, %v237_v21  ;;  %v693_v14 = vld [vmem:[%s792_s2] ss:$0 sm:$0xff] }
  0x16   : > { %v242_v27 = vpack.c.bf16 %v238_v22, %v238_v22  ;;  %v679_v17 = vunpack.c.l.bf16 %v678_v12 }
  0x17   : > { %244 = vst.msk [vmem:[#allocation2] sm:$0xf] %vm243_vm6, %v239_v23 }
  0x18   : > { %245 = vst.msk [vmem:[#allocation2 + $0x4] sm:$0xf] %vm243_vm6, %v240_v24  ;;  %v251_v28 = vsel %vm249_vm7, %v242_v27, %v250_v26 }
  0x19   : > { %246 = vst.msk [vmem:[#allocation2 + $0x8] sm:$0xf] %vm243_vm6, %v241_v25 }
  0x1a   : > { %252 = vst [vmem:[#allocation2 + $0xc] sm:$0x1] %v251_v28  ;;  %v680_v28 = vunpack.c.h.bf16 %v678_v12 }
  0x1e   : > { %v640_v29 = vld [vmem:[#allocation2] sm:$0x8] }
  0x1f   : > { %v682_v30 = vld [vmem:[#allocation2] sm:$0xc]  ;;  %v665_v31 = vld [vmem:[#allocation2] sm:$0xf0] }
  0x20   : > { %v674_v32 = vld [vmem:[#allocation2] sm:$0xff]   ;;  %v644_v34 = vld [vmem:[#allocation2 + $0x8] sm:$0xf]  ;;  %v641_v35 = vor.u32 %v665_v31, %v640_v29 }
  0x21   : > { %v681_v33 = vld [vmem:[#allocation2] sm:$0xf0]  ;;  %v277_v36 = vshll.u32 %v674_v32, 16  ;;  %618 = vmatmul.msk.bf16.vlgmr.msra.gmra.mxu1 %vm301_vm8, %v674_v32  ;;  %v255_v37 = vld [vmem:[#allocation2 + $0x8] sm:$0x3]  ;;  %v275_v40 = vshrl.u32 %v674_v32, 16 }
  0x22   : > { %v683_v38 = vor.u32 %v682_v30, %v681_v33  ;;  %v666_v39 = vld [vmem:[#allocation2 + $0x8] sm:$0x10]  ;;  %v270_v41 = vunpack.c.l.b16 %v255_v37  ;;  %v361_v42 = vld [vmem:[#allocation2 + $0x8] sm:$0xf]  ;;  %v450_v44 = vrot.slane %v641_v35, 3 }
  0x23   : > { %v645_v43 = vor.u32 %v666_v39, %v644_v34  ;;  %v279_v45 = vrot.slane %v277_v36, 1  ;;  %v370_v46 = vunpack.c.l.b16 %v361_v42  ;;  %v501_v34 = vld [vmem:[%s212_s14 + $0x8] sm:$0x3] }
  0x24   : > { %v272_v47 = vpack.c.b16 %v270_v41, %v270_v41  ;;  %v375_v48 = vshrl.u32 %v683_v38, 16  ;;  %v378_v49 = vshll.u32 %v683_v38, 16  ;;  %v504_v39 = vunpack.c.l.bf16 %v501_v34  ;;  %v517_v42 = vld [vmem:[%s217_s20 + $0x8] sm:$0x3] }
  0x25   : > { %v451_v50 = vrot.slane %v645_v43, 3  ;;  %v372_v51 = vpack.c.b16 %v370_v46, %v370_v46  ;;  %v280_v52 = vor.u32 %v279_v45, %v275_v40 }
  0x26   : > { %v282_v53 = vshll.u32 %v272_v47, 16  ;;  %v377_v54 = vrot.slane %v375_v48, 2  ;;  %v380_v55 = vrot.slane %v378_v49, 3  ;;  %v286_v2 = vshrl.u32 %v272_v47, 16 }
  0x27   : > { %v452_v56 = vsel %vm449_vm9, %v450_v44, %v451_v50  ;;  %v383_v57 = vshrl.u32 %v372_v51, 16  ;;  %v386_v58 = vshll.u32 %v372_v51, 16 }
  0x28   : > { %654 = vmatmul.msk.bf16.vlgmr.msra.gmra.mxu3 %vm301_vm8, %v452_v56  ;;  %v284_v59 = vrot.slane %v282_v53, 1  ;;  %v381_v60 = vor.u32 %v380_v55, %v377_v54 }
  0x29   : > { %v385_v61 = vrot.slane %v383_v57, 2  ;;  %v388_v62 = vrot.slane %v386_v58, 3 }
  0x2a   : > { %v285_v63 = vsel %vm273_vm10, %v280_v52, %v284_v59  ;;  %v288_v3 = vor.u32 %v286_v2, %v284_v59 }
  0x2b   : > { %608 = vmatmul.msk.bf16.vlgmr.msra.gmra.mxu0 %vm301_vm8, %v285_v63  ;;  %v389_v0 = vor.u32 %v388_v62, %v385_v61 }
  0x2d   : > { %v390_v1 = vsel %vm373_vm11, %v381_v60, %v389_v0 }
  0x2e   : > { %632 = vmatmul.msk.bf16.vlgmr.msra.gmra.mxu2 %vm301_vm8, %v390_v1 }
  0x31   : > { %619 = vmatmul.msk.bf16.gmra.mxu1 %vm301_vm8, %v272_v47 }
  0x38   : > { %655 = vmatmul.msk.bf16.gmra.mxu3 %vm301_vm8, %v451_v50 }
  0x3b   : > { %609 = vmatmul.msk.bf16.gmra.mxu0 %vm301_vm8, %v288_v3 }
  0x3e   : > { %633 = vmatmul.msk.bf16.gmra.mxu2 %vm301_vm8, %v389_v0 }
  0x9e   : > { %v351_v4 = vpop.f32.mrf.mxu1 }
  0xa6   : > { %v353_v5 = vpop.f32.mrf.mxu1 }
  0xa8   : > { %v317_v6 = vpop.f32.mrf.mxu0 }
  0xa9   : > { %v352_v8 = vadd.f32 %v351_v4, %v317_v6 }
  0xab   : > { %v480_v7 = vpop.f32.mrf.mxu3 }
  0xae   : > { %v356_v9 = vpop.f32.mrf.mxu1 }
  0xb0   : > { %v319_v10 = vpop.f32.mrf.mxu0 }
  0xb1   : > { %v418_v11 = vpop.f32.mrf.mxu2  ;;  %v354_v20 = vadd.f32 %v353_v5, %v319_v10 }
  0xb2   : > { %v427_v13 = vadd.f32 %v418_v11, %v352_v8 }
  0xb3   : > { %v482_v15 = vpop.f32.mrf.mxu3 }
  0xb4   : > { %v489_v16 = vadd.f32 %v480_v7, %v427_v13 }
  0xb6   : > { %v496_v18 = vadd.f32 %v693_v14, %v489_v16  ;;  %v358_v19 = vpop.f32.mrf.mxu1 }
  0xb8   : > { %v505_v21 = vadd.f32 %v679_v17, %v496_v18  ;;  %v322_v22 = vpop.f32.mrf.mxu0 }
  0xb9   : > { %v420_v23 = vpop.f32.mrf.mxu2  ;;  %v357_v29 = vadd.f32 %v356_v9, %v322_v22 }
  0xba   : > { %v508_v24 = vpack.c.bf16 %v505_v21, %v505_v21  ;;  %v428_v25 = vadd.f32 %v420_v23, %v354_v20 }
  0xbb   : > { %v485_v26 = vpop.f32.mrf.mxu3 }
  0xbc   : > { %512 = vst.msk [vmem:[%s217_s20] sm:$0xf] %vm511_vm12, %v508_v24  ;;  %v490_v27 = vadd.f32 %v482_v15, %v428_v25 }
  0xbe   : > { %v497_v30 = vadd.f32 %v693_v14, %v490_v27 }
  0xc0   : > { %v506_v31 = vadd.f32 %v680_v28, %v497_v30  ;;  %v324_v32 = vpop.f32.mrf.mxu0 }
  0xc1   : > { %v423_v33 = vpop.f32.mrf.mxu2 }
  0xc2   : > { %v509_v35 = vpack.c.bf16 %v506_v31, %v506_v31  ;;  %v429_v36 = vadd.f32 %v423_v33, %v357_v29 }
  0xc3   : > { %v487_v37 = vpop.f32.mrf.mxu3 }
  0xc4   : > { %513 = vst.msk [vmem:[%s217_s20 + $0x4] sm:$0xf] %vm511_vm12, %v509_v35  ;;  %v491_v38 = vadd.f32 %v485_v26, %v429_v36 }
  0xc6   : > { %v498_v40 = vadd.f32 %v693_v14, %v491_v38 }
  0xc8   : > { %v507_v41 = vadd.f32 %v504_v39, %v498_v40 }
  0xc9   : > { %v425_v43 = vpop.f32.mrf.mxu2 }
  0xca   : > { %v510_v44 = vpack.c.bf16 %v507_v41, %v507_v41 }
  0xcc   : > { %v518_v45 = vsel %vm516_vm15, %v510_v44, %v517_v42 }
  0xcd   : > { %519 = vst [vmem:[%s217_s20 + $0x8] sm:$0x3] %v518_v45 }
  0xce PF: > { %s14_s15 = sadd.s32 1, %s700_s15  }
  0xcf   : > { %p11_p4 = scmp.ge.s32.totalorder %s14_s15, 4  }
  0xd1   :  { %13 = sbr.rel (!%p11_p4) target bundleno = 1 (0x1), region = 72 }

// kernel: tile.13
= control target key start
LH: loop header
LB: loop body
LE: loop exit
PB: predicated region body
PF: predicated region fallthrough
CT: control target
= control target key end

     0   :  { %s22_s0 = inlined_call_operand.vmem [shape: f32[8], index: 0, kind: input, shape index: {}]   ;;  %s23_s1 = inlined_call_operand.vmem [shape: f32[4,8], index: 1, kind: output, shape index: {}]  }
   0x1   :  { %v4_v0 = vld [vmem:[%s22_s0] ss:$0 sm:$0xff] }
   0x2   :  { %5 = vst [vmem:[%s23_s1] sm:$0xf] %v4_v0 }

// kernel: tile.14
= control target key start
LH: loop header
LB: loop body
LE: loop exit
PB: predicated region body
PF: predicated region fallthrough
CT: control target
= control target key end

     0   :  { %s37_s8 = smov 8   ;;  %s38_s9 = smov 16   ;;  %vm7_vm0 = vcmask 64512   ;;  %vm13_vm1 = vcmask 261312   ;;  %vm19_vm2 = vcmask 195712   ;;  %vm25_vm3 = vcmask 130112   ;;  %s55_s0 = inlined_call_operand.vmem [shape: f32[4,8], index: 0, kind: input, shape index: {}]   ;;  %s56_s1 = inlined_call_operand.vmem [shape: f32[1,32], index: 1, kind: output, shape index: {}]  }
   0x1   :  { %v4_v0 = vld [vmem:[%s55_s0] sm:$0xf]  ;;  %s36_s0 = smov 24  }
   0x2   :  { %5 = vst [vmem:[#allocation1] sm:$0xf] %v4_v0 }
   0x9   :  { %v10_v1 = vld [vmem:[#allocation1 + $0x3] sm:$0x1]   ;;  %v22_v2 = vld [vmem:[#allocation1 + $0x1] sm:$0x1]   ;;  %v16_v3 = vld [vmem:[#allocation1 + $0x2] sm:$0x1]  }
   0xa   :  { %11 = vrot.lane.b32.xlu0 %v10_v1, %s36_s0  ;;  %23 = vrot.lane.b32.xlu1 %v22_v2, %s37_s8  ;;  %v6_v4 = vld [vmem:[#allocation1] sm:$0x1]  }
   0xb   :  { %8 = vst.msk [vmem:[#allocation0] sm:$0x1] %vm7_vm0, %v6_v4  }
  0x12   :  { %17 = vrot.lane.b32.xlu0 %v16_v3, %s38_s9 }
  0x7c   :  { %v12_v5 = vpop.permute.xlu0 %11   ;;  %v24_v6 = vpop.permute.xlu1 %23  }
  0x7d   :  { %14 = vst.msk [vmem:[#allocation0] sm:$0x1] %vm13_vm1, %v12_v5  }
  0x84   :  { %v18_v7 = vpop.permute.xlu0 %17  }
  0x85   :  { %20 = vst.msk [vmem:[#allocation0] sm:$0x1] %vm19_vm2, %v18_v7  }
  0x86   :  { %26 = vst.msk [vmem:[#allocation0] sm:$0x1] %vm25_vm3, %v24_v6  }
  0x8d   :  { %v29_v8 = vld [vmem:[#allocation0] sm:$0x1] }
  0x8e   :  { %32 = vst [vmem:[%s56_s1] sm:$0x1] %v29_v8 }

// kernel: unet2_forward.7
= control target key start
LH: loop header
LB: loop body
LE: loop exit
PB: predicated region body
PF: predicated region fallthrough
CT: control target
= control target key end

     0   :  { %s1176_s24 = smov 0   ;;  %s1313_s0 = inlined_call_operand.vmem [shape: bf16[2,36,16], index: 0, kind: input, shape index: {}]   ;;  %s1314_s1 = inlined_call_operand.vmem [shape: bf16[9,16,32], index: 1, kind: input, shape index: {}]   ;;  %s1315_s2 = inlined_call_operand.vmem [shape: f32[1,32], index: 2, kind: input, shape index: {}]   ;;  %s1316_s3 = inlined_call_operand.vmem [shape: bf16[2,22,32], index: 3, kind: input, shape index: {}]   ;;  %s1317_s4 = inlined_call_operand.vmem [shape: f32[1,22,1], index: 4, kind: input, shape index: {}]   ;;  %s1318_s5 = inlined_call_operand.vmem [shape: bf16[2,22,32], index: 5, kind: output, shape index: {0}]   ;;  %s1319_s6 = inlined_call_operand.vmem [shape: f32[2,1,32], index: 6, kind: output, shape index: {1}]   ;;  %s1320_s7 = inlined_call_operand.vmem [shape: f32[2,1,32], index: 7, kind: output, shape index: {2}]  }
   0x1 LB: > { %s998_s25 = sadd.s32 4294967295, %s1133_s24   ;;  %p1002_p0 = scmp.ge.s32.totalorder %s1133_s24, 1  ;;  %s1133_s24 = sphi %s1176_s24, %s18_s24  }
   0x2   : > { %p252_p1 = scmp.lt.s32.totalorder %s1133_s24, 3 }
   0x4   : > { %p253_p2 = pnand %p1002_p0, %p252_p1 }
   0x5   : > { %p295_p3 = scmp.lt.s32.totalorder (!%p253_p2), %s998_s25, 1 }
   0x6   : > { %256 = sbr.rel (%p253_p2) target bundleno = 289 (0x121), region = 40 }
   0xb   : > { %v1079_v0 = vld [vmem:[%s1314_s1 + $0x8] sm:$0xff]  ;;  %s1322_s25 = smov (!%p295_p3, %s998_s25), 1  ;;  %v1080_v1 = vld [vmem:[%s1314_s1 + $0x10] sm:$0xff]  ;;  %v1078_v2 = vld [vmem:[%s1314_s1] sm:$0xff]  ;;  %vm347_vm4 = vcmask 125952   ;;  %vm352_vm6 = vcmask 123904  }
   0xc   : > { %407 = vmatpush.bf16.msra.mxu0 %v1079_v0  ;;  %1112 = vmatpush.bf16.msra.mxu1 %v1079_v0  ;;  %v1081_v3 = vld [vmem:[%s1314_s1 + $0x18] sm:$0xff]  ;;  %v1082_v4 = vld [vmem:[%s1314_s1 + $0x20] sm:$0xff]  ;;  %s1113_s13 = smul.u32 20, %s1322_s25  ;;  %v1084_v5 = vld [vmem:[%s1314_s1 + $0x30] sm:$0xff]  ;;  %vm457_vm7 = vcmask 1046528   ;;  %vm511_vm8 = vcmask 1044480   ;;  %s312_s21 = scalar_lea.vmem %s1319_s6, %s1322_s25 }
   0xd   : > { %480 = vmatpush.bf16.msra.mxu2 %v1080_v1  ;;  %v1085_v6 = vld [vmem:[%s1314_s1 + $0x38] sm:$0xff]  ;;  %534 = vmatpush.bf16.msra.mxu3 %v1081_v3  ;;  %vm371_vm9 = vsmask.f32 7424  ;;  %vm393_vm10 = vcmask 130048   ;;  %v1086_v61 = vld [vmem:[%s1314_s1 + $0x40] sm:$0xff]  ;;  %v1083_v63 = vld [vmem:[%s1314_s1 + $0x28] sm:$0xff]  ;;  %s315_s26 = scalar_lea.vmem %s1320_s7, %s1322_s25 }
   0xe   : > { %s299_s20 = scalar_lea.vmem %s1313_s0, %s1113_s13  ;;  %vm555_vm11 = vsmask.f32 4352  ;;  %vm661_vm12 = vcmask 1045504   ;;  %vm705_vm13 = vsmask.f32 5376  ;;  %s1114_s10 = smul.u32 12, %s1322_s25 }
   0xf   : > { %v1088_v7 = vld [vmem:[%s299_s20] sm:$0xff]   ;;  %v1107_v8 = vld [vmem:[%s299_s20 + $0x8] sm:$0xff]   ;;  %v321_v24 = vld [vmem:[%s299_s20 + $0x10] sm:$0x3]  ;;  %vm876_vm14 = vcmask 257024   ;;  %vm836_vm15 = vcmask 261120  }
  0x10   : > { %439 = vmatpush.bf16.msrb.mxu1 %v1078_v2  ;;  %592 = vmatpush.bf16.msrb.mxu0 %v1082_v4  ;;  %v1089_v9 = vunpack.c.l.bf16 %v1088_v7  ;;  %v1090_v10 = vunpack.c.h.bf16 %v1088_v7  ;;  %v1093_v11 = vunpack.c.l.bf16 %v1107_v8  ;;  %v1094_v12 = vunpack.c.h.bf16 %v1107_v8  ;;  %s1275_s13 = scalar_lea.vmem %s1316_s3, %s1114_s10  ;;  %s1286_s18 = scalar_lea.vmem %s1318_s5, %s1114_s10 }
  0x11   : > { %684 = vmatpush.bf16.msrb.mxu2 %v1084_v5  ;;  %742 = vmatpush.bf16.msrb.mxu3 %v1085_v6  ;;  %v326_v26 = vunpack.c.l.bf16 %v321_v24 }
  0x12   : > { %vm327_vm0 = vcmp.ge.f32.partialorder %v1089_v9, 0.0  ;;  %vm328_vm1 = vcmp.ge.f32.partialorder %v1090_v10, 0.0  ;;  %vm329_vm2 = vcmp.ge.f32.partialorder %v1093_v11, 0.0  ;;  %v332_v13 = vmul.f32 0.01, %v1089_v9 }
  0x13   : > { %v333_v14 = vmul.f32 0.01, %v1090_v10  ;;  %v334_v15 = vmul.f32 0.01, %v1093_v11  ;;  %vm330_vm3 = vcmp.ge.f32.partialorder %v1094_v12, 0.0  ;;  %vm331_vm5 = vcmp.ge.f32.partialorder %v326_v26, 0.0 }
  0x14   : > { %v337_v16 = vsel %vm327_vm0, %v1089_v9, %v332_v13  ;;  %v335_v17 = vmul.f32 0.01, %v1094_v12  ;;  %v336_v27 = vmul.f32 0.01, %v326_v26  ;;  %vm840_vm0 = vcmask 259072  }
  0x15   : > { %v338_v18 = vsel %vm328_vm1, %v1090_v10, %v333_v14  ;;  %v339_v19 = vsel %vm329_vm2, %v1093_v11, %v334_v15  ;;  %v342_v20 = vpack.c.bf16 %v337_v16, %v337_v16  ;;  %vm879_vm1 = vcmask 256000  }
  0x16   : > { %v343_v21 = vpack.c.bf16 %v338_v18, %v338_v18  ;;  %v344_v22 = vpack.c.bf16 %v339_v19, %v339_v19  ;;  %v340_v23 = vsel %vm330_vm3, %v1094_v12, %v335_v17  ;;  %v341_v28 = vsel %vm331_vm5, %v326_v26, %v336_v27 }
  0x17   : > { %348 = vst.msk [vmem:[#allocation2] sm:$0xf] %vm347_vm4, %v342_v20  ;;  %v345_v25 = vpack.c.bf16 %v340_v23, %v340_v23  ;;  %v346_v29 = vpack.c.bf16 %v341_v28, %v341_v28  ;;  %vm856_vm2 = vcmask 253952  }
  0x18   : > { %349 = vst.msk [vmem:[#allocation2 + $0x4] sm:$0xf] %vm347_vm4, %v343_v21 }
  0x19   : > { %350 = vst.msk [vmem:[#allocation2 + $0x8] sm:$0xf] %vm347_vm4, %v344_v22 }
  0x1a   : > { %351 = vst.msk [vmem:[#allocation2 + $0xc] sm:$0xf] %vm347_vm4, %v345_v25 }
  0x1b   : > { %353 = vst.msk [vmem:[#allocation2 + $0x10] sm:$0x3] %vm352_vm6, %v346_v29 }
  0x1e   : > { %v1109_v30 = vld [vmem:[#allocation2] sm:$0xe] }
  0x1f   : > { %v494_v31 = vld [vmem:[#allocation2] sm:$0x8]  ;;  %v1108_v33 = vld [vmem:[#allocation2] sm:$0xf0] }
  0x20   : > { %v1211_v32 = vld [vmem:[#allocation2] sm:$0xff]   ;;  %v505_v34 = vunpack.c.l.b16 %v494_v31  ;;  %v1110_v38 = vor.u32 %v1109_v30, %v1108_v33  ;;  %v496_v39 = vld [vmem:[#allocation2 + $0x8] sm:$0xf] }
  0x21   : > { %v1213_v35 = vld [vmem:[#allocation2 + $0x4] sm:$0xff]   ;;  %v373_v36 = vshrl.u32 %v1211_v32, 16  ;;  %v375_v37 = vshll.u32 %v1211_v32, 16  ;;  %v497_v41 = vld [vmem:[#allocation2 + $0xc] sm:$0x3]  ;;  %v1219_v43 = vunpack.c.l.b16 %v496_v39 }
  0x22   : > { %v368_v40 = vunpack.c.h.b16 %v1213_v35  ;;  %v506_v42 = vunpack.c.l.b16 %v1213_v35  ;;  %v548_v44 = vld [vmem:[#allocation2 + $0xc] sm:$0x7]  ;;  %v508_v46 = vunpack.c.l.b16 %v497_v41  ;;  %v458_v48 = vrot.slane %v1110_v38, 1  ;;  %v644_v6 = vld [vmem:[#allocation2 + $0x4] sm:$0xc] }
  0x23   : > { %v377_v45 = vrot.slane %v375_v37, 1  ;;  %v1223_v50 = vunpack.c.l.b16 %v548_v44  ;;  %v1111_v7 = vld [vmem:[#allocation2 + $0x8] sm:$0xff]   ;;  %v698_v12 = vld [vmem:[#allocation2 + $0x10] sm:$0x3]  ;;  %v655_v15 = vunpack.c.l.b16 %v644_v6 }
  0x24   : > { %v370_v47 = vpack.c.b16 %v368_v40, %v368_v40  ;;  %v509_v49 = vpack.c.b16 %v506_v42, %v505_v34  ;;  %v510_v52 = vpack.c.b16 %v508_v46, %v1219_v43  ;;  %v1101_v13 = vunpack.c.l.b16 %v1111_v7  ;;  %v647_v19 = vld [vmem:[#allocation2 + $0x10] sm:$0x1]  ;;  %v356_v34 = vld [vmem:[#allocation2 + $0x8] sm:$0x7]  ;;  %v756_v46 = vld [vmem:[#allocation2 + $0x4] sm:$0x8] }
  0x25   : > { %v378_v51 = vor.u32 %v377_v45, %v373_v36  ;;  %v554_v60 = vpack.c.b16 %v1223_v50, %v1219_v43  ;;  %v1102_v14 = vunpack.c.h.b16 %v1111_v7  ;;  %v703_v16 = vunpack.c.l.b16 %v698_v12 }
  0x26   : > { %v380_v53 = vshll.u32 %v370_v47, 16  ;;  %v384_v54 = vshrl.u32 %v370_v47, 16  ;;  %v459_v55 = vrot.slane %v370_v47, 1  ;;  %v512_v56 = vrot.slane %v509_v49, 3  ;;  %v815_v47 = vld [vmem:[%s1317_s4] sm:$0xff] }
  0x27   : > { %v513_v57 = vrot.slane %v510_v52, 3  ;;  %v557_v2 = vshrl.u32 %v509_v49, 16  ;;  %v560_v3 = vshll.u32 %v509_v49, 16  ;;  %v565_v4 = vshrl.u32 %v554_v60, 16  ;;  %v816_v52 = vld [vmem:[%s1317_s4 + $0x8] sm:$0xff] }
  0x28   : > { %v382_v58 = vrot.slane %v380_v53, 1  ;;  %v460_v59 = vsel %vm457_vm7, %v458_v48, %v459_v55  ;;  %v568_v5 = vshll.u32 %v554_v60, 16  ;;  %v659_v20 = vpack.c.b16 %v1101_v13, %v655_v15  ;;  %v817_v48 = vld [vmem:[%s1317_s4 + $0x10] sm:$0x3f] }
  0x29   : > { %1026 = vmatmul.msk.bf16.vlgmr.msra.gmra.mxu2 %vm393_vm10, %v460_v59  ;;  %v514_v62 = vsel %vm511_vm8, %v512_v56, %v513_v57  ;;  %v559_v8 = vrot.slane %v557_v2, 3  ;;  %v562_v9 = vrot.slane %v560_v3, 4  ;;  %v567_v10 = vrot.slane %v565_v4, 3 }
  0x2a   : > { %v383_v0 = vsel %vm371_vm9, %v378_v51, %v382_v58  ;;  %v386_v1 = vor.u32 %v384_v54, %v382_v58  ;;  %1034 = vmatmul.msk.bf16.vlgmr.msra.gmra.mxu3 %vm393_vm10, %v514_v62  ;;  %v570_v11 = vrot.slane %v568_v5, 4  ;;  %v704_v21 = vpack.c.b16 %v703_v16, %v1102_v14 }
  0x2b   : > { %1012 = vmatmul.msk.bf16.vlgmr.msra.gmra.mxu0 %vm393_vm10, %v383_v0  ;;  %v563_v17 = vor.u32 %v562_v9, %v559_v8  ;;  %v658_v23 = vunpack.c.l.b16 %v647_v19  ;;  %v707_v24 = vshrl.u32 %v659_v20, 16  ;;  %v710_v25 = vshll.u32 %v659_v20, 16 }
  0x2c   : > { %1013 = vmatmul.msk.bf16.vlgmr.msra.gmra.mxu1 %vm393_vm10, %v386_v1  ;;  %785 = vmatpush.bf16.msra.mxu0 %v1086_v61  ;;  %v571_v18 = vor.u32 %v570_v11, %v567_v10  ;;  %v715_v26 = vshrl.u32 %v704_v21, 16  ;;  %v718_v27 = vshll.u32 %v704_v21, 16  ;;  %v662_v36 = vrot.slane %v659_v20, 2 }
  0x2d   : > { %630 = vmatpush.bf16.msra.mxu1 %v1083_v63  ;;  %v660_v28 = vpack.c.b16 %v658_v23, %v1102_v14  ;;  %v709_v29 = vrot.slane %v707_v24, 2  ;;  %v712_v30 = vrot.slane %v710_v25, 3  ;;  %v419_v40 = vunpack.c.l.b16 %v356_v34 }
  0x2e   : > { %v572_v22 = vsel %vm555_vm11, %v563_v17, %v571_v18  ;;  %v717_v31 = vrot.slane %v715_v26, 2  ;;  %v720_v33 = vrot.slane %v718_v27, 3  ;;  %v1135_v49 = vmov 0   ;;  %v1104_v27 = vld [vmem:[%s1275_s13] sm:$0xff]  }
  0x2f   : > { %v663_v37 = vrot.slane %v660_v28, 2  ;;  %v713_v38 = vor.u32 %v712_v30, %v709_v29  ;;  %v420_v45 = vpack.c.b16 %v419_v40, %v419_v40  ;;  %1124 = vset.pattern.permute.xlu0 %v1135_v49  ;;  %1125 = vset.pattern.permute.xlu1 %v1135_v49  ;;  %v764_v54 = vrot.slane %v704_v21, 3  ;;  %v1126_v30 = vld [vmem:[%s1315_s2] ss:$0 sm:$0xff] }
  0x30   : > { %v721_v39 = vor.u32 %v720_v33, %v717_v31  ;;  %820 = vperm.xlu0 %1124, %v815_v47   ;;  %830 = vperm.xlu1 %1125, %v817_v48   ;;  %v609_v56 = vpack.c.b16 %v1219_v43, %v506_v42 }
  0x31   : > { %v664_v41 = vsel %vm661_vm12, %v662_v36, %v663_v37 }
  0x32   : > { %v722_v44 = vsel %vm705_vm13, %v713_v38, %v721_v39 }
  0x38   : > { %825 = vperm.xlu0 %1124, %v816_v52  }
  0x39   : > { %1027 = vmatmul.msk.bf16.gmra.mxu2 %vm393_vm10, %v459_v55 }
  0x3a   : > { %1035 = vmatmul.msk.bf16.gmra.mxu3 %vm393_vm10, %v513_v57  ;;  %v610_v57 = vpack.c.b16 %v1223_v50, %v1223_v50 }
  0x3b   : > { %1042 = vmatmul.msk.bf16.vlgmr.msrb.gmra.mxu0 %vm393_vm10, %v572_v22 }
  0x3c   : > { %1018 = vmatmul.msk.bf16.vlgmr.msrb.gmra.mxu1 %vm393_vm10, %v1211_v32  ;;  %v761_v32 = vunpack.c.l.b16 %v756_v46 }
  0x3e   : > { %v762_v51 = vpack.c.b16 %v1101_v13, %v761_v32 }
  0x40   : > { %v763_v53 = vrot.slane %v762_v51, 3 }
  0x42   : > { %v765_v55 = vsel %vm511_vm8, %v763_v53, %v764_v54 }
  0x49   : > { %1058 = vmatmul.msk.bf16.vlgmr.msrb.gmra.mxu2 %vm393_vm10, %v664_v41 }
  0x4a   : > { %1066 = vmatmul.msk.bf16.vlgmr.msrb.gmra.mxu3 %vm393_vm10, %v722_v44 }
  0x4b   : > { %1043 = vmatmul.msk.bf16.gmra.mxu0 %vm393_vm10, %v571_v18 }
  0x4c   : > { %1019 = vmatmul.msk.bf16.gmra.mxu1 %vm393_vm10, %v420_v45 }
  0x59   : > { %1059 = vmatmul.msk.bf16.gmra.mxu2 %vm393_vm10, %v663_v37  ;;  %v1105_v37 = vunpack.c.l.bf16 %v1104_v27 }
  0x5a   : > { %1067 = vmatmul.msk.bf16.gmra.mxu3 %vm393_vm10, %v721_v39 }
  0x5b   : > { %1074 = vmatmul.msk.bf16.vlgmr.msra.gmra.mxu0 %vm393_vm10, %v765_v55 }
  0x5c   : > { %1050 = vmatmul.msk.bf16.vlgmr.msra.gmra.mxu1 %vm393_vm10, %v609_v56 }
  0x6b   : > { %1075 = vmatmul.msk.bf16.gmra.mxu0 %vm393_vm10, %v764_v54  ;;  %v1106_v54 = vunpack.c.h.bf16 %v1104_v27 }
  0x6c   : > { %1051 = vmatmul.msk.bf16.gmra.mxu1 %vm393_vm10, %v610_v57 }
  0xa2   : > { %v821_v32 = vpop.permute.xlu0 %820 }
  0xa8   : > { %v409_v58 = vpop.f32.mrf.mxu0 }
  0xa9   : > { %v414_v59 = vpop.f32.mrf.mxu1 }
  0xac   : > { %v482_v35 = vpop.f32.mrf.mxu2 }
  0xad   : > { %v536_v60 = vpop.f32.mrf.mxu3 }
  0xb0   : > { %v411_v42 = vpop.f32.mrf.mxu0 }
  0xb1   : > { %v416_v43 = vpop.f32.mrf.mxu1 }
  0xb2   : > { %v826_v43 = vpop.permute.xlu0 %825 }
  0xb4   : > { %v484_v61 = vpop.f32.mrf.mxu2 }
  0xb5   : > { %v538_v62 = vpop.f32.mrf.mxu3 }
  0xb8   : > { %v594_v63 = vpop.f32.mrf.mxu0 }
  0xb9   : > { %v441_v0 = vpop.f32.mrf.mxu1 }
  0xba   : > { %v442_v8 = vadd.f32 %v441_v0, %v409_v58 }
  0xbc   : > { %v487_v1 = vpop.f32.mrf.mxu2  ;;  %v491_v11 = vadd.f32 %v482_v35, %v442_v8  ;;  %v808_v35 = vld [vmem:[%s1275_s13 + $0x8] sm:$0x7] }
  0xbd   : > { %v541_v2 = vpop.f32.mrf.mxu3  ;;  %v811_v0 = vunpack.c.l.bf16 %v808_v35 }
  0xbe   : > { %v545_v15 = vadd.f32 %v536_v60, %v491_v11 }
  0xc0   : > { %v596_v3 = vpop.f32.mrf.mxu0  ;;  %v603_v20 = vadd.f32 %v594_v63, %v545_v15 }
  0xc1   : > { %v443_v4 = vpop.f32.mrf.mxu1 }
  0xc2   : > { %v444_v14 = vadd.f32 %v443_v4, %v411_v42  ;;  %v831_v4 = vpop.permute.xlu1 %830 }
  0xc4   : > { %v489_v50 = vpop.f32.mrf.mxu2  ;;  %v492_v18 = vadd.f32 %v484_v61, %v444_v14 }
  0xc5   : > { %v543_v5 = vpop.f32.mrf.mxu3 }
  0xc6   : > { %v546_v25 = vadd.f32 %v538_v62, %v492_v18 }
  0xc8   : > { %v599_v6 = vpop.f32.mrf.mxu0  ;;  %v604_v36 = vadd.f32 %v596_v3, %v546_v25 }
  0xc9   : > { %v446_v7 = vpop.f32.mrf.mxu1 }
  0xca   : > { %v447_v23 = vadd.f32 %v446_v7, %v414_v59 }
  0xcc   : > { %v686_v9 = vpop.f32.mrf.mxu2  ;;  %v493_v31 = vadd.f32 %v487_v1, %v447_v23 }
  0xcd   : > { %v744_v10 = vpop.f32.mrf.mxu3 }
  0xce   : > { %v547_v45 = vadd.f32 %v541_v2, %v493_v31 }
  0xd0   : > { %v601_v12 = vpop.f32.mrf.mxu0  ;;  %v605_v53 = vadd.f32 %v599_v6, %v547_v45 }
  0xd1   : > { %v448_v13 = vpop.f32.mrf.mxu1 }
  0xd4   : > { %v688_v16 = vpop.f32.mrf.mxu2 }
  0xd5   : > { %v746_v17 = vpop.f32.mrf.mxu3 }
  0xd8   : > { %v787_v19 = vpop.f32.mrf.mxu0 }
  0xd9   : > { %v632_v21 = vpop.f32.mrf.mxu1 }
  0xda   : > { %v641_v22 = vadd.f32 %v632_v21, %v603_v20 }
  0xdc   : > { %v695_v24 = vadd.f32 %v686_v9, %v641_v22  ;;  %v691_v26 = vpop.f32.mrf.mxu2 }
  0xdd   : > { %v749_v28 = vpop.f32.mrf.mxu3 }
  0xde   : > { %v753_v29 = vadd.f32 %v744_v10, %v695_v24 }
  0xe0   : > { %v796_v33 = vadd.f32 %v787_v19, %v753_v29  ;;  %v789_v34 = vpop.f32.mrf.mxu0 }
  0xe1   : > { %v634_v38 = vpop.f32.mrf.mxu1 }
  0xe2   : > { %v642_v39 = vadd.f32 %v634_v38, %v604_v36  ;;  %v803_v40 = vadd.f32 %v1126_v30, %v796_v33 }
  0xe4   : > { %v696_v41 = vadd.f32 %v688_v16, %v642_v39  ;;  %v812_v44 = vadd.f32 %v1105_v37, %v803_v40  ;;  %v693_v46 = vpop.f32.mrf.mxu2 }
  0xe5   : > { %v751_v47 = vpop.f32.mrf.mxu3 }
  0xe6   : > { %v754_v48 = vadd.f32 %v746_v17, %v696_v41  ;;  %v873_v49 = vpack.c.bf16 %v812_v44, %v812_v44  ;;  %v833_v2 = vmul.f32 %v821_v32, %v812_v44 }
  0xe8   : > { %v797_v51 = vadd.f32 %v789_v34, %v754_v48  ;;  %877 = vst.msk [vmem:[%s1286_s18] sm:$0xf] %vm876_vm14, %v873_v49  ;;  %v792_v52 = vpop.f32.mrf.mxu0  ;;  %v837_v6 = vsel %vm836_vm15, %v833_v2, 0.0 }
  0xe9   : > { %v637_v55 = vpop.f32.mrf.mxu1 }
  0xea   : > { %v643_v56 = vadd.f32 %v637_v55, %v605_v53  ;;  %v804_v57 = vadd.f32 %v1126_v30, %v797_v51 }
  0xec   : > { %v697_v58 = vadd.f32 %v691_v26, %v643_v56  ;;  %v813_v59 = vadd.f32 %v1106_v54, %v804_v57 }
  0xee   : > { %v755_v60 = vadd.f32 %v749_v28, %v697_v58  ;;  %v874_v42 = vpack.c.bf16 %v813_v59, %v813_v59  ;;  %v834_v62 = vmul.f32 %v826_v43, %v813_v59 }
  0xf0   : > { %v798_v61 = vadd.f32 %v792_v52, %v755_v60  ;;  %878 = vst.msk [vmem:[%s1286_s18 + $0x4] sm:$0xf] %vm876_vm14, %v874_v42  ;;  %v794_v63 = vpop.f32.mrf.mxu0  ;;  %v838_v50 = vsel %vm836_vm15, %v834_v62, 0.0 }
  0xf1   : > { %v639_v1 = vpop.f32.mrf.mxu1  ;;  %v839_v9 = vadd.f32 %v838_v50, %v837_v6 }
  0xf2   : > { %v805_v3 = vadd.f32 %v1126_v30, %v798_v61 }
  0xf4   : > { %v814_v5 = vadd.f32 %v811_v0, %v805_v3 }
  0xf6   : > { %v835_v7 = vmul.f32 %v831_v4, %v814_v5  ;;  %v875_v8 = vpack.c.bf16 %v814_v5, %v814_v5 }
  0xf8   : > { %v841_v10 = vsel %vm840_vm0, %v835_v7, 0.0  ;;  %880 = vst.msk [vmem:[%s1286_s18 + $0x8] sm:$0x7] %vm879_vm1, %v875_v8 }
  0xf9   : > { %v842_v11 = vadd.f32 %v841_v10, %v839_v9 }
  0xfb   : > { %v843_v12 = vrot.slane %v842_v11, 4 }
  0xfd   : > { %v844_v13 = vadd.f32 %v843_v12, %v842_v11 }
  0xff   : > { %v845_v14 = vrot.slane %v844_v13, 2 }
 0x101   : > { %v846_v15 = vadd.f32 %v845_v14, %v844_v13 }
 0x103   : > { %v847_v16 = vrot.slane %v846_v15, 1 }
 0x105   : > { %v848_v17 = vadd.f32 %v847_v16, %v846_v15 }
 0x107   : > { %v849_v18 = vmul.f32 0.0625, %v848_v17  ;;  %857 = vst.msk [vmem:[%s312_s21] sm:$0x1] %vm856_vm2, %v848_v17 }
 0x109   : > { %v850_v19 = vsub.f32 %v812_v44, %v849_v18  ;;  %v851_v20 = vsub.f32 %v813_v59, %v849_v18  ;;  %v852_v21 = vsub.f32 %v814_v5, %v849_v18 }
 0x10b   : > { %v853_v22 = vmul.f32 %v850_v19, %v821_v32  ;;  %v854_v23 = vmul.f32 %v851_v20, %v826_v43  ;;  %v855_v24 = vmul.f32 %v852_v21, %v831_v4 }
 0x10d   : > { %v858_v25 = vmul.f32 %v853_v22, %v853_v22  ;;  %v859_v26 = vmul.f32 %v854_v23, %v854_v23  ;;  %v860_v27 = vmul.f32 %v855_v24, %v855_v24 }
 0x10f   : > { %v861_v28 = vsel %vm836_vm15, %v858_v25, 0.0  ;;  %v862_v29 = vsel %vm836_vm15, %v859_v26, 0.0  ;;  %v864_v31 = vsel %vm840_vm0, %v860_v27, 0.0 }
 0x110   : > { %v863_v30 = vadd.f32 %v862_v29, %v861_v28 }
 0x112   : > { %v865_v33 = vadd.f32 %v864_v31, %v863_v30 }
 0x114   : > { %v866_v34 = vrot.slane %v865_v33, 4 }
 0x116   : > { %v867_v36 = vadd.f32 %v866_v34, %v865_v33 }
 0x118   : > { %v868_v37 = vrot.slane %v867_v36, 2 }
 0x11a   : > { %v869_v38 = vadd.f32 %v868_v37, %v867_v36 }
 0x11c   : > { %v870_v39 = vrot.slane %v869_v38, 1 }
 0x11e   : > { %v871_v40 = vadd.f32 %v870_v39, %v869_v38 }
 0x120   : > { %872 = vst.msk [vmem:[%s315_s26] sm:$0x1] %vm856_vm2, %v871_v40 }
 0x121 PF: > { %s18_s24 = sadd.s32 1, %s1133_s24  }
 0x122   : > { %p15_p4 = scmp.ge.s32.totalorder %s18_s24, 4  }
 0x124   :  { %17 = sbr.rel (!%p15_p4) target bundleno = 1 (0x1), region = 105 }

// kernel: tile.18
= control target key start
LH: loop header
LB: loop body
LE: loop exit
PB: predicated region body
PF: predicated region fallthrough
CT: control target
= control target key end

     0   :  { %s22_s0 = inlined_call_operand.vmem [shape: f32[4], index: 0, kind: input, shape index: {}]   ;;  %s23_s1 = inlined_call_operand.vmem [shape: f32[4,4], index: 1, kind: output, shape index: {}]  }
   0x1   :  { %v4_v0 = vld [vmem:[%s22_s0] ss:$0 sm:$0xff] }
   0x2   :  { %5 = vst [vmem:[%s23_s1] sm:$0xf] %v4_v0 }

// kernel: tile.19
= control target key start
LH: loop header
LB: loop body
LE: loop exit
PB: predicated region body
PF: predicated region fallthrough
CT: control target
= control target key end

     0   :  { %s37_s8 = smov 4   ;;  %s38_s9 = smov 8   ;;  %vm7_vm0 = vcmask 31744   ;;  %vm13_vm1 = vcmask 130144   ;;  %vm19_vm2 = vcmask 97344   ;;  %vm25_vm3 = vcmask 64544   ;;  %s55_s0 = inlined_call_operand.vmem [shape: f32[4,4], index: 0, kind: input, shape index: {}]   ;;  %s56_s1 = inlined_call_operand.vmem [shape: f32[1,16], index: 1, kind: output, shape index: {}]  }
   0x1   :  { %v4_v0 = vld [vmem:[%s55_s0] sm:$0xf]  ;;  %s36_s0 = smov 12  }
   0x2   :  { %5 = vst [vmem:[#allocation1] sm:$0xf] %v4_v0 }
   0x9   :  { %v10_v1 = vld [vmem:[#allocation1 + $0x3] sm:$0x1]   ;;  %v22_v2 = vld [vmem:[#allocation1 + $0x1] sm:$0x1]   ;;  %v16_v3 = vld [vmem:[#allocation1 + $0x2] sm:$0x1]  }
   0xa   :  { %11 = vrot.lane.b32.xlu0 %v10_v1, %s36_s0  ;;  %23 = vrot.lane.b32.xlu1 %v22_v2, %s37_s8  ;;  %v6_v4 = vld [vmem:[#allocation1] sm:$0x1]  }
   0xb   :  { %8 = vst.msk [vmem:[#allocation0] sm:$0x1] %vm7_vm0, %v6_v4  }
  0x12   :  { %17 = vrot.lane.b32.xlu0 %v16_v3, %s38_s9 }
  0x7c   :  { %v12_v5 = vpop.permute.xlu0 %11   ;;  %v24_v6 = vpop.permute.xlu1 %23  }
  0x7d   :  { %14 = vst.msk [vmem:[#allocation0] sm:$0x1] %vm13_vm1, %v12_v5  }
  0x84   :  { %v18_v7 = vpop.permute.xlu0 %17  }
  0x85   :  { %20 = vst.msk [vmem:[#allocation0] sm:$0x1] %vm19_vm2, %v18_v7  }
  0x86   :  { %26 = vst.msk [vmem:[#allocation0] sm:$0x1] %vm25_vm3, %v24_v6  }
  0x8d   :  { %v29_v8 = vld [vmem:[#allocation0] sm:$0x1] }
  0x8e   :  { %32 = vst [vmem:[%s56_s1] sm:$0x1] %v29_v8 }

// kernel: unet2_forward.8
= control target key start
LH: loop header
LB: loop body
LE: loop exit
PB: predicated region body
PF: predicated region fallthrough
CT: control target
= control target key end

     0   :  { %s2252_s13 = smov 0   ;;  %s2811_s0 = inlined_call_operand.vmem [shape: bf16[2,100,16], index: 0, kind: input, shape index: {}]   ;;  %s2812_s1 = inlined_call_operand.vmem [shape: bf16[9,16,16], index: 1, kind: input, shape index: {}]   ;;  %s2813_s2 = inlined_call_operand.vmem [shape: f32[1,16], index: 2, kind: input, shape index: {}]   ;;  %s2814_s3 = inlined_call_operand.vmem [shape: f32[1,16], index: 3, kind: input, shape index: {}]   ;;  %s2815_s4 = inlined_call_operand.vmem [shape: f32[1,16], index: 4, kind: input, shape index: {}]   ;;  %s2816_s5 = inlined_call_operand.vmem [shape: f32[1,100,1], index: 5, kind: input, shape index: {}]   ;;  %s2817_s6 = inlined_call_operand.vmem [shape: bf16[2,78,16], index: 6, kind: input, shape index: {}]   ;;  %s2818_s7 = inlined_call_operand.vmem [shape: f32[1,78,1], index: 7, kind: input, shape index: {}]   ;;  %s2819_s8 = inlined_call_operand.vmem [shape: bf16[2,78,16], index: 8, kind: output, shape index: {0}]   ;;  %s2820_s9 = inlined_call_operand.vmem [shape: f32[2,1,16], index: 9, kind: output, shape index: {1}]   ;;  %s2821_s10 = inlined_call_operand.vmem [shape: f32[2,1,16], index: 10, kind: output, shape index: {2}]  }
   0x1 LB: > { %s1907_s14 = sadd.s32 4294967295, %s2194_s13   ;;  %p1911_p0 = scmp.ge.s32.totalorder %s2194_s13, 1  ;;  %s2194_s13 = sphi %s2252_s13, %s21_s13  }
   0x2   : > { %p327_p1 = scmp.lt.s32.totalorder %s2194_s13, 3 }
   0x4   : > { %p328_p2 = pnand %p1911_p0, %p327_p1 }
   0x5   : > { %p376_p3 = scmp.lt.s32.totalorder (!%p328_p2), %s1907_s14, 1 }
   0x6   : > { %331 = sbr.rel (%p328_p2) target bundleno = 542 (0x21e), region = 52 }
   0xb   : > { %v464_v0 = vld [vmem:[%s2816_s5 + $0x30] sm:$0xff]  ;;  %v462_v1 = vld [vmem:[%s2816_s5 + $0x20] sm:$0xff]  ;;  %v2196_v3 = vmov 0   ;;  %v465_v4 = vld [vmem:[%s2816_s5 + $0x38] sm:$0xff]  ;;  %s2823_s14 = smov (!%p376_p3, %s1907_s14), 1  ;;  %vm601_vm1 = vcmask 125952  }
   0xc   : > { %v460_v2 = vld [vmem:[%s2816_s5 + $0x10] sm:$0xff]  ;;  %2184 = vset.pattern.permute.xlu2 %v2196_v3  ;;  %2183 = vset.pattern.permute.xlu1 %v2196_v3  ;;  %v463_v5 = vld [vmem:[%s2816_s5 + $0x28] sm:$0xff]  ;;  %v461_v6 = vld [vmem:[%s2816_s5 + $0x18] sm:$0xff]  ;;  %s2171_s25 = smul.u32 52, %s2823_s14  ;;  %vm657_vm12 = vsmask.f32 7424  ;;  %s393_s26 = scalar_lea.vmem %s2820_s9, %s2823_s14 }
   0xd   : > { %2182 = vset.pattern.permute.xlu0 %v2196_v3  ;;  %503 = vperm.xlu1 %2183, %v464_v0   ;;  %v467_v7 = vld [vmem:[%s2816_s5 + $0x48] sm:$0xff]  ;;  %v466_v8 = vld [vmem:[%s2816_s5 + $0x40] sm:$0xff]  ;;  %v468_v10 = vld [vmem:[%s2816_s5 + $0x50] sm:$0xff]  ;;  %vm703_vm13 = vcmask 130048   ;;  %s2172_s15 = smul.u32 40, %s2823_s14  ;;  %s396_s29 = scalar_lea.vmem %s2821_s10, %s2823_s14 }
   0xe   : > { %493 = vperm.xlu0 %2182, %v462_v1   ;;  %483 = vperm.xlu2 %2184, %v460_v2   ;;  %v458_v9 = vld [vmem:[%s2816_s5] sm:$0xff]  ;;  %v459_v11 = vld [vmem:[%s2816_s5 + $0x8] sm:$0xff]  ;;  %v469_v12 = vld [vmem:[%s2816_s5 + $0x58] sm:$0xff]  ;;  %s2339_s28 = scalar_lea.vmem %s2811_s0, %s2171_s25 }
   0xf   : > { %v1614_v13 = vld [vmem:[%s2818_s7] sm:$0xff]  ;;  %v1615_v15 = vld [vmem:[%s2818_s7 + $0x8] sm:$0xff]  ;;  %v1617_v16 = vld [vmem:[%s2818_s7 + $0x18] sm:$0xff]  ;;  %s2632_s18 = scalar_lea.vmem %s2817_s6, %s2172_s15  ;;  %s2647_s23 = scalar_lea.vmem %s2819_s8, %s2172_s15 }
  0x10   : > { %v470_v14 = vld [vmem:[%s2816_s5 + $0x60] sm:$0xf]  ;;  %v1616_v17 = vld [vmem:[%s2818_s7 + $0x10] sm:$0xff]  ;;  %v1619_v20 = vld [vmem:[%s2818_s7 + $0x28] sm:$0xff] }
  0x11   : > { %v1618_v18 = vld [vmem:[%s2818_s7 + $0x20] sm:$0xff]  ;;  %v1620_v19 = vld [vmem:[%s2818_s7 + $0x30] sm:$0xff]  ;;  %v1621_v21 = vld [vmem:[%s2818_s7 + $0x38] sm:$0xff] }
  0x12   : > { %v1623_v22 = vld [vmem:[%s2818_s7 + $0x48] sm:$0x3f]  ;;  %v1622_v23 = vld [vmem:[%s2818_s7 + $0x40] sm:$0xff]  ;;  %v2153_v43 = vld [vmem:[%s2339_s28 + $0x18] sm:$0xff]  }
  0x13   : > { %v2151_v24 = vld [vmem:[%s2339_s28 + $0x8] sm:$0xff]   ;;  %v2345_v26 = vld [vmem:[%s2814_s3] ss:$0 sm:$0xff]  ;;  %v2152_v44 = vld [vmem:[%s2339_s28 + $0x10] sm:$0xff]   ;;  %v2117_v47 = vunpack.c.l.bf16 %v2153_v43  ;;  %v2118_v61 = vunpack.c.h.bf16 %v2153_v43 }
  0x14   : > { %v2109_v25 = vunpack.c.l.bf16 %v2151_v24  ;;  %v2351_v28 = vld [vmem:[%s2815_s4] ss:$0 sm:$0xff]  ;;  %v2110_v30 = vunpack.c.h.bf16 %v2151_v24  ;;  %v2365_v45 = vld [vmem:[%s2339_s28 + $0x28] sm:$0xff]   ;;  %v2113_v50 = vunpack.c.l.bf16 %v2152_v44  ;;  %v2114_v62 = vunpack.c.h.bf16 %v2152_v44 }
  0x15   : > { %508 = vperm.xlu1 %2183, %v465_v4   ;;  %v2356_v34 = vld [vmem:[%s2339_s28] sm:$0xff]   ;;  %v2126_v51 = vunpack.c.h.bf16 %v2365_v45  ;;  %v434_v54 = vmul.f32 %v2345_v26, %v2117_v47  ;;  %v2082_v58 = vld [vmem:[%s2812_s1 + $0x8] sm:$0xff] }
  0x16   : > { %498 = vperm.xlu0 %2182, %v463_v5   ;;  %488 = vperm.xlu2 %2184, %v461_v6   ;;  %v430_v27 = vmul.f32 %v2345_v26, %v2109_v25  ;;  %v431_v33 = vmul.f32 %v2345_v26, %v2110_v30  ;;  %v2105_v38 = vunpack.c.l.bf16 %v2356_v34  ;;  %v432_v56 = vmul.f32 %v2345_v26, %v2113_v50 }
  0x17   : > { %v439_v57 = vmul.f32 %v2345_v26, %v2126_v51  ;;  %2168 = vmatpush.bf16.msra.mxu1 %v2082_v58  ;;  %2169 = vmatpush.bf16.msra.mxu2 %v2082_v58  ;;  %v451_v60 = vadd.f32 %v2351_v28, %v434_v54  ;;  %v410_v54 = vld [vmem:[%s2339_s28 + $0x30] sm:$0x3] }
  0x18   : > { %v447_v29 = vadd.f32 %v2351_v28, %v430_v27  ;;  %v448_v37 = vadd.f32 %v2351_v28, %v431_v33  ;;  %v428_v42 = vmul.f32 %v2345_v26, %v2105_v38  ;;  %2170 = vmatpush.bf16.msra.mxu3 %v2082_v58  ;;  %726 = vmatpush.bf16.msra.mxu0 %v2082_v58 }
  0x19   : > { %v449_v0 = vadd.f32 %v2351_v28, %v432_v56  ;;  %v456_v1 = vadd.f32 %v2351_v28, %v439_v57 }
  0x1a   : > { %v445_v49 = vadd.f32 %v2351_v28, %v428_v42 }
  0x1d   : > { %518 = vperm.xlu1 %2183, %v467_v7   ;;  %v435_v7 = vmul.f32 %v2345_v26, %v2118_v61 }
  0x1e   : > { %513 = vperm.xlu0 %2182, %v466_v8   ;;  %473 = vperm.xlu2 %2184, %v458_v9   ;;  %v433_v8 = vmul.f32 %v2345_v26, %v2114_v62 }
  0x25   : > { %523 = vperm.xlu1 %2183, %v468_v10  }
  0x26   : > { %478 = vperm.xlu0 %2182, %v459_v11   ;;  %528 = vperm.xlu2 %2184, %v469_v12   ;;  %v2154_v11 = vld [vmem:[%s2339_s28 + $0x20] sm:$0xff]  }
  0x2d   : > { %1626 = vperm.xlu1 %2183, %v1614_v13  }
  0x2e   : > { %533 = vperm.xlu0 %2182, %v470_v14   ;;  %1631 = vperm.xlu2 %2184, %v1615_v15  }
  0x35   : > { %1641 = vperm.xlu1 %2183, %v1617_v16   ;;  %v452_v16 = vadd.f32 %v2351_v28, %v435_v7 }
  0x36   : > { %1636 = vperm.xlu0 %2182, %v1616_v17   ;;  %1646 = vperm.xlu2 %2184, %v1618_v18   ;;  %v450_v17 = vadd.f32 %v2351_v28, %v433_v8  ;;  %v2122_v18 = vunpack.c.h.bf16 %v2154_v11 }
  0x38   : > { %v437_v30 = vmul.f32 %v2345_v26, %v2122_v18 }
  0x3d   : > { %1656 = vperm.xlu1 %2183, %v1620_v19  }
  0x3e   : > { %1651 = vperm.xlu0 %2182, %v1619_v20   ;;  %1661 = vperm.xlu2 %2184, %v1621_v21  }
  0x45   : > { %1671 = vperm.xlu1 %2183, %v1623_v22   ;;  %v2121_v22 = vunpack.c.l.bf16 %v2154_v11 }
  0x46   : > { %1666 = vperm.xlu0 %2182, %v1622_v23  }
  0x68   : > { %v484_v31 = vpop.permute.xlu2 %483 }
  0x69   : > { %v538_v32 = vmul.f32 %v484_v31, %v447_v29  ;;  %v2083_v31 = vld [vmem:[%s2812_s1 + $0x10] sm:$0xff] }
  0x6a   : > { %852 = vmatpush.bf16.msrb.mxu2 %v2083_v31 }
  0x6b   : > { %vm551_vm0 = vcmp.ge.f32.partialorder %v538_v32, 0.0  ;;  %v564_v35 = vmul.f32 0.01, %v538_v32 }
  0x6d   : > { %v577_v36 = vsel %vm551_vm0, %v538_v32, %v564_v35  ;;  %v2081_v32 = vld [vmem:[%s2812_s1] sm:$0xff]  ;;  %v436_v35 = vmul.f32 %v2345_v26, %v2121_v22  ;;  %vm1165_vm0 = vcmask 1045504  }
  0x6e   : > { %v590_v39 = vpack.c.bf16 %v577_v36, %v577_v36  ;;  %780 = vmatpush.bf16.msrb.mxu1 %v2081_v32  ;;  %v2095_v32 = vld [vmem:[%s2812_s1 + $0x28] sm:$0xff] }
  0x6f   : > { %v453_v44 = vadd.f32 %v2351_v28, %v436_v35 }
  0x70   : > { %604 = vst.msk [vmem:[#allocation2 + $0x8] sm:$0xf] %vm601_vm1, %v590_v39  ;;  %v489_v40 = vpop.permute.xlu2 %488  ;;  %v454_v39 = vadd.f32 %v2351_v28, %v437_v30 }
  0x71   : > { %v539_v41 = vmul.f32 %v489_v40, %v448_v37  ;;  %v2125_v40 = vunpack.c.l.bf16 %v2365_v45 }
  0x73   : > { %vm552_vm2 = vcmp.ge.f32.partialorder %v539_v41, 0.0  ;;  %v565_v46 = vmul.f32 0.01, %v539_v41  ;;  %v438_v51 = vmul.f32 %v2345_v26, %v2125_v40 }
  0x75   : > { %v578_v48 = vsel %vm552_vm2, %v539_v41, %v565_v46  ;;  %v2106_v41 = vunpack.c.h.bf16 %v2356_v34  ;;  %v2089_v34 = vld [vmem:[%s2812_s1 + $0x18] sm:$0xff]  ;;  %v455_v58 = vadd.f32 %v2351_v28, %v438_v51  ;;  %vm614_vm2 = vcmask 123904  }
  0x76   : > { %v591_v52 = vpack.c.bf16 %v578_v48, %v578_v48  ;;  %964 = vmatpush.bf16.msrb.mxu3 %v2089_v34 }
  0x77   : > { %v429_v45 = vmul.f32 %v2345_v26, %v2106_v41 }
  0x78   : > { %605 = vst.msk [vmem:[#allocation2 + $0xc] sm:$0xf] %vm601_vm1, %v591_v52  ;;  %v474_v53 = vpop.permute.xlu2 %473 }
  0x79   : > { %v536_v55 = vmul.f32 %v474_v53, %v445_v49 }
  0x7b   : > { %vm549_vm3 = vcmp.ge.f32.partialorder %v536_v55, 0.0  ;;  %v562_v59 = vmul.f32 0.01, %v536_v55 }
  0x7d   : > { %v575_v63 = vsel %vm549_vm3, %v536_v55, %v562_v59  ;;  %v446_v59 = vadd.f32 %v2351_v28, %v429_v45  ;;  %vm814_vm3 = vcmask 1046528  }
  0x7e   : > { %v588_v2 = vpack.c.bf16 %v575_v63, %v575_v63 }
  0x7f   : > { %v504_v3 = vpop.permute.xlu1 %503  ;;  %v2400_v46 = vld [vmem:[#allocation2 + $0x8] sm:$0xff] }
  0x80   : > { %602 = vst.msk [vmem:[#allocation2] sm:$0xf] %vm601_vm1, %v588_v2  ;;  %v542_v4 = vmul.f32 %v504_v3, %v451_v60  ;;  %v494_v5 = vpop.permute.xlu0 %493  ;;  %v529_v6 = vpop.permute.xlu2 %528  ;;  %v666_v53 = vshll.u32 %v2400_v46, 16  ;;  %v423_v60 = vunpack.c.l.bf16 %v410_v54 }
  0x81   : > { %v540_v9 = vmul.f32 %v494_v5, %v449_v0  ;;  %v547_v10 = vmul.f32 %v529_v6, %v456_v1  ;;  %v670_v0 = vshrl.u32 %v2400_v46, 16 }
  0x82   : > { %vm555_vm4 = vcmp.ge.f32.partialorder %v542_v4, 0.0  ;;  %v568_v12 = vmul.f32 0.01, %v542_v4  ;;  %v2413_v63 = vrot.slane %v666_v53, 1  ;;  %v440_v7 = vmul.f32 %v2345_v26, %v423_v60 }
  0x83   : > { %vm553_vm5 = vcmp.ge.f32.partialorder %v540_v9, 0.0  ;;  %v566_v13 = vmul.f32 0.01, %v540_v9  ;;  %vm560_vm6 = vcmp.ge.f32.partialorder %v547_v10, 0.0  ;;  %v573_v14 = vmul.f32 0.01, %v547_v10 }
  0x84   : > { %v581_v15 = vsel %vm555_vm4, %v542_v4, %v568_v12  ;;  %v672_v11 = vor.u32 %v670_v0, %v2413_v63  ;;  %vm1043_vm4 = vsmask.f32 6400 }
  0x85   : > { %v594_v19 = vpack.c.bf16 %v581_v15, %v581_v15  ;;  %v579_v20 = vsel %vm553_vm5, %v540_v9, %v566_v13  ;;  %v586_v21 = vsel %vm560_vm6, %v547_v10, %v573_v14  ;;  %v2094_v9 = vld [vmem:[%s2812_s1 + $0x20] sm:$0xff]  ;;  %vm1367_vm5 = vsmask.f32 5376 }
  0x86   : > { %v592_v23 = vpack.c.bf16 %v579_v20, %v579_v20  ;;  %v599_v24 = vpack.c.bf16 %v586_v21, %v586_v21  ;;  %1121 = vmatpush.bf16.msrb.mxu0 %v2094_v9  ;;  %vm1493_vm6 = vcmask 1044480  }
  0x87   : > { %608 = vst.msk [vmem:[#allocation2 + $0x18] sm:$0xf] %vm601_vm1, %v594_v19  ;;  %v509_v25 = vpop.permute.xlu1 %508 }
  0x88   : > { %606 = vst.msk [vmem:[#allocation2 + $0x10] sm:$0xf] %vm601_vm1, %v592_v23  ;;  %v543_v27 = vmul.f32 %v509_v25, %v452_v16  ;;  %v499_v29 = vpop.permute.xlu0 %498 }
  0x89   : > { %613 = vst.msk [vmem:[#allocation2 + $0x2c] sm:$0xf] %vm601_vm1, %v599_v24  ;;  %v541_v33 = vmul.f32 %v499_v29, %v450_v17  ;;  %v457_v17 = vadd.f32 %v2351_v28, %v440_v7  ;;  %v2100_v29 = vld [vmem:[%s2812_s1 + $0x30] sm:$0xff] }
  0x8a   : > { %vm556_vm7 = vcmp.ge.f32.partialorder %v543_v27, 0.0  ;;  %v569_v36 = vmul.f32 0.01, %v543_v27 }
  0x8b   : > { %vm554_vm8 = vcmp.ge.f32.partialorder %v541_v33, 0.0  ;;  %v567_v37 = vmul.f32 0.01, %v541_v33 }
  0x8c   : > { %v582_v38 = vsel %vm556_vm7, %v543_v27, %v569_v36  ;;  %vm1701_vm7 = vcmask 128000  }
  0x8d   : > { %v595_v42 = vpack.c.bf16 %v582_v38, %v582_v38  ;;  %v580_v43 = vsel %vm554_vm8, %v541_v33, %v567_v37  ;;  %v2101_v38 = vld [vmem:[%s2812_s1 + $0x38] sm:$0xff]  ;;  %vm1788_vm8 = vcmask 124928  }
  0x8e   : > { %v593_v47 = vpack.c.bf16 %v580_v43, %v580_v43 }
  0x8f   : > { %609 = vst.msk [vmem:[#allocation2 + $0x1c] sm:$0xf] %vm601_vm1, %v595_v42  ;;  %v519_v48 = vpop.permute.xlu1 %518  ;;  %v2443_v31 = vld [vmem:[#allocation2 + $0xc] sm:$0xff] }
  0x90   : > { %607 = vst.msk [vmem:[#allocation2 + $0x14] sm:$0xf] %vm601_vm1, %v593_v47  ;;  %v545_v49 = vmul.f32 %v519_v48, %v454_v39  ;;  %v514_v50 = vpop.permute.xlu0 %513  ;;  %v1167_v41 = vrot.slane %v2443_v31, 2  ;;  %v2085_v7 = vld [vmem:[#allocation2 + $0xc] sm:$0xff] }
  0x91   : > { %v544_v52 = vmul.f32 %v514_v50, %v453_v44 }
  0x92   : > { %vm558_vm9 = vcmp.ge.f32.partialorder %v545_v49, 0.0  ;;  %v571_v55 = vmul.f32 0.01, %v545_v49 }
  0x93   : > { %vm557_vm10 = vcmp.ge.f32.partialorder %v544_v52, 0.0  ;;  %v570_v56 = vmul.f32 0.01, %v544_v52 }
  0x94   : > { %v584_v57 = vsel %vm558_vm9, %v545_v49, %v571_v55  ;;  %v2084_v55 = vld [vmem:[#allocation2 + $0x4] sm:$0xf0] }
  0x95   : > { %v597_v61 = vpack.c.bf16 %v584_v57, %v584_v57  ;;  %v583_v62 = vsel %vm557_vm10, %v544_v52, %v570_v56  ;;  %v2460_v52 = vld [vmem:[#allocation2 + $0x8] sm:$0xff]  }
  0x96   : > { %v596_v1 = vpack.c.bf16 %v583_v62, %v583_v62  ;;  %v2416_v2 = vld [vmem:[#allocation2 + $0x18] sm:$0xff]  ;;  %v1027_v56 = vunpack.c.l.b16 %v2460_v52 }
  0x97   : > { %611 = vst.msk [vmem:[#allocation2 + $0x24] sm:$0xf] %vm601_vm1, %v597_v61  ;;  %v524_v3 = vpop.permute.xlu1 %523  ;;  %v2419_v4 = vld [vmem:[#allocation2 + $0x10] sm:$0xff]  ;;  %v682_v8 = vshll.u32 %v2416_v2, 16  ;;  %v686_v54 = vshrl.u32 %v2416_v2, 16 }
  0x98   : > { %610 = vst.msk [vmem:[#allocation2 + $0x20] sm:$0xf] %vm601_vm1, %v596_v1  ;;  %v546_v5 = vmul.f32 %v524_v3, %v455_v58  ;;  %v479_v6 = vpop.permute.xlu0 %478  ;;  %v674_v12 = vshll.u32 %v2419_v4, 16  ;;  %v678_v26 = vshrl.u32 %v2419_v4, 16  ;;  %v2448_v33 = vld [vmem:[#allocation2 + $0x14] sm:$0xff] }
  0x99   : > { %v537_v10 = vmul.f32 %v479_v6, %v446_v59  ;;  %v684_v18 = vrot.slane %v682_v8, 1  ;;  %v1169_v42 = vrot.slane %v2448_v33, 2  ;;  %v2102_v59 = vld [vmem:[%s2812_s1 + $0x40] sm:$0xff]  ;;  %v1011_v61 = vld [vmem:[#allocation2 + $0x2c] sm:$0x1] }
  0x9a   : > { %vm559_vm11 = vcmp.ge.f32.partialorder %v546_v5, 0.0  ;;  %v572_v13 = vmul.f32 0.01, %v546_v5  ;;  %v676_v15 = vrot.slane %v674_v12, 1  ;;  %v1036_v8 = vunpack.c.l.b16 %v1011_v61 }
  0x9b   : > { %vm550_vm14 = vcmp.ge.f32.partialorder %v537_v10, 0.0  ;;  %v563_v14 = vmul.f32 0.01, %v537_v10  ;;  %v2458_v48 = vsel %vm1165_vm0, %v1167_v41, %v1169_v42  ;;  %v688_v62 = vor.u32 %v686_v54, %v684_v18 }
  0x9c   : > { %v585_v16 = vsel %vm559_vm11, %v546_v5, %v572_v13  ;;  %v677_v21 = vsel %vm657_vm12, %v672_v11, %v676_v15  ;;  %v680_v22 = vor.u32 %v678_v26, %v676_v15  ;;  %v928_v26 = vrot.slane %v2085_v7, 1 }
  0x9d   : > { %v598_v19 = vpack.c.bf16 %v585_v16, %v585_v16  ;;  %v576_v20 = vsel %vm550_vm14, %v537_v10, %v563_v14  ;;  %1934 = vmatmul.msk.bf16.vlgmr.msra.gmra.mxu1 %vm703_vm13, %v677_v21  ;;  %v2484_v16 = vpack.c.b16 %v1036_v8, %v1036_v8 }
  0x9e   : > { %v589_v23 = vpack.c.bf16 %v576_v20, %v576_v20  ;;  %v685_v24 = vsel %vm657_vm12, %v680_v22, %v684_v18  ;;  %1205 = vmatpush.bf16.msra.mxu1 %v2095_v32  ;;  %v1056_v18 = vshll.u32 %v2443_v31, 16  ;;  %v2167_v8 = vld [vmem:[#allocation2 + $0x20] sm:$0x70] }
  0x9f   : > { %612 = vst.msk [vmem:[#allocation2 + $0x28] sm:$0xf] %vm601_vm1, %v598_v19  ;;  %v2435_v25 = vld [vmem:[#allocation2 + $0x20] sm:$0xff]   ;;  %1935 = vmatmul.msk.bf16.vlgmr.msra.gmra.mxu2 %vm703_vm13, %v685_v24 }
  0xa0   : > { %603 = vst.msk [vmem:[#allocation2 + $0x4] sm:$0xf] %vm601_vm1, %v589_v23  ;;  %v534_v27 = vpop.permute.xlu0 %533  ;;  %v690_v28 = vshll.u32 %v2435_v25, 16  ;;  %v694_v36 = vshrl.u32 %v2435_v25, 16  ;;  %1323 = vmatpush.bf16.msra.mxu2 %v2100_v29  ;;  %v2467_v60 = vld [vmem:[#allocation2 + $0x1c] sm:$0xff]  ;;  %v1175_v29 = vrot.slane %v2484_v16, 2 }
  0xa1   : > { %v548_v30 = vmul.f32 %v534_v27, %v457_v17  ;;  %v1171_v11 = vrot.slane %v2467_v60, 2  ;;  %v1053_v17 = vshrl.u32 %v2443_v31, 16  ;;  %v2162_v24 = vld [vmem:[#allocation2] sm:$0xe]  ;;  %v1058_v32 = vrot.slane %v1056_v18, 2  ;;  %v2096_v18 = vld [vmem:[#allocation2 + $0x10] sm:$0xff] }
  0xa2   : > { %v692_v35 = vrot.slane %v690_v28, 1  ;;  %v1071_v54 = vshrl.u32 %v2467_v60, 16 }
  0xa3   : > { %vm561_vm15 = vcmp.ge.f32.partialorder %v548_v30, 0.0  ;;  %v574_v37 = vmul.f32 0.01, %v548_v30  ;;  %v2482_v15 = vsel %vm1165_vm0, %v1169_v42, %v1171_v11 }
  0xa4   : > { %v696_v39 = vor.u32 %v694_v36, %v692_v35  ;;  %v693_v6 = vsel %vm657_vm12, %v688_v62, %v692_v35 }
  0xa5   : > { %v587_v40 = vsel %vm561_vm15, %v548_v30, %v574_v37  ;;  %v1055_v30 = vrot.slane %v1053_v17, 1  ;;  %v1268_v17 = vunpack.c.h.b16 %v2460_v52  ;;  %v1486_v52 = vld [vmem:[#allocation2 + $0x8] sm:$0x8] }
  0xa6   : > { %v600_v43 = vpack.c.bf16 %v587_v40, %v587_v40  ;;  %1937 = vmatmul.msk.bf16.vlgmr.msra.gmra.mxu3 %vm703_vm13, %v696_v39  ;;  %v2475_v10 = vld [vmem:[#allocation2 + $0x24] sm:$0xff]  ;;  %v2086_v39 = vld [vmem:[#allocation2 + $0x14] sm:$0xff] }
  0xa7   : > { %v2128_v44 = vld [vmem:[#allocation2] sm:$0xff]   ;;  %1449 = vmatpush.bf16.msra.mxu3 %v2101_v38  ;;  %v1173_v20 = vrot.slane %v2475_v10, 2  ;;  %v1059_v37 = vor.u32 %v1058_v32, %v1055_v30  ;;  %v816_v38 = vrot.slane %v2400_v46, 1  ;;  %v930_v42 = vrot.slane %v2086_v39, 1  ;;  %v2097_v39 = vld [vmem:[#allocation2 + $0x18] sm:$0xff] }
  0xa8   : > { %v1001_v47 = vld [vmem:[#allocation2 + $0x4] sm:$0xe]  ;;  %615 = vst.msk [vmem:[#allocation2 + $0x30] sm:$0x3] %vm614_vm2, %v600_v43  ;;  %v661_v49 = vshll.u32 %v2128_v44, 16  ;;  %v659_v51 = vshrl.u32 %v2128_v44, 16 }
  0xa9   : > { %v1158_v50 = vld [vmem:[#allocation2 + $0x4] sm:$0xc]  ;;  %v1026_v53 = vunpack.c.l.b16 %v1001_v47  ;;  %v2492_v27 = vsel %vm1165_vm0, %v1171_v11, %v1173_v20  ;;  %v2496_v31 = vsel %vm1165_vm0, %v1173_v20, %v1175_v29  ;;  %v1062_v43 = vshrl.u32 %v2448_v33, 16 }
  0xaa   : > { %v663_v45 = vrot.slane %v661_v49, 1  ;;  %v1962_v34 = vld [vmem:[#allocation2 + $0x4] sm:$0xe]  ;;  %v1163_v57 = vunpack.c.l.b16 %v1158_v50  ;;  %v931_v47 = vsel %vm814_vm3, %v928_v26, %v930_v42  ;;  %v822_v11 = vrot.slane %v2435_v25, 1 }
  0xab   : > { %v1963_v0 = vor.u32 %v2084_v55, %v1962_v34  ;;  %v1037_v5 = vpack.c.b16 %v1027_v56, %v1026_v53  ;;  %v2161_v19 = vld [vmem:[#allocation2] sm:$0xf0]  ;;  %v1064_v49 = vrot.slane %v1062_v43, 1  ;;  %v1074_v55 = vshll.u32 %v2467_v60, 16 }
  0xac   : > { %v664_v58 = vor.u32 %v663_v45, %v659_v51  ;;  %v1164_v1 = vpack.c.b16 %v1027_v56, %v1163_v57  ;;  %v2163_v28 = vor.u32 %v2162_v24, %v2161_v19  ;;  %v818_v51 = vrot.slane %v2419_v4, 1  ;;  %v2087_v45 = vld [vmem:[#allocation2 + $0x1c] sm:$0xff]  ;;  %v2088_v61 = vld [vmem:[#allocation2 + $0x24] sm:$0xff] }
  0xad   : > { %1942 = vmatmul.msk.bf16.vlgmr.msrb.gmra.mxu1 %vm703_vm13, %v2128_v44  ;;  %v927_v12 = vrot.slane %v1963_v0, 1  ;;  %v1045_v13 = vshrl.u32 %v1037_v5, 16  ;;  %v1048_v14 = vshll.u32 %v1037_v5, 16  ;;  %v1065_v44 = vshll.u32 %v2448_v33, 16 }
  0xae   : > { %v669_v3 = vsel %vm657_vm12, %v664_v58, %v2413_v63  ;;  %v1166_v9 = vrot.slane %v1164_v1, 2  ;;  %v815_v36 = vrot.slane %v2163_v28, 1  ;;  %v819_v53 = vsel %vm814_vm3, %v816_v38, %v818_v51 }
  0xaf   : > { %1933 = vmatmul.msk.bf16.vlgmr.msra.gmra.mxu0 %vm703_vm13, %v669_v3  ;;  %1936 = vmatmul.msk.bf16.gmra.mxu2 %vm703_vm13, %v693_v6  ;;  %v929_v21 = vsel %vm814_vm3, %v927_v12, %v928_v26  ;;  %v1047_v22 = vrot.slane %v1045_v13, 1  ;;  %v1050_v23 = vrot.slane %v1048_v14, 2  ;;  %v1067_v50 = vrot.slane %v1065_v44, 2  ;;  %v1242_v14 = vld [vmem:[#allocation2 + $0x8] sm:$0xc] }
  0xb0   : > { %1533 = vmatpush.bf16.msra.mxu0 %v2102_v59  ;;  %v2479_v63 = vsel %vm1165_vm0, %v1166_v9, %v1167_v41  ;;  %v817_v41 = vsel %vm814_vm3, %v815_v36, %v816_v38  ;;  %v932_v33 = vrot.slane %v2087_v45, 1  ;;  %v1073_v57 = vrot.slane %v1071_v54, 1 }
  0xb1   : > { %v1051_v35 = vor.u32 %v1050_v23, %v1047_v22  ;;  %v1076_v58 = vrot.slane %v1074_v55, 2  ;;  %v820_v59 = vrot.slane %v2416_v2, 1  ;;  %v934_v60 = vrot.slane %v2088_v61, 1 }
  0xb2   : > { %v933_v56 = vsel %vm814_vm3, %v930_v42, %v932_v33  ;;  %v1080_v1 = vshrl.u32 %v2475_v10, 16  ;;  %v1083_v3 = vshll.u32 %v2475_v10, 16  ;;  %v1267_v26 = vunpack.c.l.b16 %v1242_v14 }
  0xb3   : > { %v1060_v40 = vsel %vm1043_vm4, %v1051_v35, %v1059_v37  ;;  %v821_v0 = vsel %vm814_vm3, %v818_v51, %v820_v59  ;;  %v935_v5 = vsel %vm814_vm3, %v932_v33, %v934_v60  ;;  %v823_v10 = vsel %vm814_vm3, %v820_v59, %v822_v11 }
  0xb4   : > { %v1082_v6 = vrot.slane %v1080_v1, 1  ;;  %v1085_v7 = vrot.slane %v1083_v3, 2  ;;  %v1278_v19 = vpack.c.b16 %v1268_v17, %v1267_v26  ;;  %v1089_v25 = vshll.u32 %v2484_v16, 16  ;;  %v2568_v1 = vld [vmem:[#allocation2 + $0x28] sm:$0xff] }
  0xb5   : > { %v1377_v22 = vshrl.u32 %v2096_v18, 16  ;;  %v1380_v23 = vshll.u32 %v2096_v18, 16  ;;  %v1389_v42 = vshll.u32 %v2097_v39, 16  ;;  %v1495_v44 = vrot.slane %v2096_v18, 3 }
  0xb6   : > { %1984 = vmatmul.msk.bf16.vlgmr.msrb.gmra.mxu3 %vm703_vm13, %v929_v21  ;;  %v1086_v9 = vor.u32 %v1085_v7, %v1082_v6  ;;  %v1369_v20 = vshrl.u32 %v1278_v19, 16  ;;  %v1372_v21 = vshll.u32 %v1278_v19, 16  ;;  %v1091_v24 = vrot.slane %v1089_v25, 2 }
  0xb7   : > { %v1379_v30 = vrot.slane %v1377_v22, 2  ;;  %v1382_v32 = vrot.slane %v1380_v23, 3 }
  0xb8   : > { %v1371_v28 = vrot.slane %v1369_v20, 2  ;;  %v1374_v29 = vrot.slane %v1372_v21, 3  ;;  %v1092_v35 = vsel %vm1043_vm4, %v1086_v9, %v1091_v24 }
  0xb9   : > { %v1383_v36 = vor.u32 %v1382_v32, %v1379_v30  ;;  %v1501_v30 = vrot.slane %v2568_v1, 3 }
  0xba   : > { %v1375_v16 = vor.u32 %v1374_v29, %v1371_v28 }
  0xbc   : > { %v1384_v38 = vsel %vm1367_vm5, %v1375_v16, %v1383_v36 }
  0xbd   : > { %1943 = vmatmul.msk.bf16.gmra.mxu1 %vm703_vm13, %v2400_v46  ;;  %v1068_v46 = vor.u32 %v1067_v50, %v1064_v49  ;;  %v1391_v50 = vrot.slane %v1389_v42, 3 }
  0xbf   : > { %2011 = vmatmul.msk.bf16.vlgmr.msrb.gmra.mxu0 %vm703_vm13, %v1060_v40  ;;  %1953 = vmatmul.msk.bf16.vlgmr.msrb.gmra.mxu2 %vm703_vm13, %v817_v41  ;;  %v1069_v34 = vsel %vm1043_vm4, %v1059_v37, %v1068_v46  ;;  %v1491_v37 = vunpack.c.l.b16 %v1486_v52  ;;  %v1386_v41 = vshrl.u32 %v2097_v39, 16  ;;  %v1291_v52 = vrot.slane %v2568_v1, 2 }
  0xc1   : > { %v1492_v40 = vpack.c.b16 %v1268_v17, %v1491_v37  ;;  %v1388_v49 = vrot.slane %v1386_v41, 2  ;;  %v1252_v41 = vld [vmem:[#allocation2 + $0x30] sm:$0x1] }
  0xc3   : > { %v1494_v43 = vrot.slane %v1492_v40, 3  ;;  %v1392_v45 = vor.u32 %v1391_v50, %v1388_v49 }
  0xc6   : > { %1985 = vmatmul.msk.bf16.gmra.mxu3 %vm703_vm13, %v931_v47  ;;  %v1285_v47 = vrot.slane %v2096_v18, 2 }
  0xcd   : > { %1944 = vmatmul.msk.bf16.gmra.mxu1 %vm703_vm13, %v2419_v4  ;;  %v1077_v4 = vor.u32 %v1076_v58, %v1073_v57 }
  0xcf   : > { %2012 = vmatmul.msk.bf16.gmra.mxu0 %vm703_vm13, %v1069_v34  ;;  %1954 = vmatmul.msk.bf16.gmra.mxu2 %vm703_vm13, %v819_v53  ;;  %v1078_v62 = vsel %vm1043_vm4, %v1068_v46, %v1077_v4  ;;  %v1087_v13 = vsel %vm1043_vm4, %v1077_v4, %v1086_v9  ;;  %v1496_v46 = vsel %vm1493_vm6, %v1494_v43, %v1495_v44  ;;  %v2554_v53 = vld [vmem:[#allocation2 + $0x20] sm:$0xff] }
  0xd0   : > { %v1393_v34 = vsel %vm1367_vm5, %v1383_v36, %v1392_v45  ;;  %v1395_v33 = vshrl.u32 %v2554_v53, 16  ;;  %v1398_v54 = vshll.u32 %v2554_v53, 16  ;;  %v1499_v6 = vrot.slane %v2554_v53, 3 }
  0xd2   : > { %v1397_v57 = vrot.slane %v1395_v33, 2  ;;  %v1400_v58 = vrot.slane %v1398_v54, 3 }
  0xd4   : > { %v1401_v61 = vor.u32 %v1400_v58, %v1397_v57 }
  0xd6   : > { %1986 = vmatmul.msk.bf16.gmra.mxu3 %vm703_vm13, %v933_v56  ;;  %v1287_v56 = vrot.slane %v2097_v39, 2 }
  0xd8   : > { %v1288_v59 = vsel %vm1165_vm0, %v1285_v47, %v1287_v56 }
  0xdd   : > { %1945 = vmatmul.msk.bf16.gmra.mxu1 %vm703_vm13, %v2416_v2  ;;  %v2159_v2 = vld [vmem:[#allocation2 + $0x20] sm:$0xf]  }
  0xde   : > { %v2160_v12 = vor.u32 %v2167_v8, %v2159_v2  ;;  %v1289_v8 = vrot.slane %v2554_v53, 2 }
  0xdf   : > { %2013 = vmatmul.msk.bf16.gmra.mxu0 %vm703_vm13, %v1078_v62  ;;  %1955 = vmatmul.msk.bf16.gmra.mxu2 %vm703_vm13, %v821_v0 }
  0xe0   : > { %v1290_v26 = vsel %vm1165_vm0, %v1287_v56, %v1289_v8  ;;  %v1292_v40 = vsel %vm1165_vm0, %v1289_v8, %v1291_v52 }
  0xe6   : > { %1987 = vmatmul.msk.bf16.gmra.mxu3 %vm703_vm13, %v935_v5  ;;  %v1407_v5 = vshll.u32 %v2568_v1, 16 }
  0xed   : > { %1946 = vmatmul.msk.bf16.gmra.mxu1 %vm703_vm13, %v2160_v12 }
  0xef   : > { %2014 = vmatmul.msk.bf16.gmra.mxu0 %vm703_vm13, %v1087_v13  ;;  %1956 = vmatmul.msk.bf16.gmra.mxu2 %vm703_vm13, %v823_v10  ;;  %v1409_v13 = vrot.slane %v1407_v5, 3  ;;  %v1360_v10 = vld [vmem:[#allocation2 + $0x30] sm:$0x3] }
  0xf6   : > { %1988 = vmatmul.msk.bf16.gmra.mxu3 %vm703_vm13, %v934_v60  ;;  %v1402_v60 = vsel %vm1367_vm5, %v1392_v45, %v1401_v61 }
  0xfd   : > { %2022 = vmatmul.msk.bf16.vlgmr.msra.gmra.mxu1 %vm703_vm13, %v2479_v63  ;;  %v1284_v63 = vrot.slane %v1278_v19, 2  ;;  %v1365_v19 = vunpack.c.l.b16 %v1360_v10 }
  0xff   : > { %2015 = vmatmul.msk.bf16.gmra.mxu0 %vm703_vm13, %v1092_v35  ;;  %1957 = vmatmul.msk.bf16.gmra.mxu2 %vm703_vm13, %v822_v11  ;;  %v1286_v51 = vsel %vm1165_vm0, %v1284_v63, %v1285_v47  ;;  %v1277_v47 = vunpack.c.l.b16 %v1252_v41 }
 0x101   : > { %v1283_v45 = vpack.c.b16 %v1277_v47, %v1277_v47 }
 0x106   : > { %2060 = vmatmul.msk.bf16.vlgmr.msra.gmra.mxu3 %vm703_vm13, %v1384_v38 }
 0x10d   : > { %2023 = vmatmul.msk.bf16.gmra.mxu1 %vm703_vm13, %v2458_v48  ;;  %v1497_v48 = vrot.slane %v2097_v39, 3  ;;  %v1502_v39 = vsel %vm1493_vm6, %v1499_v6, %v1501_v30 }
 0x10f   : > { %2071 = vmatmul.msk.bf16.vlgmr.msra.gmra.mxu0 %vm703_vm13, %v1496_v46  ;;  %2049 = vmatmul.msk.bf16.vlgmr.msra.gmra.mxu2 %vm703_vm13, %v1286_v51  ;;  %v1498_v4 = vsel %vm1493_vm6, %v1495_v44, %v1497_v48  ;;  %v1500_v14 = vsel %vm1493_vm6, %v1497_v48, %v1499_v6 }
 0x116   : > { %2061 = vmatmul.msk.bf16.gmra.mxu3 %vm703_vm13, %v1393_v34 }
 0x11a   : > { %v733_v55 = vpop.f32.mrf.mxu1 }
 0x11d   : > { %2024 = vmatmul.msk.bf16.gmra.mxu1 %vm703_vm13, %v2482_v15  ;;  %v1404_v15 = vshrl.u32 %v2568_v1, 16 }
 0x11f   : > { %2072 = vmatmul.msk.bf16.gmra.mxu0 %vm703_vm13, %v1498_v4  ;;  %2050 = vmatmul.msk.bf16.gmra.mxu2 %vm703_vm13, %v1288_v59  ;;  %v1406_v12 = vrot.slane %v1404_v15, 2 }
 0x121   : > { %v1410_v18 = vor.u32 %v1409_v13, %v1406_v12 }
 0x122   : > { %v735_v62 = vpop.f32.mrf.mxu1  ;;  %v2565_v0 = vpop.f32.mrf.mxu2 }
 0x123   : > { %v1411_v23 = vsel %vm1367_vm5, %v1401_v61, %v1410_v18 }
 0x126   : > { %2062 = vmatmul.msk.bf16.gmra.mxu3 %vm703_vm13, %v1402_v60 }
 0x129   : > { %v2571_v3 = vpop.f32.mrf.mxu3 }
 0x12a   : > { %v2576_v7 = vpop.f32.mrf.mxu2  ;;  %v782_v2 = vpop.f32.mrf.mxu1 }
 0x12c   : > { %v728_v9 = vpop.f32.mrf.mxu0 }
 0x12d   : > { %v783_v11 = vadd.f32 %v782_v2, %v728_v9  ;;  %2025 = vmatmul.msk.bf16.gmra.mxu1 %vm703_vm13, %v2492_v27  ;;  %v1366_v27 = vpack.c.b16 %v1365_v19, %v1365_v19 }
 0x12f   : > { %2073 = vmatmul.msk.bf16.gmra.mxu0 %vm703_vm13, %v1500_v14  ;;  %2051 = vmatmul.msk.bf16.gmra.mxu2 %vm703_vm13, %v1290_v26  ;;  %v1413_v28 = vshrl.u32 %v1366_v27, 16  ;;  %v1416_v29 = vshll.u32 %v1366_v27, 16  ;;  %v1503_v33 = vrot.slane %v1366_v27, 3 }
 0x131   : > { %v2585_v17 = vpop.f32.mrf.mxu3  ;;  %v1415_v37 = vrot.slane %v1413_v28, 2  ;;  %v1418_v38 = vrot.slane %v1416_v29, 3  ;;  %v1504_v59 = vsel %vm1493_vm6, %v1501_v30, %v1503_v33 }
 0x132   : > { %v743_v25 = vpop.f32.mrf.mxu2  ;;  %v784_v20 = vpop.f32.mrf.mxu1 }
 0x133   : > { %v1419_v43 = vor.u32 %v1418_v38, %v1415_v37 }
 0x134   : > { %v730_v21 = vpop.f32.mrf.mxu0 }
 0x135   : > { %v785_v22 = vadd.f32 %v784_v20, %v730_v21  ;;  %v1420_v51 = vsel %vm1367_vm5, %v1410_v18, %v1419_v43 }
 0x136   : > { %2063 = vmatmul.msk.bf16.gmra.mxu3 %vm703_vm13, %v1411_v23 }
 0x139   : > { %v966_v24 = vpop.f32.mrf.mxu3 }
 0x13a   : > { %v745_v32 = vpop.f32.mrf.mxu2  ;;  %v787_v35 = vpop.f32.mrf.mxu1 }
 0x13b   : > { %v788_v16 = vadd.f32 %v787_v35, %v733_v55  ;;  %v1293_v55 = vrot.slane %v1283_v45, 2 }
 0x13c   : > { %v1123_v36 = vpop.f32.mrf.mxu0 }
 0x13d   : > { %2026 = vmatmul.msk.bf16.gmra.mxu1 %vm703_vm13, %v2496_v31  ;;  %v1294_v61 = vsel %vm1165_vm0, %v1291_v52, %v1293_v55 }
 0x13f   : > { %2074 = vmatmul.msk.bf16.gmra.mxu0 %vm703_vm13, %v1502_v39  ;;  %2052 = vmatmul.msk.bf16.gmra.mxu2 %vm703_vm13, %v1292_v40 }
 0x141   : > { %v968_v42 = vpop.f32.mrf.mxu3 }
 0x142   : > { %v789_v44 = vpop.f32.mrf.mxu1  ;;  %v854_v63 = vpop.f32.mrf.mxu2 }
 0x143   : > { %v790_v49 = vadd.f32 %v789_v44, %v735_v62  ;;  %v879_v50 = vadd.f32 %v854_v63, %v783_v11 }
 0x144   : > { %v1125_v46 = vpop.f32.mrf.mxu0 }
 0x145   : > { %v991_v31 = vadd.f32 %v966_v24, %v879_v50 }
 0x146   : > { %2064 = vmatmul.msk.bf16.gmra.mxu3 %vm703_vm13, %v1420_v51 }
 0x147   : > { %v2599_v34 = vadd.f32 %v1123_v36, %v991_v31 }
 0x149   : > { %v971_v53 = vpop.f32.mrf.mxu3 }
 0x14a   : > { %v792_v54 = vpop.f32.mrf.mxu1  ;;  %v856_v48 = vpop.f32.mrf.mxu2 }
 0x14b   : > { %v793_v56 = vadd.f32 %v792_v54, %v2565_v0  ;;  %v880_v57 = vadd.f32 %v856_v48, %v785_v22 }
 0x14c   : > { %v1128_v58 = vpop.f32.mrf.mxu0 }
 0x14d   : > { %v992_v4 = vadd.f32 %v968_v42, %v880_v57 }
 0x14f   : > { %2075 = vmatmul.msk.bf16.gmra.mxu0 %vm703_vm13, %v1504_v59  ;;  %2053 = vmatmul.msk.bf16.gmra.mxu2 %vm703_vm13, %v1294_v61  ;;  %v2606_v62 = vadd.f32 %v1125_v46, %v992_v4 }
 0x151   : > { %v973_v60 = vpop.f32.mrf.mxu3 }
 0x152   : > { %v794_v1 = vpop.f32.mrf.mxu1  ;;  %v859_v15 = vpop.f32.mrf.mxu2 }
 0x153   : > { %v795_v5 = vadd.f32 %v794_v1, %v2576_v7  ;;  %v881_v6 = vadd.f32 %v859_v15, %v788_v16 }
 0x154   : > { %v1130_v0 = vpop.f32.mrf.mxu0 }
 0x155   : > { %v993_v2 = vadd.f32 %v971_v53, %v881_v6  ;;  %v2136_v6 = vld [vmem:[%s2632_s18] sm:$0xff]  }
 0x157   : > { %v2609_v8 = vadd.f32 %v1128_v58, %v993_v2  ;;  %v2638_v2 = vld [vmem:[%s2813_s2] ss:$0 sm:$0xff] }
 0x159   : > { %v976_v9 = vpop.f32.mrf.mxu3 }
 0x15a   : > { %v797_v11 = vpop.f32.mrf.mxu1  ;;  %v861_v12 = vpop.f32.mrf.mxu2 }
 0x15b   : > { %v798_v13 = vadd.f32 %v797_v11, %v743_v25  ;;  %v882_v14 = vadd.f32 %v861_v12, %v790_v49  ;;  %v2137_v11 = vunpack.c.l.bf16 %v2136_v6 }
 0x15c   : > { %v1133_v10 = vpop.f32.mrf.mxu0 }
 0x15d   : > { %v994_v26 = vadd.f32 %v973_v60, %v882_v14 }
 0x15f   : > { %v2611_v18 = vadd.f32 %v1130_v0, %v994_v26 }
 0x161   : > { %v978_v19 = vpop.f32.mrf.mxu3 }
 0x162   : > { %v799_v20 = vpop.f32.mrf.mxu1  ;;  %v864_v21 = vpop.f32.mrf.mxu2 }
 0x163   : > { %v800_v22 = vadd.f32 %v799_v20, %v745_v32  ;;  %v883_v23 = vadd.f32 %v864_v21, %v793_v56 }
 0x164   : > { %v1135_v7 = vpop.f32.mrf.mxu0 }
 0x165   : > { %v995_v27 = vadd.f32 %v976_v9, %v883_v23  ;;  %v2138_v23 = vunpack.c.h.bf16 %v2136_v6 }
 0x167   : > { %v2613_v24 = vadd.f32 %v1133_v10, %v995_v27 }
 0x169   : > { %v981_v28 = vpop.f32.mrf.mxu3 }
 0x16a   : > { %v802_v29 = vpop.f32.mrf.mxu1  ;;  %v866_v30 = vpop.f32.mrf.mxu2 }
 0x16b   : > { %v803_v35 = vadd.f32 %v802_v29, %v2571_v3  ;;  %v884_v25 = vadd.f32 %v866_v30, %v795_v5 }
 0x16c   : > { %v1138_v52 = vpop.f32.mrf.mxu0 }
 0x16d   : > { %v996_v16 = vadd.f32 %v978_v19, %v884_v25 }
 0x16f   : > { %v2616_v36 = vadd.f32 %v1135_v7, %v996_v16  ;;  %v2164_v16 = vld [vmem:[%s2632_s18 + $0x8] sm:$0xff]  }
 0x171   : > { %v983_v37 = vpop.f32.mrf.mxu3 }
 0x172   : > { %v804_v38 = vpop.f32.mrf.mxu1  ;;  %v869_v39 = vpop.f32.mrf.mxu2 }
 0x173   : > { %v805_v32 = vadd.f32 %v804_v38, %v2585_v17  ;;  %v885_v40 = vadd.f32 %v869_v39, %v798_v13 }
 0x174   : > { %v1140_v41 = vpop.f32.mrf.mxu0 }
 0x175   : > { %v997_v42 = vadd.f32 %v981_v28, %v885_v40 }
 0x177   : > { %v2619_v43 = vadd.f32 %v1138_v52, %v997_v42 }
 0x179   : > { %v986_v44 = vpop.f32.mrf.mxu3 }
 0x17a   : > { %v871_v63 = vpop.f32.mrf.mxu2  ;;  %v1207_v3 = vpop.f32.mrf.mxu1 }
 0x17b   : > { %v886_v47 = vadd.f32 %v871_v63, %v800_v22  ;;  %v1232_v60 = vadd.f32 %v1207_v3, %v2599_v34 }
 0x17c   : > { %v1143_v49 = vpop.f32.mrf.mxu0 }
 0x17d   : > { %v998_v50 = vadd.f32 %v983_v37, %v886_v47 }
 0x17f   : > { %v2621_v46 = vadd.f32 %v1140_v41, %v998_v50 }
 0x181   : > { %v988_v51 = vpop.f32.mrf.mxu3 }
 0x182   : > { %v874_v31 = vpop.f32.mrf.mxu2  ;;  %v1209_v17 = vpop.f32.mrf.mxu1 }
 0x183   : > { %v887_v45 = vadd.f32 %v874_v31, %v803_v35  ;;  %v1233_v34 = vadd.f32 %v1209_v17, %v2606_v62  ;;  %v2142_v31 = vunpack.c.h.bf16 %v2164_v16 }
 0x184   : > { %v1145_v53 = vpop.f32.mrf.mxu0 }
 0x185   : > { %v999_v33 = vadd.f32 %v986_v44, %v887_v45 }
 0x187   : > { %v2623_v54 = vadd.f32 %v1143_v49, %v999_v33 }
 0x189   : > { %v1451_v48 = vpop.f32.mrf.mxu3 }
 0x18a   : > { %v876_v55 = vpop.f32.mrf.mxu2  ;;  %v1212_v59 = vpop.f32.mrf.mxu1 }
 0x18b   : > { %v888_v56 = vadd.f32 %v876_v55, %v805_v32  ;;  %v1234_v27 = vadd.f32 %v1212_v59, %v2609_v8  ;;  %v2141_v32 = vunpack.c.l.bf16 %v2164_v16  ;;  %v2676_v55 = vpop.permute.xlu2 %1631 }
 0x18c   : > { %v1535_v57 = vpop.f32.mrf.mxu0 }
 0x18d   : > { %v1000_v58 = vadd.f32 %v988_v51, %v888_v56 }
 0x18f   : > { %v2626_v4 = vadd.f32 %v1145_v53, %v1000_v58  ;;  %v2672_v53 = vpop.permute.xlu1 %1626 }
 0x191   : > { %v1453_v61 = vpop.f32.mrf.mxu3 }
 0x192   : > { %v1325_v1 = vpop.f32.mrf.mxu2  ;;  %v1214_v14 = vpop.f32.mrf.mxu1 }
 0x193   : > { %v1350_v15 = vadd.f32 %v1325_v1, %v1232_v60  ;;  %v1235_v8 = vadd.f32 %v1214_v14, %v2611_v18 }
 0x194   : > { %v1537_v5 = vpop.f32.mrf.mxu0 }
 0x195   : > { %v1476_v0 = vadd.f32 %v1451_v48, %v1350_v15 }
 0x197   : > { %v1560_v9 = vadd.f32 %v1535_v57, %v1476_v0  ;;  %v2165_v57 = vld [vmem:[%s2632_s18 + $0x10] sm:$0xff]   ;;  %v2687_v0 = vpop.permute.xlu0 %1636  ;;  %v2695_v14 = vpop.permute.xlu1 %1641 }
 0x198   : > { %v2145_v60 = vunpack.c.l.bf16 %v2165_v57 }
 0x199   : > { %v1456_v12 = vpop.f32.mrf.mxu3  ;;  %v1574_v13 = vadd.f32 %v2638_v2, %v1560_v9 }
 0x19a   : > { %v1327_v10 = vpop.f32.mrf.mxu2  ;;  %v1217_v52 = vpop.f32.mrf.mxu1 }
 0x19b   : > { %v2642_v26 = vadd.f32 %v2137_v11, %v1574_v13  ;;  %v1351_v19 = vadd.f32 %v1327_v10, %v1233_v34  ;;  %v1236_v18 = vadd.f32 %v1217_v52, %v2613_v24 }
 0x19c   : > { %v1540_v20 = vpop.f32.mrf.mxu0 }
 0x19d   : > { %v1769_v21 = vpack.c.bf16 %v2642_v26, %v2642_v26  ;;  %v1477_v62 = vadd.f32 %v1453_v61, %v1351_v19  ;;  %v1674_v9 = vmul.f32 %v2672_v53, %v2642_v26 }
 0x19f   : > { %1779 = vst.msk [vmem:[%s2647_s23] sm:$0xf] %vm601_vm1, %v1769_v21  ;;  %v1561_v22 = vadd.f32 %v1537_v5, %v1477_v62  ;;  %v2702_v21 = vpop.permute.xlu2 %1646  ;;  %v1684_v62 = vsel %vm703_vm13, %v1674_v9, 0.0 }
 0x1a1   : > { %v1458_v7 = vpop.f32.mrf.mxu3  ;;  %v1575_v28 = vadd.f32 %v2638_v2, %v1561_v22 }
 0x1a2   : > { %v1330_v29 = vpop.f32.mrf.mxu2  ;;  %v1219_v50 = vpop.f32.mrf.mxu1 }
 0x1a3   : > { %v2655_v30 = vadd.f32 %v2138_v23, %v1575_v28  ;;  %v1352_v35 = vadd.f32 %v1330_v29, %v1234_v27  ;;  %v1237_v5 = vadd.f32 %v1219_v50, %v2616_v36  ;;  %v2146_v28 = vunpack.c.h.bf16 %v2165_v57 }
 0x1a4   : > { %v1542_v25 = vpop.f32.mrf.mxu0 }
 0x1a5   : > { %v1770_v37 = vpack.c.bf16 %v2655_v30, %v2655_v30  ;;  %v1478_v38 = vadd.f32 %v1456_v12, %v1352_v35  ;;  %v1675_v15 = vmul.f32 %v2676_v55, %v2655_v30 }
 0x1a7   : > { %1780 = vst.msk [vmem:[%s2647_s23 + $0x4] sm:$0xf] %vm601_vm1, %v1770_v37  ;;  %v1562_v39 = vadd.f32 %v1540_v20, %v1478_v38  ;;  %v1685_v10 = vsel %vm703_vm13, %v1675_v15, 0.0 }
 0x1a8   : > { %v1686_v29 = vadd.f32 %v1685_v10, %v1684_v62 }
 0x1a9   : > { %v1576_v40 = vadd.f32 %v2638_v2, %v1562_v39  ;;  %v1461_v41 = vpop.f32.mrf.mxu3 }
 0x1aa   : > { %v1332_v42 = vpop.f32.mrf.mxu2  ;;  %v1222_v1 = vpop.f32.mrf.mxu1 }
 0x1ab   : > { %v2664_v44 = vadd.f32 %v2141_v32, %v1576_v40  ;;  %v1353_v63 = vadd.f32 %v1332_v42, %v1235_v8 }
 0x1ac   : > { %v1545_v47 = vpop.f32.mrf.mxu0 }
 0x1ad   : > { %v1771_v49 = vpack.c.bf16 %v2664_v44, %v2664_v44  ;;  %v1479_v3 = vadd.f32 %v1458_v7, %v1353_v63  ;;  %v1676_v12 = vmul.f32 %v2687_v0, %v2664_v44  ;;  %v2166_v63 = vld [vmem:[%s2632_s18 + $0x18] sm:$0xff]  }
 0x1af   : > { %1781 = vst.msk [vmem:[%s2647_s23 + $0x8] sm:$0xf] %vm601_vm1, %v1771_v49  ;;  %v1563_v51 = vadd.f32 %v1542_v25, %v1479_v3  ;;  %v1687_v23 = vsel %vm703_vm13, %v1676_v12, 0.0  ;;  %v1238_v25 = vadd.f32 %v1222_v1, %v2619_v43 }
 0x1b0   : > { %v1688_v37 = vadd.f32 %v1687_v23, %v1686_v29 }
 0x1b1   : > { %v1577_v45 = vadd.f32 %v2638_v2, %v1563_v51  ;;  %v1463_v56 = vpop.f32.mrf.mxu3 }
 0x1b2   : > { %v1335_v33 = vpop.f32.mrf.mxu2  ;;  %v1224_v38 = vpop.f32.mrf.mxu1 }
 0x1b3   : > { %v2674_v17 = vadd.f32 %v2142_v31, %v1577_v45  ;;  %v1354_v48 = vadd.f32 %v1335_v33, %v1236_v18  ;;  %v2149_v31 = vunpack.c.l.bf16 %v2166_v63  ;;  %v1239_v33 = vadd.f32 %v1224_v38, %v2621_v46 }
 0x1b4   : > { %v1547_v61 = vpop.f32.mrf.mxu0 }
 0x1b5   : > { %v1772_v58 = vpack.c.bf16 %v2674_v17, %v2674_v17  ;;  %v1480_v59 = vadd.f32 %v1461_v41, %v1354_v48  ;;  %v1677_v36 = vmul.f32 %v2695_v14, %v2674_v17  ;;  %v2716_v41 = vpop.permute.xlu0 %1651 }
 0x1b7   : > { %1782 = vst.msk [vmem:[%s2647_s23 + $0xc] sm:$0xf] %vm601_vm1, %v1772_v58  ;;  %v1564_v24 = vadd.f32 %v1545_v47, %v1480_v59  ;;  %v1689_v52 = vsel %vm703_vm13, %v1677_v36, 0.0 }
 0x1b8   : > { %v1690_v42 = vadd.f32 %v1689_v52, %v1688_v37 }
 0x1b9   : > { %v1578_v6 = vadd.f32 %v2638_v2, %v1564_v24  ;;  %v1466_v22 = vpop.f32.mrf.mxu3 }
 0x1ba   : > { %v1337_v11 = vpop.f32.mrf.mxu2  ;;  %v1227_v24 = vpop.f32.mrf.mxu1 }
 0x1bb   : > { %v2693_v34 = vadd.f32 %v2145_v60, %v1578_v6  ;;  %v1355_v13 = vadd.f32 %v1337_v11, %v1237_v5  ;;  %v2150_v6 = vunpack.c.h.bf16 %v2166_v63  ;;  %v1240_v11 = vadd.f32 %v1227_v24, %v2623_v54 }
 0x1bc   : > { %v1550_v35 = vpop.f32.mrf.mxu0 }
 0x1bd   : > { %v1773_v19 = vpack.c.bf16 %v2693_v34, %v2693_v34  ;;  %v1481_v20 = vadd.f32 %v1463_v56, %v1355_v13  ;;  %v1678_v7 = vmul.f32 %v2702_v21, %v2693_v34 }
 0x1bf   : > { %1783 = vst.msk [vmem:[%s2647_s23 + $0x10] sm:$0xf] %vm601_vm1, %v1773_v19  ;;  %v1565_v27 = vadd.f32 %v1547_v61, %v1481_v20  ;;  %v1691_v32 = vsel %vm703_vm13, %v1678_v7, 0.0  ;;  %v2730_v61 = vpop.permute.xlu1 %1656  ;;  %v2743_v20 = vpop.permute.xlu2 %1661 }
 0x1c0   : > { %v1692_v3 = vadd.f32 %v1691_v32, %v1690_v42  ;;  %v2757_v32 = vpop.permute.xlu0 %1666  ;;  %v1593_v42 = vld [vmem:[%s2632_s18 + $0x24] sm:$0x7] }
 0x1c1   : > { %v1579_v16 = vadd.f32 %v2638_v2, %v1565_v27  ;;  %v1468_v45 = vpop.f32.mrf.mxu3 }
 0x1c2   : > { %v1340_v39 = vpop.f32.mrf.mxu2  ;;  %v1229_v54 = vpop.f32.mrf.mxu1 }
 0x1c3   : > { %v2714_v8 = vadd.f32 %v2146_v28, %v1579_v16  ;;  %v1356_v40 = vadd.f32 %v1340_v39, %v1238_v25  ;;  %v1241_v52 = vadd.f32 %v1229_v54, %v2626_v4 }
 0x1c4   : > { %v1552_v56 = vpop.f32.mrf.mxu0 }
 0x1c5   : > { %v1679_v43 = vmul.f32 %v2716_v41, %v2714_v8  ;;  %v1774_v47 = vpack.c.bf16 %v2714_v8, %v2714_v8  ;;  %v1482_v49 = vadd.f32 %v1466_v22, %v1356_v40  ;;  %v1592_v22 = vld [vmem:[%s2632_s18 + $0x20] sm:$0xf] }
 0x1c7   : > { %v1693_v50 = vsel %vm703_vm13, %v1679_v43, 0.0  ;;  %1784 = vst.msk [vmem:[%s2647_s23 + $0x14] sm:$0xf] %vm601_vm1, %v1774_v47  ;;  %v1566_v51 = vadd.f32 %v1550_v35, %v1482_v49  ;;  %v1602_v35 = vunpack.c.l.bf16 %v1592_v22 }
 0x1c8   : > { %v1694_v18 = vadd.f32 %v1693_v50, %v1692_v3  ;;  %v1603_v50 = vunpack.c.l.bf16 %v1593_v42 }
 0x1c9   : > { %v1580_v48 = vadd.f32 %v2638_v2, %v1566_v51  ;;  %v1471_v13 = vpop.f32.mrf.mxu3 }
 0x1ca   : > { %v1342_v57 = vpop.f32.mrf.mxu2 }
 0x1cb   : > { %v2728_v58 = vadd.f32 %v2149_v31, %v1580_v48  ;;  %v1357_v59 = vadd.f32 %v1342_v57, %v1239_v33 }
 0x1cc   : > { %v1555_v62 = vpop.f32.mrf.mxu0 }
 0x1cd   : > { %v1680_v60 = vmul.f32 %v2730_v61, %v2728_v58  ;;  %v1775_v1 = vpack.c.bf16 %v2728_v58, %v2728_v58  ;;  %v1483_v15 = vadd.f32 %v1468_v45, %v1357_v59  ;;  %v1672_v45 = vpop.permute.xlu1 %1671 }
 0x1cf   : > { %v1695_v46 = vsel %vm703_vm13, %v1680_v60, 0.0  ;;  %1785 = vst.msk [vmem:[%s2647_s23 + $0x18] sm:$0xf] %vm601_vm1, %v1775_v1  ;;  %v1567_v5 = vadd.f32 %v1552_v56, %v1483_v15 }
 0x1d0   : > { %v1696_v9 = vadd.f32 %v1695_v46, %v1694_v18 }
 0x1d1   : > { %v1581_v12 = vadd.f32 %v2638_v2, %v1567_v5  ;;  %v1473_v40 = vpop.f32.mrf.mxu3 }
 0x1d2   : > { %v1345_v10 = vpop.f32.mrf.mxu2 }
 0x1d3   : > { %v2741_v36 = vadd.f32 %v2150_v6, %v1581_v12  ;;  %v1358_v19 = vadd.f32 %v1345_v10, %v1240_v11 }
 0x1d4   : > { %v1557_v49 = vpop.f32.mrf.mxu0 }
 0x1d5   : > { %v1681_v23 = vmul.f32 %v2743_v20, %v2741_v36  ;;  %v1776_v7 = vpack.c.bf16 %v2741_v36, %v2741_v36  ;;  %v1484_v27 = vadd.f32 %v1471_v13, %v1358_v19 }
 0x1d7   : > { %v1697_v28 = vsel %vm703_vm13, %v1681_v23, 0.0  ;;  %1786 = vst.msk [vmem:[%s2647_s23 + $0x1c] sm:$0xf] %vm601_vm1, %v1776_v7  ;;  %v1568_v29 = vadd.f32 %v1555_v62, %v1484_v27 }
 0x1d8   : > { %v1698_v25 = vadd.f32 %v1697_v28, %v1696_v9 }
 0x1d9   : > { %v1582_v16 = vadd.f32 %v2638_v2, %v1568_v29 }
 0x1da   : > { %v1347_v37 = vpop.f32.mrf.mxu2 }
 0x1db   : > { %v2755_v38 = vadd.f32 %v1602_v35, %v1582_v16  ;;  %v1359_v39 = vadd.f32 %v1347_v37, %v1241_v52 }
 0x1dd   : > { %v1682_v63 = vmul.f32 %v2757_v32, %v2755_v38  ;;  %v1777_v43 = vpack.c.bf16 %v2755_v38, %v2755_v38  ;;  %v1485_v47 = vadd.f32 %v1473_v40, %v1359_v39 }
 0x1df   : > { %v1699_v4 = vsel %vm703_vm13, %v1682_v63, 0.0  ;;  %1787 = vst.msk [vmem:[%s2647_s23 + $0x20] sm:$0xf] %vm601_vm1, %v1777_v43  ;;  %v1569_v3 = vadd.f32 %v1557_v49, %v1485_v47  ;;  %vm1731_vm1 = vcmask 122880  }
 0x1e0   : > { %v1700_v51 = vadd.f32 %v1699_v4, %v1698_v25 }
 0x1e1   : > { %v1583_v31 = vadd.f32 %v2638_v2, %v1569_v3 }
 0x1e3   : > { %v1613_v18 = vadd.f32 %v1603_v50, %v1583_v31 }
 0x1e5   : > { %v1683_v33 = vmul.f32 %v1672_v45, %v1613_v18  ;;  %v1778_v48 = vpack.c.bf16 %v1613_v18, %v1613_v18 }
 0x1e7   : > { %v1702_v56 = vsel %vm1701_vm7, %v1683_v33, 0.0  ;;  %1789 = vst.msk [vmem:[%s2647_s23 + $0x24] sm:$0x7] %vm1788_vm8, %v1778_v48 }
 0x1e8   : > { %v1703_v57 = vadd.f32 %v1702_v56, %v1700_v51 }
 0x1ea   : > { %v1704_v59 = vrot.slane %v1703_v57, 4 }
 0x1ec   : > { %v1705_v24 = vadd.f32 %v1704_v59, %v1703_v57 }
 0x1ee   : > { %v1706_v60 = vrot.slane %v1705_v24, 2 }
 0x1f0   : > { %v1707_v1 = vadd.f32 %v1706_v60, %v1705_v24 }
 0x1f2   : > { %v1708_v15 = vrot.slane %v1707_v1, 1 }
 0x1f4   : > { %v1709_v2 = vadd.f32 %v1708_v15, %v1707_v1 }
 0x1f6   : > { %v1710_v46 = vmul.f32 0.015625, %v1709_v2  ;;  %1732 = vst.msk [vmem:[%s393_s26] sm:$0x1] %vm1731_vm1, %v1709_v2 }
 0x1f8   : > { %v1711_v5 = vsub.f32 %v2642_v26, %v1710_v46  ;;  %v1712_v6 = vsub.f32 %v2655_v30, %v1710_v46  ;;  %v1713_v9 = vsub.f32 %v2664_v44, %v1710_v46  ;;  %v1714_v11 = vsub.f32 %v2674_v17, %v1710_v46 }
 0x1f9   : > { %v1715_v12 = vsub.f32 %v2693_v34, %v1710_v46  ;;  %v1716_v13 = vsub.f32 %v2714_v8, %v1710_v46  ;;  %v1717_v10 = vsub.f32 %v2728_v58, %v1710_v46  ;;  %v1718_v19 = vsub.f32 %v2741_v36, %v1710_v46 }
 0x1fa   : > { %v1719_v62 = vsub.f32 %v2755_v38, %v1710_v46  ;;  %v1720_v22 = vsub.f32 %v1613_v18, %v1710_v46  ;;  %v1721_v23 = vmul.f32 %v1711_v5, %v2672_v53  ;;  %v1722_v26 = vmul.f32 %v1712_v6, %v2676_v55 }
 0x1fb   : > { %v1723_v30 = vmul.f32 %v1713_v9, %v2687_v0  ;;  %v1724_v44 = vmul.f32 %v1714_v11, %v2695_v14  ;;  %v1725_v17 = vmul.f32 %v1715_v12, %v2702_v21  ;;  %v1726_v58 = vmul.f32 %v1716_v13, %v2716_v41 }
 0x1fc   : > { %v1733_v34 = vmul.f32 %v1721_v23, %v1721_v23  ;;  %v1734_v7 = vmul.f32 %v1722_v26, %v1722_v26  ;;  %v1727_v53 = vmul.f32 %v1717_v10, %v2730_v61  ;;  %v1728_v14 = vmul.f32 %v1718_v19, %v2743_v20 }
 0x1fd   : > { %v1735_v8 = vmul.f32 %v1723_v30, %v1723_v30  ;;  %v1736_v27 = vmul.f32 %v1724_v44, %v1724_v44  ;;  %v1737_v55 = vmul.f32 %v1725_v17, %v1725_v17  ;;  %v1738_v21 = vmul.f32 %v1726_v58, %v1726_v58 }
 0x1fe   : > { %v1743_v36 = vsel %vm703_vm13, %v1733_v34, 0.0  ;;  %v1744_v54 = vsel %vm703_vm13, %v1734_v7, 0.0  ;;  %v1729_v41 = vmul.f32 %v1719_v62, %v2757_v32  ;;  %v1739_v52 = vmul.f32 %v1727_v53, %v1727_v53 }
 0x1ff   : > { %v1745_v28 = vadd.f32 %v1744_v54, %v1743_v36  ;;  %v1746_v0 = vsel %vm703_vm13, %v1735_v8, 0.0  ;;  %v1748_v35 = vsel %vm703_vm13, %v1736_v27, 0.0  ;;  %v1750_v16 = vsel %vm703_vm13, %v1737_v55, 0.0 }
 0x200   : > { %v1730_v38 = vmul.f32 %v1720_v22, %v1672_v45  ;;  %v1740_v39 = vmul.f32 %v1728_v14, %v1728_v14  ;;  %v1752_v61 = vsel %vm703_vm13, %v1738_v21, 0.0  ;;  %v1741_v42 = vmul.f32 %v1729_v41, %v1729_v41 }
 0x201   : > { %v1747_v29 = vadd.f32 %v1746_v0, %v1745_v28  ;;  %v1754_v63 = vsel %vm703_vm13, %v1739_v52, 0.0 }
 0x202   : > { %v1742_v43 = vmul.f32 %v1730_v38, %v1730_v38  ;;  %v1756_v47 = vsel %vm703_vm13, %v1740_v39, 0.0  ;;  %v1758_v32 = vsel %vm703_vm13, %v1741_v42, 0.0 }
 0x203   : > { %v1749_v25 = vadd.f32 %v1748_v35, %v1747_v29 }
 0x204   : > { %v1760_v3 = vsel %vm1701_vm7, %v1742_v43, 0.0 }
 0x205   : > { %v1751_v37 = vadd.f32 %v1750_v16, %v1749_v25 }
 0x207   : > { %v1753_v40 = vadd.f32 %v1752_v61, %v1751_v37 }
 0x209   : > { %v1755_v20 = vadd.f32 %v1754_v63, %v1753_v40 }
 0x20b   : > { %v1757_v49 = vadd.f32 %v1756_v47, %v1755_v20 }
 0x20d   : > { %v1759_v4 = vadd.f32 %v1758_v32, %v1757_v49 }
 0x20f   : > { %v1761_v50 = vadd.f32 %v1760_v3, %v1759_v4 }
 0x211   : > { %v1762_v51 = vrot.slane %v1761_v50, 4 }
 0x213   : > { %v1763_v31 = vadd.f32 %v1762_v51, %v1761_v50 }
 0x215   : > { %v1764_v18 = vrot.slane %v1763_v31, 2 }
 0x217   : > { %v1765_v45 = vadd.f32 %v1764_v18, %v1763_v31 }
 0x219   : > { %v1766_v33 = vrot.slane %v1765_v45, 1 }
 0x21b   : > { %v1767_v48 = vadd.f32 %v1766_v33, %v1765_v45 }
 0x21d   : > { %1768 = vst.msk [vmem:[%s396_s29] sm:$0x1] %vm1731_vm1, %v1767_v48 }
 0x21e PF: > { %s21_s13 = sadd.s32 1, %s2194_s13  }
 0x21f   : > { %p18_p4 = scmp.ge.s32.totalorder %s21_s13, 4  }
 0x221   :  { %20 = sbr.rel (!%p18_p4) target bundleno = 1 (0x1), region = 117 }

// kernel: unet2_forward.9
= control target key start
LH: loop header
LB: loop body
LE: loop exit
PB: predicated region body
PF: predicated region fallthrough
CT: control target
= control target key end

     0   :  { %s4505_s21 = smov 0   ;;  %s5903_s0 = inlined_call_operand.vmem [shape: bf16[2,324,6], index: 0, kind: input, shape index: {}]   ;;  %s5904_s1 = inlined_call_operand.vmem [shape: bf16[9,6,2], index: 1, kind: input, shape index: {}]   ;;  %s5905_s2 = inlined_call_operand.vmem [shape: f32[1,2], index: 2, kind: input, shape index: {}]   ;;  %s5906_s3 = inlined_call_operand.vmem [shape: f32[1,6], index: 3, kind: input, shape index: {}]   ;;  %s5907_s4 = inlined_call_operand.vmem [shape: f32[1,6], index: 4, kind: input, shape index: {}]   ;;  %s5908_s5 = inlined_call_operand.vmem [shape: f32[1,324,1], index: 5, kind: input, shape index: {}]   ;;  %s5909_s6 = inlined_call_operand.vmem [shape: f32[2,286,2], index: 6, kind: output, shape index: {}]  }
   0x1 LB: > { %s3785_s22 = sadd.s32 4294967295, %s4467_s21   ;;  %p3789_p0 = scmp.ge.s32.totalorder %s4467_s21, 1  ;;  %s4467_s21 = sphi %s4505_s21, %s16_s21  }
   0x2   : > { %p212_p1 = scmp.lt.s32.totalorder %s4467_s21, 3 }
   0x4   : > { %p213_p2 = pnand %p3789_p0, %p212_p1 }
   0x6   : > { %216 = sbr.rel (%p213_p2) target bundleno = 973 (0x3cd), region = 44 }
   0xb   : > { %v447_v0 = vld [vmem:[%s5908_s5 + $0xb0] sm:$0xff]  ;;  %v445_v1 = vld [vmem:[%s5908_s5 + $0xa0] sm:$0xff]  ;;  %v4469_v3 = vmov 0   ;;  %v448_v4 = vld [vmem:[%s5908_s5 + $0xb8] sm:$0xff]  ;;  %p242_p3 = scmp.lt.s32.totalorder %s3785_s22, 1  ;;  %vm753_vm0 = vcmask 44032  }
   0xc   : > { %v435_v2 = vld [vmem:[%s5908_s5 + $0x50] sm:$0xff]  ;;  %4436 = vset.pattern.permute.xlu2 %v4469_v3  ;;  %4435 = vset.pattern.permute.xlu1 %v4469_v3  ;;  %v446_v5 = vld [vmem:[%s5908_s5 + $0xa8] sm:$0xff]  ;;  %v436_v6 = vld [vmem:[%s5908_s5 + $0x58] sm:$0xff]  ;;  %vm1125_vm1 = vcmask 1042432   ;;  %vm926_vm2 = vsmask.f32 7424 }
   0xd   : > { %4434 = vset.pattern.permute.xlu0 %v4469_v3  ;;  %578 = vperm.xlu1 %4435, %v447_v0   ;;  %v438_v7 = vld [vmem:[%s5908_s5 + $0x68] sm:$0xff]  ;;  %v437_v8 = vld [vmem:[%s5908_s5 + $0x60] sm:$0xff]  ;;  %v427_v10 = vld [vmem:[%s5908_s5 + $0x10] sm:$0xff]  ;;  %s6000_s22 = smov (!%p242_p3, %s3785_s22), 1  ;;  %vm1070_vm3 = vcmask 48128   ;;  %vm794_vm4 = vcmask 41984  }
   0xe   : > { %568 = vperm.xlu0 %4434, %v445_v1   ;;  %518 = vperm.xlu2 %4436, %v435_v2   ;;  %v425_v9 = vld [vmem:[%s5908_s5] sm:$0xff]  ;;  %v426_v11 = vld [vmem:[%s5908_s5 + $0x8] sm:$0xff]  ;;  %v428_v12 = vld [vmem:[%s5908_s5 + $0x18] sm:$0xff]  ;;  %s4423_s15 = smul.u32 164, %s6000_s22  ;;  %vm1376_vm5 = vcmask 1046528   ;;  %vm2456_vm7 = vcmask 1045504  }
   0xf   : > { %v450_v13 = vld [vmem:[%s5908_s5 + $0xc8] sm:$0xff]  ;;  %v449_v14 = vld [vmem:[%s5908_s5 + $0xc0] sm:$0xff]  ;;  %v439_v15 = vld [vmem:[%s5908_s5 + $0x70] sm:$0xff]  ;;  %vm2091_vm6 = vsmask.f32 6400  ;;  %vm3422_vm9 = vcmask 1044480  }
  0x10   : > { %v429_v16 = vld [vmem:[%s5908_s5 + $0x20] sm:$0xff]  ;;  %v440_v17 = vld [vmem:[%s5908_s5 + $0x78] sm:$0xff]  ;;  %v430_v18 = vld [vmem:[%s5908_s5 + $0x28] sm:$0xff]  ;;  %s4613_s18 = scalar_lea.vmem %s5903_s0, %s4423_s15  ;;  %vm3053_vm8 = vsmask.f32 5376  ;;  %s4424_s20 = smul.u32 288, %s6000_s22 }
  0x11   : > { %v452_v19 = vld [vmem:[%s5908_s5 + $0xd8] sm:$0xff]  ;;  %v451_v20 = vld [vmem:[%s5908_s5 + $0xd0] sm:$0xff]  ;;  %v457_v22 = vld [vmem:[%s5908_s5 + $0x100] sm:$0xff]  ;;  %vm3692_vm10 = vcmask 15360   ;;  %vm3728_vm11 = vcmask 13312  }
  0x12   : > { %v455_v21 = vld [vmem:[%s5908_s5 + $0xf0] sm:$0xff]  ;;  %v456_v23 = vld [vmem:[%s5908_s5 + $0xf8] sm:$0xff]  ;;  %v458_v24 = vld [vmem:[%s5908_s5 + $0x108] sm:$0xff]  ;;  %s5609_s26 = scalar_lea.vmem %s5909_s6, %s4424_s20 }
  0x13   : > { %v442_v25 = vld [vmem:[%s5908_s5 + $0x88] sm:$0xff]  ;;  %v441_v26 = vld [vmem:[%s5908_s5 + $0x80] sm:$0xff]  ;;  %v431_v27 = vld [vmem:[%s5908_s5 + $0x30] sm:$0xff] }
  0x14   : > { %v453_v28 = vld [vmem:[%s5908_s5 + $0xe0] sm:$0xff]  ;;  %v432_v29 = vld [vmem:[%s5908_s5 + $0x38] sm:$0xff]  ;;  %v454_v30 = vld [vmem:[%s5908_s5 + $0xe8] sm:$0xff] }
  0x15   : > { %583 = vperm.xlu1 %4435, %v448_v4   ;;  %v444_v31 = vld [vmem:[%s5908_s5 + $0x98] sm:$0xff]  ;;  %v4396_v32 = vld [vmem:[%s4613_s18 + $0x28] sm:$0xff]   ;;  %v443_v33 = vld [vmem:[%s5908_s5 + $0x90] sm:$0xff] }
  0x16   : > { %573 = vperm.xlu0 %4434, %v446_v5   ;;  %523 = vperm.xlu2 %4436, %v436_v6   ;;  %v459_v34 = vld [vmem:[%s5908_s5 + $0x110] sm:$0xff]  ;;  %v4326_v35 = vunpack.c.l.bf16 %v4396_v32  ;;  %v4628_v36 = vld [vmem:[%s5906_s3] ss:$0 sm:$0xff]  ;;  %v460_v39 = vld [vmem:[%s5908_s5 + $0x118] sm:$0xff]  ;;  %v4327_v43 = vunpack.c.h.bf16 %v4396_v32 }
  0x17   : > { %v433_v38 = vld [vmem:[%s5908_s5 + $0x40] sm:$0xff]  ;;  %v434_v40 = vld [vmem:[%s5908_s5 + $0x48] sm:$0xff]  ;;  %v463_v51 = vld [vmem:[%s5908_s5 + $0x130] sm:$0xff] }
  0x18   : > { %v349_v37 = vmul.f32 %v4628_v36, %v4326_v35  ;;  %v4643_v41 = vld [vmem:[%s5907_s4] ss:$0 sm:$0xff]  ;;  %v350_v46 = vmul.f32 %v4628_v36, %v4327_v43  ;;  %v462_v47 = vld [vmem:[%s5908_s5 + $0x128] sm:$0xff]  ;;  %v4402_v57 = vld [vmem:[%s4613_s18 + $0x58] sm:$0xff]  }
  0x19   : > { %v4651_v48 = vld [vmem:[%s4613_s18] sm:$0xff]   ;;  %v4401_v59 = vld [vmem:[%s4613_s18 + $0x50] sm:$0xff]   ;;  %v4669_v60 = vld [vmem:[%s4613_s18 + $0x8] sm:$0xff]   ;;  %v4350_v63 = vunpack.c.l.bf16 %v4402_v57 }
  0x1a   : > { %v394_v42 = vadd.f32 %v4643_v41, %v349_v37  ;;  %v461_v50 = vld [vmem:[%s5908_s5 + $0x120] sm:$0xff]  ;;  %v395_v52 = vadd.f32 %v4643_v41, %v350_v46  ;;  %v4306_v53 = vunpack.c.l.bf16 %v4651_v48  ;;  %v464_v62 = vld [vmem:[%s5908_s5 + $0x138] sm:$0xff]  ;;  %v4346_v1 = vunpack.c.l.bf16 %v4401_v59 }
  0x1b   : > { %v465_v58 = vld [vmem:[%s5908_s5 + $0x140] sm:$0xf]  ;;  %v4311_v2 = vunpack.c.h.bf16 %v4669_v60  ;;  %v361_v4 = vmul.f32 %v4628_v36, %v4350_v63 }
  0x1c   : > { %v339_v56 = vmul.f32 %v4628_v36, %v4306_v53  ;;  %v359_v6 = vmul.f32 %v4628_v36, %v4346_v1 }
  0x1d   : > { %533 = vperm.xlu1 %4435, %v438_v7   ;;  %v342_v7 = vmul.f32 %v4628_v36, %v4311_v2 }
  0x1e   : > { %528 = vperm.xlu0 %4434, %v437_v8   ;;  %468 = vperm.xlu2 %4436, %v425_v9   ;;  %v384_v0 = vadd.f32 %v4643_v41, %v339_v56  ;;  %v3792_v8 = vld [vmem:[%s5904_s1 + $0x4] sm:$0x7]  ;;  %v4684_v9 = vld [vmem:[%s4613_s18 + $0x38] sm:$0xff]  }
  0x25   : > { %478 = vperm.xlu1 %4435, %v427_v10   ;;  %v1127_v10 = vsel %vm1125_vm1, %v3792_v8, 0 }
  0x26   : > { %473 = vperm.xlu0 %4434, %v426_v11   ;;  %483 = vperm.xlu2 %4436, %v428_v12   ;;  %v406_v12 = vadd.f32 %v4643_v41, %v361_v4 }
  0x27   : > { %4421 = vmatpush.bf16.msra.mxu2 %v1127_v10  ;;  %4420 = vmatpush.bf16.msra.mxu1 %v1127_v10 }
  0x28   : > { %1136 = vmatpush.bf16.msra.mxu0 %v1127_v10  ;;  %4422 = vmatpush.bf16.msra.mxu3 %v1127_v10 }
  0x2d   : > { %593 = vperm.xlu1 %4435, %v450_v13   ;;  %v4351_v13 = vunpack.c.h.bf16 %v4402_v57 }
  0x2e   : > { %588 = vperm.xlu0 %4434, %v449_v14   ;;  %538 = vperm.xlu2 %4436, %v439_v15   ;;  %v404_v14 = vadd.f32 %v4643_v41, %v359_v6  ;;  %v387_v15 = vadd.f32 %v4643_v41, %v342_v7  ;;  %v4726_v7 = vld [vmem:[%s4613_s18 + $0x80] sm:$0xff]  }
  0x35   : > { %488 = vperm.xlu1 %4435, %v429_v16   ;;  %v4347_v16 = vunpack.c.h.bf16 %v4401_v59 }
  0x36   : > { %543 = vperm.xlu0 %4434, %v440_v17   ;;  %493 = vperm.xlu2 %4436, %v430_v18   ;;  %v4334_v17 = vunpack.c.l.bf16 %v4684_v9 }
  0x3d   : > { %603 = vperm.xlu1 %4435, %v452_v19  }
  0x3e   : > { %598 = vperm.xlu0 %4434, %v451_v20   ;;  %618 = vperm.xlu2 %4436, %v455_v21  }
  0x45   : > { %628 = vperm.xlu1 %4435, %v457_v22   ;;  %v362_v22 = vmul.f32 %v4628_v36, %v4351_v13 }
  0x46   : > { %623 = vperm.xlu0 %4434, %v456_v23   ;;  %633 = vperm.xlu2 %4436, %v458_v24  }
  0x47   : > { %v407_v32 = vadd.f32 %v4643_v41, %v362_v22 }
  0x4d   : > { %553 = vperm.xlu1 %4435, %v442_v25   ;;  %v360_v25 = vmul.f32 %v4628_v36, %v4347_v16 }
  0x4e   : > { %548 = vperm.xlu0 %4434, %v441_v26   ;;  %498 = vperm.xlu2 %4436, %v431_v27   ;;  %v353_v26 = vmul.f32 %v4628_v36, %v4334_v17  ;;  %v4397_v27 = vld [vmem:[%s4613_s18 + $0x30] sm:$0xff]  }
  0x4f   : > { %v4330_v37 = vunpack.c.l.bf16 %v4397_v27 }
  0x50   : > { %v398_v35 = vadd.f32 %v4643_v41, %v353_v26 }
  0x55   : > { %608 = vperm.xlu1 %4435, %v453_v28  }
  0x56   : > { %503 = vperm.xlu0 %4434, %v432_v29   ;;  %613 = vperm.xlu2 %4436, %v454_v30   ;;  %v4697_v29 = vld [vmem:[%s4613_s18 + $0x10] sm:$0xff]  }
  0x5d   : > { %563 = vperm.xlu1 %4435, %v444_v31  }
  0x5e   : > { %558 = vperm.xlu0 %4434, %v443_v33   ;;  %638 = vperm.xlu2 %4436, %v459_v34   ;;  %v4331_v33 = vunpack.c.h.bf16 %v4397_v27  ;;  %v405_v34 = vadd.f32 %v4643_v41, %v360_v25 }
  0x65   : > { %508 = vperm.xlu1 %4435, %v433_v38   ;;  %v4315_v38 = vunpack.c.h.bf16 %v4697_v29 }
  0x66   : > { %643 = vperm.xlu0 %4434, %v460_v39   ;;  %513 = vperm.xlu2 %4436, %v434_v40  }
  0x68   : > { %v519_v44 = vpop.permute.xlu2 %518 }
  0x69   : > { %v681_v45 = vmul.f32 %v519_v44, %v394_v42  ;;  %v352_v44 = vmul.f32 %v4628_v36, %v4331_v33 }
  0x6b   : > { %v722_v49 = vpack.c.bf16 %v681_v45, %v681_v45 }
  0x6d   : > { %764 = vst.msk [vmem:[#allocation2 + $0x28] sm:$0xf] %vm753_vm0, %v722_v49  ;;  %653 = vperm.xlu1 %4435, %v462_v47   ;;  %v351_v47 = vmul.f32 %v4628_v36, %v4330_v37  ;;  %v344_v49 = vmul.f32 %v4628_v36, %v4315_v38 }
  0x6e   : > { %648 = vperm.xlu0 %4434, %v461_v50   ;;  %658 = vperm.xlu2 %4436, %v463_v51   ;;  %v4710_v51 = vld [vmem:[%s4613_s18 + $0x78] sm:$0xff]  }
  0x6f   : > { %v396_v56 = vadd.f32 %v4643_v41, %v351_v47  ;;  %v389_v57 = vadd.f32 %v4643_v41, %v344_v49  ;;  %v4366_v59 = vunpack.c.l.bf16 %v4710_v51 }
  0x70   : > { %v524_v54 = vpop.permute.xlu2 %523 }
  0x71   : > { %v682_v55 = vmul.f32 %v524_v54, %v395_v52  ;;  %v397_v54 = vadd.f32 %v4643_v41, %v352_v44  ;;  %v369_v4 = vmul.f32 %v4628_v36, %v4366_v59 }
  0x73   : > { %v723_v61 = vpack.c.bf16 %v682_v55, %v682_v55  ;;  %v4310_v55 = vunpack.c.l.bf16 %v4669_v60  ;;  %v414_v16 = vadd.f32 %v4643_v41, %v369_v4  ;;  %v4404_v4 = vld [vmem:[%s4613_s18 + $0x68] sm:$0xff]  }
  0x75   : > { %765 = vst.msk [vmem:[#allocation2 + $0x2c] sm:$0xf] %vm753_vm0, %v723_v61  ;;  %668 = vperm.xlu1 %4435, %v465_v58   ;;  %v4307_v58 = vunpack.c.h.bf16 %v4651_v48  ;;  %v341_v60 = vmul.f32 %v4628_v36, %v4310_v55 }
  0x76   : > { %663 = vperm.xlu0 %4434, %v464_v62  }
  0x78   : > { %v469_v3 = vpop.permute.xlu2 %468 }
  0x79   : > { %v671_v5 = vmul.f32 %v469_v3, %v384_v0  ;;  %v340_v3 = vmul.f32 %v4628_v36, %v4307_v58 }
  0x7b   : > { %v712_v11 = vpack.c.bf16 %v671_v5, %v671_v5  ;;  %v4403_v5 = vld [vmem:[%s4613_s18 + $0x60] sm:$0xff]  }
  0x7c   : > { %v4354_v17 = vunpack.c.l.bf16 %v4403_v5 }
  0x7d   : > { %754 = vst.msk [vmem:[#allocation2] sm:$0xf] %vm753_vm0, %v712_v11  ;;  %v4730_v11 = vld [vmem:[#allocation2 + $0x28] sm:$0xff] }
  0x7f   : > { %v579_v18 = vpop.permute.xlu1 %578 }
  0x80   : > { %v693_v19 = vmul.f32 %v579_v18, %v406_v12  ;;  %v569_v20 = vpop.permute.xlu0 %568  ;;  %v484_v21 = vpop.permute.xlu2 %483  ;;  %v386_v12 = vadd.f32 %v4643_v41, %v341_v60  ;;  %v4371_v18 = vunpack.c.h.bf16 %v4726_v7 }
  0x81   : > { %v691_v23 = vmul.f32 %v569_v20, %v404_v14  ;;  %v674_v24 = vmul.f32 %v484_v21, %v387_v15  ;;  %v4355_v14 = vunpack.c.h.bf16 %v4403_v5  ;;  %v385_v15 = vadd.f32 %v4643_v41, %v340_v3  ;;  %v3893_v21 = vld [vmem:[%s5904_s1 + $0x8] sm:$0x7] }
  0x82   : > { %v734_v28 = vpack.c.bf16 %v693_v19, %v693_v19 }
  0x83   : > { %v732_v30 = vpack.c.bf16 %v691_v23, %v691_v23  ;;  %v715_v31 = vpack.c.bf16 %v674_v24, %v674_v24  ;;  %v967_v23 = vshll.u32 %v4730_v11, 16  ;;  %v1467_v24 = vsel %vm1125_vm1, %v3893_v21, 0 }
  0x84   : > { %776 = vst.msk [vmem:[#allocation2 + $0x58] sm:$0xf] %vm753_vm0, %v734_v28  ;;  %1476 = vmatpush.bf16.msrb.mxu2 %v1467_v24 }
  0x85   : > { %774 = vst.msk [vmem:[#allocation2 + $0x50] sm:$0xf] %vm753_vm0, %v732_v30  ;;  %v4756_v44 = vrot.slane %v967_v23, 1  ;;  %v4003_v23 = vld [vmem:[%s5904_s1 + $0x10] sm:$0x7] }
  0x86   : > { %757 = vst.msk [vmem:[#allocation2 + $0xc] sm:$0xf] %vm753_vm0, %v715_v31  ;;  %v364_v31 = vmul.f32 %v4628_v36, %v4355_v14 }
  0x87   : > { %v584_v39 = vpop.permute.xlu1 %583 }
  0x88   : > { %v694_v40 = vmul.f32 %v584_v39, %v407_v32  ;;  %v574_v42 = vpop.permute.xlu0 %573  ;;  %v539_v43 = vpop.permute.xlu2 %538  ;;  %v409_v47 = vadd.f32 %v4643_v41, %v364_v31 }
  0x89   : > { %v692_v45 = vmul.f32 %v574_v42, %v405_v34  ;;  %v685_v46 = vmul.f32 %v539_v43, %v398_v35  ;;  %v363_v34 = vmul.f32 %v4628_v36, %v4354_v17  ;;  %v372_v35 = vmul.f32 %v4628_v36, %v4371_v18 }
  0x8a   : > { %v735_v50 = vpack.c.bf16 %v694_v40, %v694_v40  ;;  %v4754_v40 = vld [vmem:[%s4613_s18 + $0x18] sm:$0xff]   ;;  %v4359_v17 = vunpack.c.h.bf16 %v4404_v4  ;;  %v4358_v18 = vunpack.c.l.bf16 %v4404_v4 }
  0x8b   : > { %v733_v52 = vpack.c.bf16 %v692_v45, %v692_v45  ;;  %v726_v53 = vpack.c.bf16 %v685_v46, %v685_v46  ;;  %v971_v45 = vshrl.u32 %v4730_v11, 16  ;;  %v4318_v55 = vunpack.c.l.bf16 %v4754_v40 }
  0x8c   : > { %777 = vst.msk [vmem:[#allocation2 + $0x5c] sm:$0xf] %vm753_vm0, %v735_v50  ;;  %v4314_v50 = vunpack.c.l.bf16 %v4697_v29  ;;  %v832_v29 = vld [vmem:[%s5904_s1] sm:$0x7] }
  0x8d   : > { %775 = vst.msk [vmem:[#allocation2 + $0x54] sm:$0xf] %vm753_vm0, %v733_v52  ;;  %v4335_v52 = vunpack.c.h.bf16 %v4684_v9  ;;  %v1269_v58 = vsel %vm1125_vm1, %v832_v29, 0  ;;  %v345_v3 = vmul.f32 %v4628_v36, %v4318_v55 }
  0x8e   : > { %768 = vst.msk [vmem:[#allocation2 + $0x38] sm:$0xf] %vm753_vm0, %v726_v53  ;;  %v408_v53 = vadd.f32 %v4643_v41, %v363_v34  ;;  %1278 = vmatpush.bf16.msrb.mxu1 %v1269_v58  ;;  %v366_v34 = vmul.f32 %v4628_v36, %v4359_v17 }
  0x8f   : > { %v534_v61 = vpop.permute.xlu1 %533  ;;  %v354_v60 = vmul.f32 %v4628_v36, %v4335_v52 }
  0x90   : > { %v684_v62 = vmul.f32 %v534_v61, %v397_v54  ;;  %v529_v63 = vpop.permute.xlu0 %528  ;;  %v494_v0 = vpop.permute.xlu2 %493  ;;  %v417_v54 = vadd.f32 %v4643_v41, %v372_v35  ;;  %v365_v35 = vmul.f32 %v4628_v36, %v4358_v18 }
  0x91   : > { %v683_v1 = vmul.f32 %v529_v63, %v396_v56  ;;  %v676_v2 = vmul.f32 %v494_v0, %v389_v57  ;;  %v973_v57 = vor.u32 %v971_v45, %v4756_v44  ;;  %v343_v0 = vmul.f32 %v4628_v36, %v4314_v50 }
  0x92   : > { %v725_v6 = vpack.c.bf16 %v684_v62, %v684_v62  ;;  %v410_v29 = vadd.f32 %v4643_v41, %v365_v35 }
  0x93   : > { %v724_v48 = vpack.c.bf16 %v683_v1, %v683_v1  ;;  %v717_v8 = vpack.c.bf16 %v676_v2, %v676_v2  ;;  %v4728_v10 = vld [vmem:[#allocation2 + $0x58] sm:$0xff]  ;;  %v388_v14 = vadd.f32 %v4643_v41, %v343_v0 }
  0x94   : > { %767 = vst.msk [vmem:[#allocation2 + $0x34] sm:$0xf] %vm753_vm0, %v725_v6  ;;  %v4245_v13 = vld [vmem:[#allocation2 + $0x50] sm:$0xff]  ;;  %v1015_v20 = vshll.u32 %v4728_v10, 16 }
  0x95   : > { %766 = vst.msk [vmem:[#allocation2 + $0x30] sm:$0xf] %vm753_vm0, %v724_v48  ;;  %v1007_v19 = vshll.u32 %v4245_v13, 16  ;;  %v1011_v30 = vshrl.u32 %v4245_v13, 16  ;;  %v4788_v48 = vld [vmem:[%s4613_s18 + $0x70] sm:$0xff]  }
  0x96   : > { %759 = vst.msk [vmem:[#allocation2 + $0x14] sm:$0xf] %vm753_vm0, %v717_v8  ;;  %v4751_v39 = vrot.slane %v1015_v20, 1 }
  0x97   : > { %v479_v22 = vpop.permute.xlu1 %478  ;;  %v4745_v28 = vrot.slane %v1007_v19, 1  ;;  %v390_v19 = vadd.f32 %v4643_v41, %v345_v3  ;;  %v4399_v3 = vld [vmem:[%s4613_s18 + $0x40] sm:$0xff]  }
  0x98   : > { %v673_v25 = vmul.f32 %v479_v22, %v386_v12  ;;  %v474_v26 = vpop.permute.xlu0 %473  ;;  %v619_v27 = vpop.permute.xlu2 %618  ;;  %v4363_v22 = vunpack.c.h.bf16 %v4788_v48  ;;  %v4339_v17 = vunpack.c.h.bf16 %v4399_v3 }
  0x99   : > { %v672_v32 = vmul.f32 %v474_v26, %v385_v15  ;;  %v701_v33 = vmul.f32 %v619_v27, %v414_v16  ;;  %v1013_v38 = vor.u32 %v1011_v30, %v4745_v28  ;;  %v399_v15 = vadd.f32 %v4643_v41, %v354_v60 }
  0x9a   : > { %v714_v37 = vpack.c.bf16 %v673_v25, %v673_v25  ;;  %v2313_v30 = vsel %vm1125_vm1, %v4003_v23, 0 }
  0x9b   : > { %v713_v42 = vpack.c.bf16 %v672_v32, %v672_v32  ;;  %v742_v43 = vpack.c.bf16 %v701_v33, %v701_v33  ;;  %v1018_v46 = vsel %vm926_vm2, %v1013_v38, %v4751_v39  ;;  %2322 = vmatpush.bf16.msrb.mxu0 %v2313_v30 }
  0x9c   : > { %756 = vst.msk [vmem:[#allocation2 + $0x8] sm:$0xf] %vm753_vm0, %v714_v37  ;;  %v4763_v49 = vld [vmem:[#allocation2 + $0x30] sm:$0xff]  ;;  %3867 = vmatmul.msk.bf16.vlgmr.msra.gmra.mxu2 %vm1070_vm3, %v1018_v46  ;;  %v4815_v46 = vld [vmem:[%s4613_s18 + $0x88] sm:$0xff]  }
  0x9d   : > { %755 = vst.msk [vmem:[#allocation2 + $0x4] sm:$0xf] %vm753_vm0, %v713_v42  ;;  %v975_v56 = vshll.u32 %v4763_v49, 16 }
  0x9e   : > { %784 = vst.msk [vmem:[#allocation2 + $0x78] sm:$0xf] %vm753_vm0, %v742_v43  ;;  %v368_v43 = vmul.f32 %v4628_v36, %v4363_v22 }
  0x9f   : > { %v594_v9 = vpop.permute.xlu1 %593  ;;  %v4779_v63 = vrot.slane %v975_v56, 1  ;;  %v4367_v56 = vunpack.c.h.bf16 %v4710_v51 }
  0xa0   : > { %v696_v59 = vmul.f32 %v594_v9, %v409_v47  ;;  %v589_v61 = vpop.permute.xlu0 %588  ;;  %v634_v62 = vpop.permute.xlu2 %633  ;;  %v413_v9 = vadd.f32 %v4643_v41, %v368_v43 }
  0xa1   : > { %v695_v1 = vmul.f32 %v589_v61, %v408_v53  ;;  %v704_v2 = vmul.f32 %v634_v62, %v417_v54  ;;  %v978_v6 = vsel %vm926_vm2, %v973_v57, %v4779_v63  ;;  %v4370_v53 = vunpack.c.l.bf16 %v4726_v7 }
  0xa2   : > { %v737_v5 = vpack.c.bf16 %v696_v59, %v696_v59  ;;  %3862 = vmatmul.msk.bf16.vlgmr.msra.gmra.mxu1 %vm1070_vm3, %v978_v6  ;;  %v411_v54 = vadd.f32 %v4643_v41, %v366_v34  ;;  %v4374_v57 = vunpack.c.l.bf16 %v4815_v46  ;;  %v1019_v7 = vshrl.u32 %v4728_v10, 16 }
  0xa3   : > { %v736_v8 = vpack.c.bf16 %v695_v1, %v695_v1  ;;  %v745_v12 = vpack.c.bf16 %v704_v2, %v704_v2  ;;  %v4791_v13 = vld [vmem:[#allocation2 + $0x8] sm:$0xff]  ;;  %v371_v61 = vmul.f32 %v4628_v36, %v4370_v53  ;;  %v370_v2 = vmul.f32 %v4628_v36, %v4367_v56  ;;  %v4875_v56 = vld [vmem:[%s4613_s18 + $0x98] sm:$0xff]  }
  0xa4   : > { %779 = vst.msk [vmem:[#allocation2 + $0x64] sm:$0xf] %vm753_vm0, %v737_v5  ;;  %v4796_v16 = vld [vmem:[#allocation2] sm:$0xff]   ;;  %v935_v21 = vshll.u32 %v4791_v13, 16  ;;  %v1021_v60 = vor.u32 %v1019_v7, %v4751_v39  ;;  %v373_v10 = vmul.f32 %v4628_v36, %v4374_v57  ;;  %v939_v23 = vshrl.u32 %v4791_v13, 16 }
  0xa5   : > { %778 = vst.msk [vmem:[#allocation2 + $0x60] sm:$0xf] %vm753_vm0, %v736_v8  ;;  %v930_v20 = vshll.u32 %v4796_v16, 16  ;;  %v928_v25 = vshrl.u32 %v4796_v16, 16  ;;  %v416_v18 = vadd.f32 %v4643_v41, %v371_v61  ;;  %v356_v34 = vmul.f32 %v4628_v36, %v4339_v17  ;;  %v4400_v17 = vld [vmem:[%s4613_s18 + $0x48] sm:$0xff]  }
  0xa6   : > { %787 = vst.msk [vmem:[#allocation2 + $0x84] sm:$0xf] %vm753_vm0, %v745_v12  ;;  %v4808_v27 = vrot.slane %v935_v21, 1  ;;  %v4843_v12 = vld [vmem:[%s4613_s18 + $0x20] sm:$0xff]   ;;  %v4338_v21 = vunpack.c.l.bf16 %v4399_v3  ;;  %v418_v22 = vadd.f32 %v4643_v41, %v373_v10  ;;  %v4362_v7 = vunpack.c.l.bf16 %v4788_v48 }
  0xa7   : > { %v489_v24 = vpop.permute.xlu1 %488  ;;  %v932_v26 = vrot.slane %v930_v20, 1  ;;  %v4319_v61 = vunpack.c.h.bf16 %v4754_v40 }
  0xa8   : > { %v675_v31 = vmul.f32 %v489_v24, %v388_v14  ;;  %v544_v32 = vpop.permute.xlu0 %543  ;;  %v499_v33 = vpop.permute.xlu2 %498 }
  0xa9   : > { %v686_v37 = vmul.f32 %v544_v32, %v399_v15  ;;  %v677_v38 = vmul.f32 %v499_v33, %v390_v19  ;;  %v933_v42 = vor.u32 %v932_v26, %v928_v25  ;;  %v415_v19 = vadd.f32 %v4643_v41, %v370_v2 }
  0xaa   : > { %v716_v45 = vpack.c.bf16 %v675_v31, %v675_v31  ;;  %v4323_v25 = vunpack.c.h.bf16 %v4843_v12  ;;  %v979_v26 = vshrl.u32 %v4763_v49, 16  ;;  %v941_v32 = vor.u32 %v939_v23, %v4808_v27 }
  0xab   : > { %v727_v47 = vpack.c.bf16 %v686_v37, %v686_v37  ;;  %v718_v50 = vpack.c.bf16 %v677_v38, %v677_v38  ;;  %v938_v52 = vsel %vm926_vm2, %v933_v42, %v4808_v27 }
  0xac   : > { %758 = vst.msk [vmem:[#allocation2 + $0x10] sm:$0xf] %vm753_vm0, %v716_v45  ;;  %3857 = vmatmul.msk.bf16.vlgmr.msra.gmra.mxu0 %vm1070_vm3, %v938_v52  ;;  %v4823_v55 = vld [vmem:[#allocation2 + $0x60] sm:$0xff]  ;;  %v981_v42 = vor.u32 %v979_v26, %v4779_v63  ;;  %v355_v45 = vmul.f32 %v4628_v36, %v4338_v21  ;;  %v348_v27 = vmul.f32 %v4628_v36, %v4323_v25  ;;  %v4343_v25 = vunpack.c.h.bf16 %v4400_v17 }
  0xad   : > { %769 = vst.msk [vmem:[#allocation2 + $0x3c] sm:$0xf] %vm753_vm0, %v727_v47  ;;  %v1023_v58 = vshll.u32 %v4823_v55, 16  ;;  %v401_v63 = vadd.f32 %v4643_v41, %v356_v34 }
  0xae   : > { %760 = vst.msk [vmem:[#allocation2 + $0x18] sm:$0xf] %vm753_vm0, %v718_v50 }
  0xaf   : > { %v604_v59 = vpop.permute.xlu1 %603  ;;  %v4835_v1 = vrot.slane %v1023_v58, 1  ;;  %v400_v58 = vadd.f32 %v4643_v41, %v355_v45 }
  0xb0   : > { %v698_v51 = vmul.f32 %v604_v59, %v411_v54  ;;  %v599_v62 = vpop.permute.xlu0 %598  ;;  %v614_v0 = vpop.permute.xlu2 %613  ;;  %v393_v59 = vadd.f32 %v4643_v41, %v348_v27 }
  0xb1   : > { %v697_v4 = vmul.f32 %v599_v62, %v410_v29  ;;  %v700_v5 = vmul.f32 %v614_v0, %v413_v9  ;;  %v1026_v8 = vsel %vm926_vm2, %v1021_v60, %v4835_v1  ;;  %v3912_v62 = vld [vmem:[%s5904_s1 + $0xc] sm:$0x7]  ;;  %v1027_v0 = vshrl.u32 %v4823_v55, 16 }
  0xb2   : > { %v739_v6 = vpack.c.bf16 %v698_v51, %v698_v51  ;;  %3868 = vmatmul.msk.bf16.gmra.mxu2 %vm1070_vm3, %v1026_v8  ;;  %v4382_v51 = vunpack.c.l.bf16 %v4875_v56  ;;  %v1822_v60 = vsel %vm1125_vm1, %v3912_v62, 0 }
  0xb3   : > { %v738_v14 = vpack.c.bf16 %v697_v4, %v697_v4  ;;  %v741_v15 = vpack.c.bf16 %v700_v5, %v700_v5  ;;  %v4846_v39 = vld [vmem:[#allocation2 + $0x10] sm:$0xff]  ;;  %1831 = vmatpush.bf16.msrb.mxu3 %v1822_v60  ;;  %v1029_v5 = vor.u32 %v1027_v0, %v4835_v1  ;;  %v4375_v0 = vunpack.c.h.bf16 %v4815_v46 }
  0xb4   : > { %781 = vst.msk [vmem:[#allocation2 + $0x6c] sm:$0xf] %vm753_vm0, %v739_v6  ;;  %v4851_v20 = vld [vmem:[#allocation2 + $0x38] sm:$0xff]  ;;  %v943_v24 = vshll.u32 %v4846_v39, 16  ;;  %v367_v6 = vmul.f32 %v4628_v36, %v4362_v7  ;;  %v377_v55 = vmul.f32 %v4628_v36, %v4382_v51  ;;  %v4322_v51 = vunpack.c.l.bf16 %v4843_v12 }
  0xb5   : > { %780 = vst.msk [vmem:[#allocation2 + $0x68] sm:$0xf] %vm753_vm0, %v738_v14  ;;  %v983_v30 = vshll.u32 %v4851_v20, 16 }
  0xb6   : > { %783 = vst.msk [vmem:[#allocation2 + $0x74] sm:$0xf] %vm753_vm0, %v741_v15  ;;  %v4862_v33 = vrot.slane %v943_v24, 1  ;;  %v346_v15 = vmul.f32 %v4628_v36, %v4319_v61  ;;  %v412_v23 = vadd.f32 %v4643_v41, %v367_v6 }
  0xb7   : > { %v629_v31 = vpop.permute.xlu1 %628  ;;  %v4866_v43 = vrot.slane %v983_v30, 1  ;;  %v422_v30 = vadd.f32 %v4643_v41, %v377_v55 }
  0xb8   : > { %v703_v35 = vmul.f32 %v629_v31, %v416_v18  ;;  %v624_v37 = vpop.permute.xlu0 %623  ;;  %v639_v38 = vpop.permute.xlu2 %638  ;;  %v946_v52 = vsel %vm926_vm2, %v941_v32, %v4862_v33  ;;  %v391_v26 = vadd.f32 %v4643_v41, %v346_v15  ;;  %v4342_v31 = vunpack.c.l.bf16 %v4400_v17 }
  0xb9   : > { %v702_v47 = vmul.f32 %v624_v37, %v415_v19  ;;  %v705_v50 = vmul.f32 %v639_v38, %v418_v22  ;;  %v986_v54 = vsel %vm926_vm2, %v981_v42, %v4866_v43 }
  0xba   : > { %v744_v53 = vpack.c.bf16 %v703_v35, %v703_v35  ;;  %3863 = vmatmul.msk.bf16.gmra.mxu1 %vm1070_vm3, %v986_v54 }
  0xbb   : > { %v743_v29 = vpack.c.bf16 %v702_v47, %v702_v47  ;;  %v746_v9 = vpack.c.bf16 %v705_v50, %v705_v50  ;;  %v358_v50 = vmul.f32 %v4628_v36, %v4343_v25 }
  0xbc   : > { %786 = vst.msk [vmem:[#allocation2 + $0x80] sm:$0xf] %vm753_vm0, %v744_v53  ;;  %3858 = vmatmul.msk.bf16.gmra.mxu0 %vm1070_vm3, %v946_v52  ;;  %v4881_v57 = vld [vmem:[#allocation2 + $0x68] sm:$0xff]  ;;  %v357_v53 = vmul.f32 %v4628_v36, %v4342_v31 }
  0xbd   : > { %785 = vst.msk [vmem:[#allocation2 + $0x7c] sm:$0xf] %vm753_vm0, %v743_v29  ;;  %v1031_v48 = vshll.u32 %v4881_v57, 16 }
  0xbe   : > { %788 = vst.msk [vmem:[#allocation2 + $0x88] sm:$0xf] %vm753_vm0, %v746_v9  ;;  %v402_v62 = vadd.f32 %v4643_v41, %v357_v53 }
  0xbf   : > { %v554_v2 = vpop.permute.xlu1 %553  ;;  %v4897_v10 = vrot.slane %v1031_v48, 1  ;;  %v987_v48 = vshrl.u32 %v4851_v20, 16 }
  0xc0   : > { %v688_v3 = vmul.f32 %v554_v2, %v401_v63  ;;  %v549_v4 = vpop.permute.xlu0 %548  ;;  %v514_v40 = vpop.permute.xlu2 %513 }
  0xc1   : > { %v687_v8 = vmul.f32 %v549_v4, %v400_v58  ;;  %v680_v14 = vmul.f32 %v514_v40, %v393_v59  ;;  %v1034_v19 = vsel %vm926_vm2, %v1029_v5, %v4897_v10  ;;  %v403_v59 = vadd.f32 %v4643_v41, %v358_v50  ;;  %v293_v50 = vld [vmem:[%s4613_s18 + $0xa0] sm:$0x3] }
  0xc2   : > { %v729_v18 = vpack.c.bf16 %v688_v3, %v688_v3  ;;  %3869 = vmatmul.msk.bf16.gmra.mxu2 %vm1070_vm3, %v1034_v19  ;;  %v989_v12 = vor.u32 %v987_v48, %v4866_v43  ;;  %v347_v5 = vmul.f32 %v4628_v36, %v4322_v51 }
  0xc3   : > { %v728_v21 = vpack.c.bf16 %v687_v8, %v687_v8  ;;  %v721_v22 = vpack.c.bf16 %v680_v14, %v680_v14  ;;  %v4906_v1 = vld [vmem:[#allocation2 + $0x80] sm:$0xff]  ;;  %v374_v8 = vmul.f32 %v4628_v36, %v4375_v0  ;;  %v4409_v14 = vld [vmem:[%s4613_s18 + $0x90] sm:$0xff]  }
  0xc4   : > { %771 = vst.msk [vmem:[#allocation2 + $0x44] sm:$0xf] %vm753_vm0, %v729_v18  ;;  %v4910_v24 = vld [vmem:[#allocation2 + $0x78] sm:$0xff]  ;;  %v1055_v34 = vshll.u32 %v4906_v1, 16  ;;  %v392_v18 = vadd.f32 %v4643_v41, %v347_v5  ;;  %v4379_v19 = vunpack.c.h.bf16 %v4409_v14  ;;  %v4378_v25 = vunpack.c.l.bf16 %v4409_v14 }
  0xc5   : > { %770 = vst.msk [vmem:[#allocation2 + $0x40] sm:$0xf] %vm753_vm0, %v728_v21  ;;  %v1047_v32 = vshll.u32 %v4910_v24, 16  ;;  %v1051_v47 = vshrl.u32 %v4910_v24, 16  ;;  %v419_v21 = vadd.f32 %v4643_v41, %v374_v8 }
  0xc6   : > { %763 = vst.msk [vmem:[#allocation2 + $0x24] sm:$0xf] %vm753_vm0, %v721_v22  ;;  %v4924_v9 = vrot.slane %v1055_v34, 1  ;;  %v1035_v22 = vshrl.u32 %v4881_v57, 16  ;;  %v375_v53 = vmul.f32 %v4628_v36, %v4378_v25 }
  0xc7   : > { %v609_v35 = vpop.permute.xlu1 %608  ;;  %v4918_v45 = vrot.slane %v1047_v32, 1 }
  0xc8   : > { %v699_v37 = vmul.f32 %v609_v35, %v412_v23  ;;  %v504_v38 = vpop.permute.xlu0 %503  ;;  %v659_v42 = vpop.permute.xlu2 %658  ;;  %v1037_v32 = vor.u32 %v1035_v22, %v4897_v10 }
  0xc9   : > { %v678_v52 = vmul.f32 %v504_v38, %v391_v26  ;;  %v709_v27 = vmul.f32 %v659_v42, %v422_v30  ;;  %v1053_v29 = vor.u32 %v1051_v47, %v4918_v45  ;;  %v947_v26 = vshrl.u32 %v4846_v39, 16 }
  0xca   : > { %v740_v54 = vpack.c.bf16 %v699_v37, %v699_v37  ;;  %v376_v47 = vmul.f32 %v4628_v36, %v4379_v19 }
  0xcb   : > { %v719_v63 = vpack.c.bf16 %v678_v52, %v678_v52  ;;  %v750_v7 = vpack.c.bf16 %v709_v27, %v709_v27  ;;  %v1058_v58 = vsel %vm926_vm2, %v1053_v29, %v4924_v9  ;;  %v949_v38 = vor.u32 %v947_v26, %v4862_v33 }
  0xcc   : > { %782 = vst.msk [vmem:[#allocation2 + $0x70] sm:$0xf] %vm753_vm0, %v740_v54  ;;  %v4930_v61 = vld [vmem:[#allocation2 + $0x40] sm:$0xff]  ;;  %3872 = vmatmul.msk.bf16.vlgmr.msra.gmra.mxu3 %vm1070_vm3, %v1058_v58  ;;  %v421_v33 = vadd.f32 %v4643_v41, %v376_v47  ;;  %v4383_v58 = vunpack.c.h.bf16 %v4875_v56 }
  0xcd   : > { %761 = vst.msk [vmem:[#allocation2 + $0x1c] sm:$0xf] %vm753_vm0, %v719_v63  ;;  %v991_v60 = vshll.u32 %v4930_v61, 16  ;;  %v334_v63 = vunpack.c.l.bf16 %v293_v50  ;;  %v995_v51 = vshrl.u32 %v4930_v61, 16 }
  0xce   : > { %792 = vst.msk [vmem:[#allocation2 + $0x98] sm:$0xf] %vm753_vm0, %v750_v7 }
  0xcf   : > { %v564_v2 = vpop.permute.xlu1 %563  ;;  %v993_v40 = vrot.slane %v991_v60, 1  ;;  %v379_v48 = vmul.f32 %v4628_v36, %v334_v63  ;;  %v4416_v63 = vld [vmem:[#allocation2] sm:$0xf0] }
  0xd0   : > { %v690_v3 = vmul.f32 %v564_v2, %v403_v59  ;;  %v559_v4 = vpop.permute.xlu0 %558  ;;  %v420_v59 = vadd.f32 %v4643_v41, %v375_v53 }
  0xd1   : > { %v689_v6 = vmul.f32 %v559_v4, %v402_v62  ;;  %v994_v46 = vsel %vm926_vm2, %v989_v12, %v993_v40  ;;  %v378_v12 = vmul.f32 %v4628_v36, %v4383_v58 }
  0xd2   : > { %v731_v15 = vpack.c.bf16 %v690_v3, %v690_v3  ;;  %3864 = vmatmul.msk.bf16.gmra.mxu1 %vm1070_vm3, %v994_v46  ;;  %v997_v3 = vor.u32 %v995_v51, %v993_v40  ;;  %v4109_v46 = vld [vmem:[%s5904_s1 + $0x18] sm:$0x7]  ;;  %v424_v40 = vadd.f32 %v4643_v41, %v379_v48  ;;  %v1959_v48 = vld [vmem:[#allocation2 + $0x8] sm:$0xe] }
  0xd3   : > { %v730_v55 = vpack.c.bf16 %v689_v6, %v689_v6  ;;  %v4946_v17 = vld [vmem:[#allocation2 + $0x70] sm:$0xff]  ;;  %v423_v36 = vadd.f32 %v4643_v41, %v378_v12  ;;  %v2910_v19 = vsel %vm1125_vm1, %v4109_v46, 0  ;;  %v2035_v12 = vunpack.c.l.b16 %v1959_v48 }
  0xd4   : > { %773 = vst.msk [vmem:[#allocation2 + $0x4c] sm:$0xf] %vm753_vm0, %v731_v15  ;;  %v4950_v43 = vld [vmem:[#allocation2 + $0x18] sm:$0xff]  ;;  %v1039_v23 = vshll.u32 %v4946_v17, 16  ;;  %v1043_v15 = vshrl.u32 %v4946_v17, 16  ;;  %2919 = vmatpush.bf16.msra.mxu2 %v2910_v19  ;;  %v4253_v19 = vld [vmem:[#allocation2 + $0x10] sm:$0xff] }
  0xd5   : > { %772 = vst.msk [vmem:[#allocation2 + $0x48] sm:$0xf] %vm753_vm0, %v730_v55  ;;  %v951_v30 = vshll.u32 %v4950_v43, 16  ;;  %v955_v22 = vshrl.u32 %v4950_v43, 16 }
  0xd6   : > { %v1041_v34 = vrot.slane %v1039_v23, 1 }
  0xd7   : > { %v509_v31 = vpop.permute.xlu1 %508  ;;  %v953_v42 = vrot.slane %v951_v30, 1 }
  0xd8   : > { %v679_v35 = vmul.f32 %v509_v31, %v392_v18  ;;  %v644_v37 = vpop.permute.xlu0 %643  ;;  %v1042_v27 = vsel %vm926_vm2, %v1037_v32, %v1041_v34  ;;  %v1059_v18 = vshrl.u32 %v4906_v1, 16  ;;  %v1045_v25 = vor.u32 %v1043_v15, %v1041_v34 }
  0xd9   : > { %v706_v52 = vmul.f32 %v644_v37, %v419_v21  ;;  %v954_v29 = vsel %vm926_vm2, %v949_v38, %v953_v42  ;;  %3870 = vmatmul.msk.bf16.gmra.mxu2 %vm1070_vm3, %v1042_v27  ;;  %v957_v31 = vor.u32 %v955_v22, %v953_v42  ;;  %v4090_v27 = vld [vmem:[%s5904_s1 + $0x14] sm:$0x7] }
  0xda   : > { %v720_v54 = vpack.c.bf16 %v679_v35, %v679_v35  ;;  %3859 = vmatmul.msk.bf16.gmra.mxu0 %vm1070_vm3, %v954_v29  ;;  %v1061_v30 = vor.u32 %v1059_v18, %v4924_v9  ;;  %v1050_v50 = vsel %vm926_vm2, %v1045_v25, %v4918_v45  ;;  %v4196_v9 = vld [vmem:[%s5904_s1 + $0x1c] sm:$0x7]  ;;  %v4215_v45 = vld [vmem:[%s5904_s1 + $0x20] sm:$0x7] }
  0xdb   : > { %v747_v10 = vpack.c.bf16 %v706_v52, %v706_v52  ;;  %v3279_v42 = vsel %vm1125_vm1, %v4196_v9, 0  ;;  %v3515_v29 = vsel %vm1125_vm1, %v4215_v45, 0 }
  0xdc   : > { %762 = vst.msk [vmem:[#allocation2 + $0x20] sm:$0xf] %vm753_vm0, %v720_v54  ;;  %v4969_v7 = vld [vmem:[#allocation2 + $0x48] sm:$0xff]  ;;  %3288 = vmatpush.bf16.msra.mxu3 %v3279_v42  ;;  %v2549_v54 = vsel %vm1125_vm1, %v4090_v27, 0  ;;  %3524 = vmatpush.bf16.msra.mxu0 %v3515_v29 }
  0xdd   : > { %789 = vst.msk [vmem:[#allocation2 + $0x8c] sm:$0xf] %vm753_vm0, %v747_v10  ;;  %v999_v62 = vshll.u32 %v4969_v7, 16  ;;  %v1003_v53 = vshrl.u32 %v4969_v7, 16  ;;  %2558 = vmatpush.bf16.msra.mxu1 %v2549_v54 }
  0xdf   : > { %v654_v0 = vpop.permute.xlu1 %653  ;;  %v1001_v4 = vrot.slane %v999_v62, 1 }
  0xe0   : > { %v708_v60 = vmul.f32 %v654_v0, %v421_v33  ;;  %v649_v2 = vpop.permute.xlu0 %648  ;;  %v4417_v33 = vld [vmem:[#allocation2] sm:$0xe]  ;;  %v1378_v0 = vrot.slane %v4791_v13, 1 }
  0xe1   : > { %v707_v5 = vmul.f32 %v649_v2, %v420_v59  ;;  %v1002_v56 = vsel %vm926_vm2, %v997_v3, %v1001_v4  ;;  %v1005_v10 = vor.u32 %v1003_v53, %v1001_v4  ;;  %v4418_v58 = vor.u32 %v4417_v33, %v4416_v63  ;;  %v5026_v3 = vld [vmem:[#allocation2 + $0xc] sm:$0xf] }
  0xe2   : > { %v749_v6 = vpack.c.bf16 %v708_v60, %v708_v60  ;;  %3865 = vmatmul.msk.bf16.gmra.mxu1 %vm1070_vm3, %v1002_v56  ;;  %v5912_v56 = vunpack.c.l.b16 %v5026_v3  ;;  %v1382_v53 = vrot.slane %v4950_v43, 1 }
  0xe3   : > { %v748_v8 = vpack.c.bf16 %v707_v5, %v707_v5  ;;  %v4980_v14 = vld [vmem:[#allocation2 + $0x20] sm:$0xff]  ;;  %v1010_v59 = vsel %vm926_vm2, %v1005_v10, %v4745_v28  ;;  %v1377_v62 = vrot.slane %v4418_v58, 1 }
  0xe4   : > { %791 = vst.msk [vmem:[#allocation2 + $0x94] sm:$0xf] %vm753_vm0, %v749_v6  ;;  %v4989_v55 = vld [vmem:[#allocation2 + $0x88] sm:$0xff]   ;;  %v959_v23 = vshll.u32 %v4980_v14, 16  ;;  %v963_v51 = vshrl.u32 %v4980_v14, 16  ;;  %v5033_v6 = vld [vmem:[#allocation2 + $0x10] sm:$0xff] }
  0xe5   : > { %790 = vst.msk [vmem:[#allocation2 + $0x90] sm:$0xf] %vm753_vm0, %v748_v8  ;;  %v1063_v21 = vshll.u32 %v4989_v55, 16  ;;  %v1067_v60 = vshrl.u32 %v4989_v55, 16  ;;  %v1379_v5 = vsel %vm1376_vm5, %v1377_v62, %v1378_v0  ;;  %v2072_v8 = vpack.c.b16 %v5912_v56, %v2035_v12  ;;  %v5064_v33 = vld [vmem:[#allocation2 + $0x20] sm:$0xff] }
  0xe6   : > { %v961_v32 = vrot.slane %v959_v23, 1  ;;  %v2101_v15 = vshrl.u32 %v5033_v6, 16  ;;  %v2104_v46 = vshll.u32 %v5033_v6, 16  ;;  %v5911_v42 = vrot.slane %v5033_v6, 2 }
  0xe7   : > { %v669_v26 = vpop.permute.xlu1 %668  ;;  %v1065_v41 = vrot.slane %v1063_v21, 1  ;;  %v2096_v18 = vshll.u32 %v2072_v8, 16  ;;  %v2119_v58 = vshrl.u32 %v5064_v33, 16  ;;  %v5910_v12 = vrot.slane %v5064_v33, 2 }
  0xe8   : > { %v711_v1 = vmul.f32 %v669_v26, %v424_v40  ;;  %v664_v35 = vpop.permute.xlu0 %663  ;;  %v962_v47 = vsel %vm926_vm2, %v957_v31, %v961_v32  ;;  %v965_v2 = vor.u32 %v963_v51, %v961_v32  ;;  %v3915_v40 = vld [vmem:[#allocation2 + $0x8] sm:$0xe]  ;;  %v2103_v21 = vrot.slane %v2101_v15, 1  ;;  %v4255_v51 = vld [vmem:[#allocation2 + $0x20] sm:$0xff] }
  0xe9   : > { %v710_v37 = vmul.f32 %v664_v35, %v423_v36  ;;  %v1066_v38 = vsel %vm926_vm2, %v1061_v30, %v1065_v41  ;;  %3871 = vmatmul.msk.bf16.gmra.mxu2 %vm1070_vm3, %v1050_v50  ;;  %v1069_v4 = vor.u32 %v1067_v60, %v1065_v41  ;;  %v2093_v36 = vshrl.u32 %v2072_v8, 16 }
  0xea   : > { %v752_v52 = vpack.c.bf16 %v711_v1, %v711_v1  ;;  %3873 = vmatmul.msk.bf16.gmra.mxu3 %vm1070_vm3, %v1066_v38  ;;  %3860 = vmatmul.msk.bf16.gmra.mxu0 %vm1070_vm3, %v962_v47  ;;  %v970_v28 = vsel %vm926_vm2, %v965_v2, %v4756_v44  ;;  %v4252_v44 = vld [vmem:[#allocation2 + $0x8] sm:$0xf0]  ;;  %v2106_v22 = vrot.slane %v2104_v46, 2  ;;  %v2098_v26 = vrot.slane %v2096_v18, 2  ;;  %v4271_v38 = vld [vmem:[#allocation2 + $0x18] sm:$0xff] }
  0xeb   : > { %v751_v34 = vpack.c.bf16 %v710_v37, %v710_v37  ;;  %v3916_v23 = vor.u32 %v4252_v44, %v3915_v40  ;;  %v2095_v25 = vrot.slane %v2093_v36, 1  ;;  %v1733_v30 = vrot.slane %v4253_v19, 1  ;;  %v4273_v46 = vld [vmem:[#allocation2 + $0x28] sm:$0xff] }
  0xec   : > { %795 = vst.msk [vmem:[#allocation2 + $0xa0] sm:$0x3] %vm794_vm4, %v752_v52  ;;  %v1380_v41 = vrot.slane %v4846_v39, 1  ;;  %v2107_v31 = vor.u32 %v2106_v22, %v2103_v21  ;;  %v2110_v47 = vshrl.u32 %v4271_v38, 16  ;;  %v2113_v50 = vshll.u32 %v4271_v38, 16  ;;  %v4254_v52 = vld [vmem:[#allocation2 + $0x18] sm:$0xff] }
  0xed   : > { %793 = vst.msk [vmem:[#allocation2 + $0x9c] sm:$0xf] %vm753_vm0, %v751_v34  ;;  %v1732_v32 = vrot.slane %v3916_v23, 1  ;;  %v2099_v1 = vor.u32 %v2098_v26, %v2095_v25  ;;  %v2460_v27 = vrot.slane %v4271_v38, 2  ;;  %v1735_v45 = vrot.slane %v4254_v52, 1  ;;  %v4256_v44 = vld [vmem:[#allocation2 + $0x28] sm:$0xff] }
  0xee   : > { %v1381_v37 = vsel %vm1376_vm5, %v1378_v0, %v1380_v41  ;;  %v2112_v9 = vrot.slane %v2110_v47, 1  ;;  %v2115_v34 = vrot.slane %v2113_v50, 2  ;;  %v1383_v63 = vsel %vm1376_vm5, %v1380_v41, %v1382_v53  ;;  %v4257_v50 = vld [vmem:[#allocation2 + $0x30] sm:$0xff] }
  0xef   : > { %v1734_v35 = vsel %vm1376_vm5, %v1732_v32, %v1733_v30  ;;  %v5057_v29 = vsel %vm2456_vm7, %v5911_v42, %v2460_v27  ;;  %v1736_v10 = vsel %vm1376_vm5, %v1733_v30, %v1735_v45  ;;  %v2121_v62 = vrot.slane %v2119_v58, 1  ;;  %v4275_v58 = vld [vmem:[#allocation2 + $0x38] sm:$0xff]  ;;  %v4440_v42 = vld [vmem:[#allocation2 + $0x50] sm:$0xff] }
  0xf0   : > { %v2116_v54 = vor.u32 %v2115_v34, %v2112_v9  ;;  %v1737_v60 = vrot.slane %v4255_v51, 1  ;;  %v1384_v2 = vrot.slane %v4980_v14, 1  ;;  %v2128_v36 = vshrl.u32 %v4273_v46, 16 }
  0xf1   : > { %v2131_v18 = vshll.u32 %v4273_v46, 16  ;;  %v1739_v26 = vrot.slane %v4256_v44, 1  ;;  %v1386_v30 = vrot.slane %v4730_v11, 1  ;;  %v1741_v34 = vrot.slane %v4257_v50, 1 }
  0xf2   : > { %3866 = vmatmul.msk.bf16.gmra.mxu1 %vm1070_vm3, %v1010_v59  ;;  %v2122_v59 = vshll.u32 %v5064_v33, 16  ;;  %v1385_v8 = vsel %vm1376_vm5, %v1382_v53, %v1384_v2  ;;  %v2130_v21 = vrot.slane %v2128_v36, 1  ;;  %v2149_v51 = vshll.u32 %v4275_v58, 16 }
  0xf3   : > { %v2133_v22 = vrot.slane %v2131_v18, 2  ;;  %v1387_v32 = vsel %vm1376_vm5, %v1384_v2, %v1386_v30  ;;  %v1396_v56 = vrot.slane %v4440_v42, 1 }
  0xf4   : > { %v2124_v0 = vrot.slane %v2122_v59, 2  ;;  %v2146_v59 = vshrl.u32 %v4275_v58, 16  ;;  %v4277_v58 = vld [vmem:[#allocation2 + $0x48] sm:$0xff] }
  0xf5   : > { %v2134_v41 = vor.u32 %v2133_v22, %v2130_v21  ;;  %v4276_v22 = vld [vmem:[#allocation2 + $0x40] sm:$0xff] }
  0xf6   : > { %v2148_v2 = vrot.slane %v2146_v59, 1 }
  0xf9   : > { %3894 = vmatmul.msk.bf16.vlgmr.msrb.gmra.mxu2 %vm1070_vm3, %v1379_v5  ;;  %v5078_v5 = vsel %vm2456_vm7, %v2460_v27, %v5910_v12  ;;  %v1388_v27 = vrot.slane %v4763_v49, 1 }
  0xfa   : > { %3874 = vmatmul.msk.bf16.gmra.mxu3 %vm1070_vm3, %v1069_v4  ;;  %3861 = vmatmul.msk.bf16.gmra.mxu0 %vm1070_vm3, %v970_v28  ;;  %v2125_v4 = vor.u32 %v2124_v0, %v2121_v62  ;;  %v1738_v28 = vsel %vm1376_vm5, %v1735_v45, %v1737_v60 }
 0x102   : > { %3875 = vmatmul.msk.bf16.vlgmr.msrb.gmra.mxu1 %vm1070_vm3, %v4796_v16  ;;  %v2108_v16 = vsel %vm2091_vm6, %v2099_v1, %v2107_v31  ;;  %v4274_v1 = vld [vmem:[#allocation2 + $0x30] sm:$0xff] }
 0x103   : > { %v2140_v38 = vshll.u32 %v4274_v1, 16 }
 0x105   : > { %v2142_v9 = vrot.slane %v2140_v38, 2 }
 0x109   : > { %3895 = vmatmul.msk.bf16.gmra.mxu2 %vm1070_vm3, %v1381_v37 }
 0x10a   : > { %3985 = vmatmul.msk.bf16.vlgmr.msrb.gmra.mxu3 %vm1070_vm3, %v1734_v35  ;;  %4072 = vmatmul.msk.bf16.vlgmr.msrb.gmra.mxu0 %vm1070_vm3, %v2108_v16  ;;  %v2137_v16 = vshrl.u32 %v4274_v1, 16  ;;  %v4259_v1 = vld [vmem:[#allocation2 + $0x40] sm:$0xff] }
 0x10c   : > { %v2139_v52 = vrot.slane %v2137_v16, 1 }
 0x10e   : > { %v2143_v53 = vor.u32 %v2142_v9, %v2139_v52  ;;  %v1745_v9 = vrot.slane %v4259_v1, 1 }
 0x112   : > { %3876 = vmatmul.msk.bf16.gmra.mxu1 %vm1070_vm3, %v4791_v13  ;;  %v2117_v13 = vsel %vm2091_vm6, %v2107_v31, %v2116_v54  ;;  %v1740_v31 = vsel %vm1376_vm5, %v1737_v60, %v1739_v26  ;;  %v4258_v60 = vld [vmem:[#allocation2 + $0x38] sm:$0xff] }
 0x119   : > { %3896 = vmatmul.msk.bf16.gmra.mxu2 %vm1070_vm3, %v1383_v63  ;;  %v1389_v63 = vsel %vm1376_vm5, %v1386_v30, %v1388_v27 }
 0x11a   : > { %3986 = vmatmul.msk.bf16.gmra.mxu3 %vm1070_vm3, %v1736_v10  ;;  %4073 = vmatmul.msk.bf16.gmra.mxu0 %vm1070_vm3, %v2117_v13  ;;  %v1742_v10 = vsel %vm1376_vm5, %v1739_v26, %v1741_v34  ;;  %v2144_v13 = vsel %vm2091_vm6, %v2134_v41, %v2143_v53 }
 0x11f   : > { %v5071_v48 = vpop.f32.mrf.mxu2  ;;  %v5086_v15 = vpop.f32.mrf.mxu1 }
 0x122   : > { %3877 = vmatmul.msk.bf16.gmra.mxu1 %vm1070_vm3, %v4846_v39  ;;  %v2126_v39 = vsel %vm2091_vm6, %v2116_v54, %v2125_v4 }
 0x127   : > { %v5088_v40 = vpop.f32.mrf.mxu2  ;;  %v5094_v23 = vpop.f32.mrf.mxu1 }
 0x129   : > { %3897 = vmatmul.msk.bf16.gmra.mxu2 %vm1070_vm3, %v1385_v8  ;;  %v5090_v19 = vpop.f32.mrf.mxu0  ;;  %v1743_v8 = vrot.slane %v4258_v60, 1  ;;  %v2164_v60 = vshrl.u32 %v4277_v58, 16 }
 0x12a   : > { %3987 = vmatmul.msk.bf16.gmra.mxu3 %vm1070_vm3, %v1738_v28  ;;  %4074 = vmatmul.msk.bf16.gmra.mxu0 %vm1070_vm3, %v2126_v39  ;;  %v1390_v39 = vrot.slane %v4851_v20, 1 }
 0x12b   : > { %v1744_v44 = vsel %vm1376_vm5, %v1741_v34, %v1743_v8  ;;  %v1392_v34 = vrot.slane %v4930_v61, 1 }
 0x12c   : > { %v1391_v21 = vsel %vm1376_vm5, %v1388_v27, %v1390_v39 }
 0x131   : > { %v5105_v35 = vpop.f32.mrf.mxu0 }
 0x132   : > { %3878 = vmatmul.msk.bf16.gmra.mxu1 %vm1070_vm3, %v4950_v43  ;;  %v2135_v43 = vsel %vm2091_vm6, %v2125_v4, %v2134_v41  ;;  %v2151_v4 = vrot.slane %v2149_v51, 2  ;;  %v2155_v41 = vshrl.u32 %v4276_v22, 16 }
 0x134   : > { %v2152_v46 = vor.u32 %v2151_v4, %v2148_v2  ;;  %v2157_v16 = vrot.slane %v2155_v41, 1  ;;  %v2167_v2 = vshll.u32 %v4277_v58, 16  ;;  %v1394_v41 = vrot.slane %v4969_v7, 1 }
 0x135   : > { %v5096_v25 = vpop.f32.mrf.mxu2 }
 0x137   : > { %v5107_v37 = vpop.f32.mrf.mxu1 }
 0x139   : > { %3898 = vmatmul.msk.bf16.gmra.mxu2 %vm1070_vm3, %v1387_v32  ;;  %v5114_v45 = vpop.f32.mrf.mxu0 }
 0x13a   : > { %3988 = vmatmul.msk.bf16.gmra.mxu3 %vm1070_vm3, %v1740_v31  ;;  %4075 = vmatmul.msk.bf16.gmra.mxu0 %vm1070_vm3, %v2135_v43  ;;  %v2158_v31 = vshll.u32 %v4276_v22, 16 }
 0x13c   : > { %v2160_v38 = vrot.slane %v2158_v31, 2 }
 0x13d   : > { %v5109_v47 = vpop.f32.mrf.mxu2 }
 0x13e   : > { %v2161_v27 = vor.u32 %v2160_v38, %v2157_v16 }
 0x13f   : > { %v5116_v54 = vpop.f32.mrf.mxu1 }
 0x141   : > { %v5126_v62 = vpop.f32.mrf.mxu0 }
 0x142   : > { %3879 = vmatmul.msk.bf16.gmra.mxu1 %vm1070_vm3, %v4980_v14 }
 0x145   : > { %v5123_v14 = vpop.f32.mrf.mxu2 }
 0x149   : > { %3899 = vmatmul.msk.bf16.gmra.mxu2 %vm1070_vm3, %v1389_v63  ;;  %v1746_v63 = vsel %vm1376_vm5, %v1743_v8, %v1745_v9 }
 0x14a   : > { %3989 = vmatmul.msk.bf16.gmra.mxu3 %vm1070_vm3, %v1742_v10  ;;  %4076 = vmatmul.msk.bf16.gmra.mxu0 %vm1070_vm3, %v2144_v13  ;;  %v1393_v13 = vsel %vm1376_vm5, %v1390_v39, %v1392_v34  ;;  %v4260_v39 = vld [vmem:[#allocation2 + $0x48] sm:$0xff] }
 0x14b   : > { %v1747_v22 = vrot.slane %v4260_v39, 1 }
 0x14d   : > { %v5132_v28 = vpop.f32.mrf.mxu2  ;;  %v1748_v38 = vsel %vm1376_vm5, %v1745_v9, %v1747_v22 }
 0x14f   : > { %v5128_v0 = vpop.f32.mrf.mxu1  ;;  %v5144_v26 = vpop.f32.mrf.mxu3 }
 0x152   : > { %3880 = vmatmul.msk.bf16.gmra.mxu1 %vm1070_vm3, %v4730_v11  ;;  %v2153_v11 = vsel %vm2091_vm6, %v2143_v53, %v2152_v46 }
 0x157   : > { %v5135_v36 = vpop.f32.mrf.mxu0  ;;  %v5137_v18 = vpop.f32.mrf.mxu1 }
 0x158   : > { %v5155_v50 = vpop.f32.mrf.mxu3 }
 0x159   : > { %3900 = vmatmul.msk.bf16.gmra.mxu2 %vm1070_vm3, %v1391_v21  ;;  %v2169_v21 = vrot.slane %v2167_v2, 2 }
 0x15a   : > { %3990 = vmatmul.msk.bf16.gmra.mxu3 %vm1070_vm3, %v1744_v44  ;;  %4077 = vmatmul.msk.bf16.gmra.mxu0 %vm1070_vm3, %v2153_v11  ;;  %v2166_v44 = vrot.slane %v2164_v60, 1 }
 0x15c   : > { %v5147_v30 = vpop.f32.mrf.mxu2  ;;  %v2170_v31 = vor.u32 %v2169_v21, %v2166_v44 }
 0x15f   : > { %v5149_v32 = vpop.f32.mrf.mxu0  ;;  %v5151_v43 = vpop.f32.mrf.mxu1 }
 0x162   : > { %3881 = vmatmul.msk.bf16.gmra.mxu1 %vm1070_vm3, %v4763_v49  ;;  %v2162_v49 = vsel %vm2091_vm6, %v2152_v46, %v2161_v27 }
 0x164   : > { %v5157_v52 = vpop.f32.mrf.mxu2 }
 0x167   : > { %v5160_v53 = vpop.f32.mrf.mxu0  ;;  %v5162_v10 = vpop.f32.mrf.mxu1 }
 0x169   : > { %3901 = vmatmul.msk.bf16.gmra.mxu2 %vm1070_vm3, %v1393_v13  ;;  %v4278_v13 = vld [vmem:[#allocation2 + $0x50] sm:$0xff] }
 0x16a   : > { %3991 = vmatmul.msk.bf16.gmra.mxu3 %vm1070_vm3, %v1746_v63  ;;  %4078 = vmatmul.msk.bf16.gmra.mxu0 %vm1070_vm3, %v2162_v49  ;;  %v1395_v63 = vsel %vm1376_vm5, %v1392_v34, %v1394_v41  ;;  %v2173_v39 = vshrl.u32 %v4278_v13, 16  ;;  %v2176_v44 = vshll.u32 %v4278_v13, 16  ;;  %v4261_v34 = vld [vmem:[#allocation2 + $0x50] sm:$0xff] }
 0x16b   : > { %v1749_v12 = vrot.slane %v4261_v34, 1 }
 0x16c   : > { %v5172_v51 = vpop.f32.mrf.mxu2 }
 0x16d   : > { %v5170_v59 = vpop.f32.mrf.mxu3 }
 0x16e   : > { %5914 = vst [vmem:[#allocation3_spill] sm:$0xff] %v5170_v59 }
 0x16f   : > { %v5174_v4 = vpop.f32.mrf.mxu0  ;;  %v5176_v8 = vpop.f32.mrf.mxu1 }
 0x172   : > { %3882 = vmatmul.msk.bf16.gmra.mxu1 %vm1070_vm3, %v4851_v20  ;;  %v2171_v20 = vsel %vm2091_vm6, %v2161_v27, %v2170_v31  ;;  %v2178_v27 = vrot.slane %v2176_v44, 2 }
 0x174   : > { %v5182_v11 = vpop.f32.mrf.mxu2 }
 0x175   : > { %v5180_v46 = vpop.f32.mrf.mxu3 }
 0x176   : > { %5915 = vst [vmem:[#allocation4_spill] sm:$0xff] %v5180_v46 }
 0x177   : > { %v5185_v1 = vpop.f32.mrf.mxu0  ;;  %v5187_v16 = vpop.f32.mrf.mxu1 }
 0x179   : > { %3902 = vmatmul.msk.bf16.gmra.mxu2 %vm1070_vm3, %v1395_v63 }
 0x17a   : > { %3992 = vmatmul.msk.bf16.gmra.mxu3 %vm1070_vm3, %v1748_v38  ;;  %4079 = vmatmul.msk.bf16.gmra.mxu0 %vm1070_vm3, %v2171_v20  ;;  %v2175_v38 = vrot.slane %v2173_v39, 1 }
 0x17c   : > { %v1478_v58 = vpop.f32.mrf.mxu2  ;;  %v2179_v59 = vor.u32 %v2178_v27, %v2175_v38  ;;  %v4262_v27 = vld [vmem:[#allocation2 + $0x58] sm:$0xff] }
 0x17d   : > { %v5195_v49 = vpop.f32.mrf.mxu3 }
 0x17e   : > { %5916 = vst [vmem:[#allocation5_spill] sm:$0xff] %v5195_v49 }
 0x17f   : > { %v5197_v60 = vpop.f32.mrf.mxu0  ;;  %v1280_v2 = vpop.f32.mrf.mxu1 }
 0x180   : > { %v1281_v9 = vadd.f32 %v1280_v2, %v5090_v19  ;;  %v1750_v19 = vsel %vm1376_vm5, %v1747_v22, %v1749_v12  ;;  %v4279_v2 = vld [vmem:[#allocation2 + $0x58] sm:$0xff] }
 0x181   : > { %v2182_v38 = vshrl.u32 %v4279_v2, 16 }
 0x182   : > { %3883 = vmatmul.msk.bf16.gmra.mxu1 %vm1070_vm3, %v4930_v61  ;;  %v1568_v21 = vadd.f32 %v1478_v58, %v1281_v9  ;;  %v1397_v61 = vsel %vm1376_vm5, %v1394_v41, %v1396_v56  ;;  %v2180_v58 = vsel %vm2091_vm6, %v2170_v31, %v2179_v59 }
 0x184   : > { %v1480_v20 = vpop.f32.mrf.mxu2 }
 0x185   : > { %v5202_v63 = vpop.f32.mrf.mxu3 }
 0x186   : > { %5917 = vst [vmem:[#allocation6_spill] sm:$0xff] %v5202_v63 }
 0x187   : > { %v1282_v49 = vpop.f32.mrf.mxu1  ;;  %v5204_v46 = vpop.f32.mrf.mxu0 }
 0x188   : > { %5918 = vst [vmem:[#allocation7_spill] sm:$0xff] %v5204_v46  ;;  %v1283_v13 = vadd.f32 %v1282_v49, %v5105_v35  ;;  %v2185_v35 = vshll.u32 %v4279_v2, 16  ;;  %v4441_v46 = vld [vmem:[#allocation2 + $0x58] sm:$0xff] }
 0x189   : > { %3903 = vmatmul.msk.bf16.gmra.mxu2 %vm1070_vm3, %v1397_v61 }
 0x18a   : > { %3993 = vmatmul.msk.bf16.gmra.mxu3 %vm1070_vm3, %v1750_v19  ;;  %4080 = vmatmul.msk.bf16.gmra.mxu0 %vm1070_vm3, %v2180_v58  ;;  %v1569_v39 = vadd.f32 %v1480_v20, %v1283_v13  ;;  %v2184_v19 = vrot.slane %v2182_v38, 1  ;;  %v2187_v61 = vrot.slane %v2185_v35, 2  ;;  %v1751_v13 = vrot.slane %v4262_v27, 1 }
 0x18c   : > { %v1483_v9 = vpop.f32.mrf.mxu2  ;;  %v2188_v2 = vor.u32 %v2187_v61, %v2184_v19  ;;  %v1752_v38 = vsel %vm1376_vm5, %v1749_v12, %v1751_v13  ;;  %v4263_v61 = vld [vmem:[#allocation2 + $0x60] sm:$0xff] }
 0x18d   : > { %v1833_v44 = vpop.f32.mrf.mxu3 }
 0x18e   : > { %v5213_v34 = vadd.f32 %v1833_v44, %v1568_v21  ;;  %v1398_v21 = vrot.slane %v4441_v46, 1 }
 0x18f   : > { %v1285_v49 = vpop.f32.mrf.mxu1  ;;  %v5215_v22 = vpop.f32.mrf.mxu0 }
 0x190   : > { %5919 = vst [vmem:[#allocation8_spill] sm:$0xff] %v5213_v34  ;;  %v1286_v41 = vadd.f32 %v1285_v49, %v5114_v45  ;;  %v1399_v35 = vsel %vm1376_vm5, %v1396_v56, %v1398_v21 }
 0x192   : > { %3884 = vmatmul.msk.bf16.gmra.mxu1 %vm1070_vm3, %v4969_v7  ;;  %v1570_v31 = vadd.f32 %v1483_v9, %v1286_v41  ;;  %v2189_v7 = vsel %vm2091_vm6, %v2179_v59, %v2188_v2  ;;  %v4280_v9 = vld [vmem:[#allocation2 + $0x60] sm:$0xff] }
 0x193   : > { %v2191_v19 = vshrl.u32 %v4280_v9, 16 }
 0x194   : > { %v1485_v20 = vpop.f32.mrf.mxu2 }
 0x195   : > { %v1835_v58 = vpop.f32.mrf.mxu3 }
 0x196   : > { %v5220_v44 = vadd.f32 %v1835_v58, %v1569_v39  ;;  %v2193_v58 = vrot.slane %v2191_v19, 1 }
 0x197   : > { %v1287_v34 = vpop.f32.mrf.mxu1  ;;  %v5222_v63 = vpop.f32.mrf.mxu0 }
 0x198   : > { %5920 = vst [vmem:[#allocation9_spill] sm:$0xff] %v5222_v63  ;;  %v1288_v45 = vadd.f32 %v1287_v34, %v5126_v62  ;;  %v2194_v62 = vshll.u32 %v4280_v9, 16 }
 0x199   : > { %3904 = vmatmul.msk.bf16.gmra.mxu2 %vm1070_vm3, %v1399_v35 }
 0x19a   : > { %3994 = vmatmul.msk.bf16.gmra.mxu3 %vm1070_vm3, %v1752_v38  ;;  %4081 = vmatmul.msk.bf16.gmra.mxu0 %vm1070_vm3, %v2189_v7  ;;  %v1571_v39 = vadd.f32 %v1485_v20, %v1288_v45  ;;  %v2196_v38 = vrot.slane %v2194_v62, 2  ;;  %v1753_v20 = vrot.slane %v4263_v61, 1  ;;  %v4442_v45 = vld [vmem:[#allocation2 + $0x60] sm:$0xff] }
 0x19b   : > { %v1400_v63 = vrot.slane %v4442_v45, 1 }
 0x19c   : > { %v1488_v41 = vpop.f32.mrf.mxu2 }
 0x19d   : > { %v1838_v49 = vpop.f32.mrf.mxu3  ;;  %v1401_v19 = vsel %vm1376_vm5, %v1398_v21, %v1400_v63 }
 0x19e   : > { %v5231_v27 = vadd.f32 %v1838_v49, %v1570_v31  ;;  %v2197_v49 = vor.u32 %v2196_v38, %v2193_v58  ;;  %v4264_v38 = vld [vmem:[#allocation2 + $0x68] sm:$0xff] }
 0x19f   : > { %v1290_v34 = vpop.f32.mrf.mxu1  ;;  %v5233_v12 = vpop.f32.mrf.mxu0 }
 0x1a0   : > { %5921 = vst [vmem:[#allocation10_spill] sm:$0xff] %v5231_v27  ;;  %v1291_v56 = vadd.f32 %v1290_v34, %v5135_v36  ;;  %v1754_v36 = vsel %vm1376_vm5, %v1751_v13, %v1753_v20 }
 0x1a1   : > { %5922 = vst [vmem:[#allocation11_spill] sm:$0xff] %v5233_v12 }
 0x1a2   : > { %3885 = vmatmul.msk.bf16.gmra.mxu1 %vm1070_vm3, %v4440_v42  ;;  %v1572_v59 = vadd.f32 %v1488_v41, %v1291_v56  ;;  %v2198_v42 = vsel %vm2091_vm6, %v2188_v2, %v2197_v49  ;;  %v4281_v41 = vld [vmem:[#allocation2 + $0x68] sm:$0xff] }
 0x1a3   : > { %v2200_v61 = vshrl.u32 %v4281_v41, 16 }
 0x1a4   : > { %v1490_v7 = vpop.f32.mrf.mxu2 }
 0x1a5   : > { %v1840_v35 = vpop.f32.mrf.mxu3 }
 0x1a6   : > { %v5237_v31 = vadd.f32 %v1840_v35, %v1571_v39  ;;  %v2202_v35 = vrot.slane %v2200_v61, 1 }
 0x1a7   : > { %v1292_v9 = vpop.f32.mrf.mxu1  ;;  %v5239_v27 = vpop.f32.mrf.mxu0 }
 0x1a8   : > { %v1293_v12 = vadd.f32 %v1292_v9, %v5149_v32  ;;  %v2203_v32 = vshll.u32 %v4281_v41, 16 }
 0x1a9   : > { %3905 = vmatmul.msk.bf16.gmra.mxu2 %vm1070_vm3, %v1401_v19 }
 0x1aa   : > { %3995 = vmatmul.msk.bf16.gmra.mxu3 %vm1070_vm3, %v1754_v36  ;;  %4082 = vmatmul.msk.bf16.gmra.mxu0 %vm1070_vm3, %v2198_v42  ;;  %v1573_v39 = vadd.f32 %v1490_v7, %v1293_v12  ;;  %v2205_v9 = vrot.slane %v2203_v32, 2  ;;  %v1755_v12 = vrot.slane %v4264_v38, 1  ;;  %v1402_v7 = vrot.slane %v4881_v57, 1 }
 0x1ac   : > { %v1493_v34 = vpop.f32.mrf.mxu2  ;;  %v2206_v42 = vor.u32 %v2205_v9, %v2202_v35  ;;  %v1403_v61 = vsel %vm1376_vm5, %v1400_v63, %v1402_v7  ;;  %v4265_v35 = vld [vmem:[#allocation2 + $0x70] sm:$0xff] }
 0x1ad   : > { %v1843_v62 = vpop.f32.mrf.mxu3 }
 0x1ae   : > { %v5248_v56 = vadd.f32 %v1843_v62, %v1572_v59 }
 0x1af   : > { %v1295_v58 = vpop.f32.mrf.mxu1  ;;  %v5250_v13 = vpop.f32.mrf.mxu0 }
 0x1b0   : > { %5923 = vst [vmem:[#allocation12_spill] sm:$0xff] %v5250_v13  ;;  %v1296_v21 = vadd.f32 %v1295_v58, %v5160_v53  ;;  %v1756_v53 = vsel %vm1376_vm5, %v1753_v20, %v1755_v12 }
 0x1b2   : > { %3886 = vmatmul.msk.bf16.gmra.mxu1 %vm1070_vm3, %v4441_v46  ;;  %v1574_v2 = vadd.f32 %v1493_v34, %v1296_v21  ;;  %v2207_v46 = vsel %vm2091_vm6, %v2197_v49, %v2206_v42  ;;  %v4282_v34 = vld [vmem:[#allocation2 + $0x70] sm:$0xff] }
 0x1b3   : > { %v2209_v21 = vshrl.u32 %v4282_v34, 16 }
 0x1b4   : > { %v1495_v19 = vpop.f32.mrf.mxu2 }
 0x1b5   : > { %v1845_v36 = vpop.f32.mrf.mxu3  ;;  %v2211_v9 = vrot.slane %v2209_v21, 1 }
 0x1b6   : > { %v5255_v59 = vadd.f32 %v1845_v36, %v1573_v39 }
 0x1b7   : > { %v1297_v41 = vpop.f32.mrf.mxu1  ;;  %v5257_v62 = vpop.f32.mrf.mxu0 }
 0x1b8   : > { %v1298_v13 = vadd.f32 %v1297_v41, %v5174_v4  ;;  %v2212_v4 = vshll.u32 %v4282_v34, 16 }
 0x1b9   : > { %3906 = vmatmul.msk.bf16.gmra.mxu2 %vm1070_vm3, %v1403_v61 }
 0x1ba   : > { %3996 = vmatmul.msk.bf16.gmra.mxu3 %vm1070_vm3, %v1756_v53  ;;  %4083 = vmatmul.msk.bf16.gmra.mxu0 %vm1070_vm3, %v2207_v46  ;;  %v1575_v57 = vadd.f32 %v1495_v19, %v1298_v13  ;;  %v2214_v36 = vrot.slane %v2212_v4, 2  ;;  %v1757_v13 = vrot.slane %v4265_v35, 1  ;;  %v1404_v19 = vrot.slane %v4946_v17, 1 }
 0x1bc   : > { %v1498_v32 = vpop.f32.mrf.mxu2  ;;  %v2215_v61 = vor.u32 %v2214_v36, %v2211_v9  ;;  %v1405_v21 = vsel %vm1376_vm5, %v1402_v7, %v1404_v19  ;;  %v4443_v36 = vld [vmem:[#allocation2 + $0x68] sm:$0xff] }
 0x1bd   : > { %v1848_v39 = vpop.f32.mrf.mxu3 }
 0x1be   : > { %v5266_v58 = vadd.f32 %v1848_v39, %v1574_v2 }
 0x1bf   : > { %v1300_v38 = vpop.f32.mrf.mxu1  ;;  %v5268_v20 = vpop.f32.mrf.mxu0 }
 0x1c0   : > { %v1301_v63 = vadd.f32 %v1300_v38, %v5185_v1  ;;  %v1758_v1 = vsel %vm1376_vm5, %v1755_v12, %v1757_v13 }
 0x1c2   : > { %3887 = vmatmul.msk.bf16.gmra.mxu1 %vm1070_vm3, %v4442_v45  ;;  %v1576_v49 = vadd.f32 %v1498_v32, %v1301_v63  ;;  %v2216_v45 = vsel %vm2091_vm6, %v2206_v42, %v2215_v61  ;;  %v4283_v32 = vld [vmem:[#allocation2 + $0x78] sm:$0xff] }
 0x1c3   : > { %v2218_v12 = vshrl.u32 %v4283_v32, 16  ;;  %v2221_v9 = vshll.u32 %v4283_v32, 16 }
 0x1c4   : > { %v1500_v53 = vpop.f32.mrf.mxu2 }
 0x1c5   : > { %v1850_v41 = vpop.f32.mrf.mxu3 }
 0x1c6   : > { %v5273_v2 = vadd.f32 %v1850_v41, %v1575_v57  ;;  %v4266_v41 = vld [vmem:[#allocation2 + $0x78] sm:$0xff] }
 0x1c7   : > { %v1302_v46 = vpop.f32.mrf.mxu1  ;;  %v5275_v34 = vpop.f32.mrf.mxu0 }
 0x1c8   : > { %v1303_v39 = vadd.f32 %v1302_v46, %v5197_v60  ;;  %v2220_v46 = vrot.slane %v2218_v12, 1 }
 0x1c9   : > { %3907 = vmatmul.msk.bf16.gmra.mxu2 %vm1070_vm3, %v1405_v21 }
 0x1ca   : > { %3997 = vmatmul.msk.bf16.gmra.mxu3 %vm1070_vm3, %v1758_v1  ;;  %4084 = vmatmul.msk.bf16.gmra.mxu0 %vm1070_vm3, %v2216_v45  ;;  %v1577_v57 = vadd.f32 %v1500_v53, %v1303_v39  ;;  %v2223_v1 = vrot.slane %v2221_v9, 2  ;;  %v1406_v45 = vrot.slane %v4910_v24, 1 }
 0x1cc   : > { %v1503_v38 = vpop.f32.mrf.mxu2  ;;  %v2224_v32 = vor.u32 %v2223_v1, %v2220_v46  ;;  %v4267_v1 = vld [vmem:[#allocation2 + $0x80] sm:$0xff] }
 0x1cd   : > { %v1853_v4 = vpop.f32.mrf.mxu3 }
 0x1ce   : > { %v5284_v63 = vadd.f32 %v1853_v4, %v1576_v49  ;;  %v1759_v49 = vrot.slane %v4266_v41, 1 }
 0x1cf   : > { %v1305_v35 = vpop.f32.mrf.mxu1  ;;  %v5286_v60 = vpop.f32.mrf.mxu0 }
 0x1d0   : > { %5924 = vst [vmem:[#allocation13_spill] sm:$0xff] %v5286_v60  ;;  %v1306_v7 = vadd.f32 %v1305_v35, %v5086_v15  ;;  %v1760_v35 = vsel %vm1376_vm5, %v1757_v13, %v1759_v49 }
 0x1d2   : > { %3888 = vmatmul.msk.bf16.gmra.mxu1 %vm1070_vm3, %v4443_v36  ;;  %v1578_v42 = vadd.f32 %v1503_v38, %v1306_v7  ;;  %v1407_v36 = vsel %vm1376_vm5, %v1404_v19, %v1406_v45  ;;  %v4284_v38 = vld [vmem:[#allocation2 + $0x80] sm:$0xff] }
 0x1d3   : > { %v2227_v41 = vshrl.u32 %v4284_v38, 16 }
 0x1d4   : > { %v1505_v39 = vpop.f32.mrf.mxu2 }
 0x1d5   : > { %v1855_v53 = vpop.f32.mrf.mxu3 }
 0x1d6   : > { %v5290_v21 = vadd.f32 %v1855_v53, %v1577_v57  ;;  %v2225_v57 = vsel %vm2091_vm6, %v2215_v61, %v2224_v32  ;;  %v2229_v53 = vrot.slane %v2227_v41, 1 }
 0x1d7   : > { %v1307_v4 = vpop.f32.mrf.mxu1  ;;  %v5293_v60 = vpop.f32.mrf.mxu0 }
 0x1d8   : > { %5925 = vst [vmem:[#allocation14_spill] sm:$0xff] %v5293_v60  ;;  %v1308_v15 = vadd.f32 %v1307_v4, %v5094_v23  ;;  %v2230_v23 = vshll.u32 %v4284_v38, 16 }
 0x1d9   : > { %3908 = vmatmul.msk.bf16.gmra.mxu2 %vm1070_vm3, %v1407_v36  ;;  %v4444_v36 = vld [vmem:[#allocation2 + $0x80] sm:$0xff] }
 0x1da   : > { %3998 = vmatmul.msk.bf16.gmra.mxu3 %vm1070_vm3, %v1760_v35  ;;  %4085 = vmatmul.msk.bf16.gmra.mxu0 %vm1070_vm3, %v2225_v57  ;;  %v1579_v24 = vadd.f32 %v1505_v39, %v1308_v15  ;;  %v2232_v4 = vrot.slane %v2230_v23, 2  ;;  %v1761_v15 = vrot.slane %v4267_v1, 1 }
 0x1dc   : > { %v1508_v9 = vpop.f32.mrf.mxu2  ;;  %v2233_v38 = vor.u32 %v2232_v4, %v2229_v53  ;;  %v1762_v41 = vsel %vm1376_vm5, %v1759_v49, %v1761_v15 }
 0x1dd   : > { %v1858_v12 = vpop.f32.mrf.mxu3 }
 0x1de   : > { %v5302_v7 = vadd.f32 %v1858_v12, %v1578_v42  ;;  %v1408_v42 = vrot.slane %v4444_v36, 1 }
 0x1df   : > { %v1310_v46 = vpop.f32.mrf.mxu1  ;;  %v5304_v13 = vpop.f32.mrf.mxu0 }
 0x1e0   : > { %v1311_v19 = vadd.f32 %v1310_v46, %v5107_v37  ;;  %v1409_v23 = vsel %vm1376_vm5, %v1406_v45, %v1408_v42 }
 0x1e2   : > { %3889 = vmatmul.msk.bf16.gmra.mxu1 %vm1070_vm3, %v4946_v17  ;;  %v1580_v61 = vadd.f32 %v1508_v9, %v1311_v19  ;;  %v2234_v17 = vsel %vm2091_vm6, %v2224_v32, %v2233_v38  ;;  %v4285_v9 = vld [vmem:[#allocation2 + $0x88] sm:$0xff] }
 0x1e3   : > { %v2236_v53 = vshrl.u32 %v4285_v9, 16 }
 0x1e4   : > { %v1510_v39 = vpop.f32.mrf.mxu2 }
 0x1e5   : > { %v1860_v35 = vpop.f32.mrf.mxu3 }
 0x1e6   : > { %v5309_v57 = vadd.f32 %v1860_v35, %v1579_v24  ;;  %v4268_v35 = vld [vmem:[#allocation2 + $0x88] sm:$0xff] }
 0x1e7   : > { %v1312_v12 = vpop.f32.mrf.mxu1  ;;  %v5311_v60 = vpop.f32.mrf.mxu0 }
 0x1e8   : > { %5926 = vst [vmem:[#allocation15_spill] sm:$0xff] %v5311_v60  ;;  %v1313_v37 = vadd.f32 %v1312_v12, %v5116_v54  ;;  %v2239_v54 = vshll.u32 %v4285_v9, 16  ;;  %v2238_v12 = vrot.slane %v2236_v53, 1 }
 0x1e9   : > { %3909 = vmatmul.msk.bf16.gmra.mxu2 %vm1070_vm3, %v1409_v23  ;;  %v4445_v23 = vld [vmem:[#allocation2 + $0x78] sm:$0xff] }
 0x1ea   : > { %3999 = vmatmul.msk.bf16.gmra.mxu3 %vm1070_vm3, %v1762_v41  ;;  %4086 = vmatmul.msk.bf16.gmra.mxu0 %vm1070_vm3, %v2234_v17  ;;  %v1581_v24 = vadd.f32 %v1510_v39, %v1313_v37  ;;  %v2241_v41 = vrot.slane %v2239_v54, 2  ;;  %v1763_v37 = vrot.slane %v4268_v35, 1 }
 0x1ec   : > { %v1513_v19 = vpop.f32.mrf.mxu2  ;;  %v2242_v9 = vor.u32 %v2241_v41, %v2238_v12  ;;  %v1764_v53 = vsel %vm1376_vm5, %v1761_v15, %v1763_v37  ;;  %v4269_v41 = vld [vmem:[#allocation2 + $0x90] sm:$0xff] }
 0x1ed   : > { %v1863_v46 = vpop.f32.mrf.mxu3 }
 0x1ee   : > { %v5320_v1 = vadd.f32 %v1863_v46, %v1580_v61  ;;  %v1410_v61 = vrot.slane %v4989_v55, 1 }
 0x1ef   : > { %v1315_v4 = vpop.f32.mrf.mxu1  ;;  %v5322_v49 = vpop.f32.mrf.mxu0 }
 0x1f0   : > { %5927 = vst [vmem:[#allocation16_spill] sm:$0xff] %v5320_v1  ;;  %v1316_v45 = vadd.f32 %v1315_v4, %v5128_v0  ;;  %v1411_v54 = vsel %vm1376_vm5, %v1408_v42, %v1410_v61  ;;  %v4286_v4 = vld [vmem:[#allocation2 + $0x90] sm:$0xff] }
 0x1f1   : > { %v2245_v12 = vshrl.u32 %v4286_v4, 16 }
 0x1f2   : > { %3890 = vmatmul.msk.bf16.gmra.mxu1 %vm1070_vm3, %v4445_v23  ;;  %v1582_v32 = vadd.f32 %v1513_v19, %v1316_v45  ;;  %v2243_v19 = vsel %vm2091_vm6, %v2233_v38, %v2242_v9 }
 0x1f3   : > { %v2247_v23 = vrot.slane %v2245_v12, 1  ;;  %v2686_v12 = vld [vmem:[#allocation2 + $0x10] sm:$0xc] }
 0x1f4   : > { %v1515_v39 = vpop.f32.mrf.mxu2 }
 0x1f5   : > { %v1865_v17 = vpop.f32.mrf.mxu3 }
 0x1f6   : > { %v5327_v46 = vadd.f32 %v1865_v17, %v1581_v24 }
 0x1f7   : > { %v1317_v60 = vpop.f32.mrf.mxu1  ;;  %v5329_v1 = vpop.f32.mrf.mxu0 }
 0x1f8   : > { %v1318_v0 = vadd.f32 %v1317_v60, %v5137_v18  ;;  %v2248_v18 = vshll.u32 %v4286_v4, 16 }
 0x1f9   : > { %3910 = vmatmul.msk.bf16.gmra.mxu2 %vm1070_vm3, %v1411_v54 }
 0x1fa   : > { %4000 = vmatmul.msk.bf16.gmra.mxu3 %vm1070_vm3, %v1764_v53  ;;  %4087 = vmatmul.msk.bf16.gmra.mxu0 %vm1070_vm3, %v2243_v19  ;;  %v1583_v55 = vadd.f32 %v1515_v39, %v1318_v0  ;;  %v2250_v17 = vrot.slane %v2248_v18, 2  ;;  %v1765_v39 = vrot.slane %v4269_v41, 1  ;;  %v4419_v41 = vld [vmem:[#allocation2 + $0x88] sm:$0x70] }
 0x1fc   : > { %v1518_v45 = vpop.f32.mrf.mxu2 }
 0x1fd   : > { %v1868_v24 = vpop.f32.mrf.mxu3 }
 0x1fe   : > { %v5338_v35 = vadd.f32 %v1868_v24, %v1582_v32  ;;  %v2251_v32 = vor.u32 %v2250_v17, %v2247_v23  ;;  %v2762_v23 = vunpack.c.l.b16 %v2686_v12 }
 0x1ff   : > { %v1320_v60 = vpop.f32.mrf.mxu1  ;;  %v5340_v15 = vpop.f32.mrf.mxu0 }
 0x200   : > { %5928 = vst [vmem:[#allocation17_spill] sm:$0xff] %v5340_v15  ;;  %v1321_v42 = vadd.f32 %v1320_v60, %v5151_v43  ;;  %v1766_v15 = vsel %vm1376_vm5, %v1763_v37, %v1765_v39  ;;  %v1995_v43 = vld [vmem:[#allocation2 + $0x98] sm:$0x1] }
 0x202   : > { %3891 = vmatmul.msk.bf16.gmra.mxu1 %vm1070_vm3, %v4444_v36  ;;  %v1584_v38 = vadd.f32 %v1518_v45, %v1321_v42  ;;  %v2252_v36 = vsel %vm2091_vm6, %v2242_v9, %v2251_v32 }
 0x204   : > { %v1520_v54 = vpop.f32.mrf.mxu2 }
 0x205   : > { %v1870_v53 = vpop.f32.mrf.mxu3 }
 0x206   : > { %v5344_v0 = vadd.f32 %v1870_v53, %v1583_v55  ;;  %v2071_v55 = vunpack.c.l.b16 %v1995_v43 }
 0x207   : > { %v1322_v19 = vpop.f32.mrf.mxu1  ;;  %v5346_v24 = vpop.f32.mrf.mxu0 }
 0x208   : > { %5929 = vst [vmem:[#allocation18_spill] sm:$0xff] %v5346_v24  ;;  %v1323_v4 = vadd.f32 %v1322_v19, %v5162_v10  ;;  %v2687_v10 = vld [vmem:[#allocation2 + $0x14] sm:$0xf]  ;;  %v5358_v53 = vpack.c.b16 %v2071_v55, %v2071_v55  ;;  %v5361_v19 = vld [vmem:[#allocation2 + $0x18] sm:$0xff] }
 0x209   : > { %3911 = vmatmul.msk.bf16.gmra.mxu2 %vm1070_vm3, %v1410_v61 }
 0x20a   : > { %4001 = vmatmul.msk.bf16.gmra.mxu3 %vm1070_vm3, %v1766_v15  ;;  %4088 = vmatmul.msk.bf16.gmra.mxu0 %vm1070_vm3, %v2252_v36  ;;  %v1585_v45 = vadd.f32 %v1520_v54, %v1323_v4  ;;  %v4414_v15 = vld [vmem:[#allocation2 + $0x88] sm:$0xf]   ;;  %5932 = vst [vmem:[#allocation21_spill] sm:$0xff] %v5358_v53  ;;  %v2763_v54 = vunpack.c.l.b16 %v2687_v10  ;;  %v2254_v43 = vshll.u32 %v5358_v53, 16 }
 0x20b   : > { %v4415_v9 = vor.u32 %v4419_v41, %v4414_v15  ;;  %v5934_v15 = vunpack.c.l.b16 %v5026_v3 }
 0x20c   : > { %v1523_v60 = vpop.f32.mrf.mxu2  ;;  %v2799_v4 = vpack.c.b16 %v2763_v54, %v2762_v23  ;;  %v2256_v41 = vrot.slane %v2254_v43, 2 }
 0x20d   : > { %v1873_v18 = vpop.f32.mrf.mxu3 }
 0x20e   : > { %v5354_v42 = vadd.f32 %v1873_v18, %v1584_v38  ;;  %v2819_v18 = vrot.slane %v5361_v19, 2  ;;  %v2818_v55 = vrot.slane %v2799_v4, 2 }
 0x20f   : > { %v1325_v37 = vpop.f32.mrf.mxu1  ;;  %v5356_v17 = vpop.f32.mrf.mxu0 }
 0x210   : > { %5930 = vst [vmem:[#allocation19_spill] sm:$0xff] %v5354_v42  ;;  %v1326_v61 = vadd.f32 %v1325_v37, %v5176_v8  ;;  %v2820_v23 = vsel %vm2456_vm7, %v2818_v55, %v2819_v18  ;;  %v3058_v55 = vshll.u32 %v2799_v4, 16 }
 0x211   : > { %5931 = vst [vmem:[#allocation20_spill] sm:$0xff] %v5356_v17  ;;  %v2450_v17 = vld [vmem:[#allocation2 + $0x8] sm:$0xc] }
 0x212   : > { %3892 = vmatmul.msk.bf16.gmra.mxu1 %vm1070_vm3, %v4415_v9  ;;  %v1586_v38 = vadd.f32 %v1523_v60, %v1326_v61  ;;  %v2454_v37 = vunpack.c.l.b16 %v2450_v17  ;;  %v2257_v60 = vsel %vm2091_vm6, %v2251_v32, %v2256_v41  ;;  %v3063_v17 = vshrl.u32 %v5361_v19, 16 }
 0x214   : > { %v1525_v12 = vpop.f32.mrf.mxu2  ;;  %v2455_v61 = vpack.c.b16 %v5934_v15, %v2454_v37  ;;  %v3065_v3 = vrot.slane %v3063_v17, 2  ;;  %v5937_v15 = vrot.slane %v5033_v6, 2  ;;  %v3424_v17 = vrot.slane %v5361_v19, 3 }
 0x215   : > { %v1875_v36 = vpop.f32.mrf.mxu3 }
 0x216   : > { %v5366_v24 = vadd.f32 %v1875_v36, %v1585_v45 }
 0x217   : > { %v1327_v42 = vpop.f32.mrf.mxu1  ;;  %v5368_v8 = vpop.f32.mrf.mxu0 }
 0x218   : > { %5933 = vst [vmem:[#allocation22_spill] sm:$0xff] %v5368_v8  ;;  %v1328_v10 = vadd.f32 %v1327_v42, %v5187_v16  ;;  %v3066_v16 = vshll.u32 %v5361_v19, 16  ;;  %v3416_v42 = vld [vmem:[#allocation2 + $0x10] sm:$0x8] }
 0x219   : > { %4178 = vmatmul.msk.bf16.vlgmr.msra.gmra.mxu2 %vm1070_vm3, %v2820_v23  ;;  %v2457_v23 = vrot.slane %v2455_v61, 2 }
 0x21a   : > { %4002 = vmatmul.msk.bf16.gmra.mxu3 %vm1070_vm3, %v1765_v39  ;;  %4089 = vmatmul.msk.bf16.gmra.mxu0 %vm1070_vm3, %v2257_v60  ;;  %v1587_v45 = vadd.f32 %v1525_v12, %v1328_v10  ;;  %v3055_v39 = vshrl.u32 %v2799_v4, 16  ;;  %v3420_v60 = vunpack.c.l.b16 %v3416_v42  ;;  %v3068_v37 = vrot.slane %v3066_v16, 3  ;;  %v5385_v10 = vld [vmem:[#allocation2 + $0x20] sm:$0xff] }
 0x21b   : > { %v2459_v8 = vsel %vm2456_vm7, %v2457_v23, %v5937_v15  ;;  %v2821_v42 = vrot.slane %v5385_v10, 2  ;;  %v5413_v15 = vld [vmem:[#allocation2 + $0x28] sm:$0xff] }
 0x21c   : > { %v1528_v36 = vpop.f32.mrf.mxu2  ;;  %v3069_v61 = vor.u32 %v3068_v37, %v3065_v3 }
 0x21d   : > { %v1878_v9 = vpop.f32.mrf.mxu3 }
 0x21e   : > { %v5380_v43 = vadd.f32 %v1878_v9, %v1586_v38  ;;  %v3057_v38 = vrot.slane %v3055_v39, 2  ;;  %v3060_v9 = vrot.slane %v3058_v55, 3 }
 0x21f   : > { %v1330_v32 = vpop.f32.mrf.mxu1  ;;  %v5382_v41 = vpop.f32.mrf.mxu0 }
 0x220   : > { %5935 = vst [vmem:[#allocation23_spill] sm:$0xff] %v5380_v43  ;;  %v1331_v12 = vadd.f32 %v1330_v32, %v5071_v48  ;;  %v3421_v43 = vpack.c.b16 %v2763_v54, %v3420_v60  ;;  %v3061_v16 = vor.u32 %v3060_v9, %v3057_v38  ;;  %v2822_v54 = vsel %vm2456_vm7, %v2819_v18, %v2821_v42 }
 0x221   : > { %5936 = vst [vmem:[#allocation24_spill] sm:$0xff] %v5382_v41 }
 0x222   : > { %4091 = vmatmul.msk.bf16.vlgmr.msra.gmra.mxu1 %vm1070_vm3, %v2459_v8  ;;  %v1588_v4 = vadd.f32 %v1528_v36, %v1331_v12  ;;  %v3423_v23 = vrot.slane %v3421_v43, 3  ;;  %v3070_v36 = vsel %vm3053_vm8, %v3061_v16, %v3069_v61  ;;  %v3072_v43 = vshrl.u32 %v5385_v10, 16 }
 0x224   : > { %v1530_v41 = vpop.f32.mrf.mxu2  ;;  %v3074_v3 = vrot.slane %v3072_v43, 2  ;;  %v3081_v43 = vshrl.u32 %v5413_v15, 16 }
 0x225   : > { %v1880_v53 = vpop.f32.mrf.mxu3 }
 0x226   : > { %v5392_v48 = vadd.f32 %v1880_v53, %v1587_v45  ;;  %v3425_v53 = vsel %vm3422_vm9, %v3423_v23, %v3424_v17  ;;  %v2823_v23 = vrot.slane %v5413_v15, 2 }
 0x227   : > { %v1332_v32 = vpop.f32.mrf.mxu1  ;;  %v5395_v6 = vpop.f32.mrf.mxu0 }
 0x228   : > { %v1333_v8 = vadd.f32 %v1332_v32, %v5088_v40  ;;  %v3075_v40 = vshll.u32 %v5385_v10, 16 }
 0x229   : > { %4179 = vmatmul.msk.bf16.gmra.mxu2 %vm1070_vm3, %v2822_v54 }
 0x22a   : > { %4197 = vmatmul.msk.bf16.vlgmr.msra.gmra.mxu3 %vm1070_vm3, %v3070_v36  ;;  %4216 = vmatmul.msk.bf16.vlgmr.msra.gmra.mxu0 %vm1070_vm3, %v3425_v53  ;;  %v1589_v19 = vadd.f32 %v1530_v41, %v1333_v8  ;;  %v3077_v37 = vrot.slane %v3075_v40, 3 }
 0x22c   : > { %v1533_v39 = vpop.f32.mrf.mxu2  ;;  %v3078_v16 = vor.u32 %v3077_v37, %v3074_v3 }
 0x22d   : > { %v1883_v45 = vpop.f32.mrf.mxu3 }
 0x22e   : > { %v5406_v55 = vadd.f32 %v1883_v45, %v1588_v4  ;;  %v3426_v4 = vrot.slane %v5385_v10, 3  ;;  %v3079_v54 = vsel %vm3053_vm8, %v3069_v61, %v3078_v16 }
 0x22f   : > { %v1335_v60 = vpop.f32.mrf.mxu1  ;;  %v5408_v18 = vpop.f32.mrf.mxu0 }
 0x230   : > { %v1336_v12 = vadd.f32 %v1335_v60, %v5096_v25  ;;  %v3427_v53 = vsel %vm3422_vm9, %v3424_v17, %v3426_v4  ;;  %v5435_v60 = vld [vmem:[#allocation2 + $0x30] sm:$0xff]  ;;  %v3083_v17 = vrot.slane %v3081_v43, 2 }
 0x232   : > { %4092 = vmatmul.msk.bf16.gmra.mxu1 %vm1070_vm3, %v5057_v29  ;;  %v1590_v41 = vadd.f32 %v1533_v39, %v1336_v12  ;;  %v2824_v29 = vsel %vm2456_vm7, %v2821_v42, %v2823_v23 }
 0x234   : > { %v1535_v9 = vpop.f32.mrf.mxu2 }
 0x235   : > { %v1885_v38 = vpop.f32.mrf.mxu3 }
 0x236   : > { %v5415_v32 = vadd.f32 %v1885_v38, %v1589_v19  ;;  %v2825_v38 = vrot.slane %v5435_v60, 2 }
 0x237   : > { %v1337_v8 = vpop.f32.mrf.mxu1  ;;  %v5419_v36 = vpop.f32.mrf.mxu0 }
 0x238   : > { %v1338_v25 = vadd.f32 %v1337_v8, %v5109_v47  ;;  %v3084_v47 = vshll.u32 %v5413_v15, 16 }
 0x239   : > { %4180 = vmatmul.msk.bf16.gmra.mxu2 %vm1070_vm3, %v2824_v29 }
 0x23a   : > { %4198 = vmatmul.msk.bf16.gmra.mxu3 %vm1070_vm3, %v3079_v54  ;;  %4217 = vmatmul.msk.bf16.gmra.mxu0 %vm1070_vm3, %v3427_v53  ;;  %v1591_v10 = vadd.f32 %v1535_v9, %v1338_v25  ;;  %v3086_v12 = vrot.slane %v3084_v47, 3  ;;  %v3090_v47 = vshrl.u32 %v5435_v60, 16 }
 0x23c   : > { %v1538_v45 = vpop.f32.mrf.mxu2  ;;  %v3087_v8 = vor.u32 %v3086_v12, %v3083_v17  ;;  %v3092_v12 = vrot.slane %v3090_v47, 2 }
 0x23d   : > { %v1888_v19 = vpop.f32.mrf.mxu3 }
 0x23e   : > { %v5428_v39 = vadd.f32 %v1888_v19, %v1590_v41  ;;  %v3088_v53 = vsel %vm3053_vm8, %v3078_v16, %v3087_v8 }
 0x23f   : > { %v1340_v61 = vpop.f32.mrf.mxu1  ;;  %v5432_v40 = vpop.f32.mrf.mxu0 }
 0x240   : > { %v1341_v42 = vadd.f32 %v1340_v61, %v5123_v14  ;;  %v3428_v14 = vrot.slane %v5413_v15, 3  ;;  %v3093_v15 = vshll.u32 %v5435_v60, 16 }
 0x242   : > { %4093 = vmatmul.msk.bf16.gmra.mxu1 %vm1070_vm3, %v5078_v5  ;;  %v1592_v3 = vadd.f32 %v1538_v45, %v1341_v42  ;;  %v2826_v5 = vsel %vm2456_vm7, %v2823_v23, %v2825_v38  ;;  %v3429_v19 = vsel %vm3422_vm9, %v3426_v4, %v3428_v14  ;;  %v4446_v23 = vld [vmem:[#allocation2 + $0x28] sm:$0xff]  ;;  %v3095_v4 = vrot.slane %v3093_v15, 3 }
 0x243   : > { %v2464_v42 = vrot.slane %v4446_v23, 2 }
 0x244   : > { %v1540_v41 = vpop.f32.mrf.mxu2 }
 0x245   : > { %v1890_v37 = vpop.f32.mrf.mxu3 }
 0x246   : > { %v5440_v9 = vadd.f32 %v1890_v37, %v1591_v10  ;;  %v5459_v37 = vld [vmem:[#allocation2 + $0x38] sm:$0xff] }
 0x247   : > { %v1342_v25 = vpop.f32.mrf.mxu1  ;;  %v5442_v54 = vpop.f32.mrf.mxu0 }
 0x248   : > { %v1343_v29 = vadd.f32 %v1342_v25, %v5132_v28 }
 0x249   : > { %4181 = vmatmul.msk.bf16.gmra.mxu2 %vm1070_vm3, %v2826_v5  ;;  %v3096_v5 = vor.u32 %v3095_v4, %v3092_v12  ;;  %v3099_v12 = vshrl.u32 %v5459_v37, 16  ;;  %v3102_v4 = vshll.u32 %v5459_v37, 16 }
 0x24a   : > { %4199 = vmatmul.msk.bf16.gmra.mxu3 %vm1070_vm3, %v3088_v53  ;;  %4218 = vmatmul.msk.bf16.gmra.mxu0 %vm1070_vm3, %v3429_v19  ;;  %v1593_v10 = vadd.f32 %v1540_v41, %v1343_v29  ;;  %v5938_v41 = vrot.slane %v5064_v33, 2  ;;  %v2827_v19 = vrot.slane %v5459_v37, 2 }
 0x24b   : > { %v3097_v33 = vsel %vm3053_vm8, %v3087_v8, %v3096_v5  ;;  %v4447_v8 = vld [vmem:[#allocation2 + $0x30] sm:$0xff] }
 0x24c   : > { %v1543_v43 = vpop.f32.mrf.mxu2  ;;  %v2465_v25 = vsel %vm2456_vm7, %v5938_v41, %v2464_v42  ;;  %v2828_v23 = vsel %vm2456_vm7, %v2825_v38, %v2827_v19  ;;  %v2466_v41 = vrot.slane %v4447_v8, 2 }
 0x24d   : > { %v1893_v45 = vpop.f32.mrf.mxu3 }
 0x24e   : > { %v5454_v28 = vadd.f32 %v1893_v45, %v1592_v3 }
 0x24f   : > { %v1345_v16 = vpop.f32.mrf.mxu1  ;;  %v5456_v61 = vpop.f32.mrf.mxu0 }
 0x250   : > { %v1346_v17 = vadd.f32 %v1345_v16, %v5147_v30  ;;  %v3430_v30 = vrot.slane %v5435_v60, 3 }
 0x252   : > { %4094 = vmatmul.msk.bf16.gmra.mxu1 %vm1070_vm3, %v2465_v25  ;;  %v1594_v29 = vadd.f32 %v1543_v43, %v1346_v17  ;;  %v3431_v43 = vsel %vm3422_vm9, %v3428_v14, %v3430_v30  ;;  %v3104_v14 = vrot.slane %v3102_v4, 3 }
 0x254   : > { %v1545_v53 = vpop.f32.mrf.mxu2 }
 0x255   : > { %v1895_v3 = vpop.f32.mrf.mxu3 }
 0x256   : > { %v5466_v45 = vadd.f32 %v1895_v3, %v1593_v10 }
 0x257   : > { %v1347_v47 = vpop.f32.mrf.mxu1  ;;  %v5469_v15 = vpop.f32.mrf.mxu0 }
 0x258   : > { %5939 = vst [vmem:[#allocation25_spill] sm:$0xff] %v5469_v15  ;;  %v1348_v16 = vadd.f32 %v1347_v47, %v5157_v52  ;;  %v3101_v47 = vrot.slane %v3099_v12, 2 }
 0x259   : > { %4182 = vmatmul.msk.bf16.gmra.mxu2 %vm1070_vm3, %v2828_v23 }
 0x25a   : > { %4200 = vmatmul.msk.bf16.gmra.mxu3 %vm1070_vm3, %v3097_v33  ;;  %4219 = vmatmul.msk.bf16.gmra.mxu0 %vm1070_vm3, %v3431_v43  ;;  %v1595_v10 = vadd.f32 %v1545_v53, %v1348_v16  ;;  %v5485_v33 = vld [vmem:[#allocation2 + $0x40] sm:$0xff]  ;;  %v2467_v53 = vsel %vm2456_vm7, %v2464_v42, %v2466_v41 }
 0x25c   : > { %v1548_v60 = vpop.f32.mrf.mxu2 }
 0x25d   : > { %v1898_v17 = vpop.f32.mrf.mxu3 }
 0x25e   : > { %v5480_v52 = vadd.f32 %v1898_v17, %v1594_v29  ;;  %v3105_v29 = vor.u32 %v3104_v14, %v3101_v47  ;;  %v2829_v17 = vrot.slane %v5485_v33, 2  ;;  %v3111_v47 = vshll.u32 %v5485_v33, 16 }
 0x25f   : > { %v1350_v38 = vpop.f32.mrf.mxu1  ;;  %v5482_v25 = vpop.f32.mrf.mxu0 }
 0x260   : > { %5940 = vst [vmem:[#allocation26_spill] sm:$0xff] %v5482_v25  ;;  %v1351_v3 = vadd.f32 %v1350_v38, %v5172_v51  ;;  %v3432_v25 = vrot.slane %v5459_v37, 3  ;;  %v3106_v4 = vsel %vm3053_vm8, %v3096_v5, %v3105_v29  ;;  %v2830_v42 = vsel %vm2456_vm7, %v2827_v19, %v2829_v17  ;;  %v4448_v5 = vld [vmem:[#allocation2 + $0x38] sm:$0xff] }
 0x262   : > { %4095 = vmatmul.msk.bf16.gmra.mxu1 %vm1070_vm3, %v2467_v53  ;;  %v1596_v16 = vadd.f32 %v1548_v60, %v1351_v3  ;;  %v3433_v60 = vsel %vm3422_vm9, %v3430_v30, %v3432_v25  ;;  %v3108_v3 = vshrl.u32 %v5485_v33, 16  ;;  %v3113_v30 = vrot.slane %v3111_v47, 3 }
 0x264   : > { %v1550_v43 = vpop.f32.mrf.mxu2 }
 0x265   : > { %v1900_v23 = vpop.f32.mrf.mxu3 }
 0x266   : > { %v5490_v8 = vadd.f32 %v1900_v23, %v1595_v10  ;;  %v3110_v23 = vrot.slane %v3108_v3, 2 }
 0x267   : > { %v1352_v15 = vpop.f32.mrf.mxu1  ;;  %v5493_v51 = vpop.f32.mrf.mxu0 }
 0x268   : > { %5941 = vst [vmem:[#allocation27_spill] sm:$0xff] %v5490_v8  ;;  %v1353_v12 = vadd.f32 %v1352_v15, %v5182_v11  ;;  %v2468_v15 = vrot.slane %v4448_v5, 2 }
 0x269   : > { %5942 = vst [vmem:[#allocation28_spill] sm:$0xff] %v5493_v51  ;;  %4183 = vmatmul.msk.bf16.gmra.mxu2 %vm1070_vm3, %v2830_v42 }
 0x26a   : > { %4201 = vmatmul.msk.bf16.gmra.mxu3 %vm1070_vm3, %v3106_v4  ;;  %4220 = vmatmul.msk.bf16.gmra.mxu0 %vm1070_vm3, %v3433_v60  ;;  %v1597_v10 = vadd.f32 %v1550_v43, %v1353_v12  ;;  %v5509_v4 = vld [vmem:[#allocation2 + $0x48] sm:$0xff]  ;;  %v2469_v43 = vsel %vm2456_vm7, %v2466_v41, %v2468_v15 }
 0x26c   : > { %v1553_v37 = vpop.f32.mrf.mxu2 }
 0x26d   : > { %v1903_v38 = vpop.f32.mrf.mxu3 }
 0x26e   : > { %v5504_v11 = vadd.f32 %v1903_v38, %v1596_v16  ;;  %v3114_v16 = vor.u32 %v3113_v30, %v3110_v23  ;;  %v2831_v38 = vrot.slane %v5509_v4, 2  ;;  %v3120_v23 = vshll.u32 %v5509_v4, 16 }
 0x26f   : > { %v1355_v19 = vpop.f32.mrf.mxu1  ;;  %v5506_v14 = vpop.f32.mrf.mxu0 }
 0x270   : > { %5943 = vst [vmem:[#allocation29_spill] sm:$0xff] %v5504_v11  ;;  %v1356_v53 = vadd.f32 %v1355_v19, %v5144_v26  ;;  %v3115_v47 = vsel %vm3053_vm8, %v3105_v29, %v3114_v16  ;;  %v2832_v41 = vsel %vm2456_vm7, %v2829_v17, %v2831_v38  ;;  %v4449_v29 = vld [vmem:[#allocation2 + $0x40] sm:$0xff] }
 0x271   : > { %5944 = vst [vmem:[#allocation30_spill] sm:$0xff] %v5506_v14  ;;  %v3434_v14 = vrot.slane %v5485_v33, 3 }
 0x272   : > { %4096 = vmatmul.msk.bf16.gmra.mxu1 %vm1070_vm3, %v2469_v43  ;;  %v1598_v12 = vadd.f32 %v1553_v37, %v1356_v53  ;;  %v3117_v53 = vshrl.u32 %v5509_v4, 16  ;;  %v5949_v43 = vld [vmem:[#allocation3_spill] sm:$0xff] }
 0x273   : > { %v3435_v37 = vsel %vm3422_vm9, %v3432_v25, %v3434_v14  ;;  %v3122_v25 = vrot.slane %v3120_v23, 3 }
 0x274   : > { %v1555_v60 = vpop.f32.mrf.mxu2 }
 0x275   : > { %v1905_v42 = vpop.f32.mrf.mxu3 }
 0x276   : > { %v5514_v5 = vadd.f32 %v1905_v42, %v1597_v10 }
 0x277   : > { %v1357_v51 = vpop.f32.mrf.mxu1  ;;  %v5517_v26 = vpop.f32.mrf.mxu0 }
 0x278   : > { %5945 = vst [vmem:[#allocation31_spill] sm:$0xff] %v5514_v5  ;;  %v1358_v3 = vadd.f32 %v1357_v51, %v5155_v50  ;;  %v2470_v51 = vrot.slane %v4449_v29, 2  ;;  %v3436_v29 = vrot.slane %v5509_v4, 3 }
 0x279   : > { %5946 = vst [vmem:[#allocation32_spill] sm:$0xff] %v5517_v26  ;;  %4184 = vmatmul.msk.bf16.gmra.mxu2 %vm1070_vm3, %v2832_v41 }
 0x27a   : > { %4202 = vmatmul.msk.bf16.gmra.mxu3 %vm1070_vm3, %v3115_v47  ;;  %4221 = vmatmul.msk.bf16.gmra.mxu0 %vm1070_vm3, %v3435_v37  ;;  %v1599_v10 = vadd.f32 %v1555_v60, %v1358_v3  ;;  %v3119_v47 = vrot.slane %v3117_v53, 2  ;;  %v2471_v41 = vsel %vm2456_vm7, %v2468_v15, %v2470_v51  ;;  %v5535_v60 = vld [vmem:[#allocation2 + $0x50] sm:$0xff] }
 0x27b   : > { %v5952_v53 = vld [vmem:[#allocation4_spill] sm:$0xff] }
 0x27c   : > { %v1558_v33 = vpop.f32.mrf.mxu2 }
 0x27d   : > { %v1908_v19 = vpop.f32.mrf.mxu3 }
 0x27e   : > { %v5528_v50 = vadd.f32 %v1908_v19, %v1598_v12  ;;  %v3123_v12 = vor.u32 %v3122_v25, %v3119_v47  ;;  %v4450_v25 = vld [vmem:[#allocation2 + $0x48] sm:$0xff] }
 0x27f   : > { %v1360_v17 = vpop.f32.mrf.mxu1  ;;  %v5530_v30 = vpop.f32.mrf.mxu0 }
 0x280   : > { %5947 = vst [vmem:[#allocation33_spill] sm:$0xff] %v5528_v50  ;;  %v1361_v42 = vadd.f32 %v1360_v17, %v5949_v43  ;;  %v3124_v15 = vsel %vm3053_vm8, %v3114_v16, %v3123_v12  ;;  %v3129_v16 = vshll.u32 %v5535_v60, 16 }
 0x281   : > { %5948 = vst [vmem:[#allocation34_spill] sm:$0xff] %v5530_v30  ;;  %v2833_v30 = vrot.slane %v5535_v60, 2 }
 0x282   : > { %4097 = vmatmul.msk.bf16.gmra.mxu1 %vm1070_vm3, %v2471_v41  ;;  %v1600_v3 = vadd.f32 %v1558_v33, %v1361_v42  ;;  %v2472_v41 = vrot.slane %v4450_v25, 2 }
 0x283   : > { %v2834_v43 = vsel %vm2456_vm7, %v2831_v38, %v2833_v30 }
 0x284   : > { %v1560_v26 = vpop.f32.mrf.mxu2 }
 0x285   : > { %v1910_v37 = vpop.f32.mrf.mxu3 }
 0x286   : > { %v5537_v19 = vadd.f32 %v1910_v37, %v1599_v10  ;;  %v3437_v10 = vsel %vm3422_vm9, %v3434_v14, %v3436_v29  ;;  %v2473_v14 = vsel %vm2456_vm7, %v2470_v51, %v2472_v41 }
 0x287   : > { %v1362_v50 = vpop.f32.mrf.mxu1  ;;  %v5541_v17 = vpop.f32.mrf.mxu0 }
 0x288   : > { %5950 = vst [vmem:[#allocation3_spill] sm:$0xff] %v5537_v19  ;;  %v1363_v23 = vadd.f32 %v1362_v50, %v5952_v53  ;;  %v3126_v50 = vshrl.u32 %v5535_v60, 16  ;;  %v5955_v53 = vld [vmem:[#allocation5_spill] sm:$0xff] }
 0x289   : > { %5951 = vst [vmem:[#allocation35_spill] sm:$0xff] %v5541_v17  ;;  %4185 = vmatmul.msk.bf16.gmra.mxu2 %vm1070_vm3, %v2834_v43  ;;  %v5557_v43 = vld [vmem:[#allocation2 + $0x58] sm:$0xff] }
 0x28a   : > { %4203 = vmatmul.msk.bf16.gmra.mxu3 %vm1070_vm3, %v3124_v15  ;;  %4222 = vmatmul.msk.bf16.gmra.mxu0 %vm1070_vm3, %v3437_v10  ;;  %v1601_v4 = vadd.f32 %v1560_v26, %v1363_v23  ;;  %v3128_v26 = vrot.slane %v3126_v50, 2  ;;  %v2835_v25 = vrot.slane %v5557_v43, 2 }
 0x28c   : > { %v1563_v42 = vpop.f32.mrf.mxu2  ;;  %v2836_v50 = vsel %vm2456_vm7, %v2833_v30, %v2835_v25 }
 0x28d   : > { %v1913_v33 = vpop.f32.mrf.mxu3 }
 0x28e   : > { %v5550_v47 = vadd.f32 %v1913_v33, %v1600_v3  ;;  %v3131_v3 = vrot.slane %v3129_v16, 3 }
 0x28f   : > { %v1365_v38 = vpop.f32.mrf.mxu1  ;;  %v5554_v37 = vpop.f32.mrf.mxu0 }
 0x290   : > { %5953 = vst [vmem:[#allocation4_spill] sm:$0xff] %v5550_v47  ;;  %v1366_v15 = vadd.f32 %v1365_v38, %v5955_v53  ;;  %v3132_v47 = vor.u32 %v3131_v3, %v3128_v26  ;;  %v3438_v38 = vrot.slane %v5535_v60, 3  ;;  %v5958_v53 = vld [vmem:[#allocation6_spill] sm:$0xff]  ;;  %v3138_v60 = vshll.u32 %v5557_v43, 16  ;;  %v4451_v26 = vld [vmem:[#allocation2 + $0x50] sm:$0xff] }
 0x291   : > { %5954 = vst [vmem:[#allocation36_spill] sm:$0xff] %v5554_v37  ;;  %v2474_v3 = vrot.slane %v4451_v26, 2 }
 0x292   : > { %4098 = vmatmul.msk.bf16.gmra.mxu1 %vm1070_vm3, %v2473_v14  ;;  %v1602_v23 = vadd.f32 %v1563_v42, %v1366_v15  ;;  %v3133_v51 = vsel %vm3053_vm8, %v3123_v12, %v3132_v47  ;;  %v3439_v42 = vsel %vm3422_vm9, %v3436_v29, %v3438_v38  ;;  %v3135_v14 = vshrl.u32 %v5557_v43, 16 }
 0x293   : > { %v2475_v29 = vsel %vm2456_vm7, %v2472_v41, %v2474_v3 }
 0x294   : > { %v1565_v33 = vpop.f32.mrf.mxu2 }
 0x295   : > { %v1915_v10 = vpop.f32.mrf.mxu3 }
 0x296   : > { %v5562_v17 = vadd.f32 %v1915_v10, %v1601_v4  ;;  %v3137_v10 = vrot.slane %v3135_v14, 2  ;;  %v3440_v14 = vrot.slane %v5557_v43, 3 }
 0x297   : > { %v1367_v19 = vpop.f32.mrf.mxu1  ;;  %v5564_v37 = vpop.f32.mrf.mxu0 }
 0x298   : > { %5956 = vst [vmem:[#allocation5_spill] sm:$0xff] %v5562_v17  ;;  %v1368_v5 = vadd.f32 %v1367_v19, %v5958_v53  ;;  %v3140_v53 = vrot.slane %v3138_v60, 3 }
 0x299   : > { %5957 = vst [vmem:[#allocation37_spill] sm:$0xff] %v5564_v37  ;;  %4186 = vmatmul.msk.bf16.gmra.mxu2 %vm1070_vm3, %v2836_v50 }
 0x29a   : > { %4204 = vmatmul.msk.bf16.gmra.mxu3 %vm1070_vm3, %v3133_v51  ;;  %4223 = vmatmul.msk.bf16.gmra.mxu0 %vm1070_vm3, %v3439_v42  ;;  %v1603_v4 = vadd.f32 %v1565_v33, %v1368_v5  ;;  %v5580_v51 = vld [vmem:[#allocation2 + $0x60] sm:$0xff]  ;;  %v3141_v50 = vor.u32 %v3140_v53, %v3137_v10  ;;  %v5961_v42 = vld [vmem:[#allocation8_spill] sm:$0xff]  ;;  %v3441_v10 = vsel %vm3422_vm9, %v3438_v38, %v3440_v14  ;;  %v4452_v38 = vld [vmem:[#allocation2 + $0x58] sm:$0xff] }
 0x29b   : > { %v3144_v43 = vshrl.u32 %v5580_v51, 16  ;;  %v3442_v17 = vrot.slane %v5580_v51, 3 }
 0x29c   : > { %v2921_v15 = vpop.f32.mrf.mxu2  ;;  %v3142_v41 = vsel %vm3053_vm8, %v3132_v47, %v3141_v50  ;;  %v2415_v47 = vadd.f32 %v5215_v22, %v5220_v44 }
 0x29d   : > { %v1918_v16 = vpop.f32.mrf.mxu3  ;;  %v3146_v22 = vrot.slane %v3144_v43, 2  ;;  %v5965_v43 = vld [vmem:[#allocation9_spill] sm:$0xff] }
 0x29e   : > { %v5576_v19 = vadd.f32 %v1918_v16, %v1602_v23  ;;  %v2837_v23 = vrot.slane %v5580_v51, 2  ;;  %v5962_v16 = vld [vmem:[#allocation7_spill] sm:$0xff] }
 0x29f   : > { %v5578_v12 = vpop.f32.mrf.mxu0  ;;  %v2560_v30 = vpop.f32.mrf.mxu1 }
 0x2a0   : > { %5959 = vst [vmem:[#allocation6_spill] sm:$0xff] %v5576_v19 }
 0x2a1   : > { %5960 = vst [vmem:[#allocation38_spill] sm:$0xff] %v5578_v12  ;;  %v2414_v12 = vadd.f32 %v5962_v16, %v5961_v42  ;;  %v2476_v42 = vrot.slane %v4452_v38, 2  ;;  %v5964_v38 = vld [vmem:[#allocation10_spill] sm:$0xff] }
 0x2a2   : > { %4099 = vmatmul.msk.bf16.gmra.mxu1 %vm1070_vm3, %v2475_v29  ;;  %v2838_v29 = vsel %vm2456_vm7, %v2835_v25, %v2837_v23 }
 0x2a3   : > { %v2650_v60 = vadd.f32 %v2560_v30, %v2414_v12  ;;  %v3147_v12 = vshll.u32 %v5580_v51, 16  ;;  %v5604_v30 = vld [vmem:[%s5905_s2] ss:$0 sm:$0xff] }
 0x2a4   : > { %v2923_v33 = vpop.f32.mrf.mxu2 }
 0x2a5   : > { %v1920_v5 = vpop.f32.mrf.mxu3  ;;  %v3011_v53 = vadd.f32 %v2921_v15, %v2650_v60  ;;  %v3149_v44 = vrot.slane %v3147_v12, 3  ;;  %v2416_v12 = vadd.f32 %v5965_v43, %v5964_v38 }
 0x2a6   : > { %v5587_v37 = vadd.f32 %v1920_v5, %v1603_v4 }
 0x2a7   : > { %v2562_v26 = vpop.f32.mrf.mxu1  ;;  %v3526_v19 = vpop.f32.mrf.mxu0 }
 0x2a8   : > { %5963 = vst [vmem:[#allocation8_spill] sm:$0xff] %v5587_v37  ;;  %v2651_v16 = vadd.f32 %v2562_v26, %v2415_v47  ;;  %v3150_v47 = vor.u32 %v3149_v44, %v3146_v22  ;;  %v3443_v22 = vsel %vm3422_vm9, %v3440_v14, %v3442_v17 }
 0x2a9   : > { %4187 = vmatmul.msk.bf16.gmra.mxu2 %vm1070_vm3, %v2838_v29  ;;  %v5611_v29 = vld [vmem:[#allocation2 + $0x68] sm:$0xff] }
 0x2aa   : > { %4205 = vmatmul.msk.bf16.gmra.mxu3 %vm1070_vm3, %v3142_v41  ;;  %4224 = vmatmul.msk.bf16.gmra.mxu0 %vm1070_vm3, %v3441_v10 }
 0x2ac   : > { %v2926_v5 = vpop.f32.mrf.mxu2 }
 0x2ad   : > { %v3290_v4 = vpop.f32.mrf.mxu3 }
 0x2ae   : > { %v3380_v25 = vadd.f32 %v3290_v4, %v3011_v53  ;;  %v2477_v53 = vsel %vm2456_vm7, %v2474_v3, %v2476_v42 }
 0x2af   : > { %v2565_v60 = vpop.f32.mrf.mxu1  ;;  %v3528_v41 = vpop.f32.mrf.mxu0 }
 0x2b0   : > { %v3616_v15 = vadd.f32 %v3526_v19, %v3380_v25  ;;  %v3012_v19 = vadd.f32 %v2923_v33, %v2651_v16  ;;  %v2839_v25 = vrot.slane %v5611_v29, 2 }
 0x2b2   : > { %v3656_v10 = vadd.f32 %v5604_v30, %v3616_v15  ;;  %4100 = vmatmul.msk.bf16.gmra.mxu1 %vm1070_vm3, %v2477_v53  ;;  %v2652_v15 = vadd.f32 %v2565_v60, %v2416_v12  ;;  %v3151_v53 = vsel %vm3053_vm8, %v3141_v50, %v3150_v47  ;;  %v2840_v33 = vsel %vm2456_vm7, %v2837_v23, %v2839_v25 }
 0x2b3   : > { %v3156_v50 = vshll.u32 %v5611_v29, 16 }
 0x2b4   : > { %3693 = vst.msk [vmem:[%s5609_s26] sm:$0xff] %vm3692_vm10, %v3656_v10  ;;  %v2928_v4 = vpop.f32.mrf.mxu2  ;;  %v3013_v51 = vadd.f32 %v2926_v5, %v2652_v15  ;;  %v4453_v10 = vld [vmem:[#allocation2 + $0x60] sm:$0xff]  ;;  %v5635_v5 = vld [vmem:[#allocation2 + $0x70] sm:$0xff] }
 0x2b5   : > { %v3292_v26 = vpop.f32.mrf.mxu3 }
 0x2b6   : > { %v3381_v37 = vadd.f32 %v3292_v26, %v3012_v19  ;;  %v2478_v19 = vrot.slane %v4453_v10, 2 }
 0x2b7   : > { %v2567_v3 = vpop.f32.mrf.mxu1  ;;  %v3531_v8 = vpop.f32.mrf.mxu0 }
 0x2b8   : > { %v3617_v11 = vadd.f32 %v3528_v41, %v3381_v37  ;;  %v3153_v41 = vshrl.u32 %v5611_v29, 16 }
 0x2b9   : > { %4188 = vmatmul.msk.bf16.gmra.mxu2 %vm1070_vm3, %v2840_v33  ;;  %v2479_v33 = vsel %vm2456_vm7, %v2476_v42, %v2478_v19 }
 0x2ba   : > { %v3657_v16 = vadd.f32 %v5604_v30, %v3617_v11  ;;  %4206 = vmatmul.msk.bf16.gmra.mxu3 %vm1070_vm3, %v3151_v53  ;;  %4225 = vmatmul.msk.bf16.gmra.mxu0 %vm1070_vm3, %v3443_v22  ;;  %v5966_v11 = vld [vmem:[#allocation11_spill] sm:$0xff]  ;;  %v3155_v12 = vrot.slane %v3153_v41, 2  ;;  %v3158_v53 = vrot.slane %v3156_v50, 3  ;;  %v3444_v41 = vrot.slane %v5611_v29, 3 }
 0x2bb   : > { %v2417_v23 = vadd.f32 %v5966_v11, %v5237_v31 }
 0x2bc   : > { %3694 = vst.msk [vmem:[%s5609_s26 + $0x8] sm:$0xff] %vm3692_vm10, %v3657_v16  ;;  %v2931_v60 = vpop.f32.mrf.mxu2 }
 0x2bd   : > { %v3295_v37 = vpop.f32.mrf.mxu3  ;;  %v2653_v26 = vadd.f32 %v2567_v3, %v2417_v23  ;;  %v2418_v3 = vadd.f32 %v5239_v27, %v5248_v56 }
 0x2be   : > { %v3382_v44 = vadd.f32 %v3295_v37, %v3013_v51  ;;  %v3159_v51 = vor.u32 %v3158_v53, %v3155_v12  ;;  %v4454_v12 = vld [vmem:[#allocation2 + $0x68] sm:$0xff] }
 0x2bf   : > { %v2570_v38 = vpop.f32.mrf.mxu1  ;;  %v3533_v43 = vpop.f32.mrf.mxu0  ;;  %v3014_v31 = vadd.f32 %v2928_v4, %v2653_v26  ;;  %v3445_v26 = vsel %vm3422_vm9, %v3442_v17, %v3444_v41  ;;  %v2480_v53 = vrot.slane %v4454_v12, 2 }
 0x2c0   : > { %v3618_v14 = vadd.f32 %v3531_v8, %v3382_v44  ;;  %v2841_v8 = vrot.slane %v5635_v5, 2  ;;  %v2654_v50 = vadd.f32 %v2570_v38, %v2418_v3  ;;  %v3160_v44 = vsel %vm3053_vm8, %v3150_v47, %v3159_v51 }
 0x2c1   : > { %v3165_v47 = vshll.u32 %v5635_v5, 16 }
 0x2c2   : > { %v3658_v15 = vadd.f32 %v5604_v30, %v3618_v14  ;;  %4101 = vmatmul.msk.bf16.gmra.mxu1 %vm1070_vm3, %v2479_v33  ;;  %v2842_v4 = vsel %vm2456_vm7, %v2839_v25, %v2841_v8  ;;  %v3015_v27 = vadd.f32 %v2931_v60, %v2654_v50  ;;  %v3162_v14 = vshrl.u32 %v5635_v5, 16  ;;  %v5967_v25 = vld [vmem:[#allocation12_spill] sm:$0xff]  ;;  %v5662_v50 = vld [vmem:[#allocation2 + $0x78] sm:$0xff] }
 0x2c3   : > { %v2419_v38 = vadd.f32 %v5967_v25, %v5255_v59  ;;  %v3167_v3 = vrot.slane %v3165_v47, 3 }
 0x2c4   : > { %3695 = vst.msk [vmem:[%s5609_s26 + $0x10] sm:$0xff] %vm3692_vm10, %v3658_v15  ;;  %v2933_v22 = vpop.f32.mrf.mxu2 }
 0x2c5   : > { %v3297_v16 = vpop.f32.mrf.mxu3 }
 0x2c6   : > { %v3383_v37 = vadd.f32 %v3297_v16, %v3014_v31  ;;  %v3164_v16 = vrot.slane %v3162_v14, 2 }
 0x2c7   : > { %v2572_v42 = vpop.f32.mrf.mxu1  ;;  %v3536_v23 = vpop.f32.mrf.mxu0 }
 0x2c8   : > { %v3619_v11 = vadd.f32 %v3533_v43, %v3383_v37  ;;  %v2655_v15 = vadd.f32 %v2572_v42, %v2419_v38  ;;  %v2481_v37 = vsel %vm2456_vm7, %v2478_v19, %v2480_v53  ;;  %v2420_v42 = vadd.f32 %v5257_v62, %v5266_v58 }
 0x2c9   : > { %4189 = vmatmul.msk.bf16.gmra.mxu2 %vm1070_vm3, %v2842_v4  ;;  %v3168_v4 = vor.u32 %v3167_v3, %v3164_v16  ;;  %v5683_v3 = vld [vmem:[#allocation2 + $0x80] sm:$0xff] }
 0x2ca   : > { %v3659_v10 = vadd.f32 %v5604_v30, %v3619_v11  ;;  %4207 = vmatmul.msk.bf16.gmra.mxu3 %vm1070_vm3, %v3160_v44  ;;  %4226 = vmatmul.msk.bf16.gmra.mxu0 %vm1070_vm3, %v3445_v26  ;;  %v3016_v59 = vadd.f32 %v2933_v22, %v2655_v15  ;;  %v2843_v26 = vrot.slane %v5662_v50, 2  ;;  %v3171_v15 = vshrl.u32 %v5662_v50, 16 }
 0x2cb   : > { %v3169_v47 = vsel %vm3053_vm8, %v3159_v51, %v3168_v4  ;;  %v2421_v51 = vadd.f32 %v5268_v20, %v5273_v2 }
 0x2cc   : > { %3696 = vst.msk [vmem:[%s5609_s26 + $0x18] sm:$0xff] %vm3692_vm10, %v3659_v10  ;;  %v2936_v29 = vpop.f32.mrf.mxu2  ;;  %v3446_v10 = vrot.slane %v5635_v5, 3  ;;  %v2844_v22 = vsel %vm2456_vm7, %v2841_v8, %v2843_v26  ;;  %v3173_v20 = vrot.slane %v3171_v15, 2 }
 0x2cd   : > { %v3300_v56 = vpop.f32.mrf.mxu3 }
 0x2ce   : > { %v3384_v43 = vadd.f32 %v3300_v56, %v3015_v27  ;;  %v3447_v62 = vsel %vm3422_vm9, %v3444_v41, %v3446_v10 }
 0x2cf   : > { %v2575_v33 = vpop.f32.mrf.mxu1  ;;  %v3538_v31 = vpop.f32.mrf.mxu0 }
 0x2d0   : > { %v3620_v17 = vadd.f32 %v3536_v23, %v3384_v43  ;;  %v2656_v19 = vadd.f32 %v2575_v33, %v2420_v42  ;;  %v4455_v43 = vld [vmem:[#allocation2 + $0x70] sm:$0xff]  ;;  %v2845_v42 = vrot.slane %v5683_v3, 2 }
 0x2d1   : > { %v2482_v12 = vrot.slane %v4455_v43, 2 }
 0x2d2   : > { %v3660_v60 = vadd.f32 %v5604_v30, %v3620_v17  ;;  %4102 = vmatmul.msk.bf16.gmra.mxu1 %vm1070_vm3, %v2481_v37  ;;  %v3017_v58 = vadd.f32 %v2936_v29, %v2656_v19  ;;  %v3174_v17 = vshll.u32 %v5662_v50, 16 }
 0x2d4   : > { %3697 = vst.msk [vmem:[%s5609_s26 + $0x20] sm:$0xff] %vm3692_vm10, %v3660_v60  ;;  %v2938_v44 = vpop.f32.mrf.mxu2  ;;  %v2483_v60 = vsel %vm2456_vm7, %v2480_v53, %v2482_v12  ;;  %v3176_v2 = vrot.slane %v3174_v17, 3 }
 0x2d5   : > { %v3302_v11 = vpop.f32.mrf.mxu3 }
 0x2d6   : > { %v3385_v23 = vadd.f32 %v3302_v11, %v3016_v59 }
 0x2d7   : > { %v2577_v56 = vpop.f32.mrf.mxu1  ;;  %v3541_v14 = vpop.f32.mrf.mxu0 }
 0x2d8   : > { %v3621_v27 = vadd.f32 %v3538_v31, %v3385_v23  ;;  %v2657_v33 = vadd.f32 %v2577_v56, %v2421_v51  ;;  %v2422_v23 = vadd.f32 %v5275_v34, %v5284_v63 }
 0x2d9   : > { %4190 = vmatmul.msk.bf16.gmra.mxu2 %vm1070_vm3, %v2844_v22  ;;  %v3448_v22 = vrot.slane %v5662_v50, 3  ;;  %v3180_v50 = vshrl.u32 %v5683_v3, 16 }
 0x2da   : > { %v3661_v25 = vadd.f32 %v5604_v30, %v3621_v27  ;;  %4208 = vmatmul.msk.bf16.gmra.mxu3 %vm1070_vm3, %v3169_v47  ;;  %4227 = vmatmul.msk.bf16.gmra.mxu0 %vm1070_vm3, %v3447_v62  ;;  %v3018_v37 = vadd.f32 %v2938_v44, %v2657_v33  ;;  %v3177_v27 = vor.u32 %v3176_v2, %v3173_v20  ;;  %v4456_v33 = vld [vmem:[#allocation2 + $0x78] sm:$0xff] }
 0x2db   : > { %v2846_v44 = vsel %vm2456_vm7, %v2843_v26, %v2845_v42  ;;  %v3449_v34 = vsel %vm3422_vm9, %v3446_v10, %v3448_v22  ;;  %v5968_v26 = vld [vmem:[#allocation13_spill] sm:$0xff] }
 0x2dc   : > { %3698 = vst.msk [vmem:[%s5609_s26 + $0x28] sm:$0xff] %vm3692_vm10, %v3661_v25  ;;  %v2941_v38 = vpop.f32.mrf.mxu2  ;;  %v3178_v25 = vsel %vm3053_vm8, %v3168_v4, %v3177_v27  ;;  %v3183_v4 = vshll.u32 %v5683_v3, 16  ;;  %v2423_v51 = vadd.f32 %v5968_v26, %v5290_v21 }
 0x2dd   : > { %v3305_v5 = vpop.f32.mrf.mxu3 }
 0x2de   : > { %v3386_v8 = vadd.f32 %v3305_v5, %v3017_v58 }
 0x2df   : > { %v2580_v31 = vpop.f32.mrf.mxu1  ;;  %v3543_v16 = vpop.f32.mrf.mxu0 }
 0x2e0   : > { %v3622_v41 = vadd.f32 %v3541_v14, %v3386_v8  ;;  %v2658_v56 = vadd.f32 %v2580_v31, %v2422_v23  ;;  %v3182_v31 = vrot.slane %v3180_v50, 2  ;;  %v5969_v23 = vld [vmem:[#allocation14_spill] sm:$0xff] }
 0x2e2   : > { %v3662_v29 = vadd.f32 %v5604_v30, %v3622_v41  ;;  %4103 = vmatmul.msk.bf16.gmra.mxu1 %vm1070_vm3, %v2483_v60  ;;  %v3019_v63 = vadd.f32 %v2941_v38, %v2658_v56  ;;  %v2484_v41 = vrot.slane %v4456_v33, 2  ;;  %v5707_v38 = vld [vmem:[#allocation2 + $0x88] sm:$0xff] }
 0x2e4   : > { %3699 = vst.msk [vmem:[%s5609_s26 + $0x30] sm:$0xff] %vm3692_vm10, %v3662_v29  ;;  %v2943_v11 = vpop.f32.mrf.mxu2  ;;  %v2485_v60 = vsel %vm2456_vm7, %v2482_v12, %v2484_v41 }
 0x2e5   : > { %v3307_v59 = vpop.f32.mrf.mxu3 }
 0x2e6   : > { %v3387_v19 = vadd.f32 %v3307_v59, %v3018_v37  ;;  %v2847_v59 = vrot.slane %v5707_v38, 2 }
 0x2e7   : > { %v2582_v53 = vpop.f32.mrf.mxu1  ;;  %v3546_v47 = vpop.f32.mrf.mxu0 }
 0x2e8   : > { %v3623_v14 = vadd.f32 %v3543_v16, %v3387_v19  ;;  %v2659_v43 = vadd.f32 %v2582_v53, %v2423_v51  ;;  %v3185_v16 = vrot.slane %v3183_v4, 3  ;;  %v2424_v19 = vadd.f32 %v5969_v23, %v5302_v7  ;;  %v4457_v4 = vld [vmem:[#allocation2 + $0x80] sm:$0xff] }
 0x2e9   : > { %4191 = vmatmul.msk.bf16.gmra.mxu2 %vm1070_vm3, %v2846_v44  ;;  %v2486_v26 = vrot.slane %v4457_v4, 2 }
 0x2ea   : > { %v3663_v62 = vadd.f32 %v5604_v30, %v3623_v14  ;;  %4209 = vmatmul.msk.bf16.gmra.mxu3 %vm1070_vm3, %v3178_v25  ;;  %4228 = vmatmul.msk.bf16.gmra.mxu0 %vm1070_vm3, %v3449_v34  ;;  %v3020_v21 = vadd.f32 %v2943_v11, %v2659_v43  ;;  %v3186_v37 = vor.u32 %v3185_v16, %v3182_v31  ;;  %v3450_v14 = vrot.slane %v5683_v3, 3 }
 0x2eb   : > { %v2848_v11 = vsel %vm2456_vm7, %v2845_v42, %v2847_v59  ;;  %v3192_v42 = vshll.u32 %v5707_v38, 16  ;;  %v2487_v33 = vsel %vm2456_vm7, %v2484_v41, %v2486_v26 }
 0x2ec   : > { %3700 = vst.msk [vmem:[%s5609_s26 + $0x38] sm:$0xff] %vm3692_vm10, %v3663_v62  ;;  %v2946_v5 = vpop.f32.mrf.mxu2  ;;  %v3187_v44 = vsel %vm3053_vm8, %v3177_v27, %v3186_v37  ;;  %v3451_v34 = vsel %vm3422_vm9, %v3448_v22, %v3450_v14  ;;  %v2425_v27 = vadd.f32 %v5304_v13, %v5309_v57 }
 0x2ed   : > { %v3310_v58 = vpop.f32.mrf.mxu3 }
 0x2ee   : > { %v3388_v8 = vadd.f32 %v3310_v58, %v3019_v63  ;;  %v3189_v58 = vshrl.u32 %v5707_v38, 16 }
 0x2ef   : > { %v2585_v17 = vpop.f32.mrf.mxu1  ;;  %v3548_v10 = vpop.f32.mrf.mxu0 }
 0x2f0   : > { %v3624_v15 = vadd.f32 %v3546_v47, %v3388_v8  ;;  %v2660_v53 = vadd.f32 %v2585_v17, %v2424_v19  ;;  %v3194_v17 = vrot.slane %v3192_v42, 3  ;;  %v3452_v19 = vrot.slane %v5707_v38, 3 }
 0x2f2   : > { %v3664_v29 = vadd.f32 %v5604_v30, %v3624_v15  ;;  %4104 = vmatmul.msk.bf16.gmra.mxu1 %vm1070_vm3, %v2485_v60  ;;  %v3021_v7 = vadd.f32 %v2946_v5, %v2660_v53  ;;  %v3191_v15 = vrot.slane %v3189_v58, 2  ;;  %v5731_v5 = vld [vmem:[#allocation2 + $0x90] sm:$0xff] }
 0x2f3   : > { %v5970_v60 = vld [vmem:[#allocation16_spill] sm:$0xff] }
 0x2f4   : > { %3701 = vst.msk [vmem:[%s5609_s26 + $0x40] sm:$0xff] %vm3692_vm10, %v3664_v29  ;;  %v2948_v2 = vpop.f32.mrf.mxu2  ;;  %v3195_v16 = vor.u32 %v3194_v17, %v3191_v15  ;;  %v2849_v29 = vrot.slane %v5731_v5, 2 }
 0x2f5   : > { %v3312_v20 = vpop.f32.mrf.mxu3 }
 0x2f6   : > { %v3389_v56 = vadd.f32 %v3312_v20, %v3020_v21  ;;  %v5971_v21 = vld [vmem:[#allocation15_spill] sm:$0xff] }
 0x2f7   : > { %v2587_v12 = vpop.f32.mrf.mxu1  ;;  %v3551_v25 = vpop.f32.mrf.mxu0  ;;  %v2426_v20 = vadd.f32 %v5971_v21, %v5970_v60 }
 0x2f8   : > { %v3625_v47 = vadd.f32 %v3548_v10, %v3389_v56  ;;  %v2661_v51 = vadd.f32 %v2587_v12, %v2425_v27  ;;  %v3196_v12 = vsel %vm3053_vm8, %v3186_v37, %v3195_v16  ;;  %v3201_v37 = vshll.u32 %v5731_v5, 16 }
 0x2f9   : > { %4192 = vmatmul.msk.bf16.gmra.mxu2 %vm1070_vm3, %v2848_v11 }
 0x2fa   : > { %v3665_v62 = vadd.f32 %v5604_v30, %v3625_v47  ;;  %4210 = vmatmul.msk.bf16.gmra.mxu3 %vm1070_vm3, %v3187_v44  ;;  %4229 = vmatmul.msk.bf16.gmra.mxu0 %vm1070_vm3, %v3451_v34  ;;  %v3022_v13 = vadd.f32 %v2948_v2, %v2661_v51  ;;  %v2850_v2 = vsel %vm2456_vm7, %v2847_v59, %v2849_v29  ;;  %v3198_v34 = vshrl.u32 %v5731_v5, 16 }
 0x2fb   : > { %v3453_v44 = vsel %vm3422_vm9, %v3450_v14, %v3452_v19  ;;  %v2427_v59 = vadd.f32 %v5322_v49, %v5327_v46  ;;  %v3203_v51 = vrot.slane %v3201_v37, 3 }
 0x2fc   : > { %3702 = vst.msk [vmem:[%s5609_s26 + $0x48] sm:$0xff] %vm3692_vm10, %v3665_v62  ;;  %v2951_v63 = vpop.f32.mrf.mxu2  ;;  %v3200_v4 = vrot.slane %v3198_v34, 2 }
 0x2fd   : > { %v3315_v3 = vpop.f32.mrf.mxu3 }
 0x2fe   : > { %v3390_v50 = vadd.f32 %v3315_v3, %v3021_v7  ;;  %v4458_v3 = vld [vmem:[#allocation2 + $0x88] sm:$0xff]  ;;  %v3204_v15 = vor.u32 %v3203_v51, %v3200_v4 }
 0x2ff   : > { %v2590_v8 = vpop.f32.mrf.mxu1  ;;  %v3553_v43 = vpop.f32.mrf.mxu0  ;;  %v2488_v58 = vrot.slane %v4458_v3, 2 }
 0x300   : > { %v3626_v22 = vadd.f32 %v3551_v25, %v3390_v50  ;;  %v2662_v56 = vadd.f32 %v2590_v8, %v2426_v20  ;;  %v3205_v20 = vsel %vm3053_vm8, %v3195_v16, %v3204_v15 }
 0x301   : > { %v2489_v8 = vsel %vm2456_vm7, %v2486_v26, %v2488_v58 }
 0x302   : > { %v3666_v10 = vadd.f32 %v5604_v30, %v3626_v22  ;;  %4105 = vmatmul.msk.bf16.gmra.mxu1 %vm1070_vm3, %v2487_v33  ;;  %v3023_v38 = vadd.f32 %v2951_v63, %v2662_v56  ;;  %v5755_v63 = vld [vmem:[#allocation2 + $0x98] sm:$0xff] }
 0x303   : > { %v2851_v17 = vrot.slane %v5755_v63, 2  ;;  %v3207_v16 = vshrl.u32 %v5755_v63, 16 }
 0x304   : > { %3703 = vst.msk [vmem:[%s5609_s26 + $0x50] sm:$0xff] %vm3692_vm10, %v3666_v10  ;;  %v2953_v31 = vpop.f32.mrf.mxu2  ;;  %v2428_v10 = vadd.f32 %v5329_v1, %v5338_v35  ;;  %v2722_v1 = vld [vmem:[#allocation2 + $0xa0] sm:$0x1] }
 0x305   : > { %v3317_v57 = vpop.f32.mrf.mxu3  ;;  %v3209_v37 = vrot.slane %v3207_v16, 2 }
 0x306   : > { %v3391_v23 = vadd.f32 %v3317_v57, %v3022_v13  ;;  %v3454_v13 = vrot.slane %v5731_v5, 3 }
 0x307   : > { %v2592_v41 = vpop.f32.mrf.mxu1  ;;  %v3556_v47 = vpop.f32.mrf.mxu0 }
 0x308   : > { %v3627_v53 = vadd.f32 %v3553_v43, %v3391_v23  ;;  %v2663_v42 = vadd.f32 %v2592_v41, %v2427_v59  ;;  %v3455_v56 = vsel %vm3422_vm9, %v3452_v19, %v3454_v13  ;;  %v2798_v41 = vunpack.c.l.b16 %v2722_v1 }
 0x309   : > { %4193 = vmatmul.msk.bf16.gmra.mxu2 %vm1070_vm3, %v2850_v2 }
 0x30a   : > { %v3667_v25 = vadd.f32 %v5604_v30, %v3627_v53  ;;  %4211 = vmatmul.msk.bf16.gmra.mxu3 %vm1070_vm3, %v3196_v12  ;;  %4230 = vmatmul.msk.bf16.gmra.mxu0 %vm1070_vm3, %v3453_v44  ;;  %v3024_v49 = vadd.f32 %v2953_v31, %v2663_v42  ;;  %v2852_v31 = vsel %vm2456_vm7, %v2849_v29, %v2851_v17  ;;  %v3210_v29 = vshll.u32 %v5755_v63, 16  ;;  %v3047_v42 = vld [vmem:[#allocation2 + $0xa0] sm:$0x3] }
 0x30b   : > { %v2817_v59 = vpack.c.b16 %v2798_v41, %v2798_v41  ;;  %v3051_v51 = vunpack.c.l.b16 %v3047_v42 }
 0x30c   : > { %3704 = vst.msk [vmem:[%s5609_s26 + $0x58] sm:$0xff] %vm3692_vm10, %v3667_v25  ;;  %v2956_v62 = vpop.f32.mrf.mxu2  ;;  %v4459_v25 = vld [vmem:[#allocation2 + $0x90] sm:$0xff] }
 0x30d   : > { %v3320_v11 = vpop.f32.mrf.mxu3  ;;  %v2490_v19 = vrot.slane %v4459_v25, 2  ;;  %v2853_v4 = vrot.slane %v2817_v59, 2 }
 0x30e   : > { %v3392_v7 = vadd.f32 %v3320_v11, %v3023_v38 }
 0x30f   : > { %v2595_v27 = vpop.f32.mrf.mxu1  ;;  %v3558_v50 = vpop.f32.mrf.mxu0  ;;  %v2491_v3 = vsel %vm2456_vm7, %v2488_v58, %v2490_v19 }
 0x310   : > { %v3628_v14 = vadd.f32 %v3556_v47, %v3392_v7  ;;  %v2664_v57 = vadd.f32 %v2595_v27, %v2428_v10  ;;  %v5972_v47 = vld [vmem:[#allocation17_spill] sm:$0xff]  ;;  %v3456_v10 = vrot.slane %v5755_v63, 3 }
 0x311   : > { %v2429_v12 = vadd.f32 %v5972_v47, %v5344_v0 }
 0x312   : > { %v3668_v22 = vadd.f32 %v5604_v30, %v3628_v14  ;;  %4106 = vmatmul.msk.bf16.gmra.mxu1 %vm1070_vm3, %v2489_v8  ;;  %v3025_v35 = vadd.f32 %v2956_v62, %v2664_v57  ;;  %v3212_v62 = vrot.slane %v3210_v29, 3  ;;  %v5974_v8 = vld [vmem:[#allocation18_spill] sm:$0xff] }
 0x314   : > { %3705 = vst.msk [vmem:[%s5609_s26 + $0x60] sm:$0xff] %vm3692_vm10, %v3668_v22  ;;  %v2958_v43 = vpop.f32.mrf.mxu2  ;;  %v5973_v22 = vld [vmem:[#allocation19_spill] sm:$0xff] }
 0x315   : > { %v3322_v46 = vpop.f32.mrf.mxu3 }
 0x316   : > { %v3393_v33 = vadd.f32 %v3322_v46, %v3024_v49  ;;  %v2430_v49 = vadd.f32 %v5974_v8, %v5973_v22 }
 0x317   : > { %v2597_v26 = vpop.f32.mrf.mxu1  ;;  %v3561_v21 = vpop.f32.mrf.mxu0 }
 0x318   : > { %v3629_v60 = vadd.f32 %v3558_v50, %v3393_v33  ;;  %v2665_v44 = vadd.f32 %v2597_v26, %v2429_v12  ;;  %v3213_v50 = vor.u32 %v3212_v62, %v3209_v37  ;;  %v5976_v12 = vld [vmem:[#allocation21_spill] sm:$0xff]  ;;  %v5977_v37 = vld [vmem:[#allocation23_spill] sm:$0xff]  ;;  %v5978_v62 = vld [vmem:[#allocation22_spill] sm:$0xff] }
 0x319   : > { %4194 = vmatmul.msk.bf16.gmra.mxu2 %vm1070_vm3, %v2852_v31  ;;  %v3457_v31 = vsel %vm3422_vm9, %v3454_v13, %v3456_v10  ;;  %v2492_v13 = vrot.slane %v5976_v12, 2  ;;  %v2432_v59 = vadd.f32 %v5978_v62, %v5977_v37 }
 0x31a   : > { %v3669_v23 = vadd.f32 %v5604_v30, %v3629_v60  ;;  %4212 = vmatmul.msk.bf16.gmra.mxu3 %vm1070_vm3, %v3205_v20  ;;  %4231 = vmatmul.msk.bf16.gmra.mxu0 %vm1070_vm3, %v3455_v56  ;;  %v3026_v0 = vadd.f32 %v2958_v43, %v2665_v44  ;;  %v3214_v26 = vsel %vm3053_vm8, %v3204_v15, %v3213_v50 }
 0x31b   : > { %v2854_v43 = vsel %vm2456_vm7, %v2851_v17, %v2853_v4  ;;  %v5975_v17 = vld [vmem:[#allocation20_spill] sm:$0xff] }
 0x31c   : > { %3706 = vst.msk [vmem:[%s5609_s26 + $0x68] sm:$0xff] %vm3692_vm10, %v3669_v23  ;;  %v2961_v53 = vpop.f32.mrf.mxu2 }
 0x31d   : > { %v3325_v5 = vpop.f32.mrf.mxu3 }
 0x31e   : > { %v3394_v2 = vadd.f32 %v3325_v5, %v3025_v35  ;;  %v2431_v35 = vadd.f32 %v5975_v17, %v5366_v24 }
 0x31f   : > { %v2600_v11 = vpop.f32.mrf.mxu1  ;;  %v3563_v34 = vpop.f32.mrf.mxu0 }
 0x320   : > { %v3630_v38 = vadd.f32 %v3561_v21, %v3394_v2  ;;  %v2666_v33 = vadd.f32 %v2600_v11, %v2430_v49  ;;  %v3052_v21 = vpack.c.b16 %v3051_v51, %v3051_v51 }
 0x322   : > { %v3670_v7 = vadd.f32 %v5604_v30, %v3630_v38  ;;  %4107 = vmatmul.msk.bf16.gmra.mxu1 %vm1070_vm3, %v2491_v3  ;;  %v3027_v63 = vadd.f32 %v2961_v53, %v2666_v33  ;;  %v3216_v15 = vshrl.u32 %v3052_v21, 16  ;;  %v3219_v1 = vshll.u32 %v3052_v21, 16 }
 0x323   : > { %v2493_v53 = vsel %vm2456_vm7, %v2490_v19, %v2492_v13  ;;  %v3458_v3 = vrot.slane %v3052_v21, 3 }
 0x324   : > { %3707 = vst.msk [vmem:[%s5609_s26 + $0x70] sm:$0xff] %vm3692_vm10, %v3670_v7  ;;  %v2963_v27 = vpop.f32.mrf.mxu2  ;;  %v3218_v2 = vrot.slane %v3216_v15, 2  ;;  %v3221_v25 = vrot.slane %v3219_v1, 3 }
 0x325   : > { %v3327_v14 = vpop.f32.mrf.mxu3 }
 0x326   : > { %v3395_v46 = vadd.f32 %v3327_v14, %v3026_v0 }
 0x327   : > { %v2602_v57 = vpop.f32.mrf.mxu1  ;;  %v3566_v60 = vpop.f32.mrf.mxu0 }
 0x328   : > { %v3631_v58 = vadd.f32 %v3563_v34, %v3395_v46  ;;  %v2667_v16 = vadd.f32 %v2602_v57, %v2431_v35  ;;  %v3222_v34 = vor.u32 %v3221_v25, %v3218_v2  ;;  %v5979_v46 = vld [vmem:[#allocation24_spill] sm:$0xff] }
 0x329   : > { %4195 = vmatmul.msk.bf16.gmra.mxu2 %vm1070_vm3, %v2854_v43  ;;  %v2433_v33 = vadd.f32 %v5979_v46, %v5392_v48 }
 0x32a   : > { %v3671_v20 = vadd.f32 %v5604_v30, %v3631_v58  ;;  %4213 = vmatmul.msk.bf16.gmra.mxu3 %vm1070_vm3, %v3214_v26  ;;  %4232 = vmatmul.msk.bf16.gmra.mxu0 %vm1070_vm3, %v3457_v31  ;;  %v3028_v38 = vadd.f32 %v2963_v27, %v2667_v16  ;;  %v3223_v19 = vsel %vm3053_vm8, %v3213_v50, %v3222_v34 }
 0x32b   : > { %v3459_v27 = vsel %vm3422_vm9, %v3456_v10, %v3458_v3  ;;  %v2434_v31 = vadd.f32 %v5395_v6, %v5406_v55  ;;  %v2435_v16 = vadd.f32 %v5408_v18, %v5415_v32 }
 0x32c   : > { %3708 = vst.msk [vmem:[%s5609_s26 + $0x78] sm:$0xff] %vm3692_vm10, %v3671_v20  ;;  %v2966_v56 = vpop.f32.mrf.mxu2 }
 0x32d   : > { %v3330_v23 = vpop.f32.mrf.mxu3 }
 0x32e   : > { %v3396_v5 = vadd.f32 %v3330_v23, %v3027_v63 }
 0x32f   : > { %v2605_v41 = vpop.f32.mrf.mxu1  ;;  %v3568_v47 = vpop.f32.mrf.mxu0 }
 0x330   : > { %v3632_v29 = vadd.f32 %v3566_v60, %v3396_v5  ;;  %v2668_v42 = vadd.f32 %v2605_v41, %v2432_v59  ;;  %v2437_v59 = vadd.f32 %v5432_v40, %v5440_v9 }
 0x332   : > { %v3672_v44 = vadd.f32 %v5604_v30, %v3632_v29  ;;  %4108 = vmatmul.msk.bf16.gmra.mxu1 %vm1070_vm3, %v2493_v53  ;;  %v3029_v22 = vadd.f32 %v2966_v56, %v2668_v42 }
 0x334   : > { %3709 = vst.msk [vmem:[%s5609_s26 + $0x80] sm:$0xff] %vm3692_vm10, %v3672_v44  ;;  %v2968_v11 = vpop.f32.mrf.mxu2  ;;  %v2436_v44 = vadd.f32 %v5419_v36, %v5428_v39 }
 0x335   : > { %v3332_v24 = vpop.f32.mrf.mxu3 }
 0x336   : > { %v3397_v7 = vadd.f32 %v3332_v24, %v3028_v38 }
 0x337   : > { %v2607_v14 = vpop.f32.mrf.mxu1  ;;  %v3571_v4 = vpop.f32.mrf.mxu0 }
 0x338   : > { %v3633_v0 = vadd.f32 %v3568_v47, %v3397_v7  ;;  %v2669_v57 = vadd.f32 %v2607_v14, %v2433_v33 }
 0x33a   : > { %v3673_v51 = vadd.f32 %v5604_v30, %v3633_v0  ;;  %4214 = vmatmul.msk.bf16.gmra.mxu3 %vm1070_vm3, %v3223_v19  ;;  %4233 = vmatmul.msk.bf16.gmra.mxu0 %vm1070_vm3, %v3459_v27  ;;  %v3030_v10 = vadd.f32 %v2968_v11, %v2669_v57  ;;  %v2439_v57 = vadd.f32 %v5456_v61, %v5466_v45 }
 0x33c   : > { %3710 = vst.msk [vmem:[%s5609_s26 + $0x88] sm:$0xff] %vm3692_vm10, %v3673_v51  ;;  %v2971_v49 = vpop.f32.mrf.mxu2  ;;  %v2438_v51 = vadd.f32 %v5442_v54, %v5454_v28 }
 0x33d   : > { %v3335_v8 = vpop.f32.mrf.mxu3 }
 0x33e   : > { %v3398_v58 = vadd.f32 %v3335_v8, %v3029_v22 }
 0x33f   : > { %v2610_v60 = vpop.f32.mrf.mxu1  ;;  %v3573_v26 = vpop.f32.mrf.mxu0 }
 0x340   : > { %v3634_v50 = vadd.f32 %v3571_v4, %v3398_v58  ;;  %v2670_v23 = vadd.f32 %v2610_v60, %v2434_v31  ;;  %v5980_v31 = vld [vmem:[#allocation25_spill] sm:$0xff] }
 0x342   : > { %v3674_v43 = vadd.f32 %v5604_v30, %v3634_v50  ;;  %v3031_v17 = vadd.f32 %v2971_v49, %v2670_v23 }
 0x344   : > { %3711 = vst.msk [vmem:[%s5609_s26 + $0x90] sm:$0xff] %vm3692_vm10, %v3674_v43  ;;  %v2973_v20 = vpop.f32.mrf.mxu2 }
 0x345   : > { %v3337_v21 = vpop.f32.mrf.mxu3 }
 0x346   : > { %v3399_v63 = vadd.f32 %v3337_v21, %v3030_v10 }
 0x347   : > { %v2612_v56 = vpop.f32.mrf.mxu1  ;;  %v3576_v15 = vpop.f32.mrf.mxu0 }
 0x348   : > { %v3635_v48 = vadd.f32 %v3573_v26, %v3399_v63  ;;  %v2671_v41 = vadd.f32 %v2612_v56, %v2435_v16  ;;  %v2440_v63 = vadd.f32 %v5980_v31, %v5480_v52  ;;  %v5982_v16 = vld [vmem:[#allocation26_spill] sm:$0xff] }
 0x34a   : > { %v3675_v1 = vadd.f32 %v5604_v30, %v3635_v48  ;;  %v3032_v13 = vadd.f32 %v2973_v20, %v2671_v41 }
 0x34c   : > { %3712 = vst.msk [vmem:[%s5609_s26 + $0x98] sm:$0xff] %vm3692_vm10, %v3675_v1  ;;  %v2976_v5 = vpop.f32.mrf.mxu2 }
 0x34d   : > { %v3340_v35 = vpop.f32.mrf.mxu3 }
 0x34e   : > { %v3400_v29 = vadd.f32 %v3340_v35, %v3031_v17 }
 0x34f   : > { %v2615_v55 = vpop.f32.mrf.mxu1  ;;  %v3578_v47 = vpop.f32.mrf.mxu0 }
 0x350   : > { %v3636_v6 = vadd.f32 %v3576_v15, %v3400_v29  ;;  %v2672_v38 = vadd.f32 %v2615_v55, %v2436_v44  ;;  %v5984_v44 = vld [vmem:[#allocation28_spill] sm:$0xff] }
 0x352   : > { %v3676_v12 = vadd.f32 %v5604_v30, %v3636_v6  ;;  %v3033_v34 = vadd.f32 %v2976_v5, %v2672_v38  ;;  %v5981_v5 = vld [vmem:[#allocation27_spill] sm:$0xff] }
 0x353   : > { %v2441_v29 = vadd.f32 %v5982_v16, %v5981_v5 }
 0x354   : > { %3713 = vst.msk [vmem:[%s5609_s26 + $0xa0] sm:$0xff] %vm3692_vm10, %v3676_v12  ;;  %v2978_v25 = vpop.f32.mrf.mxu2 }
 0x355   : > { %v3342_v2 = vpop.f32.mrf.mxu3 }
 0x356   : > { %v3401_v53 = vadd.f32 %v3342_v2, %v3032_v13 }
 0x357   : > { %v2617_v32 = vpop.f32.mrf.mxu1  ;;  %v3581_v24 = vpop.f32.mrf.mxu0 }
 0x358   : > { %v3637_v18 = vadd.f32 %v3578_v47, %v3401_v53  ;;  %v2673_v3 = vadd.f32 %v2617_v32, %v2437_v59 }
 0x35a   : > { %v3677_v11 = vadd.f32 %v5604_v30, %v3637_v18  ;;  %v3034_v14 = vadd.f32 %v2978_v25, %v2673_v3  ;;  %v5983_v25 = vld [vmem:[#allocation29_spill] sm:$0xff]  ;;  %v5986_v3 = vld [vmem:[#allocation30_spill] sm:$0xff] }
 0x35b   : > { %v2442_v53 = vadd.f32 %v5984_v44, %v5983_v25 }
 0x35c   : > { %3714 = vst.msk [vmem:[%s5609_s26 + $0xa8] sm:$0xff] %vm3692_vm10, %v3677_v11  ;;  %v2981_v62 = vpop.f32.mrf.mxu2 }
 0x35d   : > { %v3345_v37 = vpop.f32.mrf.mxu3 }
 0x35e   : > { %v3402_v7 = vadd.f32 %v3345_v37, %v3033_v34 }
 0x35f   : > { %v2620_v39 = vpop.f32.mrf.mxu1  ;;  %v3583_v42 = vpop.f32.mrf.mxu0 }
 0x360   : > { %v3638_v36 = vadd.f32 %v3581_v24, %v3402_v7  ;;  %v2674_v22 = vadd.f32 %v2620_v39, %v2438_v51  ;;  %v5985_v7 = vld [vmem:[#allocation31_spill] sm:$0xff] }
 0x362   : > { %v3678_v0 = vadd.f32 %v5604_v30, %v3638_v36  ;;  %v3035_v46 = vadd.f32 %v2981_v62, %v2674_v22  ;;  %v2443_v36 = vadd.f32 %v5986_v3, %v5985_v7 }
 0x364   : > { %3715 = vst.msk [vmem:[%s5609_s26 + $0xb0] sm:$0xff] %vm3692_vm10, %v3678_v0  ;;  %v2983_v19 = vpop.f32.mrf.mxu2 }
 0x365   : > { %v3347_v4 = vpop.f32.mrf.mxu3 }
 0x366   : > { %v3403_v27 = vadd.f32 %v3347_v4, %v3034_v14 }
 0x367   : > { %v2622_v9 = vpop.f32.mrf.mxu1  ;;  %v3586_v8 = vpop.f32.mrf.mxu0 }
 0x368   : > { %v3639_v40 = vadd.f32 %v3583_v42, %v3403_v27  ;;  %v2675_v60 = vadd.f32 %v2622_v9, %v2439_v57  ;;  %v5988_v9 = vld [vmem:[#allocation32_spill] sm:$0xff] }
 0x36a   : > { %v3679_v49 = vadd.f32 %v5604_v30, %v3639_v40  ;;  %v3036_v10 = vadd.f32 %v2983_v19, %v2675_v60  ;;  %v5987_v40 = vld [vmem:[#allocation33_spill] sm:$0xff] }
 0x36c   : > { %3716 = vst.msk [vmem:[%s5609_s26 + $0xb8] sm:$0xff] %vm3692_vm10, %v3679_v49  ;;  %v2986_v58 = vpop.f32.mrf.mxu2 }
 0x36d   : > { %v3350_v33 = vpop.f32.mrf.mxu3 }
 0x36e   : > { %v3404_v50 = vadd.f32 %v3350_v33, %v3035_v46 }
 0x36f   : > { %v2625_v28 = vpop.f32.mrf.mxu1  ;;  %v3588_v26 = vpop.f32.mrf.mxu0 }
 0x370   : > { %v3640_v54 = vadd.f32 %v3586_v8, %v3404_v50  ;;  %v2676_v48 = vadd.f32 %v2625_v28, %v2440_v63  ;;  %v2444_v8 = vadd.f32 %v5988_v9, %v5987_v40 }
 0x372   : > { %v3680_v43 = vadd.f32 %v5604_v30, %v3640_v54  ;;  %v3037_v1 = vadd.f32 %v2986_v58, %v2676_v48 }
 0x374   : > { %3717 = vst.msk [vmem:[%s5609_s26 + $0xc0] sm:$0xff] %vm3692_vm10, %v3680_v43  ;;  %v2988_v20 = vpop.f32.mrf.mxu2  ;;  %v5990_v43 = vld [vmem:[#allocation34_spill] sm:$0xff] }
 0x375   : > { %v3352_v21 = vpop.f32.mrf.mxu3 }
 0x376   : > { %v3405_v23 = vadd.f32 %v3352_v21, %v3036_v10 }
 0x377   : > { %v2627_v45 = vpop.f32.mrf.mxu1  ;;  %v3591_v56 = vpop.f32.mrf.mxu0 }
 0x378   : > { %v3641_v61 = vadd.f32 %v3588_v26, %v3405_v23  ;;  %v2677_v6 = vadd.f32 %v2627_v45, %v2441_v29  ;;  %v5989_v26 = vld [vmem:[#allocation3_spill] sm:$0xff] }
 0x379   : > { %v2445_v10 = vadd.f32 %v5990_v43, %v5989_v26 }
 0x37a   : > { %v3681_v15 = vadd.f32 %v5604_v30, %v3641_v61  ;;  %v3038_v13 = vadd.f32 %v2988_v20, %v2677_v6 }
 0x37c   : > { %3718 = vst.msk [vmem:[%s5609_s26 + $0xc8] sm:$0xff] %vm3692_vm10, %v3681_v15  ;;  %v2991_v35 = vpop.f32.mrf.mxu2  ;;  %v5991_v15 = vld [vmem:[#allocation4_spill] sm:$0xff] }
 0x37d   : > { %v3355_v17 = vpop.f32.mrf.mxu3 }
 0x37e   : > { %v3406_v41 = vadd.f32 %v3355_v17, %v3037_v1  ;;  %v5992_v1 = vld [vmem:[#allocation35_spill] sm:$0xff] }
 0x37f   : > { %v2630_v55 = vpop.f32.mrf.mxu1  ;;  %v3593_v47 = vpop.f32.mrf.mxu0  ;;  %v2446_v17 = vadd.f32 %v5992_v1, %v5991_v15 }
 0x380   : > { %v3642_v52 = vadd.f32 %v3591_v56, %v3406_v41  ;;  %v2678_v32 = vadd.f32 %v2630_v55, %v2442_v53 }
 0x382   : > { %v3682_v12 = vadd.f32 %v5604_v30, %v3642_v52  ;;  %v3039_v62 = vadd.f32 %v2991_v35, %v2678_v32 }
 0x384   : > { %3719 = vst.msk [vmem:[%s5609_s26 + $0xd0] sm:$0xff] %vm3692_vm10, %v3682_v12  ;;  %v2993_v18 = vpop.f32.mrf.mxu2  ;;  %v5994_v12 = vld [vmem:[#allocation36_spill] sm:$0xff] }
 0x385   : > { %v3357_v2 = vpop.f32.mrf.mxu3 }
 0x386   : > { %v3407_v38 = vadd.f32 %v3357_v2, %v3038_v13 }
 0x387   : > { %v2632_v11 = vpop.f32.mrf.mxu1  ;;  %v3596_v34 = vpop.f32.mrf.mxu0 }
 0x388   : > { %v3643_v24 = vadd.f32 %v3593_v47, %v3407_v38  ;;  %v2679_v42 = vadd.f32 %v2632_v11, %v2443_v36  ;;  %v5993_v47 = vld [vmem:[#allocation5_spill] sm:$0xff] }
 0x389   : > { %v2447_v13 = vadd.f32 %v5994_v12, %v5993_v47 }
 0x38a   : > { %v3683_v37 = vadd.f32 %v5604_v30, %v3643_v24  ;;  %v3040_v27 = vadd.f32 %v2993_v18, %v2679_v42 }
 0x38c   : > { %3720 = vst.msk [vmem:[%s5609_s26 + $0xd8] sm:$0xff] %vm3692_vm10, %v3683_v37  ;;  %v2996_v19 = vpop.f32.mrf.mxu2  ;;  %v5996_v37 = vld [vmem:[#allocation37_spill] sm:$0xff] }
 0x38d   : > { %v3360_v59 = vpop.f32.mrf.mxu3 }
 0x38e   : > { %v3408_v39 = vadd.f32 %v3360_v59, %v3039_v62 }
 0x38f   : > { %v2635_v14 = vpop.f32.mrf.mxu1  ;;  %v3598_v4 = vpop.f32.mrf.mxu0 }
 0x390   : > { %v3644_v0 = vadd.f32 %v3596_v34, %v3408_v39  ;;  %v2680_v46 = vadd.f32 %v2635_v14, %v2444_v8  ;;  %v5995_v34 = vld [vmem:[#allocation6_spill] sm:$0xff] }
 0x391   : > { %v2448_v62 = vadd.f32 %v5996_v37, %v5995_v34  ;;  %v4460_v39 = vld [vmem:[%s5905_s2] ss:$0 sm:$0xff] }
 0x392   : > { %v3684_v51 = vadd.f32 %v5604_v30, %v3644_v0  ;;  %v3041_v54 = vadd.f32 %v2996_v19, %v2680_v46  ;;  %v5997_v19 = vld [vmem:[#allocation8_spill] sm:$0xff] }
 0x394   : > { %3721 = vst.msk [vmem:[%s5609_s26 + $0xe0] sm:$0xff] %vm3692_vm10, %v3684_v51  ;;  %v2998_v60 = vpop.f32.mrf.mxu2  ;;  %v5998_v51 = vld [vmem:[#allocation38_spill] sm:$0xff] }
 0x395   : > { %v3362_v22 = vpop.f32.mrf.mxu3 }
 0x396   : > { %v3409_v49 = vadd.f32 %v3362_v22, %v3040_v27  ;;  %v2449_v27 = vadd.f32 %v5998_v51, %v5997_v19 }
 0x397   : > { %v2637_v58 = vpop.f32.mrf.mxu1  ;;  %v3601_v57 = vpop.f32.mrf.mxu0 }
 0x398   : > { %v3645_v33 = vadd.f32 %v3598_v4, %v3409_v49  ;;  %v2681_v20 = vadd.f32 %v2637_v58, %v2445_v10 }
 0x39a   : > { %v3685_v50 = vadd.f32 %v5604_v30, %v3645_v33  ;;  %v3042_v61 = vadd.f32 %v2998_v60, %v2681_v20 }
 0x39c   : > { %3722 = vst.msk [vmem:[%s5609_s26 + $0xe8] sm:$0xff] %vm3692_vm10, %v3685_v50  ;;  %v3001_v45 = vpop.f32.mrf.mxu2 }
 0x39d   : > { %v3365_v28 = vpop.f32.mrf.mxu3 }
 0x39e   : > { %v3410_v21 = vadd.f32 %v3365_v28, %v3041_v54 }
 0x39f   : > { %v2640_v63 = vpop.f32.mrf.mxu1  ;;  %v3603_v23 = vpop.f32.mrf.mxu0 }
 0x3a0   : > { %v3646_v31 = vadd.f32 %v3601_v57, %v3410_v21  ;;  %v2682_v5 = vadd.f32 %v2640_v63, %v2446_v17 }
 0x3a2   : > { %v3686_v48 = vadd.f32 %v5604_v30, %v3646_v31  ;;  %v3043_v52 = vadd.f32 %v3001_v45, %v2682_v5 }
 0x3a4   : > { %3723 = vst.msk [vmem:[%s5609_s26 + $0xf0] sm:$0xff] %vm3692_vm10, %v3686_v48  ;;  %v3003_v25 = vpop.f32.mrf.mxu2 }
 0x3a5   : > { %v3367_v56 = vpop.f32.mrf.mxu3 }
 0x3a6   : > { %v3411_v35 = vadd.f32 %v3367_v56, %v3042_v61 }
 0x3a7   : > { %v2642_v29 = vpop.f32.mrf.mxu1  ;;  %v3606_v41 = vpop.f32.mrf.mxu0 }
 0x3a8   : > { %v3647_v16 = vadd.f32 %v3603_v23, %v3411_v35  ;;  %v2683_v44 = vadd.f32 %v2642_v29, %v2447_v13 }
 0x3aa   : > { %v3687_v6 = vadd.f32 %v5604_v30, %v3647_v16  ;;  %v3044_v24 = vadd.f32 %v3003_v25, %v2683_v44 }
 0x3ac   : > { %3724 = vst.msk [vmem:[%s5609_s26 + $0xf8] sm:$0xff] %vm3692_vm10, %v3687_v6  ;;  %v3006_v36 = vpop.f32.mrf.mxu2 }
 0x3ad   : > { %v3370_v55 = vpop.f32.mrf.mxu3 }
 0x3ae   : > { %v3412_v2 = vadd.f32 %v3370_v55, %v3043_v52 }
 0x3af   : > { %v2645_v18 = vpop.f32.mrf.mxu1  ;;  %v3608_v32 = vpop.f32.mrf.mxu0 }
 0x3b0   : > { %v3648_v53 = vadd.f32 %v3606_v41, %v3412_v2  ;;  %v2684_v7 = vadd.f32 %v2645_v18, %v2448_v62 }
 0x3b2   : > { %v3688_v38 = vadd.f32 %v5604_v30, %v3648_v53  ;;  %v3045_v0 = vadd.f32 %v3006_v36, %v2684_v7 }
 0x3b4   : > { %3725 = vst.msk [vmem:[%s5609_s26 + $0x100] sm:$0xff] %vm3692_vm10, %v3688_v38  ;;  %v3008_v49 = vpop.f32.mrf.mxu2 }
 0x3b5   : > { %v3372_v11 = vpop.f32.mrf.mxu3 }
 0x3b6   : > { %v3413_v59 = vadd.f32 %v3372_v11, %v3044_v24 }
 0x3b7   : > { %v2647_v30 = vpop.f32.mrf.mxu1  ;;  %v3611_v14 = vpop.f32.mrf.mxu0 }
 0x3b8   : > { %v3649_v3 = vadd.f32 %v3608_v32, %v3413_v59  ;;  %v2685_v40 = vadd.f32 %v2647_v30, %v2449_v27 }
 0x3ba   : > { %v3689_v42 = vadd.f32 %v4460_v39, %v3649_v3  ;;  %v3046_v46 = vadd.f32 %v3008_v49, %v2685_v40 }
 0x3bc   : > { %3726 = vst.msk [vmem:[%s5609_s26 + $0x108] sm:$0xff] %vm3692_vm10, %v3689_v42 }
 0x3bd   : > { %v3375_v4 = vpop.f32.mrf.mxu3 }
 0x3be   : > { %v3414_v22 = vadd.f32 %v3375_v4, %v3045_v0 }
 0x3bf   : > { %v3613_v57 = vpop.f32.mrf.mxu0 }
 0x3c0   : > { %v3650_v9 = vadd.f32 %v3611_v14, %v3414_v22 }
 0x3c2   : > { %v3690_v8 = vadd.f32 %v4460_v39, %v3650_v9 }
 0x3c4   : > { %3727 = vst.msk [vmem:[%s5609_s26 + $0x110] sm:$0xff] %vm3692_vm10, %v3690_v8 }
 0x3c5   : > { %v3377_v33 = vpop.f32.mrf.mxu3 }
 0x3c6   : > { %v3415_v58 = vadd.f32 %v3377_v33, %v3046_v46 }
 0x3c8   : > { %v3651_v50 = vadd.f32 %v3613_v57, %v3415_v58 }
 0x3ca   : > { %v3691_v60 = vadd.f32 %v4460_v39, %v3651_v50 }
 0x3cc   : > { %3729 = vst.msk [vmem:[%s5609_s26 + $0x118] sm:$0x3f] %vm3728_vm11, %v3691_v60 }
 0x3cd PF: > { %s16_s21 = sadd.s32 1, %s4467_s21  }
 0x3ce   : > { %p13_p4 = scmp.ge.s32.totalorder %s16_s21, 4  }
 0x3d0   :  { %15 = sbr.rel (!%p13_p4) target bundleno = 1 (0x1), region = 82 }

</bundles_post_ra>
